<compile_context>
chip_gen: v6e
topology: v6e:2x2x1
jax: 0.10.0
libtpu: 0.0.40
codegen_flags: <defaults>
</compile_context>

<pallas_src>
import math

import jax
import jax.numpy as jnp
from jax.experimental import pallas as pl
from jax.experimental.pallas import tpu as pltpu

D_MODEL = 128          # hardcoded in the module (nn.Linear(input_size, 128))
D_FF = 2048            # nn.TransformerEncoderLayer default dim_feedforward
NUM_LAYERS = 6
LN_EPS = 1e-5          # nn.LayerNorm default eps
PAD_B = 8              # pad batch to a full sublane group
PAD_C = 128            # pad classifier output to a full lane group


def _layernorm(x, w, b):
    mean = jnp.mean(x, axis=-1, keepdims=True)
    var = jnp.mean(jnp.square(x - mean), axis=-1, keepdims=True)
    return (x - mean) * jax.lax.rsqrt(var + LN_EPS) * w + b


def transformer_kernel(x_ref, we_ref, be_ref,
                       wvo_ref, bvo_ref, ln1w_ref, ln1b_ref,
                       w1_ref, b1_ref, w2_ref, b2_ref,
                       ln2w_ref, ln2b_ref,
                       wfc_ref, bfc_ref, out_ref):
    # Embedding + positional encoding (pe at position 0 is pre-folded into be).
    e = jnp.dot(x_ref[...], we_ref[...],
                preferred_element_type=jnp.float32) + be_ref[...]

    # Unrolled encoder layers; activation 'e' lives in vregs (f32).
    for l in range(NUM_LAYERS):
        # seq_len == 1 -> attention weight is exactly 1, so self-attention is
        # out_proj(value_proj(e)); W_vo / b_vo are host-fused.
        attn = jnp.dot(e.astype(jnp.bfloat16), wvo_ref[l],
                       preferred_element_type=jnp.float32) + bvo_ref[l]
        e = _layernorm(e + attn, ln1w_ref[l], ln1b_ref[l])

        # Feed-forward block (128 -> 2048 -> 128, ReLU). bf16 weights, f32 acc.
        h = jnp.maximum(
            jnp.dot(e.astype(jnp.bfloat16), w1_ref[l],
                    preferred_element_type=jnp.float32) + b1_ref[l], 0.0)
        f = jnp.dot(h.astype(jnp.bfloat16), w2_ref[l],
                    preferred_element_type=jnp.float32) + b2_ref[l]
        e = _layernorm(e + f, ln2w_ref[l], ln2b_ref[l])

    # Mean over seq dim (length 1) is identity; final fc (output lane-padded).
    out_ref[...] = jnp.dot(e, wfc_ref[...],
                           preferred_element_type=jnp.float32) + bfc_ref[...]


def transformer_forward(x, params, num_classes):
    B, input_size = x.shape
    x_pad = jnp.zeros((PAD_B, input_size), jnp.float32).at[:B].set(x)

    def full(arr):
        nd = arr.ndim
        return pl.BlockSpec(arr.shape, lambda i, nd=nd: (0,) * nd)

    args = (x_pad, params["we_t"], params["be_eff"],
            params["wvo"], params["bvo"], params["ln1w"], params["ln1b"],
            params["w1_t"], params["b1"], params["w2_t"], params["b2"],
            params["ln2w"], params["ln2b"],
            params["wfc_t"], params["bfc"])

    out = pl.pallas_call(
        transformer_kernel,
        out_shape=jax.ShapeDtypeStruct((PAD_B, PAD_C), jnp.float32),
        grid=(1,),
        in_specs=[full(a) for a in args],
        out_specs=pl.BlockSpec((PAD_B, PAD_C), lambda i: (0, 0)),
        compiler_params=pltpu.CompilerParams(
            dimension_semantics=("arbitrary",),
            vmem_limit_bytes=32 * 1024 * 1024),
    )(*args)
    return out[:B, :num_classes]


def init_params(key, input_size, num_classes):
    """Deterministic synthetic parameters (PyTorch-Linear-style uniform init),
    with the seq_len==1 fusions (W_vo, b_vo, be+pe0) and bf16 storage for the
    large matrices applied host-side."""
    def linear(k, fan_in, fan_out):
        kw, kb = jax.random.split(k)
        bound = 1.0 / math.sqrt(fan_in)
        # stored pre-transposed: y = x @ w_t + b
        w_t = jax.random.uniform(kw, (fan_in, fan_out), jnp.float32, -bound, bound)
        b = jax.random.uniform(kb, (1, fan_out), jnp.float32, -bound, bound)
        return w_t, b

    keys = jax.random.split(key, 2 + 4 * NUM_LAYERS)
    we_t, be = linear(keys[0], input_size, D_MODEL)
    wfc_t, bfc = linear(keys[1], D_MODEL, num_classes)

    # Positional encoding row for position 0 (same formula as PositionalEncoding),
    # folded directly into the embedding bias.
    div_term = jnp.exp(jnp.arange(0, D_MODEL, 2, dtype=jnp.float32)
                       * -(math.log(10000.0) / D_MODEL))
    pe = jnp.zeros((D_MODEL,), jnp.float32)
    pe = pe.at[0::2].set(jnp.sin(0.0 * div_term))
    pe = pe.at[1::2].set(jnp.cos(0.0 * div_term))
    be_eff = be + pe.reshape(1, D_MODEL)

    wvo, bvo, w1_t, b1, w2_t, b2 = [], [], [], [], [], []
    for i in range(NUM_LAYERS):
        k0, k1, k2, k3 = keys[2 + 4 * i: 2 + 4 * (i + 1)]
        wv, bv_ = linear(k0, D_MODEL, D_MODEL)   # value projection
        wo, bo_ = linear(k1, D_MODEL, D_MODEL)   # attention out projection
        wvo.append(wv @ wo)                      # exact fusion (seq_len == 1)
        bvo.append(bv_ @ wo + bo_)
        w, b = linear(k2, D_MODEL, D_FF); w1_t.append(w); b1.append(b)
        w, b = linear(k3, D_FF, D_MODEL); w2_t.append(w); b2.append(b)

    stack = lambda xs: jnp.stack(xs, axis=0)
    ones = jnp.ones((NUM_LAYERS, 1, D_MODEL), jnp.float32)
    zeros = jnp.zeros((NUM_LAYERS, 1, D_MODEL), jnp.float32)

    # Classifier weights padded to 128 output lanes (extra columns are zero).
    wfc_pad = jnp.zeros((D_MODEL, PAD_C), jnp.float32).at[:, :num_classes].set(wfc_t)
    bfc_pad = jnp.zeros((1, PAD_C), jnp.float32).at[:, :num_classes].set(bfc)

    return dict(
        we_t=we_t, be_eff=be_eff,
        wvo=stack(wvo).astype(jnp.bfloat16), bvo=stack(bvo),
        ln1w=ones, ln1b=zeros,
        w1_t=stack(w1_t).astype(jnp.bfloat16), b1=stack(b1),
        w2_t=stack(w2_t).astype(jnp.bfloat16), b2=stack(b2),
        ln2w=ones, ln2b=zeros,
        wfc_t=wfc_pad, bfc=bfc_pad,
    )


def reference_forward(x, params, num_classes):
    """Pure-JAX reference with identical arithmetic (bf16 MXU inputs, f32 acc)."""
    e = x @ params["we_t"] + params["be_eff"]
    for i in range(NUM_LAYERS):
        attn = jnp.dot(e.astype(jnp.bfloat16), params["wvo"][i],
                       preferred_element_type=jnp.float32) + params["bvo"][i]
        e = _layernorm(e + attn, params["ln1w"][i], params["ln1b"][i])
        h = jnp.maximum(
            jnp.dot(e.astype(jnp.bfloat16), params["w1_t"][i],
                    preferred_element_type=jnp.float32) + params["b1"][i], 0.0)
        f = jnp.dot(h.astype(jnp.bfloat16), params["w2_t"][i],
                    preferred_element_type=jnp.float32) + params["b2"][i]
        e = _layernorm(e + f, params["ln2w"][i], params["ln2b"][i])
    out = e @ params["wfc_t"] + params["bfc"]
    return out[:, :num_classes]


# TODO(synk): dropout layers are omitted (eval-mode / inference semantics).

if __name__ == "__main__":
    B, INPUT_SIZE, NUM_CLASSES = 2, 32, 10
    key = jax.random.PRNGKey(0)
    pkey, xkey = jax.random.split(key)
    params = init_params(pkey, INPUT_SIZE, NUM_CLASSES)
    x = jax.random.normal(xkey, (B, INPUT_SIZE), jnp.float32)

    out = transformer_forward(x, params, NUM_CLASSES)
    out = jax.block_until_ready(out)
    assert out.shape == (B, NUM_CLASSES), out.shape

    ref = reference_forward(x, params, NUM_CLASSES)
    assert bool(jnp.allclose(out, ref, atol=2e-2, rtol=2e-2)), (
        f"mismatch: max abs diff = {float(jnp.max(jnp.abs(out - ref)))}")

    print("KERNEL_OK")
</pallas_src>

<mosaic_0001>
module attributes {stable_mosaic.version = 11 : i64} {
  func.func @transformer_kernel(%arg0: i32, %arg1: memref<8x32xf32, #tpu.memory_space<vmem>>, %arg2: memref<32x128xf32, #tpu.memory_space<vmem>>, %arg3: memref<1x128xf32, #tpu.memory_space<vmem>>, %arg4: memref<6x128x128xbf16, #tpu.memory_space<vmem>>, %arg5: memref<6x1x128xf32, #tpu.memory_space<vmem>>, %arg6: memref<6x1x128xf32, #tpu.memory_space<vmem>>, %arg7: memref<6x1x128xf32, #tpu.memory_space<vmem>>, %arg8: memref<6x128x2048xbf16, #tpu.memory_space<vmem>>, %arg9: memref<6x1x2048xf32, #tpu.memory_space<vmem>>, %arg10: memref<6x2048x128xbf16, #tpu.memory_space<vmem>>, %arg11: memref<6x1x128xf32, #tpu.memory_space<vmem>>, %arg12: memref<6x1x128xf32, #tpu.memory_space<vmem>>, %arg13: memref<6x1x128xf32, #tpu.memory_space<vmem>>, %arg14: memref<128x128xf32, #tpu.memory_space<vmem>>, %arg15: memref<1x128xf32, #tpu.memory_space<vmem>>, %arg16: memref<8x128xf32, #tpu.memory_space<vmem>>) attributes {dimension_semantics = [#tpu.dimension_semantics<arbitrary>], iteration_bounds = array<i64: 1>, scalar_prefetch = 0 : i64, scratch_operands = 0 : i64, tpu.core_type = #tpu.core_type<tc>, window_params = [{pipeline_mode = #tpu.pipeline_mode<synchronous>, transform_indices = @transform_0, window_bounds = array<i64: 8, 32>}, {pipeline_mode = #tpu.pipeline_mode<synchronous>, transform_indices = @transform_1, window_bounds = array<i64: 32, 128>}, {pipeline_mode = #tpu.pipeline_mode<synchronous>, transform_indices = @transform_2, window_bounds = array<i64: 1, 128>}, {pipeline_mode = #tpu.pipeline_mode<synchronous>, transform_indices = @transform_3, window_bounds = array<i64: 6, 128, 128>}, {pipeline_mode = #tpu.pipeline_mode<synchronous>, transform_indices = @transform_4, window_bounds = array<i64: 6, 1, 128>}, {pipeline_mode = #tpu.pipeline_mode<synchronous>, transform_indices = @transform_5, window_bounds = array<i64: 6, 1, 128>}, {pipeline_mode = #tpu.pipeline_mode<synchronous>, transform_indices = @transform_6, window_bounds = array<i64: 6, 1, 128>}, {pipeline_mode = #tpu.pipeline_mode<synchronous>, transform_indices = @transform_7, window_bounds = array<i64: 6, 128, 2048>}, {pipeline_mode = #tpu.pipeline_mode<synchronous>, transform_indices = @transform_8, window_bounds = array<i64: 6, 1, 2048>}, {pipeline_mode = #tpu.pipeline_mode<synchronous>, transform_indices = @transform_9, window_bounds = array<i64: 6, 2048, 128>}, {pipeline_mode = #tpu.pipeline_mode<synchronous>, transform_indices = @transform_10, window_bounds = array<i64: 6, 1, 128>}, {pipeline_mode = #tpu.pipeline_mode<synchronous>, transform_indices = @transform_11, window_bounds = array<i64: 6, 1, 128>}, {pipeline_mode = #tpu.pipeline_mode<synchronous>, transform_indices = @transform_12, window_bounds = array<i64: 6, 1, 128>}, {pipeline_mode = #tpu.pipeline_mode<synchronous>, transform_indices = @transform_13, window_bounds = array<i64: 128, 128>}, {pipeline_mode = #tpu.pipeline_mode<synchronous>, transform_indices = @transform_14, window_bounds = array<i64: 1, 128>}, {pipeline_mode = #tpu.pipeline_mode<synchronous>, transform_indices = @transform_15, window_bounds = array<i64: 8, 128>}]} {
    %c0 = arith.constant 0 : index
    %c0_0 = arith.constant 0 : index
    %0 = vector.load %arg1[%c0, %c0_0] : memref<8x32xf32, #tpu.memory_space<vmem>>, vector<8x32xf32>
    %c0_1 = arith.constant 0 : index
    %c0_2 = arith.constant 0 : index
    %1 = vector.load %arg2[%c0_1, %c0_2] : memref<32x128xf32, #tpu.memory_space<vmem>>, vector<32x128xf32>
    %cst = arith.constant dense<0.000000e+00> : vector<8x128xf32>
    %2 = tpu.matmul %0, %1, %cst {dimension_numbers = #tpu.dot_dimension_numbers<[1], [0], [0], [1], [0, 0, 1, 1], [], []>} : vector<8x32xf32>, vector<32x128xf32>, vector<8x128xf32> -> vector<8x128xf32>
    %c0_3 = arith.constant 0 : index
    %c0_4 = arith.constant 0 : index
    %3 = vector.load %arg3[%c0_3, %c0_4] : memref<1x128xf32, #tpu.memory_space<vmem>>, vector<1x128xf32>
    %4 = vector.broadcast %3 : vector<1x128xf32> to vector<8x128xf32>
    %5 = arith.addf %2, %4 : vector<8x128xf32>
    %6 = arith.truncf %5 : vector<8x128xf32> to vector<8x128xbf16>
    %c0_5 = arith.constant 0 : index
    %c0_6 = arith.constant 0 : index
    %c0_7 = arith.constant 0 : index
    %7 = vector.load %arg4[%c0_5, %c0_6, %c0_7] : memref<6x128x128xbf16, #tpu.memory_space<vmem>>, vector<1x128x128xbf16>
    %8 = vector.shape_cast %7 : vector<1x128x128xbf16> to vector<128x128xbf16>
    %cst_8 = arith.constant dense<0.000000e+00> : vector<8x128xf32>
    %9 = tpu.matmul %6, %8, %cst_8 {dimension_numbers = #tpu.dot_dimension_numbers<[1], [0], [0], [1], [0, 0, 1, 1], [], []>} : vector<8x128xbf16>, vector<128x128xbf16>, vector<8x128xf32> -> vector<8x128xf32>
    %c0_9 = arith.constant 0 : index
    %c0_10 = arith.constant 0 : index
    %c0_11 = arith.constant 0 : index
    %10 = vector.load %arg5[%c0_9, %c0_10, %c0_11] : memref<6x1x128xf32, #tpu.memory_space<vmem>>, vector<1x1x128xf32>
    %11 = vector.shape_cast %10 : vector<1x1x128xf32> to vector<1x128xf32>
    %12 = vector.broadcast %11 : vector<1x128xf32> to vector<8x128xf32>
    %13 = arith.addf %9, %12 : vector<8x128xf32>
    %14 = arith.addf %5, %13 : vector<8x128xf32>
    %c0_12 = arith.constant 0 : index
    %c0_13 = arith.constant 0 : index
    %c0_14 = arith.constant 0 : index
    %15 = vector.load %arg6[%c0_12, %c0_13, %c0_14] : memref<6x1x128xf32, #tpu.memory_space<vmem>>, vector<1x1x128xf32>
    %16 = vector.shape_cast %15 : vector<1x1x128xf32> to vector<1x128xf32>
    %c0_15 = arith.constant 0 : index
    %c0_16 = arith.constant 0 : index
    %c0_17 = arith.constant 0 : index
    %17 = vector.load %arg7[%c0_15, %c0_16, %c0_17] : memref<6x1x128xf32, #tpu.memory_space<vmem>>, vector<1x1x128xf32>
    %18 = vector.shape_cast %17 : vector<1x1x128xf32> to vector<1x128xf32>
    %cst_18 = arith.constant dense<0.000000e+00> : vector<8xf32>
    %19 = vector.multi_reduction <add>, %14, %cst_18 [1] : vector<8x128xf32> to vector<8xf32>
    %20 = vector.shape_cast %19 : vector<8xf32> to vector<8x1xf32>
    %cst_19 = arith.constant 1.280000e+02 : f32
    %21 = vector.broadcast %cst_19 : f32 to vector<8x1xf32>
    %22 = arith.divf %20, %21 : vector<8x1xf32>
    %23 = vector.broadcast %22 : vector<8x1xf32> to vector<8x128xf32>
    %24 = arith.subf %14, %23 : vector<8x128xf32>
    %25 = arith.mulf %24, %24 : vector<8x128xf32>
    %cst_20 = arith.constant dense<0.000000e+00> : vector<8xf32>
    %26 = vector.multi_reduction <add>, %25, %cst_20 [1] : vector<8x128xf32> to vector<8xf32>
    %27 = vector.shape_cast %26 : vector<8xf32> to vector<8x1xf32>
    %cst_21 = arith.constant 1.280000e+02 : f32
    %28 = vector.broadcast %cst_21 : f32 to vector<8x1xf32>
    %29 = arith.divf %27, %28 : vector<8x1xf32>
    %30 = vector.broadcast %22 : vector<8x1xf32> to vector<8x128xf32>
    %31 = arith.subf %14, %30 : vector<8x128xf32>
    %cst_22 = arith.constant 9.99999974E-6 : f32
    %32 = vector.broadcast %cst_22 : f32 to vector<8x1xf32>
    %33 = arith.addf %29, %32 : vector<8x1xf32>
    %34 = math.rsqrt %33 : vector<8x1xf32>
    %35 = vector.broadcast %34 : vector<8x1xf32> to vector<8x128xf32>
    %36 = arith.mulf %31, %35 : vector<8x128xf32>
    %37 = vector.broadcast %16 : vector<1x128xf32> to vector<8x128xf32>
    %38 = arith.mulf %36, %37 : vector<8x128xf32>
    %39 = vector.broadcast %18 : vector<1x128xf32> to vector<8x128xf32>
    %40 = arith.addf %38, %39 : vector<8x128xf32>
    %41 = arith.truncf %40 : vector<8x128xf32> to vector<8x128xbf16>
    %c0_23 = arith.constant 0 : index
    %c0_24 = arith.constant 0 : index
    %c0_25 = arith.constant 0 : index
    %42 = vector.load %arg8[%c0_23, %c0_24, %c0_25] : memref<6x128x2048xbf16, #tpu.memory_space<vmem>>, vector<1x128x2048xbf16>
    %43 = vector.shape_cast %42 : vector<1x128x2048xbf16> to vector<128x2048xbf16>
    %cst_26 = arith.constant dense<0.000000e+00> : vector<8x2048xf32>
    %44 = tpu.matmul %41, %43, %cst_26 {dimension_numbers = #tpu.dot_dimension_numbers<[1], [0], [0], [1], [0, 0, 1, 1], [], []>} : vector<8x128xbf16>, vector<128x2048xbf16>, vector<8x2048xf32> -> vector<8x2048xf32>
    %c0_27 = arith.constant 0 : index
    %c0_28 = arith.constant 0 : index
    %c0_29 = arith.constant 0 : index
    %45 = vector.load %arg9[%c0_27, %c0_28, %c0_29] : memref<6x1x2048xf32, #tpu.memory_space<vmem>>, vector<1x1x2048xf32>
    %46 = vector.shape_cast %45 : vector<1x1x2048xf32> to vector<1x2048xf32>
    %47 = vector.broadcast %46 : vector<1x2048xf32> to vector<8x2048xf32>
    %48 = arith.addf %44, %47 : vector<8x2048xf32>
    %cst_30 = arith.constant 0.000000e+00 : f32
    %49 = vector.broadcast %cst_30 : f32 to vector<8x2048xf32>
    %50 = arith.maximumf %48, %49 : vector<8x2048xf32>
    %51 = arith.truncf %50 : vector<8x2048xf32> to vector<8x2048xbf16>
    %c0_31 = arith.constant 0 : index
    %c0_32 = arith.constant 0 : index
    %c0_33 = arith.constant 0 : index
    %52 = vector.load %arg10[%c0_31, %c0_32, %c0_33] : memref<6x2048x128xbf16, #tpu.memory_space<vmem>>, vector<1x2048x128xbf16>
    %53 = vector.shape_cast %52 : vector<1x2048x128xbf16> to vector<2048x128xbf16>
    %cst_34 = arith.constant dense<0.000000e+00> : vector<8x128xf32>
    %54 = tpu.matmul %51, %53, %cst_34 {dimension_numbers = #tpu.dot_dimension_numbers<[1], [0], [0], [1], [0, 0, 1, 1], [], []>} : vector<8x2048xbf16>, vector<2048x128xbf16>, vector<8x128xf32> -> vector<8x128xf32>
    %c0_35 = arith.constant 0 : index
    %c0_36 = arith.constant 0 : index
    %c0_37 = arith.constant 0 : index
    %55 = vector.load %arg11[%c0_35, %c0_36, %c0_37] : memref<6x1x128xf32, #tpu.memory_space<vmem>>, vector<1x1x128xf32>
    %56 = vector.shape_cast %55 : vector<1x1x128xf32> to vector<1x128xf32>
    %57 = vector.broadcast %56 : vector<1x128xf32> to vector<8x128xf32>
    %58 = arith.addf %54, %57 : vector<8x128xf32>
    %59 = arith.addf %40, %58 : vector<8x128xf32>
    %c0_38 = arith.constant 0 : index
    %c0_39 = arith.constant 0 : index
    %c0_40 = arith.constant 0 : index
    %60 = vector.load %arg12[%c0_38, %c0_39, %c0_40] : memref<6x1x128xf32, #tpu.memory_space<vmem>>, vector<1x1x128xf32>
    %61 = vector.shape_cast %60 : vector<1x1x128xf32> to vector<1x128xf32>
    %c0_41 = arith.constant 0 : index
    %c0_42 = arith.constant 0 : index
    %c0_43 = arith.constant 0 : index
    %62 = vector.load %arg13[%c0_41, %c0_42, %c0_43] : memref<6x1x128xf32, #tpu.memory_space<vmem>>, vector<1x1x128xf32>
    %63 = vector.shape_cast %62 : vector<1x1x128xf32> to vector<1x128xf32>
    %cst_44 = arith.constant dense<0.000000e+00> : vector<8xf32>
    %64 = vector.multi_reduction <add>, %59, %cst_44 [1] : vector<8x128xf32> to vector<8xf32>
    %65 = vector.shape_cast %64 : vector<8xf32> to vector<8x1xf32>
    %cst_45 = arith.constant 1.280000e+02 : f32
    %66 = vector.broadcast %cst_45 : f32 to vector<8x1xf32>
    %67 = arith.divf %65, %66 : vector<8x1xf32>
    %68 = vector.broadcast %67 : vector<8x1xf32> to vector<8x128xf32>
    %69 = arith.subf %59, %68 : vector<8x128xf32>
    %70 = arith.mulf %69, %69 : vector<8x128xf32>
    %cst_46 = arith.constant dense<0.000000e+00> : vector<8xf32>
    %71 = vector.multi_reduction <add>, %70, %cst_46 [1] : vector<8x128xf32> to vector<8xf32>
    %72 = vector.shape_cast %71 : vector<8xf32> to vector<8x1xf32>
    %cst_47 = arith.constant 1.280000e+02 : f32
    %73 = vector.broadcast %cst_47 : f32 to vector<8x1xf32>
    %74 = arith.divf %72, %73 : vector<8x1xf32>
    %75 = vector.broadcast %67 : vector<8x1xf32> to vector<8x128xf32>
    %76 = arith.subf %59, %75 : vector<8x128xf32>
    %cst_48 = arith.constant 9.99999974E-6 : f32
    %77 = vector.broadcast %cst_48 : f32 to vector<8x1xf32>
    %78 = arith.addf %74, %77 : vector<8x1xf32>
    %79 = math.rsqrt %78 : vector<8x1xf32>
    %80 = vector.broadcast %79 : vector<8x1xf32> to vector<8x128xf32>
    %81 = arith.mulf %76, %80 : vector<8x128xf32>
    %82 = vector.broadcast %61 : vector<1x128xf32> to vector<8x128xf32>
    %83 = arith.mulf %81, %82 : vector<8x128xf32>
    %84 = vector.broadcast %63 : vector<1x128xf32> to vector<8x128xf32>
    %85 = arith.addf %83, %84 : vector<8x128xf32>
    %86 = arith.truncf %85 : vector<8x128xf32> to vector<8x128xbf16>
    %c1 = arith.constant 1 : index
    %c0_49 = arith.constant 0 : index
    %c0_50 = arith.constant 0 : index
    %87 = vector.load %arg4[%c1, %c0_49, %c0_50] : memref<6x128x128xbf16, #tpu.memory_space<vmem>>, vector<1x128x128xbf16>
    %88 = vector.shape_cast %87 : vector<1x128x128xbf16> to vector<128x128xbf16>
    %cst_51 = arith.constant dense<0.000000e+00> : vector<8x128xf32>
    %89 = tpu.matmul %86, %88, %cst_51 {dimension_numbers = #tpu.dot_dimension_numbers<[1], [0], [0], [1], [0, 0, 1, 1], [], []>} : vector<8x128xbf16>, vector<128x128xbf16>, vector<8x128xf32> -> vector<8x128xf32>
    %c1_52 = arith.constant 1 : index
    %c0_53 = arith.constant 0 : index
    %c0_54 = arith.constant 0 : index
    %90 = vector.load %arg5[%c1_52, %c0_53, %c0_54] : memref<6x1x128xf32, #tpu.memory_space<vmem>>, vector<1x1x128xf32>
    %91 = vector.shape_cast %90 : vector<1x1x128xf32> to vector<1x128xf32>
    %92 = vector.broadcast %91 : vector<1x128xf32> to vector<8x128xf32>
    %93 = arith.addf %89, %92 : vector<8x128xf32>
    %94 = arith.addf %85, %93 : vector<8x128xf32>
    %c1_55 = arith.constant 1 : index
    %c0_56 = arith.constant 0 : index
    %c0_57 = arith.constant 0 : index
    %95 = vector.load %arg6[%c1_55, %c0_56, %c0_57] : memref<6x1x128xf32, #tpu.memory_space<vmem>>, vector<1x1x128xf32>
    %96 = vector.shape_cast %95 : vector<1x1x128xf32> to vector<1x128xf32>
    %c1_58 = arith.constant 1 : index
    %c0_59 = arith.constant 0 : index
    %c0_60 = arith.constant 0 : index
    %97 = vector.load %arg7[%c1_58, %c0_59, %c0_60] : memref<6x1x128xf32, #tpu.memory_space<vmem>>, vector<1x1x128xf32>
    %98 = vector.shape_cast %97 : vector<1x1x128xf32> to vector<1x128xf32>
    %cst_61 = arith.constant dense<0.000000e+00> : vector<8xf32>
    %99 = vector.multi_reduction <add>, %94, %cst_61 [1] : vector<8x128xf32> to vector<8xf32>
    %100 = vector.shape_cast %99 : vector<8xf32> to vector<8x1xf32>
    %cst_62 = arith.constant 1.280000e+02 : f32
    %101 = vector.broadcast %cst_62 : f32 to vector<8x1xf32>
    %102 = arith.divf %100, %101 : vector<8x1xf32>
    %103 = vector.broadcast %102 : vector<8x1xf32> to vector<8x128xf32>
    %104 = arith.subf %94, %103 : vector<8x128xf32>
    %105 = arith.mulf %104, %104 : vector<8x128xf32>
    %cst_63 = arith.constant dense<0.000000e+00> : vector<8xf32>
    %106 = vector.multi_reduction <add>, %105, %cst_63 [1] : vector<8x128xf32> to vector<8xf32>
    %107 = vector.shape_cast %106 : vector<8xf32> to vector<8x1xf32>
    %cst_64 = arith.constant 1.280000e+02 : f32
    %108 = vector.broadcast %cst_64 : f32 to vector<8x1xf32>
    %109 = arith.divf %107, %108 : vector<8x1xf32>
    %110 = vector.broadcast %102 : vector<8x1xf32> to vector<8x128xf32>
    %111 = arith.subf %94, %110 : vector<8x128xf32>
    %cst_65 = arith.constant 9.99999974E-6 : f32
    %112 = vector.broadcast %cst_65 : f32 to vector<8x1xf32>
    %113 = arith.addf %109, %112 : vector<8x1xf32>
    %114 = math.rsqrt %113 : vector<8x1xf32>
    %115 = vector.broadcast %114 : vector<8x1xf32> to vector<8x128xf32>
    %116 = arith.mulf %111, %115 : vector<8x128xf32>
    %117 = vector.broadcast %96 : vector<1x128xf32> to vector<8x128xf32>
    %118 = arith.mulf %116, %117 : vector<8x128xf32>
    %119 = vector.broadcast %98 : vector<1x128xf32> to vector<8x128xf32>
    %120 = arith.addf %118, %119 : vector<8x128xf32>
    %121 = arith.truncf %120 : vector<8x128xf32> to vector<8x128xbf16>
    %c1_66 = arith.constant 1 : index
    %c0_67 = arith.constant 0 : index
    %c0_68 = arith.constant 0 : index
    %122 = vector.load %arg8[%c1_66, %c0_67, %c0_68] : memref<6x128x2048xbf16, #tpu.memory_space<vmem>>, vector<1x128x2048xbf16>
    %123 = vector.shape_cast %122 : vector<1x128x2048xbf16> to vector<128x2048xbf16>
    %cst_69 = arith.constant dense<0.000000e+00> : vector<8x2048xf32>
    %124 = tpu.matmul %121, %123, %cst_69 {dimension_numbers = #tpu.dot_dimension_numbers<[1], [0], [0], [1], [0, 0, 1, 1], [], []>} : vector<8x128xbf16>, vector<128x2048xbf16>, vector<8x2048xf32> -> vector<8x2048xf32>
    %c1_70 = arith.constant 1 : index
    %c0_71 = arith.constant 0 : index
    %c0_72 = arith.constant 0 : index
    %125 = vector.load %arg9[%c1_70, %c0_71, %c0_72] : memref<6x1x2048xf32, #tpu.memory_space<vmem>>, vector<1x1x2048xf32>
    %126 = vector.shape_cast %125 : vector<1x1x2048xf32> to vector<1x2048xf32>
    %127 = vector.broadcast %126 : vector<1x2048xf32> to vector<8x2048xf32>
    %128 = arith.addf %124, %127 : vector<8x2048xf32>
    %cst_73 = arith.constant 0.000000e+00 : f32
    %129 = vector.broadcast %cst_73 : f32 to vector<8x2048xf32>
    %130 = arith.maximumf %128, %129 : vector<8x2048xf32>
    %131 = arith.truncf %130 : vector<8x2048xf32> to vector<8x2048xbf16>
    %c1_74 = arith.constant 1 : index
    %c0_75 = arith.constant 0 : index
    %c0_76 = arith.constant 0 : index
    %132 = vector.load %arg10[%c1_74, %c0_75, %c0_76] : memref<6x2048x128xbf16, #tpu.memory_space<vmem>>, vector<1x2048x128xbf16>
    %133 = vector.shape_cast %132 : vector<1x2048x128xbf16> to vector<2048x128xbf16>
    %cst_77 = arith.constant dense<0.000000e+00> : vector<8x128xf32>
    %134 = tpu.matmul %131, %133, %cst_77 {dimension_numbers = #tpu.dot_dimension_numbers<[1], [0], [0], [1], [0, 0, 1, 1], [], []>} : vector<8x2048xbf16>, vector<2048x128xbf16>, vector<8x128xf32> -> vector<8x128xf32>
    %c1_78 = arith.constant 1 : index
    %c0_79 = arith.constant 0 : index
    %c0_80 = arith.constant 0 : index
    %135 = vector.load %arg11[%c1_78, %c0_79, %c0_80] : memref<6x1x128xf32, #tpu.memory_space<vmem>>, vector<1x1x128xf32>
    %136 = vector.shape_cast %135 : vector<1x1x128xf32> to vector<1x128xf32>
    %137 = vector.broadcast %136 : vector<1x128xf32> to vector<8x128xf32>
    %138 = arith.addf %134, %137 : vector<8x128xf32>
    %139 = arith.addf %120, %138 : vector<8x128xf32>
    %c1_81 = arith.constant 1 : index
    %c0_82 = arith.constant 0 : index
    %c0_83 = arith.constant 0 : index
    %140 = vector.load %arg12[%c1_81, %c0_82, %c0_83] : memref<6x1x128xf32, #tpu.memory_space<vmem>>, vector<1x1x128xf32>
    %141 = vector.shape_cast %140 : vector<1x1x128xf32> to vector<1x128xf32>
    %c1_84 = arith.constant 1 : index
    %c0_85 = arith.constant 0 : index
    %c0_86 = arith.constant 0 : index
    %142 = vector.load %arg13[%c1_84, %c0_85, %c0_86] : memref<6x1x128xf32, #tpu.memory_space<vmem>>, vector<1x1x128xf32>
    %143 = vector.shape_cast %142 : vector<1x1x128xf32> to vector<1x128xf32>
    %cst_87 = arith.constant dense<0.000000e+00> : vector<8xf32>
    %144 = vector.multi_reduction <add>, %139, %cst_87 [1] : vector<8x128xf32> to vector<8xf32>
    %145 = vector.shape_cast %144 : vector<8xf32> to vector<8x1xf32>
    %cst_88 = arith.constant 1.280000e+02 : f32
    %146 = vector.broadcast %cst_88 : f32 to vector<8x1xf32>
    %147 = arith.divf %145, %146 : vector<8x1xf32>
    %148 = vector.broadcast %147 : vector<8x1xf32> to vector<8x128xf32>
    %149 = arith.subf %139, %148 : vector<8x128xf32>
    %150 = arith.mulf %149, %149 : vector<8x128xf32>
    %cst_89 = arith.constant dense<0.000000e+00> : vector<8xf32>
    %151 = vector.multi_reduction <add>, %150, %cst_89 [1] : vector<8x128xf32> to vector<8xf32>
    %152 = vector.shape_cast %151 : vector<8xf32> to vector<8x1xf32>
    %cst_90 = arith.constant 1.280000e+02 : f32
    %153 = vector.broadcast %cst_90 : f32 to vector<8x1xf32>
    %154 = arith.divf %152, %153 : vector<8x1xf32>
    %155 = vector.broadcast %147 : vector<8x1xf32> to vector<8x128xf32>
    %156 = arith.subf %139, %155 : vector<8x128xf32>
    %cst_91 = arith.constant 9.99999974E-6 : f32
    %157 = vector.broadcast %cst_91 : f32 to vector<8x1xf32>
    %158 = arith.addf %154, %157 : vector<8x1xf32>
    %159 = math.rsqrt %158 : vector<8x1xf32>
    %160 = vector.broadcast %159 : vector<8x1xf32> to vector<8x128xf32>
    %161 = arith.mulf %156, %160 : vector<8x128xf32>
    %162 = vector.broadcast %141 : vector<1x128xf32> to vector<8x128xf32>
    %163 = arith.mulf %161, %162 : vector<8x128xf32>
    %164 = vector.broadcast %143 : vector<1x128xf32> to vector<8x128xf32>
    %165 = arith.addf %163, %164 : vector<8x128xf32>
    %166 = arith.truncf %165 : vector<8x128xf32> to vector<8x128xbf16>
    %c2 = arith.constant 2 : index
    %c0_92 = arith.constant 0 : index
    %c0_93 = arith.constant 0 : index
    %167 = vector.load %arg4[%c2, %c0_92, %c0_93] : memref<6x128x128xbf16, #tpu.memory_space<vmem>>, vector<1x128x128xbf16>
    %168 = vector.shape_cast %167 : vector<1x128x128xbf16> to vector<128x128xbf16>
    %cst_94 = arith.constant dense<0.000000e+00> : vector<8x128xf32>
    %169 = tpu.matmul %166, %168, %cst_94 {dimension_numbers = #tpu.dot_dimension_numbers<[1], [0], [0], [1], [0, 0, 1, 1], [], []>} : vector<8x128xbf16>, vector<128x128xbf16>, vector<8x128xf32> -> vector<8x128xf32>
    %c2_95 = arith.constant 2 : index
    %c0_96 = arith.constant 0 : index
    %c0_97 = arith.constant 0 : index
    %170 = vector.load %arg5[%c2_95, %c0_96, %c0_97] : memref<6x1x128xf32, #tpu.memory_space<vmem>>, vector<1x1x128xf32>
    %171 = vector.shape_cast %170 : vector<1x1x128xf32> to vector<1x128xf32>
    %172 = vector.broadcast %171 : vector<1x128xf32> to vector<8x128xf32>
    %173 = arith.addf %169, %172 : vector<8x128xf32>
    %174 = arith.addf %165, %173 : vector<8x128xf32>
    %c2_98 = arith.constant 2 : index
    %c0_99 = arith.constant 0 : index
    %c0_100 = arith.constant 0 : index
    %175 = vector.load %arg6[%c2_98, %c0_99, %c0_100] : memref<6x1x128xf32, #tpu.memory_space<vmem>>, vector<1x1x128xf32>
    %176 = vector.shape_cast %175 : vector<1x1x128xf32> to vector<1x128xf32>
    %c2_101 = arith.constant 2 : index
    %c0_102 = arith.constant 0 : index
    %c0_103 = arith.constant 0 : index
    %177 = vector.load %arg7[%c2_101, %c0_102, %c0_103] : memref<6x1x128xf32, #tpu.memory_space<vmem>>, vector<1x1x128xf32>
    %178 = vector.shape_cast %177 : vector<1x1x128xf32> to vector<1x128xf32>
    %cst_104 = arith.constant dense<0.000000e+00> : vector<8xf32>
    %179 = vector.multi_reduction <add>, %174, %cst_104 [1] : vector<8x128xf32> to vector<8xf32>
    %180 = vector.shape_cast %179 : vector<8xf32> to vector<8x1xf32>
    %cst_105 = arith.constant 1.280000e+02 : f32
    %181 = vector.broadcast %cst_105 : f32 to vector<8x1xf32>
    %182 = arith.divf %180, %181 : vector<8x1xf32>
    %183 = vector.broadcast %182 : vector<8x1xf32> to vector<8x128xf32>
    %184 = arith.subf %174, %183 : vector<8x128xf32>
    %185 = arith.mulf %184, %184 : vector<8x128xf32>
    %cst_106 = arith.constant dense<0.000000e+00> : vector<8xf32>
    %186 = vector.multi_reduction <add>, %185, %cst_106 [1] : vector<8x128xf32> to vector<8xf32>
    %187 = vector.shape_cast %186 : vector<8xf32> to vector<8x1xf32>
    %cst_107 = arith.constant 1.280000e+02 : f32
    %188 = vector.broadcast %cst_107 : f32 to vector<8x1xf32>
    %189 = arith.divf %187, %188 : vector<8x1xf32>
    %190 = vector.broadcast %182 : vector<8x1xf32> to vector<8x128xf32>
    %191 = arith.subf %174, %190 : vector<8x128xf32>
    %cst_108 = arith.constant 9.99999974E-6 : f32
    %192 = vector.broadcast %cst_108 : f32 to vector<8x1xf32>
    %193 = arith.addf %189, %192 : vector<8x1xf32>
    %194 = math.rsqrt %193 : vector<8x1xf32>
    %195 = vector.broadcast %194 : vector<8x1xf32> to vector<8x128xf32>
    %196 = arith.mulf %191, %195 : vector<8x128xf32>
    %197 = vector.broadcast %176 : vector<1x128xf32> to vector<8x128xf32>
    %198 = arith.mulf %196, %197 : vector<8x128xf32>
    %199 = vector.broadcast %178 : vector<1x128xf32> to vector<8x128xf32>
    %200 = arith.addf %198, %199 : vector<8x128xf32>
    %201 = arith.truncf %200 : vector<8x128xf32> to vector<8x128xbf16>
    %c2_109 = arith.constant 2 : index
    %c0_110 = arith.constant 0 : index
    %c0_111 = arith.constant 0 : index
    %202 = vector.load %arg8[%c2_109, %c0_110, %c0_111] : memref<6x128x2048xbf16, #tpu.memory_space<vmem>>, vector<1x128x2048xbf16>
    %203 = vector.shape_cast %202 : vector<1x128x2048xbf16> to vector<128x2048xbf16>
    %cst_112 = arith.constant dense<0.000000e+00> : vector<8x2048xf32>
    %204 = tpu.matmul %201, %203, %cst_112 {dimension_numbers = #tpu.dot_dimension_numbers<[1], [0], [0], [1], [0, 0, 1, 1], [], []>} : vector<8x128xbf16>, vector<128x2048xbf16>, vector<8x2048xf32> -> vector<8x2048xf32>
    %c2_113 = arith.constant 2 : index
    %c0_114 = arith.constant 0 : index
    %c0_115 = arith.constant 0 : index
    %205 = vector.load %arg9[%c2_113, %c0_114, %c0_115] : memref<6x1x2048xf32, #tpu.memory_space<vmem>>, vector<1x1x2048xf32>
    %206 = vector.shape_cast %205 : vector<1x1x2048xf32> to vector<1x2048xf32>
    %207 = vector.broadcast %206 : vector<1x2048xf32> to vector<8x2048xf32>
    %208 = arith.addf %204, %207 : vector<8x2048xf32>
    %cst_116 = arith.constant 0.000000e+00 : f32
    %209 = vector.broadcast %cst_116 : f32 to vector<8x2048xf32>
    %210 = arith.maximumf %208, %209 : vector<8x2048xf32>
    %211 = arith.truncf %210 : vector<8x2048xf32> to vector<8x2048xbf16>
    %c2_117 = arith.constant 2 : index
    %c0_118 = arith.constant 0 : index
    %c0_119 = arith.constant 0 : index
    %212 = vector.load %arg10[%c2_117, %c0_118, %c0_119] : memref<6x2048x128xbf16, #tpu.memory_space<vmem>>, vector<1x2048x128xbf16>
    %213 = vector.shape_cast %212 : vector<1x2048x128xbf16> to vector<2048x128xbf16>
    %cst_120 = arith.constant dense<0.000000e+00> : vector<8x128xf32>
    %214 = tpu.matmul %211, %213, %cst_120 {dimension_numbers = #tpu.dot_dimension_numbers<[1], [0], [0], [1], [0, 0, 1, 1], [], []>} : vector<8x2048xbf16>, vector<2048x128xbf16>, vector<8x128xf32> -> vector<8x128xf32>
    %c2_121 = arith.constant 2 : index
    %c0_122 = arith.constant 0 : index
    %c0_123 = arith.constant 0 : index
    %215 = vector.load %arg11[%c2_121, %c0_122, %c0_123] : memref<6x1x128xf32, #tpu.memory_space<vmem>>, vector<1x1x128xf32>
    %216 = vector.shape_cast %215 : vector<1x1x128xf32> to vector<1x128xf32>
    %217 = vector.broadcast %216 : vector<1x128xf32> to vector<8x128xf32>
    %218 = arith.addf %214, %217 : vector<8x128xf32>
    %219 = arith.addf %200, %218 : vector<8x128xf32>
    %c2_124 = arith.constant 2 : index
    %c0_125 = arith.constant 0 : index
    %c0_126 = arith.constant 0 : index
    %220 = vector.load %arg12[%c2_124, %c0_125, %c0_126] : memref<6x1x128xf32, #tpu.memory_space<vmem>>, vector<1x1x128xf32>
    %221 = vector.shape_cast %220 : vector<1x1x128xf32> to vector<1x128xf32>
    %c2_127 = arith.constant 2 : index
    %c0_128 = arith.constant 0 : index
    %c0_129 = arith.constant 0 : index
    %222 = vector.load %arg13[%c2_127, %c0_128, %c0_129] : memref<6x1x128xf32, #tpu.memory_space<vmem>>, vector<1x1x128xf32>
    %223 = vector.shape_cast %222 : vector<1x1x128xf32> to vector<1x128xf32>
    %cst_130 = arith.constant dense<0.000000e+00> : vector<8xf32>
    %224 = vector.multi_reduction <add>, %219, %cst_130 [1] : vector<8x128xf32> to vector<8xf32>
    %225 = vector.shape_cast %224 : vector<8xf32> to vector<8x1xf32>
    %cst_131 = arith.constant 1.280000e+02 : f32
    %226 = vector.broadcast %cst_131 : f32 to vector<8x1xf32>
    %227 = arith.divf %225, %226 : vector<8x1xf32>
    %228 = vector.broadcast %227 : vector<8x1xf32> to vector<8x128xf32>
    %229 = arith.subf %219, %228 : vector<8x128xf32>
    %230 = arith.mulf %229, %229 : vector<8x128xf32>
    %cst_132 = arith.constant dense<0.000000e+00> : vector<8xf32>
    %231 = vector.multi_reduction <add>, %230, %cst_132 [1] : vector<8x128xf32> to vector<8xf32>
    %232 = vector.shape_cast %231 : vector<8xf32> to vector<8x1xf32>
    %cst_133 = arith.constant 1.280000e+02 : f32
    %233 = vector.broadcast %cst_133 : f32 to vector<8x1xf32>
    %234 = arith.divf %232, %233 : vector<8x1xf32>
    %235 = vector.broadcast %227 : vector<8x1xf32> to vector<8x128xf32>
    %236 = arith.subf %219, %235 : vector<8x128xf32>
    %cst_134 = arith.constant 9.99999974E-6 : f32
    %237 = vector.broadcast %cst_134 : f32 to vector<8x1xf32>
    %238 = arith.addf %234, %237 : vector<8x1xf32>
    %239 = math.rsqrt %238 : vector<8x1xf32>
    %240 = vector.broadcast %239 : vector<8x1xf32> to vector<8x128xf32>
    %241 = arith.mulf %236, %240 : vector<8x128xf32>
    %242 = vector.broadcast %221 : vector<1x128xf32> to vector<8x128xf32>
    %243 = arith.mulf %241, %242 : vector<8x128xf32>
    %244 = vector.broadcast %223 : vector<1x128xf32> to vector<8x128xf32>
    %245 = arith.addf %243, %244 : vector<8x128xf32>
    %246 = arith.truncf %245 : vector<8x128xf32> to vector<8x128xbf16>
    %c3 = arith.constant 3 : index
    %c0_135 = arith.constant 0 : index
    %c0_136 = arith.constant 0 : index
    %247 = vector.load %arg4[%c3, %c0_135, %c0_136] : memref<6x128x128xbf16, #tpu.memory_space<vmem>>, vector<1x128x128xbf16>
    %248 = vector.shape_cast %247 : vector<1x128x128xbf16> to vector<128x128xbf16>
    %cst_137 = arith.constant dense<0.000000e+00> : vector<8x128xf32>
    %249 = tpu.matmul %246, %248, %cst_137 {dimension_numbers = #tpu.dot_dimension_numbers<[1], [0], [0], [1], [0, 0, 1, 1], [], []>} : vector<8x128xbf16>, vector<128x128xbf16>, vector<8x128xf32> -> vector<8x128xf32>
    %c3_138 = arith.constant 3 : index
    %c0_139 = arith.constant 0 : index
    %c0_140 = arith.constant 0 : index
    %250 = vector.load %arg5[%c3_138, %c0_139, %c0_140] : memref<6x1x128xf32, #tpu.memory_space<vmem>>, vector<1x1x128xf32>
    %251 = vector.shape_cast %250 : vector<1x1x128xf32> to vector<1x128xf32>
    %252 = vector.broadcast %251 : vector<1x128xf32> to vector<8x128xf32>
    %253 = arith.addf %249, %252 : vector<8x128xf32>
    %254 = arith.addf %245, %253 : vector<8x128xf32>
    %c3_141 = arith.constant 3 : index
    %c0_142 = arith.constant 0 : index
    %c0_143 = arith.constant 0 : index
    %255 = vector.load %arg6[%c3_141, %c0_142, %c0_143] : memref<6x1x128xf32, #tpu.memory_space<vmem>>, vector<1x1x128xf32>
    %256 = vector.shape_cast %255 : vector<1x1x128xf32> to vector<1x128xf32>
    %c3_144 = arith.constant 3 : index
    %c0_145 = arith.constant 0 : index
    %c0_146 = arith.constant 0 : index
    %257 = vector.load %arg7[%c3_144, %c0_145, %c0_146] : memref<6x1x128xf32, #tpu.memory_space<vmem>>, vector<1x1x128xf32>
    %258 = vector.shape_cast %257 : vector<1x1x128xf32> to vector<1x128xf32>
    %cst_147 = arith.constant dense<0.000000e+00> : vector<8xf32>
    %259 = vector.multi_reduction <add>, %254, %cst_147 [1] : vector<8x128xf32> to vector<8xf32>
    %260 = vector.shape_cast %259 : vector<8xf32> to vector<8x1xf32>
    %cst_148 = arith.constant 1.280000e+02 : f32
    %261 = vector.broadcast %cst_148 : f32 to vector<8x1xf32>
    %262 = arith.divf %260, %261 : vector<8x1xf32>
    %263 = vector.broadcast %262 : vector<8x1xf32> to vector<8x128xf32>
    %264 = arith.subf %254, %263 : vector<8x128xf32>
    %265 = arith.mulf %264, %264 : vector<8x128xf32>
    %cst_149 = arith.constant dense<0.000000e+00> : vector<8xf32>
    %266 = vector.multi_reduction <add>, %265, %cst_149 [1] : vector<8x128xf32> to vector<8xf32>
    %267 = vector.shape_cast %266 : vector<8xf32> to vector<8x1xf32>
    %cst_150 = arith.constant 1.280000e+02 : f32
    %268 = vector.broadcast %cst_150 : f32 to vector<8x1xf32>
    %269 = arith.divf %267, %268 : vector<8x1xf32>
    %270 = vector.broadcast %262 : vector<8x1xf32> to vector<8x128xf32>
    %271 = arith.subf %254, %270 : vector<8x128xf32>
    %cst_151 = arith.constant 9.99999974E-6 : f32
    %272 = vector.broadcast %cst_151 : f32 to vector<8x1xf32>
    %273 = arith.addf %269, %272 : vector<8x1xf32>
    %274 = math.rsqrt %273 : vector<8x1xf32>
    %275 = vector.broadcast %274 : vector<8x1xf32> to vector<8x128xf32>
    %276 = arith.mulf %271, %275 : vector<8x128xf32>
    %277 = vector.broadcast %256 : vector<1x128xf32> to vector<8x128xf32>
    %278 = arith.mulf %276, %277 : vector<8x128xf32>
    %279 = vector.broadcast %258 : vector<1x128xf32> to vector<8x128xf32>
    %280 = arith.addf %278, %279 : vector<8x128xf32>
    %281 = arith.truncf %280 : vector<8x128xf32> to vector<8x128xbf16>
    %c3_152 = arith.constant 3 : index
    %c0_153 = arith.constant 0 : index
    %c0_154 = arith.constant 0 : index
    %282 = vector.load %arg8[%c3_152, %c0_153, %c0_154] : memref<6x128x2048xbf16, #tpu.memory_space<vmem>>, vector<1x128x2048xbf16>
    %283 = vector.shape_cast %282 : vector<1x128x2048xbf16> to vector<128x2048xbf16>
    %cst_155 = arith.constant dense<0.000000e+00> : vector<8x2048xf32>
    %284 = tpu.matmul %281, %283, %cst_155 {dimension_numbers = #tpu.dot_dimension_numbers<[1], [0], [0], [1], [0, 0, 1, 1], [], []>} : vector<8x128xbf16>, vector<128x2048xbf16>, vector<8x2048xf32> -> vector<8x2048xf32>
    %c3_156 = arith.constant 3 : index
    %c0_157 = arith.constant 0 : index
    %c0_158 = arith.constant 0 : index
    %285 = vector.load %arg9[%c3_156, %c0_157, %c0_158] : memref<6x1x2048xf32, #tpu.memory_space<vmem>>, vector<1x1x2048xf32>
    %286 = vector.shape_cast %285 : vector<1x1x2048xf32> to vector<1x2048xf32>
    %287 = vector.broadcast %286 : vector<1x2048xf32> to vector<8x2048xf32>
    %288 = arith.addf %284, %287 : vector<8x2048xf32>
    %cst_159 = arith.constant 0.000000e+00 : f32
    %289 = vector.broadcast %cst_159 : f32 to vector<8x2048xf32>
    %290 = arith.maximumf %288, %289 : vector<8x2048xf32>
    %291 = arith.truncf %290 : vector<8x2048xf32> to vector<8x2048xbf16>
    %c3_160 = arith.constant 3 : index
    %c0_161 = arith.constant 0 : index
    %c0_162 = arith.constant 0 : index
    %292 = vector.load %arg10[%c3_160, %c0_161, %c0_162] : memref<6x2048x128xbf16, #tpu.memory_space<vmem>>, vector<1x2048x128xbf16>
    %293 = vector.shape_cast %292 : vector<1x2048x128xbf16> to vector<2048x128xbf16>
    %cst_163 = arith.constant dense<0.000000e+00> : vector<8x128xf32>
    %294 = tpu.matmul %291, %293, %cst_163 {dimension_numbers = #tpu.dot_dimension_numbers<[1], [0], [0], [1], [0, 0, 1, 1], [], []>} : vector<8x2048xbf16>, vector<2048x128xbf16>, vector<8x128xf32> -> vector<8x128xf32>
    %c3_164 = arith.constant 3 : index
    %c0_165 = arith.constant 0 : index
    %c0_166 = arith.constant 0 : index
    %295 = vector.load %arg11[%c3_164, %c0_165, %c0_166] : memref<6x1x128xf32, #tpu.memory_space<vmem>>, vector<1x1x128xf32>
    %296 = vector.shape_cast %295 : vector<1x1x128xf32> to vector<1x128xf32>
    %297 = vector.broadcast %296 : vector<1x128xf32> to vector<8x128xf32>
    %298 = arith.addf %294, %297 : vector<8x128xf32>
    %299 = arith.addf %280, %298 : vector<8x128xf32>
    %c3_167 = arith.constant 3 : index
    %c0_168 = arith.constant 0 : index
    %c0_169 = arith.constant 0 : index
    %300 = vector.load %arg12[%c3_167, %c0_168, %c0_169] : memref<6x1x128xf32, #tpu.memory_space<vmem>>, vector<1x1x128xf32>
    %301 = vector.shape_cast %300 : vector<1x1x128xf32> to vector<1x128xf32>
    %c3_170 = arith.constant 3 : index
    %c0_171 = arith.constant 0 : index
    %c0_172 = arith.constant 0 : index
    %302 = vector.load %arg13[%c3_170, %c0_171, %c0_172] : memref<6x1x128xf32, #tpu.memory_space<vmem>>, vector<1x1x128xf32>
    %303 = vector.shape_cast %302 : vector<1x1x128xf32> to vector<1x128xf32>
    %cst_173 = arith.constant dense<0.000000e+00> : vector<8xf32>
    %304 = vector.multi_reduction <add>, %299, %cst_173 [1] : vector<8x128xf32> to vector<8xf32>
    %305 = vector.shape_cast %304 : vector<8xf32> to vector<8x1xf32>
    %cst_174 = arith.constant 1.280000e+02 : f32
    %306 = vector.broadcast %cst_174 : f32 to vector<8x1xf32>
    %307 = arith.divf %305, %306 : vector<8x1xf32>
    %308 = vector.broadcast %307 : vector<8x1xf32> to vector<8x128xf32>
    %309 = arith.subf %299, %308 : vector<8x128xf32>
    %310 = arith.mulf %309, %309 : vector<8x128xf32>
    %cst_175 = arith.constant dense<0.000000e+00> : vector<8xf32>
    %311 = vector.multi_reduction <add>, %310, %cst_175 [1] : vector<8x128xf32> to vector<8xf32>
    %312 = vector.shape_cast %311 : vector<8xf32> to vector<8x1xf32>
    %cst_176 = arith.constant 1.280000e+02 : f32
    %313 = vector.broadcast %cst_176 : f32 to vector<8x1xf32>
    %314 = arith.divf %312, %313 : vector<8x1xf32>
    %315 = vector.broadcast %307 : vector<8x1xf32> to vector<8x128xf32>
    %316 = arith.subf %299, %315 : vector<8x128xf32>
    %cst_177 = arith.constant 9.99999974E-6 : f32
    %317 = vector.broadcast %cst_177 : f32 to vector<8x1xf32>
    %318 = arith.addf %314, %317 : vector<8x1xf32>
    %319 = math.rsqrt %318 : vector<8x1xf32>
    %320 = vector.broadcast %319 : vector<8x1xf32> to vector<8x128xf32>
    %321 = arith.mulf %316, %320 : vector<8x128xf32>
    %322 = vector.broadcast %301 : vector<1x128xf32> to vector<8x128xf32>
    %323 = arith.mulf %321, %322 : vector<8x128xf32>
    %324 = vector.broadcast %303 : vector<1x128xf32> to vector<8x128xf32>
    %325 = arith.addf %323, %324 : vector<8x128xf32>
    %326 = arith.truncf %325 : vector<8x128xf32> to vector<8x128xbf16>
    %c4 = arith.constant 4 : index
    %c0_178 = arith.constant 0 : index
    %c0_179 = arith.constant 0 : index
    %327 = vector.load %arg4[%c4, %c0_178, %c0_179] : memref<6x128x128xbf16, #tpu.memory_space<vmem>>, vector<1x128x128xbf16>
    %328 = vector.shape_cast %327 : vector<1x128x128xbf16> to vector<128x128xbf16>
    %cst_180 = arith.constant dense<0.000000e+00> : vector<8x128xf32>
    %329 = tpu.matmul %326, %328, %cst_180 {dimension_numbers = #tpu.dot_dimension_numbers<[1], [0], [0], [1], [0, 0, 1, 1], [], []>} : vector<8x128xbf16>, vector<128x128xbf16>, vector<8x128xf32> -> vector<8x128xf32>
    %c4_181 = arith.constant 4 : index
    %c0_182 = arith.constant 0 : index
    %c0_183 = arith.constant 0 : index
    %330 = vector.load %arg5[%c4_181, %c0_182, %c0_183] : memref<6x1x128xf32, #tpu.memory_space<vmem>>, vector<1x1x128xf32>
    %331 = vector.shape_cast %330 : vector<1x1x128xf32> to vector<1x128xf32>
    %332 = vector.broadcast %331 : vector<1x128xf32> to vector<8x128xf32>
    %333 = arith.addf %329, %332 : vector<8x128xf32>
    %334 = arith.addf %325, %333 : vector<8x128xf32>
    %c4_184 = arith.constant 4 : index
    %c0_185 = arith.constant 0 : index
    %c0_186 = arith.constant 0 : index
    %335 = vector.load %arg6[%c4_184, %c0_185, %c0_186] : memref<6x1x128xf32, #tpu.memory_space<vmem>>, vector<1x1x128xf32>
    %336 = vector.shape_cast %335 : vector<1x1x128xf32> to vector<1x128xf32>
    %c4_187 = arith.constant 4 : index
    %c0_188 = arith.constant 0 : index
    %c0_189 = arith.constant 0 : index
    %337 = vector.load %arg7[%c4_187, %c0_188, %c0_189] : memref<6x1x128xf32, #tpu.memory_space<vmem>>, vector<1x1x128xf32>
    %338 = vector.shape_cast %337 : vector<1x1x128xf32> to vector<1x128xf32>
    %cst_190 = arith.constant dense<0.000000e+00> : vector<8xf32>
    %339 = vector.multi_reduction <add>, %334, %cst_190 [1] : vector<8x128xf32> to vector<8xf32>
    %340 = vector.shape_cast %339 : vector<8xf32> to vector<8x1xf32>
    %cst_191 = arith.constant 1.280000e+02 : f32
    %341 = vector.broadcast %cst_191 : f32 to vector<8x1xf32>
    %342 = arith.divf %340, %341 : vector<8x1xf32>
    %343 = vector.broadcast %342 : vector<8x1xf32> to vector<8x128xf32>
    %344 = arith.subf %334, %343 : vector<8x128xf32>
    %345 = arith.mulf %344, %344 : vector<8x128xf32>
    %cst_192 = arith.constant dense<0.000000e+00> : vector<8xf32>
    %346 = vector.multi_reduction <add>, %345, %cst_192 [1] : vector<8x128xf32> to vector<8xf32>
    %347 = vector.shape_cast %346 : vector<8xf32> to vector<8x1xf32>
    %cst_193 = arith.constant 1.280000e+02 : f32
    %348 = vector.broadcast %cst_193 : f32 to vector<8x1xf32>
    %349 = arith.divf %347, %348 : vector<8x1xf32>
    %350 = vector.broadcast %342 : vector<8x1xf32> to vector<8x128xf32>
    %351 = arith.subf %334, %350 : vector<8x128xf32>
    %cst_194 = arith.constant 9.99999974E-6 : f32
    %352 = vector.broadcast %cst_194 : f32 to vector<8x1xf32>
    %353 = arith.addf %349, %352 : vector<8x1xf32>
    %354 = math.rsqrt %353 : vector<8x1xf32>
    %355 = vector.broadcast %354 : vector<8x1xf32> to vector<8x128xf32>
    %356 = arith.mulf %351, %355 : vector<8x128xf32>
    %357 = vector.broadcast %336 : vector<1x128xf32> to vector<8x128xf32>
    %358 = arith.mulf %356, %357 : vector<8x128xf32>
    %359 = vector.broadcast %338 : vector<1x128xf32> to vector<8x128xf32>
    %360 = arith.addf %358, %359 : vector<8x128xf32>
    %361 = arith.truncf %360 : vector<8x128xf32> to vector<8x128xbf16>
    %c4_195 = arith.constant 4 : index
    %c0_196 = arith.constant 0 : index
    %c0_197 = arith.constant 0 : index
    %362 = vector.load %arg8[%c4_195, %c0_196, %c0_197] : memref<6x128x2048xbf16, #tpu.memory_space<vmem>>, vector<1x128x2048xbf16>
    %363 = vector.shape_cast %362 : vector<1x128x2048xbf16> to vector<128x2048xbf16>
    %cst_198 = arith.constant dense<0.000000e+00> : vector<8x2048xf32>
    %364 = tpu.matmul %361, %363, %cst_198 {dimension_numbers = #tpu.dot_dimension_numbers<[1], [0], [0], [1], [0, 0, 1, 1], [], []>} : vector<8x128xbf16>, vector<128x2048xbf16>, vector<8x2048xf32> -> vector<8x2048xf32>
    %c4_199 = arith.constant 4 : index
    %c0_200 = arith.constant 0 : index
    %c0_201 = arith.constant 0 : index
    %365 = vector.load %arg9[%c4_199, %c0_200, %c0_201] : memref<6x1x2048xf32, #tpu.memory_space<vmem>>, vector<1x1x2048xf32>
    %366 = vector.shape_cast %365 : vector<1x1x2048xf32> to vector<1x2048xf32>
    %367 = vector.broadcast %366 : vector<1x2048xf32> to vector<8x2048xf32>
    %368 = arith.addf %364, %367 : vector<8x2048xf32>
    %cst_202 = arith.constant 0.000000e+00 : f32
    %369 = vector.broadcast %cst_202 : f32 to vector<8x2048xf32>
    %370 = arith.maximumf %368, %369 : vector<8x2048xf32>
    %371 = arith.truncf %370 : vector<8x2048xf32> to vector<8x2048xbf16>
    %c4_203 = arith.constant 4 : index
    %c0_204 = arith.constant 0 : index
    %c0_205 = arith.constant 0 : index
    %372 = vector.load %arg10[%c4_203, %c0_204, %c0_205] : memref<6x2048x128xbf16, #tpu.memory_space<vmem>>, vector<1x2048x128xbf16>
    %373 = vector.shape_cast %372 : vector<1x2048x128xbf16> to vector<2048x128xbf16>
    %cst_206 = arith.constant dense<0.000000e+00> : vector<8x128xf32>
    %374 = tpu.matmul %371, %373, %cst_206 {dimension_numbers = #tpu.dot_dimension_numbers<[1], [0], [0], [1], [0, 0, 1, 1], [], []>} : vector<8x2048xbf16>, vector<2048x128xbf16>, vector<8x128xf32> -> vector<8x128xf32>
    %c4_207 = arith.constant 4 : index
    %c0_208 = arith.constant 0 : index
    %c0_209 = arith.constant 0 : index
    %375 = vector.load %arg11[%c4_207, %c0_208, %c0_209] : memref<6x1x128xf32, #tpu.memory_space<vmem>>, vector<1x1x128xf32>
    %376 = vector.shape_cast %375 : vector<1x1x128xf32> to vector<1x128xf32>
    %377 = vector.broadcast %376 : vector<1x128xf32> to vector<8x128xf32>
    %378 = arith.addf %374, %377 : vector<8x128xf32>
    %379 = arith.addf %360, %378 : vector<8x128xf32>
    %c4_210 = arith.constant 4 : index
    %c0_211 = arith.constant 0 : index
    %c0_212 = arith.constant 0 : index
    %380 = vector.load %arg12[%c4_210, %c0_211, %c0_212] : memref<6x1x128xf32, #tpu.memory_space<vmem>>, vector<1x1x128xf32>
    %381 = vector.shape_cast %380 : vector<1x1x128xf32> to vector<1x128xf32>
    %c4_213 = arith.constant 4 : index
    %c0_214 = arith.constant 0 : index
    %c0_215 = arith.constant 0 : index
    %382 = vector.load %arg13[%c4_213, %c0_214, %c0_215] : memref<6x1x128xf32, #tpu.memory_space<vmem>>, vector<1x1x128xf32>
    %383 = vector.shape_cast %382 : vector<1x1x128xf32> to vector<1x128xf32>
    %cst_216 = arith.constant dense<0.000000e+00> : vector<8xf32>
    %384 = vector.multi_reduction <add>, %379, %cst_216 [1] : vector<8x128xf32> to vector<8xf32>
    %385 = vector.shape_cast %384 : vector<8xf32> to vector<8x1xf32>
    %cst_217 = arith.constant 1.280000e+02 : f32
    %386 = vector.broadcast %cst_217 : f32 to vector<8x1xf32>
    %387 = arith.divf %385, %386 : vector<8x1xf32>
    %388 = vector.broadcast %387 : vector<8x1xf32> to vector<8x128xf32>
    %389 = arith.subf %379, %388 : vector<8x128xf32>
    %390 = arith.mulf %389, %389 : vector<8x128xf32>
    %cst_218 = arith.constant dense<0.000000e+00> : vector<8xf32>
    %391 = vector.multi_reduction <add>, %390, %cst_218 [1] : vector<8x128xf32> to vector<8xf32>
    %392 = vector.shape_cast %391 : vector<8xf32> to vector<8x1xf32>
    %cst_219 = arith.constant 1.280000e+02 : f32
    %393 = vector.broadcast %cst_219 : f32 to vector<8x1xf32>
    %394 = arith.divf %392, %393 : vector<8x1xf32>
    %395 = vector.broadcast %387 : vector<8x1xf32> to vector<8x128xf32>
    %396 = arith.subf %379, %395 : vector<8x128xf32>
    %cst_220 = arith.constant 9.99999974E-6 : f32
    %397 = vector.broadcast %cst_220 : f32 to vector<8x1xf32>
    %398 = arith.addf %394, %397 : vector<8x1xf32>
    %399 = math.rsqrt %398 : vector<8x1xf32>
    %400 = vector.broadcast %399 : vector<8x1xf32> to vector<8x128xf32>
    %401 = arith.mulf %396, %400 : vector<8x128xf32>
    %402 = vector.broadcast %381 : vector<1x128xf32> to vector<8x128xf32>
    %403 = arith.mulf %401, %402 : vector<8x128xf32>
    %404 = vector.broadcast %383 : vector<1x128xf32> to vector<8x128xf32>
    %405 = arith.addf %403, %404 : vector<8x128xf32>
    %406 = arith.truncf %405 : vector<8x128xf32> to vector<8x128xbf16>
    %c5 = arith.constant 5 : index
    %c0_221 = arith.constant 0 : index
    %c0_222 = arith.constant 0 : index
    %407 = vector.load %arg4[%c5, %c0_221, %c0_222] : memref<6x128x128xbf16, #tpu.memory_space<vmem>>, vector<1x128x128xbf16>
    %408 = vector.shape_cast %407 : vector<1x128x128xbf16> to vector<128x128xbf16>
    %cst_223 = arith.constant dense<0.000000e+00> : vector<8x128xf32>
    %409 = tpu.matmul %406, %408, %cst_223 {dimension_numbers = #tpu.dot_dimension_numbers<[1], [0], [0], [1], [0, 0, 1, 1], [], []>} : vector<8x128xbf16>, vector<128x128xbf16>, vector<8x128xf32> -> vector<8x128xf32>
    %c5_224 = arith.constant 5 : index
    %c0_225 = arith.constant 0 : index
    %c0_226 = arith.constant 0 : index
    %410 = vector.load %arg5[%c5_224, %c0_225, %c0_226] : memref<6x1x128xf32, #tpu.memory_space<vmem>>, vector<1x1x128xf32>
    %411 = vector.shape_cast %410 : vector<1x1x128xf32> to vector<1x128xf32>
    %412 = vector.broadcast %411 : vector<1x128xf32> to vector<8x128xf32>
    %413 = arith.addf %409, %412 : vector<8x128xf32>
    %414 = arith.addf %405, %413 : vector<8x128xf32>
    %c5_227 = arith.constant 5 : index
    %c0_228 = arith.constant 0 : index
    %c0_229 = arith.constant 0 : index
    %415 = vector.load %arg6[%c5_227, %c0_228, %c0_229] : memref<6x1x128xf32, #tpu.memory_space<vmem>>, vector<1x1x128xf32>
    %416 = vector.shape_cast %415 : vector<1x1x128xf32> to vector<1x128xf32>
    %c5_230 = arith.constant 5 : index
    %c0_231 = arith.constant 0 : index
    %c0_232 = arith.constant 0 : index
    %417 = vector.load %arg7[%c5_230, %c0_231, %c0_232] : memref<6x1x128xf32, #tpu.memory_space<vmem>>, vector<1x1x128xf32>
    %418 = vector.shape_cast %417 : vector<1x1x128xf32> to vector<1x128xf32>
    %cst_233 = arith.constant dense<0.000000e+00> : vector<8xf32>
    %419 = vector.multi_reduction <add>, %414, %cst_233 [1] : vector<8x128xf32> to vector<8xf32>
    %420 = vector.shape_cast %419 : vector<8xf32> to vector<8x1xf32>
    %cst_234 = arith.constant 1.280000e+02 : f32
    %421 = vector.broadcast %cst_234 : f32 to vector<8x1xf32>
    %422 = arith.divf %420, %421 : vector<8x1xf32>
    %423 = vector.broadcast %422 : vector<8x1xf32> to vector<8x128xf32>
    %424 = arith.subf %414, %423 : vector<8x128xf32>
    %425 = arith.mulf %424, %424 : vector<8x128xf32>
    %cst_235 = arith.constant dense<0.000000e+00> : vector<8xf32>
    %426 = vector.multi_reduction <add>, %425, %cst_235 [1] : vector<8x128xf32> to vector<8xf32>
    %427 = vector.shape_cast %426 : vector<8xf32> to vector<8x1xf32>
    %cst_236 = arith.constant 1.280000e+02 : f32
    %428 = vector.broadcast %cst_236 : f32 to vector<8x1xf32>
    %429 = arith.divf %427, %428 : vector<8x1xf32>
    %430 = vector.broadcast %422 : vector<8x1xf32> to vector<8x128xf32>
    %431 = arith.subf %414, %430 : vector<8x128xf32>
    %cst_237 = arith.constant 9.99999974E-6 : f32
    %432 = vector.broadcast %cst_237 : f32 to vector<8x1xf32>
    %433 = arith.addf %429, %432 : vector<8x1xf32>
    %434 = math.rsqrt %433 : vector<8x1xf32>
    %435 = vector.broadcast %434 : vector<8x1xf32> to vector<8x128xf32>
    %436 = arith.mulf %431, %435 : vector<8x128xf32>
    %437 = vector.broadcast %416 : vector<1x128xf32> to vector<8x128xf32>
    %438 = arith.mulf %436, %437 : vector<8x128xf32>
    %439 = vector.broadcast %418 : vector<1x128xf32> to vector<8x128xf32>
    %440 = arith.addf %438, %439 : vector<8x128xf32>
    %441 = arith.truncf %440 : vector<8x128xf32> to vector<8x128xbf16>
    %c5_238 = arith.constant 5 : index
    %c0_239 = arith.constant 0 : index
    %c0_240 = arith.constant 0 : index
    %442 = vector.load %arg8[%c5_238, %c0_239, %c0_240] : memref<6x128x2048xbf16, #tpu.memory_space<vmem>>, vector<1x128x2048xbf16>
    %443 = vector.shape_cast %442 : vector<1x128x2048xbf16> to vector<128x2048xbf16>
    %cst_241 = arith.constant dense<0.000000e+00> : vector<8x2048xf32>
    %444 = tpu.matmul %441, %443, %cst_241 {dimension_numbers = #tpu.dot_dimension_numbers<[1], [0], [0], [1], [0, 0, 1, 1], [], []>} : vector<8x128xbf16>, vector<128x2048xbf16>, vector<8x2048xf32> -> vector<8x2048xf32>
    %c5_242 = arith.constant 5 : index
    %c0_243 = arith.constant 0 : index
    %c0_244 = arith.constant 0 : index
    %445 = vector.load %arg9[%c5_242, %c0_243, %c0_244] : memref<6x1x2048xf32, #tpu.memory_space<vmem>>, vector<1x1x2048xf32>
    %446 = vector.shape_cast %445 : vector<1x1x2048xf32> to vector<1x2048xf32>
    %447 = vector.broadcast %446 : vector<1x2048xf32> to vector<8x2048xf32>
    %448 = arith.addf %444, %447 : vector<8x2048xf32>
    %cst_245 = arith.constant 0.000000e+00 : f32
    %449 = vector.broadcast %cst_245 : f32 to vector<8x2048xf32>
    %450 = arith.maximumf %448, %449 : vector<8x2048xf32>
    %451 = arith.truncf %450 : vector<8x2048xf32> to vector<8x2048xbf16>
    %c5_246 = arith.constant 5 : index
    %c0_247 = arith.constant 0 : index
    %c0_248 = arith.constant 0 : index
    %452 = vector.load %arg10[%c5_246, %c0_247, %c0_248] : memref<6x2048x128xbf16, #tpu.memory_space<vmem>>, vector<1x2048x128xbf16>
    %453 = vector.shape_cast %452 : vector<1x2048x128xbf16> to vector<2048x128xbf16>
    %cst_249 = arith.constant dense<0.000000e+00> : vector<8x128xf32>
    %454 = tpu.matmul %451, %453, %cst_249 {dimension_numbers = #tpu.dot_dimension_numbers<[1], [0], [0], [1], [0, 0, 1, 1], [], []>} : vector<8x2048xbf16>, vector<2048x128xbf16>, vector<8x128xf32> -> vector<8x128xf32>
    %c5_250 = arith.constant 5 : index
    %c0_251 = arith.constant 0 : index
    %c0_252 = arith.constant 0 : index
    %455 = vector.load %arg11[%c5_250, %c0_251, %c0_252] : memref<6x1x128xf32, #tpu.memory_space<vmem>>, vector<1x1x128xf32>
    %456 = vector.shape_cast %455 : vector<1x1x128xf32> to vector<1x128xf32>
    %457 = vector.broadcast %456 : vector<1x128xf32> to vector<8x128xf32>
    %458 = arith.addf %454, %457 : vector<8x128xf32>
    %459 = arith.addf %440, %458 : vector<8x128xf32>
    %c5_253 = arith.constant 5 : index
    %c0_254 = arith.constant 0 : index
    %c0_255 = arith.constant 0 : index
    %460 = vector.load %arg12[%c5_253, %c0_254, %c0_255] : memref<6x1x128xf32, #tpu.memory_space<vmem>>, vector<1x1x128xf32>
    %461 = vector.shape_cast %460 : vector<1x1x128xf32> to vector<1x128xf32>
    %c5_256 = arith.constant 5 : index
    %c0_257 = arith.constant 0 : index
    %c0_258 = arith.constant 0 : index
    %462 = vector.load %arg13[%c5_256, %c0_257, %c0_258] : memref<6x1x128xf32, #tpu.memory_space<vmem>>, vector<1x1x128xf32>
    %463 = vector.shape_cast %462 : vector<1x1x128xf32> to vector<1x128xf32>
    %cst_259 = arith.constant dense<0.000000e+00> : vector<8xf32>
    %464 = vector.multi_reduction <add>, %459, %cst_259 [1] : vector<8x128xf32> to vector<8xf32>
    %465 = vector.shape_cast %464 : vector<8xf32> to vector<8x1xf32>
    %cst_260 = arith.constant 1.280000e+02 : f32
    %466 = vector.broadcast %cst_260 : f32 to vector<8x1xf32>
    %467 = arith.divf %465, %466 : vector<8x1xf32>
    %468 = vector.broadcast %467 : vector<8x1xf32> to vector<8x128xf32>
    %469 = arith.subf %459, %468 : vector<8x128xf32>
    %470 = arith.mulf %469, %469 : vector<8x128xf32>
    %cst_261 = arith.constant dense<0.000000e+00> : vector<8xf32>
    %471 = vector.multi_reduction <add>, %470, %cst_261 [1] : vector<8x128xf32> to vector<8xf32>
    %472 = vector.shape_cast %471 : vector<8xf32> to vector<8x1xf32>
    %cst_262 = arith.constant 1.280000e+02 : f32
    %473 = vector.broadcast %cst_262 : f32 to vector<8x1xf32>
    %474 = arith.divf %472, %473 : vector<8x1xf32>
    %475 = vector.broadcast %467 : vector<8x1xf32> to vector<8x128xf32>
    %476 = arith.subf %459, %475 : vector<8x128xf32>
    %cst_263 = arith.constant 9.99999974E-6 : f32
    %477 = vector.broadcast %cst_263 : f32 to vector<8x1xf32>
    %478 = arith.addf %474, %477 : vector<8x1xf32>
    %479 = math.rsqrt %478 : vector<8x1xf32>
    %480 = vector.broadcast %479 : vector<8x1xf32> to vector<8x128xf32>
    %481 = arith.mulf %476, %480 : vector<8x128xf32>
    %482 = vector.broadcast %461 : vector<1x128xf32> to vector<8x128xf32>
    %483 = arith.mulf %481, %482 : vector<8x128xf32>
    %484 = vector.broadcast %463 : vector<1x128xf32> to vector<8x128xf32>
    %485 = arith.addf %483, %484 : vector<8x128xf32>
    %c0_264 = arith.constant 0 : index
    %c0_265 = arith.constant 0 : index
    %486 = vector.load %arg14[%c0_264, %c0_265] : memref<128x128xf32, #tpu.memory_space<vmem>>, vector<128x128xf32>
    %cst_266 = arith.constant dense<0.000000e+00> : vector<8x128xf32>
    %487 = tpu.matmul %485, %486, %cst_266 {dimension_numbers = #tpu.dot_dimension_numbers<[1], [0], [0], [1], [0, 0, 1, 1], [], []>} : vector<8x128xf32>, vector<128x128xf32>, vector<8x128xf32> -> vector<8x128xf32>
    %c0_267 = arith.constant 0 : index
    %c0_268 = arith.constant 0 : index
    %488 = vector.load %arg15[%c0_267, %c0_268] : memref<1x128xf32, #tpu.memory_space<vmem>>, vector<1x128xf32>
    %489 = vector.broadcast %488 : vector<1x128xf32> to vector<8x128xf32>
    %490 = arith.addf %487, %489 : vector<8x128xf32>
    %c0_269 = arith.constant 0 : index
    %c0_270 = arith.constant 0 : index
    %491 = vector.load %arg16[%c0_269, %c0_270] : memref<8x128xf32, #tpu.memory_space<vmem>>, vector<8x128xf32>
    tpu.vector_store %arg16[%c0_269, %c0_270], %490 {strides = array<i32>} : memref<8x128xf32, #tpu.memory_space<vmem>>, vector<8x128xf32>,
    return
  }
  func.func @transform_0(%arg0: i32) -> (i32, i32) {
    %c0_i32 = arith.constant 0 : i32
    %c0_i32_0 = arith.constant 0 : i32
    %c0_i32_1 = arith.constant 0 : i32
    return %c0_i32, %c0_i32_0 : i32, i32
  }
  func.func @transform_1(%arg0: i32) -> (i32, i32) {
    %c0_i32 = arith.constant 0 : i32
    %c0_i32_0 = arith.constant 0 : i32
    %c0_i32_1 = arith.constant 0 : i32
    return %c0_i32, %c0_i32_0 : i32, i32
  }
  func.func @transform_2(%arg0: i32) -> (i32, i32) {
    %c0_i32 = arith.constant 0 : i32
    %c0_i32_0 = arith.constant 0 : i32
    %c0_i32_1 = arith.constant 0 : i32
    return %c0_i32, %c0_i32_0 : i32, i32
  }
  func.func @transform_3(%arg0: i32) -> (i32, i32, i32) {
    %c0_i32 = arith.constant 0 : i32
    %c0_i32_0 = arith.constant 0 : i32
    %c0_i32_1 = arith.constant 0 : i32
    %c0_i32_2 = arith.constant 0 : i32
    return %c0_i32, %c0_i32_0, %c0_i32_1 : i32, i32, i32
  }
  func.func @transform_4(%arg0: i32) -> (i32, i32, i32) {
    %c0_i32 = arith.constant 0 : i32
    %c0_i32_0 = arith.constant 0 : i32
    %c0_i32_1 = arith.constant 0 : i32
    %c0_i32_2 = arith.constant 0 : i32
    return %c0_i32, %c0_i32_0, %c0_i32_1 : i32, i32, i32
  }
  func.func @transform_5(%arg0: i32) -> (i32, i32, i32) {
    %c0_i32 = arith.constant 0 : i32
    %c0_i32_0 = arith.constant 0 : i32
    %c0_i32_1 = arith.constant 0 : i32
    %c0_i32_2 = arith.constant 0 : i32
    return %c0_i32, %c0_i32_0, %c0_i32_1 : i32, i32, i32
  }
  func.func @transform_6(%arg0: i32) -> (i32, i32, i32) {
    %c0_i32 = arith.constant 0 : i32
    %c0_i32_0 = arith.constant 0 : i32
    %c0_i32_1 = arith.constant 0 : i32
    %c0_i32_2 = arith.constant 0 : i32
    return %c0_i32, %c0_i32_0, %c0_i32_1 : i32, i32, i32
  }
  func.func @transform_7(%arg0: i32) -> (i32, i32, i32) {
    %c0_i32 = arith.constant 0 : i32
    %c0_i32_0 = arith.constant 0 : i32
    %c0_i32_1 = arith.constant 0 : i32
    %c0_i32_2 = arith.constant 0 : i32
    return %c0_i32, %c0_i32_0, %c0_i32_1 : i32, i32, i32
  }
  func.func @transform_8(%arg0: i32) -> (i32, i32, i32) {
    %c0_i32 = arith.constant 0 : i32
    %c0_i32_0 = arith.constant 0 : i32
    %c0_i32_1 = arith.constant 0 : i32
    %c0_i32_2 = arith.constant 0 : i32
    return %c0_i32, %c0_i32_0, %c0_i32_1 : i32, i32, i32
  }
  func.func @transform_9(%arg0: i32) -> (i32, i32, i32) {
    %c0_i32 = arith.constant 0 : i32
    %c0_i32_0 = arith.constant 0 : i32
    %c0_i32_1 = arith.constant 0 : i32
    %c0_i32_2 = arith.constant 0 : i32
    return %c0_i32, %c0_i32_0, %c0_i32_1 : i32, i32, i32
  }
  func.func @transform_10(%arg0: i32) -> (i32, i32, i32) {
    %c0_i32 = arith.constant 0 : i32
    %c0_i32_0 = arith.constant 0 : i32
    %c0_i32_1 = arith.constant 0 : i32
    %c0_i32_2 = arith.constant 0 : i32
    return %c0_i32, %c0_i32_0, %c0_i32_1 : i32, i32, i32
  }
  func.func @transform_11(%arg0: i32) -> (i32, i32, i32) {
    %c0_i32 = arith.constant 0 : i32
    %c0_i32_0 = arith.constant 0 : i32
    %c0_i32_1 = arith.constant 0 : i32
    %c0_i32_2 = arith.constant 0 : i32
    return %c0_i32, %c0_i32_0, %c0_i32_1 : i32, i32, i32
  }
  func.func @transform_12(%arg0: i32) -> (i32, i32, i32) {
    %c0_i32 = arith.constant 0 : i32
    %c0_i32_0 = arith.constant 0 : i32
    %c0_i32_1 = arith.constant 0 : i32
    %c0_i32_2 = arith.constant 0 : i32
    return %c0_i32, %c0_i32_0, %c0_i32_1 : i32, i32, i32
  }
  func.func @transform_13(%arg0: i32) -> (i32, i32) {
    %c0_i32 = arith.constant 0 : i32
    %c0_i32_0 = arith.constant 0 : i32
    %c0_i32_1 = arith.constant 0 : i32
    return %c0_i32, %c0_i32_0 : i32, i32
  }
  func.func @transform_14(%arg0: i32) -> (i32, i32) {
    %c0_i32 = arith.constant 0 : i32
    %c0_i32_0 = arith.constant 0 : i32
    %c0_i32_1 = arith.constant 0 : i32
    return %c0_i32, %c0_i32_0 : i32, i32
  }
  func.func @transform_15(%arg0: i32) -> (i32, i32) {
    %c0_i32 = arith.constant 0 : i32
    %c0_i32_0 = arith.constant 0 : i32
    %c0_i32_1 = arith.constant 0 : i32
    return %c0_i32, %c0_i32_0 : i32, i32
  }
}

</mosaic_0001>

<bundles_post_ra>
// kernel: tpu_custom_call.1
= control target key start
LH: loop header
LB: loop body
LE: loop exit
PB: predicated region body
PF: predicated region fallthrough
CT: control target
= control target key end

     0   :  { %20 = vsyncpa [#allocation3], 0  ;;  %s21701_s0 = inlined_call_operand.hbm [shape: f32[8,32], index: 0, kind: input, shape index: {}]   ;;  %s21702_s1 = inlined_call_operand.hbm [shape: f32[32,128], index: 1, kind: input, shape index: {}]   ;;  %s21703_s2 = inlined_call_operand.hbm [shape: f32[1,128], index: 2, kind: input, shape index: {}]   ;;  %s21704_s3 = inlined_call_operand.hbm [shape: bf16[6,128,128], index: 3, kind: input, shape index: {}]   ;;  %s21705_s4 = inlined_call_operand.hbm [shape: f32[6,1,128], index: 4, kind: input, shape index: {}]   ;;  %s21706_s5 = inlined_call_operand.hbm [shape: f32[6,1,128], index: 5, kind: input, shape index: {}]   ;;  %s21707_s6 = inlined_call_operand.hbm [shape: f32[6,1,128], index: 6, kind: input, shape index: {}]   ;;  %s21708_s7 = inlined_call_operand.hbm [shape: bf16[6,128,2048], index: 7, kind: input, shape index: {}]   ;;  %s21709_s8 = inlined_call_operand.hbm [shape: f32[6,1,2048], index: 8, kind: input, shape index: {}]   ;;  %s21710_s9 = inlined_call_operand.hbm [shape: bf16[6,2048,128], index: 9, kind: input, shape index: {}]   ;;  %s21711_s10 = inlined_call_operand.hbm [shape: f32[6,1,128], index: 10, kind: input, shape index: {}]   ;;  %s21712_s11 = inlined_call_operand.hbm [shape: f32[6,1,128], index: 11, kind: input, shape index: {}]   ;;  %s21713_s12 = inlined_call_operand.hbm [shape: f32[6,1,128], index: 12, kind: input, shape index: {}]   ;;  %s21714_s13 = inlined_call_operand.hbm [shape: f32[128,128], index: 13, kind: input, shape index: {}]   ;;  %s21715_s14 = inlined_call_operand.hbm [shape: f32[1,128], index: 14, kind: input, shape index: {}]   ;;  %s21716_s15 = inlined_call_operand.hbm [shape: f32[8,128], index: 15, kind: output, shape index: {}]  }
   0x1   :  { %21 = vsyncpa [#allocation6], 0 }
   0x2   :  { %22 = vsyncpa [#allocation9], 0 }
   0x3   :  { %23 = vsyncpa [#allocation12], 0 }
   0x4   :  { %24 = vsyncpa [#allocation15], 0 }
   0x5   :  { %25 = vsyncpa [#allocation18], 0 }
   0x6   :  { %26 = vsyncpa [#allocation21], 0 }
   0x7   :  { %27 = vsyncpa [#allocation24], 0 }
   0x8   :  { %28 = vsyncpa [#allocation4], 0  ;;  %s21020_s18 = smov [#allocation5]  }
   0x9   :  { %s44_s19 = sshll.u32 %s21020_s18, 4  ;;  %s45_s19 = int_to_ptr.vmem [resolvable:$true] %s44_s19 }
   0xa   :  { %s20690_s20 = scalar_lea.vmem %s45_s19, 512  ;;  %p20695_p1 = scmp.lt.s32.totalorder %s45_s19, %s45_s19 }
   0xb   :  { %p20691_p0 = scmp.ne.s32.totalorder %s45_s19, %s20690_s20  ;;  %p20696_p2 = scmp.lt.s32.totalorder %s20690_s20, %s20690_s20 }
   0xd   :  { %p20697_p3 = por %p20696_p2, %p20695_p1 }
   0xf   :  { %p20698_p4 = pnand %p20697_p3, %p20691_p0 }
  0x11   :  { %20701 = shalt.err (!%p20698_p4)
}
  0x12   :  { %s21717_s21 = smov 128   ;;  %s21022_s22 = smov 8  }
  0x13   :  { %50 = dma.hbm_to_vmem [thread:$0]  %s21702_s1, 512, %s45_s19, [#allocation6], %s21717_s21, %s21717_s21, %s21022_s22  }
  0x14   :  { %s21023_s25 = smov [#allocation8]  }
  0x15   :  { %s66_s26 = sshll.u32 %s21023_s25, 4  ;;  %s67_s26 = int_to_ptr.vmem [resolvable:$true] %s66_s26 }
  0x16   :  { %s20710_s27 = scalar_lea.vmem %s67_s26, 6144  ;;  %p20715_p6 = scmp.lt.s32.totalorder %s67_s26, %s67_s26 }
  0x17   :  { %p20711_p5 = scmp.ne.s32.totalorder %s67_s26, %s20710_s27  ;;  %p20716_p7 = scmp.lt.s32.totalorder %s20710_s27, %s20710_s27 }
  0x19   :  { %p20717_p8 = por %p20716_p7, %p20715_p6 }
  0x1b   :  { %p20718_p9 = pnand %p20717_p8, %p20711_p5 }
  0x1d   :  { %20721 = shalt.err (!%p20718_p9)
}
  0x1e   :  { %s21024_s28 = smov 64   ;;  %s21025_s29 = smov 4  }
  0x1f   :  { %72 = dma.hbm_to_vmem [thread:$0]  %s21704_s3, 6144, %s67_s26, [#allocation9], %s21024_s28, %s21024_s28, %s21025_s29  }
  0x20   :  { %s21026_s1 = smov [#allocation11]   ;;  %s21027_s18 = smov [#allocation14]  }
  0x21   :  { %s90_s17 = sshll.u32 %s21026_s1, 4  ;;  %s114_s19 = sshll.u32 %s21027_s18, 4  ;;  %s91_s17 = int_to_ptr.vmem [resolvable:$true] %s90_s17  ;;  %s115_s19 = int_to_ptr.vmem [resolvable:$true] %s114_s19 }
  0x22   :  { %s20730_s20 = scalar_lea.vmem %s91_s17, 96  ;;  %p20735_p11 = scmp.lt.s32.totalorder %s91_s17, %s91_s17 }
  0x23   :  { %p20731_p10 = scmp.ne.s32.totalorder %s91_s17, %s20730_s20  ;;  %p20736_p12 = scmp.lt.s32.totalorder %s20730_s20, %s20730_s20 }
  0x25   :  { %p20737_p13 = por %p20736_p12, %p20735_p11 }
  0x27   :  { %p20738_p0 = pnand %p20737_p13, %p20731_p10 }
  0x29   :  { %20741 = shalt.err (!%p20738_p0)
}
  0x2a   :  { %s21028_s23 = smov 16   ;;  %s21029_s24 = smov 1  }
  0x2b   :  { %96 = dma.hbm_to_vmem [thread:$0]  %s21706_s5, 96, %s91_s17, [#allocation12], %s21028_s23, %s21028_s23, %s21029_s24  }
  0x2c   :  { %s20750_s26 = scalar_lea.vmem %s115_s19, 98304  ;;  %p20755_p2 = scmp.lt.s32.totalorder %s115_s19, %s115_s19 }
  0x2d   :  { %p20751_p1 = scmp.ne.s32.totalorder %s115_s19, %s20750_s26  ;;  %p20756_p3 = scmp.lt.s32.totalorder %s20750_s26, %s20750_s26 }
  0x2f   :  { %p20757_p4 = por %p20756_p3, %p20755_p2 }
  0x31   :  { %p20758_p5 = pnand %p20757_p4, %p20751_p1 }
  0x33   :  { %20761 = shalt.err (!%p20758_p5)
}
  0x34   :  { %s21030_s27 = smov 1024   ;;  %s21031_s1 = smov [#allocation17]  }
  0x35   :  { %120 = dma.hbm_to_vmem [thread:$0]  %s21708_s7, 98304, %s115_s19, [#allocation15], %s21030_s27, %s21030_s27, %s21024_s28  }
  0x36   :  { %s138_s18 = sshll.u32 %s21031_s1, 4  ;;  %s21032_s20 = smov [#allocation20]   ;;  %s139_s18 = int_to_ptr.vmem [resolvable:$true] %s138_s18 }
  0x37   :  { %s162_s21 = sshll.u32 %s21032_s20, 4  ;;  %s20770_s25 = scalar_lea.vmem %s139_s18, 98304  ;;  %s163_s21 = int_to_ptr.vmem [resolvable:$true] %s162_s21 }
  0x38   :  { %p20771_p6 = scmp.ne.s32.totalorder %s139_s18, %s20770_s25  ;;  %p20775_p7 = scmp.lt.s32.totalorder %s139_s18, %s139_s18 }
  0x39   :  { %p20776_p8 = scmp.lt.s32.totalorder %s20770_s25, %s20770_s25 }
  0x3b   :  { %p20777_p9 = por %p20776_p8, %p20775_p7 }
  0x3d   :  { %p20778_p10 = pnand %p20777_p9, %p20771_p6 }
  0x3f   :  { %20781 = shalt.err (!%p20778_p10)
}
  0x40   :  { %144 = dma.hbm_to_vmem [thread:$0]  %s21710_s9, 98304, %s139_s18, [#allocation18], %s21024_s28, %s21024_s28, %s21025_s29  }
  0x41   :  { %s20790_s7 = scalar_lea.vmem %s163_s21, 96  ;;  %p20795_p12 = scmp.lt.s32.totalorder %s163_s21, %s163_s21 }
  0x42   :  { %p20791_p11 = scmp.ne.s32.totalorder %s163_s21, %s20790_s7  ;;  %p20796_p13 = scmp.lt.s32.totalorder %s20790_s7, %s20790_s7 }
  0x44   :  { %p20797_p0 = por %p20796_p13, %p20795_p12 }
  0x46   :  { %p20798_p1 = pnand %p20797_p0, %p20791_p11 }
  0x48   :  { %20801 = shalt.err (!%p20798_p1)
}
  0x49   :  { %168 = dma.hbm_to_vmem [thread:$0]  %s21712_s11, 96, %s163_s21, [#allocation21], %s21028_s23, %s21028_s23, %s21029_s24  }
  0x4a   :  { %s21033_s26 = smov [#allocation23]   ;;  %s21034_s30 = smov [#allocation2]  }
  0x4b   :  { %s186_s27 = sshll.u32 %s21033_s26, 4  ;;  %s35_s9 = sshll.u32 %s21034_s30, 4  ;;  %s187_s27 = int_to_ptr.vmem [resolvable:$true] %s186_s27  ;;  %s36_s9 = int_to_ptr.vmem [resolvable:$true] %s35_s9 }
  0x4c   :  { %s20810_s28 = scalar_lea.vmem %s187_s27, 2048  ;;  %p20815_p3 = scmp.lt.s32.totalorder %s187_s27, %s187_s27 }
  0x4d   :  { %p20811_p2 = scmp.ne.s32.totalorder %s187_s27, %s20810_s28  ;;  %p20816_p4 = scmp.lt.s32.totalorder %s20810_s28, %s20810_s28 }
  0x4f   :  { %p20817_p5 = por %p20816_p4, %p20815_p3 }
  0x51   :  { %p20818_p6 = pnand %p20817_p5, %p20811_p2 }
  0x53   :  { %20821 = shalt.err (!%p20818_p6)
}
  0x54   :  { %s21718_s29 = smov 128   ;;  %s20830_s11 = scalar_lea.vmem %s36_s9, 128 }
  0x55   :  { %192 = dma.hbm_to_vmem [thread:$0]  %s21714_s13, 2048, %s187_s27, [#allocation24], %s21718_s29, %s21718_s29, %s21022_s22  }
  0x56   :  { %p20831_p7 = scmp.ne.s32.totalorder %s36_s9, %s20830_s11  ;;  %p20835_p8 = scmp.lt.s32.totalorder %s36_s9, %s36_s9 }
  0x57   :  { %p20836_p9 = scmp.lt.s32.totalorder %s20830_s11, %s20830_s11 }
  0x59   :  { %p20837_p10 = por %p20836_p9, %p20835_p8 }
  0x5b   :  { %p20838_p11 = pnand %p20837_p10, %p20831_p7 }
  0x5d   :  { %20841 = shalt.err (!%p20838_p11)
}
  0x5e   :  { %38 = dma.hbm_to_vmem [thread:$0]  %s21701_s0, 128, %s36_s9, [#allocation3]  }
  0x5f   :  { %s21035_s20 = smov [#allocation7]   ;;  %s21036_s5 = smov [#allocation10]  }
  0x60   :  { %s57_s25 = sshll.u32 %s21035_s20, 4  ;;  %s78_s17 = sshll.u32 %s21036_s5, 4  ;;  %s58_s25 = int_to_ptr.vmem [resolvable:$true] %s57_s25  ;;  %s79_s17 = int_to_ptr.vmem [resolvable:$true] %s78_s17 }
  0x61   :  { %s20850_s7 = scalar_lea.vmem %s58_s25, 16  ;;  %s20854_s13 = scalar_lea.vmem %s58_s25, 32 }
  0x62   :  { %p20851_p12 = scmp.ne.s32.totalorder %s58_s25, %s20850_s7  ;;  %p20855_p13 = scmp.lt.s32.totalorder %s58_s25, %s58_s25 }
  0x63   :  { %p20856_p0 = scmp.lt.s32.totalorder %s20854_s13, %s20850_s7 }
  0x65   :  { %p20857_p1 = por %p20856_p0, %p20855_p13 }
  0x67   :  { %p20858_p2 = pnand %p20857_p1, %p20851_p12 }
  0x69   :  { %20861 = shalt.err (!%p20858_p2)
}
  0x6a   :  { %60 = dma.hbm_to_vmem [thread:$0]  %s21703_s2, 16, %s58_s25, [#allocation6]  }
  0x6b   :  { %s20870_s3 = scalar_lea.vmem %s79_s17, 96  ;;  %p20875_p4 = scmp.lt.s32.totalorder %s79_s17, %s79_s17 }
  0x6c   :  { %p20871_p3 = scmp.ne.s32.totalorder %s79_s17, %s20870_s3  ;;  %p20876_p5 = scmp.lt.s32.totalorder %s20870_s3, %s20870_s3 }
  0x6e   :  { %p20877_p6 = por %p20876_p5, %p20875_p4 }
  0x70   :  { %p20878_p7 = pnand %p20877_p6, %p20871_p3 }
  0x72   :  { %20881 = shalt.err (!%p20878_p7)
}
  0x73   :  { %84 = dma.hbm_to_vmem [thread:$0]  %s21705_s4, 96, %s79_s17, [#allocation9], %s21028_s23, %s21028_s23, %s21029_s24  }
  0x74   :  { %s21037_s27 = smov [#allocation13]   ;;  %s21038_s9 = smov [#allocation16]  }
  0x75   :  { %s102_s30 = sshll.u32 %s21037_s27, 4  ;;  %s126_s2 = sshll.u32 %s21038_s9, 4  ;;  %s103_s30 = int_to_ptr.vmem [resolvable:$true] %s102_s30  ;;  %s127_s2 = int_to_ptr.vmem [resolvable:$true] %s126_s2 }
  0x76   :  { %s20890_s28 = scalar_lea.vmem %s103_s30, 96  ;;  %p20895_p9 = scmp.lt.s32.totalorder %s103_s30, %s103_s30 }
  0x77   :  { %p20891_p8 = scmp.ne.s32.totalorder %s103_s30, %s20890_s28  ;;  %p20896_p10 = scmp.lt.s32.totalorder %s20890_s28, %s20890_s28 }
  0x79   :  { %p20897_p11 = por %p20896_p10, %p20895_p9 }
  0x7b   :  { %p20898_p12 = pnand %p20897_p11, %p20891_p8 }
  0x7d   :  { %20901 = shalt.err (!%p20898_p12)
}
  0x7e   :  { %108 = dma.hbm_to_vmem [thread:$0]  %s21707_s6, 96, %s103_s30, [#allocation12], %s21028_s23, %s21028_s23, %s21029_s24  }
  0x7f   :  { %s20910_s4 = scalar_lea.vmem %s127_s2, 1536  ;;  %p20915_p0 = scmp.lt.s32.totalorder %s127_s2, %s127_s2 }
  0x80   :  { %p20911_p13 = scmp.ne.s32.totalorder %s127_s2, %s20910_s4  ;;  %p20916_p1 = scmp.lt.s32.totalorder %s20910_s4, %s20910_s4 }
  0x82   :  { %p20917_p2 = por %p20916_p1, %p20915_p0 }
  0x84   :  { %p20918_p3 = pnand %p20917_p2, %p20911_p13 }
  0x86   :  { %20921 = shalt.err (!%p20918_p3)
}
  0x87   :  { %s21039_s1 = smov 256   ;;  %s21040_s18 = smov [#allocation19]  }
  0x88   :  { %132 = dma.hbm_to_vmem [thread:$0]  %s21709_s8, 1536, %s127_s2, [#allocation15], %s21039_s1, %s21039_s1, %s21028_s23  }
  0x89   :  { %s150_s20 = sshll.u32 %s21040_s18, 4  ;;  %s21041_s25 = smov [#allocation22]   ;;  %s151_s20 = int_to_ptr.vmem [resolvable:$true] %s150_s20 }
  0x8a   :  { %s174_s5 = sshll.u32 %s21041_s25, 4  ;;  %s20930_s6 = scalar_lea.vmem %s151_s20, 96  ;;  %s175_s5 = int_to_ptr.vmem [resolvable:$true] %s174_s5 }
  0x8b   :  { %p20931_p4 = scmp.ne.s32.totalorder %s151_s20, %s20930_s6  ;;  %p20935_p5 = scmp.lt.s32.totalorder %s151_s20, %s151_s20 }
  0x8c   :  { %p20936_p6 = scmp.lt.s32.totalorder %s20930_s6, %s20930_s6 }
  0x8e   :  { %p20937_p7 = por %p20936_p6, %p20935_p5 }
  0x90   :  { %p20938_p8 = pnand %p20937_p7, %p20931_p4 }
  0x92   :  { %20941 = shalt.err (!%p20938_p8)
}
  0x93   :  { %156 = dma.hbm_to_vmem [thread:$0]  %s21711_s10, 96, %s151_s20, [#allocation18], %s21028_s23, %s21028_s23, %s21029_s24  }
  0x94   :  { %s20950_s8 = scalar_lea.vmem %s175_s5, 96  ;;  %p20955_p10 = scmp.lt.s32.totalorder %s175_s5, %s175_s5 }
  0x95   :  { %p20951_p9 = scmp.ne.s32.totalorder %s175_s5, %s20950_s8  ;;  %p20956_p11 = scmp.lt.s32.totalorder %s20950_s8, %s20950_s8 }
  0x97   :  { %p20957_p12 = por %p20956_p11, %p20955_p10 }
  0x99   :  { %p20958_p13 = pnand %p20957_p12, %p20951_p9 }
  0x9b   :  { %20961 = shalt.err (!%p20958_p13)
}
  0x9c   :  { %180 = dma.hbm_to_vmem [thread:$0]  %s21713_s12, 96, %s175_s5, [#allocation21], %s21028_s23, %s21028_s23, %s21029_s24  }
  0x9d   :  { %s21042_s19 = smov [#allocation25]  }
  0x9e   :  { %s199_s3 = sshll.u32 %s21042_s19, 4  ;;  %s200_s3 = int_to_ptr.vmem [resolvable:$true] %s199_s3 }
  0x9f   :  { %s20970_s0 = scalar_lea.vmem %s200_s3, 16  ;;  %s20974_s10 = scalar_lea.vmem %s200_s3, 32 }
  0xa0   :  { %p20971_p0 = scmp.ne.s32.totalorder %s200_s3, %s20970_s0  ;;  %p20975_p1 = scmp.lt.s32.totalorder %s200_s3, %s200_s3 }
  0xa1   :  { %p20976_p2 = scmp.lt.s32.totalorder %s20974_s10, %s20970_s0 }
  0xa3   :  { %p20977_p3 = por %p20976_p2, %p20975_p1 }
  0xa5   :  { %p20978_p4 = pnand %p20977_p3, %p20971_p0 }
  0xa7   :  { %20981 = shalt.err (!%p20978_p4)
}
  0xa8   :  { %202 = dma.hbm_to_vmem [thread:$0]  %s21715_s14, 16, %s200_s3, [#allocation24]  }
  0xa9   :  { %21002 = dma.done.wait [#allocation3], 128  }
  0xaa   :  { %21003 = vsyncadd [#allocation3], 4294967168 }
  0xab   :  { %21004 = dma.done.wait [#allocation6], 528  }
  0xac   :  { %21005 = vsyncadd [#allocation6], 4294966768 }
  0xad   :  { %21006 = dma.done.wait [#allocation9], 6240  }
  0xae   :  { %21007 = vsyncadd [#allocation9], 4294961056 }
  0xaf   :  { %21008 = dma.done.wait [#allocation12], 192  }
  0xb0   :  { %21009 = vsyncadd [#allocation12], 4294967104 }
  0xb1   :  { %21010 = dma.done.wait [#allocation15], 99840  }
  0xb2   :  { %21011 = vsyncadd [#allocation15], 4294867456 }
  0xb3   :  { %21012 = dma.done.wait [#allocation18], 98400  }
  0xb4   :  { %21013 = vsyncadd [#allocation18], 4294868896 }
  0xb5   :  { %21014 = dma.done.wait [#allocation21], 192  }
  0xb6   :  { %21015 = vsyncadd [#allocation21], 4294967104 }
  0xb7   :  { %21016 = dma.done.wait [#allocation24], 2064  }
  0xb8   :  { %21017 = vsyncadd [#allocation24], 4294965232  ;;  %v21043_v0 = vmov 0.0   ;;  %vm21044_vm0 = vmmov 0   ;;  %v253_v1 = vld [vmem:[#allocation5 + $0x18] sm:$0xff]  ;;  %v252_v2 = vld [vmem:[#allocation5 + $0x10] sm:$0xff] }
  0xb9   :  { %19649 = vmatprep.subr.mxu0 %v21043_v0  ;;  %19657 = vmatprep.mubr.msk.f32.mxu0 %vm21044_vm0, %v21043_v0  ;;  %v251_v3 = vld [vmem:[#allocation5 + $0x8] sm:$0xff]  ;;  %v19842_v4 = vld [vmem:[#allocation8 + $0x38] sm:$0xff]   ;;  %v19843_v6 = vld [vmem:[#allocation8 + $0x30] sm:$0xff]   ;;  %vm261_vm1 = vcmask 261120   ;;  %s21046_s12 = smov [#allocation26]  }
  0xba   :  { %19660 = vmatprep.subr.bf16.mxu1 %v21043_v0  ;;  %19676 = vmatprep.mubr.msk.bf16.mxu1 %vm21044_vm0, %v21043_v0  ;;  %v250_v5 = vld [vmem:[#allocation5] sm:$0xff]  ;;  %v249_v7 = vld [vmem:[#allocation2] sm:$0xff]  ;;  %v19844_v8 = vld [vmem:[#allocation8 + $0x28] sm:$0xff]   ;;  %s16878_s14 = sshll.u32 %s21046_s12, 4  ;;  %s16879_s14 = int_to_ptr.vmem [resolvable:$true] %s16878_s14 }
  0xbb   :  { %19650 = vmatpush3.msra.mxu0 %v253_v1  ;;  %19661 = vmatpush3.bf16.msra.mxu1 %v19842_v4  ;;  %v19845_v9 = vld [vmem:[#allocation8 + $0x20] sm:$0xff]   ;;  %v19846_v10 = vld [vmem:[#allocation8 + $0x18] sm:$0xff]   ;;  %v19847_v11 = vld [vmem:[#allocation8 + $0x10] sm:$0xff]   ;;  %s20982_s23 = scalar_lea.vmem %s16879_s14, 128  ;;  %p20987_p6 = scmp.lt.s32.totalorder %s16879_s14, %s16879_s14 }
  0xbc   :  { %19651 = vmatprep.subr.mxu0 %v21043_v0  ;;  %19662 = vmatprep.subr.bf16.mxu1 %v21043_v0  ;;  %v19848_v12 = vld [vmem:[#allocation8 + $0x8] sm:$0xff]   ;;  %v19849_v13 = vld [vmem:[#allocation8] sm:$0xff]   ;;  %v16894_v14 = vld [vmem:[#allocation7] ss:$0 sm:$0xff]  ;;  %p20983_p5 = scmp.ne.s32.totalorder %s16879_s14, %s20982_s23  ;;  %p20988_p7 = scmp.lt.s32.totalorder %s20982_s23, %s20982_s23 }
  0xbd   :  { %19652 = vmatpush3.msra.mxu0 %v252_v2  ;;  %v16896_v19 = vld [vmem:[#allocation10] ss:$0 sm:$0xff]  ;;  %v589_v26 = vld [vmem:[#allocation14 + $0x380] sm:$0xff] }
  0xbe   :  { %19653 = vmatprep.subr.mxu0 %v21043_v0  ;;  %v597_v27 = vld [vmem:[#allocation14 + $0x3c0] sm:$0xff]  ;;  %v590_v28 = vld [vmem:[#allocation14 + $0x388] sm:$0xff]  ;;  %p20989_p8 = por %p20988_p7, %p20987_p6 }
  0xbf   :  { %19654 = vmatpush3.msra.mxu0 %v251_v3  ;;  %19663 = vmatpush3.bf16.msra.mxu1 %v19843_v6  ;;  %v17019_v29 = vcombine.low %v589_v26, %v597_v27  ;;  %v17020_v30 = vcombine.high %v589_v26, %v597_v27  ;;  %v598_v31 = vld [vmem:[#allocation14 + $0x3c8] sm:$0xff]  ;;  %v573_v32 = vld [vmem:[#allocation14 + $0x300] sm:$0xff] }
  0xc0   :  { %19655 = vmatprep.subr.mxu0 %v21043_v0  ;;  %19664 = vmatprep.subr.bf16.mxu1 %v21043_v0  ;;  %v581_v33 = vld [vmem:[#allocation14 + $0x340] sm:$0xff]  ;;  %v17021_v34 = vcombine.low %v590_v28, %v598_v31  ;;  %v17022_v35 = vcombine.high %v590_v28, %v598_v31  ;;  %v574_v37 = vld [vmem:[#allocation14 + $0x308] sm:$0xff]  ;;  %v591_v31 = vld [vmem:[#allocation14 + $0x390] sm:$0xff]  ;;  %p20990_p9 = pnand %p20989_p8, %p20983_p5 }
  0xc1   :  { %19656 = vmatpush3.msra.mxu0 %v250_v5  ;;  %v17004_v36 = vcombine.high %v573_v32, %v581_v33  ;;  %v582_v38 = vld [vmem:[#allocation14 + $0x348] sm:$0xff]  ;;  %v17003_v40 = vcombine.low %v573_v32, %v581_v33  ;;  %v557_v46 = vld [vmem:[#allocation14 + $0x280] sm:$0xff]  ;;  %v599_v32 = vld [vmem:[#allocation14 + $0x3d0] sm:$0xff] }
  0xc2   :  { %19658 = vmatmul.mubr.msk.f32.vlgmr.msra.gmra.mxu0 %vm261_vm1, %v249_v7  ;;  %1329 = vmatprep.subr.bf16.mxu0 %v17020_v30  ;;  %v17006_v39 = vcombine.high %v574_v37, %v582_v38  ;;  %v17005_v41 = vcombine.low %v574_v37, %v582_v38  ;;  %v565_v47 = vld [vmem:[#allocation14 + $0x2c0] sm:$0xff]  ;;  %v558_v48 = vld [vmem:[#allocation14 + $0x288] sm:$0xff]  ;;  %v592_v33 = vld [vmem:[#allocation14 + $0x398] sm:$0xff] }
  0xc3   :  { %19665 = vmatpush3.bf16.msra.mxu1 %v19844_v8  ;;  %1330 = vmatpush1.bf16.msra.mxu0 %v17019_v29  ;;  %v16988_v49 = vcombine.high %v557_v46, %v565_v47  ;;  %v566_v50 = vld [vmem:[#allocation14 + $0x2c8] sm:$0xff]  ;;  %v16987_v51 = vcombine.low %v557_v46, %v565_v47  ;;  %v541_v54 = vld [vmem:[#allocation14 + $0x200] sm:$0xff]  ;;  %v16906_v47 = vld [vmem:[#allocation13] ss:$0 sm:$0xff] }
  0xc4   :  { %19666 = vmatprep.subr.bf16.mxu1 %v21043_v0  ;;  %1331 = vmatprep.subr.bf16.mxu0 %v17004_v36  ;;  %v16989_v52 = vcombine.low %v558_v48, %v566_v50  ;;  %v16990_v53 = vcombine.high %v558_v48, %v566_v50  ;;  %v549_v55 = vld [vmem:[#allocation14 + $0x240] sm:$0xff]  ;;  %v542_v56 = vld [vmem:[#allocation14 + $0x208] sm:$0xff]  ;;  %v17023_v36 = vcombine.low %v591_v31, %v599_v32  ;;  %v583_v50 = vld [vmem:[#allocation14 + $0x350] sm:$0xff] }
  0xc5   :  { %v16972_v57 = vcombine.high %v541_v54, %v549_v55  ;;  %v550_v58 = vld [vmem:[#allocation14 + $0x248] sm:$0xff]  ;;  %v16971_v59 = vcombine.low %v541_v54, %v549_v55  ;;  %v525_v62 = vld [vmem:[#allocation14 + $0x180] sm:$0xff] }
  0xc6   :  { %v16973_v60 = vcombine.low %v542_v56, %v550_v58  ;;  %v16974_v61 = vcombine.high %v542_v56, %v550_v58  ;;  %v533_v63 = vld [vmem:[#allocation14 + $0x1c0] sm:$0xff]  ;;  %v526_v1 = vld [vmem:[#allocation14 + $0x188] sm:$0xff]  ;;  %v567_v58 = vld [vmem:[#allocation14 + $0x2d0] sm:$0xff] }
  0xc7   :  { %19667 = vmatpush3.bf16.msra.mxu1 %v19845_v9  ;;  %1332 = vmatpush1.bf16.msra.mxu0 %v17003_v40  ;;  %v16956_v2 = vcombine.high %v525_v62, %v533_v63  ;;  %v534_v3 = vld [vmem:[#allocation14 + $0x1c8] sm:$0xff]  ;;  %v16955_v4 = vcombine.low %v525_v62, %v533_v63  ;;  %v509_v7 = vld [vmem:[#allocation14 + $0x100] sm:$0xff] }
  0xc8   :  { %19668 = vmatprep.subr.bf16.mxu1 %v21043_v0  ;;  %1333 = vmatprep.subr.bf16.mxu0 %v16988_v49  ;;  %v16957_v5 = vcombine.low %v526_v1, %v534_v3  ;;  %v16958_v6 = vcombine.high %v526_v1, %v534_v3  ;;  %v517_v8 = vld [vmem:[#allocation14 + $0x140] sm:$0xff]  ;;  %v510_v9 = vld [vmem:[#allocation14 + $0x108] sm:$0xff]  ;;  %v575_v49 = vld [vmem:[#allocation14 + $0x310] sm:$0xff] }
  0xc9   :  { %v486_v27 = vld [vmem:[#allocation14 + $0x48] sm:$0xff]  ;;  %v17008_v55 = vcombine.high %v575_v49, %v583_v50  ;;  %v543_v1 = vld [vmem:[#allocation14 + $0x210] sm:$0xff]  ;;  %v544_v3 = vld [vmem:[#allocation14 + $0x218] sm:$0xff] }
  0xcb   :  { %19669 = vmatpush3.bf16.msra.mxu1 %v19846_v10  ;;  %1334 = vmatpush1.bf16.msra.mxu0 %v16987_v51  ;;  %v16940_v10 = vcombine.high %v509_v7, %v517_v8  ;;  %v576_v51 = vld [vmem:[#allocation14 + $0x318] sm:$0xff] }
  0xcc   :  { %19670 = vmatprep.subr.bf16.mxu1 %v21043_v0  ;;  %1335 = vmatprep.subr.bf16.mxu0 %v16972_v57  ;;  %v559_v57 = vld [vmem:[#allocation14 + $0x290] sm:$0xff] }
  0xcd   :  { %v16992_v62 = vcombine.high %v559_v57, %v567_v58 }
  0xcf   :  { %19671 = vmatpush3.bf16.msra.mxu1 %v19847_v11  ;;  %1336 = vmatpush1.bf16.msra.mxu0 %v16971_v59  ;;  %v518_v11 = vld [vmem:[#allocation14 + $0x148] sm:$0xff]  ;;  %v560_v59 = vld [vmem:[#allocation14 + $0x298] sm:$0xff] }
  0xd0   :  { %19672 = vmatprep.subr.bf16.mxu1 %v21043_v0  ;;  %1337 = vmatprep.subr.bf16.mxu0 %v16956_v2  ;;  %v551_v2 = vld [vmem:[#allocation14 + $0x250] sm:$0xff] }
  0xd3   :  { %19673 = vmatpush3.bf16.msra.mxu1 %v19848_v12  ;;  %1338 = vmatpush1.bf16.msra.mxu0 %v16955_v4  ;;  %v16939_v12 = vcombine.low %v509_v7, %v517_v8  ;;  %v552_v4 = vld [vmem:[#allocation14 + $0x258] sm:$0xff]  ;;  %v16976_v7 = vcombine.high %v543_v1, %v551_v2 }
  0xd4   :  { %19674 = vmatprep.subr.bf16.mxu1 %v21043_v0  ;;  %1339 = vmatprep.subr.bf16.mxu0 %v16940_v10  ;;  %v16978_v8 = vcombine.high %v544_v3, %v552_v4  ;;  %v535_v10 = vld [vmem:[#allocation14 + $0x1d0] sm:$0xff] }
  0xd7   :  { %19675 = vmatpush3.bf16.msra.mxu1 %v19849_v13  ;;  %v16941_v13 = vcombine.low %v510_v9, %v518_v11  ;;  %1340 = vmatpush1.bf16.msra.mxu0 %v16939_v12  ;;  %v536_v12 = vld [vmem:[#allocation14 + $0x1d8] sm:$0xff] }
  0xd8   :  { %1370 = vmatprep.subr.bf16.mxu1 %v17022_v35  ;;  %v600_v35 = vld [vmem:[#allocation14 + $0x3d8] sm:$0xff] }
  0xd9   :  { %v17025_v37 = vcombine.low %v592_v33, %v600_v35  ;;  %v17026_v38 = vcombine.high %v592_v33, %v600_v35  ;;  %v479_v33 = vld [vmem:[#allocation14 + $0x10] sm:$0xff]  ;;  %v480_v35 = vld [vmem:[#allocation14 + $0x18] sm:$0xff] }
 0x182   :  { %v331_v15 = vpop.f32.mrf.mxu0 }
 0x183   :  { %v332_v16 = vadd.f32 %v16894_v14, %v331_v15  ;;  %v16942_v14 = vcombine.high %v510_v9, %v518_v11  ;;  %v493_v15 = vld [vmem:[#allocation14 + $0x80] sm:$0xff]  ;;  %v527_v9 = vld [vmem:[#allocation14 + $0x190] sm:$0xff]  ;;  %v528_v11 = vld [vmem:[#allocation14 + $0x198] sm:$0xff] }
 0x184   :  { %v19659_v17 = vpop.f32.mrf.mxu0 }
 0x185   :  { %v335_v18 = vpack.c.bf16 %v332_v16, %v332_v16  ;;  %v494_v17 = vld [vmem:[#allocation14 + $0x88] sm:$0xff] }
 0x187   :  { %19677 = vmatmul.mubr.bf16.vlgmr.msra.gmra.mxu1 %v335_v18 }
 0x188   :  { %1371 = vmatpush1.bf16.msra.mxu1 %v17021_v34  ;;  %v17024_v34 = vcombine.high %v591_v31, %v599_v32 }
 0x189   :  { %1372 = vmatprep.subr.bf16.mxu1 %v17006_v39  ;;  %v21045_v39 = vmov 0  }
 0x18a   :  { %1361 = vmatprep.mubr.bf16.mxu0 %v21045_v39  ;;  %1402 = vmatprep.mubr.bf16.mxu1 %v21045_v39 }
 0x18c   :  { %1373 = vmatpush1.bf16.msra.mxu1 %v17005_v41 }
 0x18d   :  { %1374 = vmatprep.subr.bf16.mxu1 %v16990_v53 }
 0x190   :  { %1375 = vmatpush1.bf16.msra.mxu1 %v16989_v52  ;;  %v584_v52 = vld [vmem:[#allocation14 + $0x358] sm:$0xff] }
 0x191   :  { %1376 = vmatprep.subr.bf16.mxu1 %v16974_v61  ;;  %v17010_v56 = vcombine.high %v576_v51, %v584_v52  ;;  %v17009_v61 = vcombine.low %v576_v51, %v584_v52  ;;  %v577_v51 = vld [vmem:[#allocation14 + $0x320] sm:$0xff] }
 0x192   :  { %v585_v52 = vld [vmem:[#allocation14 + $0x360] sm:$0xff] }
 0x194   :  { %1377 = vmatpush1.bf16.msra.mxu1 %v16973_v60  ;;  %v568_v60 = vld [vmem:[#allocation14 + $0x2d8] sm:$0xff] }
 0x195   :  { %1378 = vmatprep.subr.bf16.mxu1 %v16958_v6  ;;  %v16994_v63 = vcombine.high %v560_v59, %v568_v60  ;;  %v16993_v6 = vcombine.low %v560_v59, %v568_v60  ;;  %v17012_v59 = vcombine.high %v577_v51, %v585_v52 }
 0x198   :  { %1379 = vmatpush1.bf16.msra.mxu1 %v16957_v5  ;;  %v16991_v5 = vcombine.low %v559_v57, %v567_v58 }
 0x199   :  { %1380 = vmatprep.subr.bf16.mxu1 %v16942_v14  ;;  %v16977_v14 = vcombine.low %v544_v3, %v552_v4 }
 0x19c   :  { %1381 = vmatpush1.bf16.msra.mxu1 %v16941_v13  ;;  %v16975_v13 = vcombine.low %v543_v1, %v551_v2  ;;  %v17011_v1 = vcombine.low %v577_v51, %v585_v52 }
 0x247   :  { %v441_v20 = vpop.f32.mrf.mxu1 }
 0x248   :  { %v442_v21 = vadd.f32 %v16896_v19, %v441_v20  ;;  %v502_v19 = vld [vmem:[#allocation14 + $0xc8] sm:$0xff] }
 0x249   :  { %v19678_v22 = vpop.f32.mrf.mxu1 }
 0x24a   :  { %v447_v23 = vadd.f32 %v442_v21, %v332_v16  ;;  %v501_v16 = vld [vmem:[#allocation14 + $0xc0] sm:$0xff]  ;;  %v16925_v21 = vcombine.low %v494_v17, %v502_v19  ;;  %v16926_v22 = vcombine.high %v494_v17, %v502_v19  ;;  %v511_v17 = vld [vmem:[#allocation14 + $0x110] sm:$0xff]  ;;  %v512_v19 = vld [vmem:[#allocation14 + $0x118] sm:$0xff] }
 0x24b   :  { %v444_v24 = vpop.f32.mrf.mxu1  ;;  %v16924_v18 = vcombine.high %v493_v15, %v501_v16  ;;  %v16923_v20 = vcombine.low %v493_v15, %v501_v16  ;;  %v16960_v15 = vcombine.high %v527_v9, %v535_v10  ;;  %v16962_v16 = vcombine.high %v528_v11, %v536_v12 }
 0x24c   :  { %450 = vadd.xlane.f32.xlu0 %v447_v23  ;;  %1382 = vmatprep.subr.bf16.mxu1 %v16926_v22  ;;  %v485_v24 = vld [vmem:[#allocation14 + $0x40] sm:$0xff]  ;;  %v16961_v22 = vcombine.low %v528_v11, %v536_v12 }
 0x24d   :  { %v19679_v25 = vpop.f32.mrf.mxu1  ;;  %1341 = vmatprep.subr.bf16.mxu0 %v16924_v18  ;;  %1383 = vmatpush1.bf16.msra.mxu1 %v16925_v21  ;;  %v519_v18 = vld [vmem:[#allocation14 + $0x150] sm:$0xff]  ;;  %v16959_v21 = vcombine.low %v527_v9, %v535_v10 }
 0x24e   :  { %1342 = vmatpush1.bf16.msra.mxu0 %v16923_v20  ;;  %v478_v25 = vld [vmem:[#allocation14 + $0x8] sm:$0xff]  ;;  %v520_v20 = vld [vmem:[#allocation14 + $0x158] sm:$0xff] }
 0x24f   :  { %v16909_v29 = vcombine.low %v478_v25, %v486_v27  ;;  %v16910_v30 = vcombine.high %v478_v25, %v486_v27  ;;  %v495_v25 = vld [vmem:[#allocation14 + $0x90] sm:$0xff]  ;;  %v496_v27 = vld [vmem:[#allocation14 + $0x98] sm:$0xff] }
 0x251   :  { %1384 = vmatprep.subr.bf16.mxu1 %v16910_v30  ;;  %v16945_v30 = vcombine.low %v512_v19, %v520_v20 }
 0x252   :  { %1385 = vmatpush1.bf16.msra.mxu1 %v16909_v29  ;;  %v16943_v29 = vcombine.low %v511_v17, %v519_v18 }
 0x253   :  { %1452 = vmatprep.subr.bf16.mxu1 %v17026_v38 }
 0x2d5   :  { %v451_v42 = vpop.xlane.xlu0 %450 }
 0x2d6   :  { %v453_v43 = vmul.f32 0.0078125, %v451_v42 }
 0x2d8   :  { %v21220_v44 = vsub.f32 %v447_v23, %v453_v43  ;;  %v477_v23 = vld [vmem:[#allocation14] sm:$0xff] }
 0x2d9   :  { %v16908_v26 = vcombine.high %v477_v23, %v485_v24  ;;  %v16907_v28 = vcombine.low %v477_v23, %v485_v24  ;;  %v16944_v23 = vcombine.high %v511_v17, %v519_v18  ;;  %v16946_v24 = vcombine.high %v512_v19, %v520_v20 }
 0x2da   :  { %v455_v45 = vmul.f32 %v21220_v44, %v21220_v44 }
 0x2db   :  { %1343 = vmatprep.subr.bf16.mxu0 %v16908_v26  ;;  %v503_v26 = vld [vmem:[#allocation14 + $0xd0] sm:$0xff] }
 0x2dc   :  { %456 = vadd.xlane.f32.xlu0 %v455_v45  ;;  %1344 = vmatpush1.bf16.msra.mxu0 %v16907_v28  ;;  %v16905_v45 = vld [vmem:[#allocation11] ss:$0 sm:$0xff]  ;;  %v504_v28 = vld [vmem:[#allocation14 + $0xd8] sm:$0xff]  ;;  %v16928_v31 = vcombine.high %v495_v25, %v503_v26 }
 0x2dd   :  { %1411 = vmatprep.subr.bf16.mxu0 %v17024_v34  ;;  %v16930_v32 = vcombine.high %v496_v27, %v504_v28  ;;  %v487_v34 = vld [vmem:[#allocation14 + $0x50] sm:$0xff]  ;;  %v16929_v38 = vcombine.low %v496_v27, %v504_v28 }
 0x365   :  { %v457_v40 = vpop.xlane.xlu0 %456 }
 0x366   :  { %v458_v41 = vmul.f32 0.0078125, %v457_v40  ;;  %v16912_v40 = vcombine.high %v479_v33, %v487_v34 }
 0x368   :  { %v459_v42 = vadd.f32 1e-05, %v458_v41 }
 0x36a   :  { %20658 = vrsqrt.f32 %v459_v42  ;;  %v593_v42 = vld [vmem:[#allocation14 + $0x3a0] sm:$0xff] }
 0x377   :  { %v20659_v43 = vpop.eup %20658 }
 0x378   :  { %v461_v46 = vmul.f32 %v20659_v43, %v21220_v44  ;;  %v17007_v44 = vcombine.low %v575_v49, %v583_v50  ;;  %v601_v43 = vld [vmem:[#allocation14 + $0x3e0] sm:$0xff] }
 0x379   :  { %v17028_v49 = vcombine.high %v593_v42, %v601_v43  ;;  %v17027_v57 = vcombine.low %v593_v42, %v601_v43 }
 0x37a   :  { %v468_v48 = vmul.f32 %v16905_v45, %v461_v46  ;;  %v594_v45 = vld [vmem:[#allocation14 + $0x3a8] sm:$0xff] }
 0x37b   :  { %v602_v46 = vld [vmem:[#allocation14 + $0x3e8] sm:$0xff] }
 0x37c   :  { %v21227_v53 = vadd.f32 %v16906_v47, %v468_v48  ;;  %v16911_v47 = vcombine.low %v479_v33, %v487_v34  ;;  %v17030_v50 = vcombine.high %v594_v45, %v602_v46  ;;  %v17029_v58 = vcombine.low %v594_v45, %v602_v46 }
 0x37e   :  { %v21231_v54 = vpack.c.bf16 %v21227_v53, %v21227_v53 }
 0x380   :  { %1362 = vmatmul.mubr.bf16.vlgmr.msra.gmra.mxu0 %v21231_v54  ;;  %1403 = vmatmul.mubr.bf16.vlgmr.msra.gmra.mxu1 %v21231_v54 }
 0x381   :  { %1412 = vmatpush1.bf16.msra.mxu0 %v17023_v36  ;;  %1453 = vmatpush1.bf16.msra.mxu1 %v17025_v37  ;;  %v488_v36 = vld [vmem:[#allocation14 + $0x58] sm:$0xff]  ;;  %v16927_v37 = vcombine.low %v495_v25, %v503_v26 }
 0x382   :  { %1413 = vmatprep.subr.bf16.mxu0 %v17008_v55  ;;  %1454 = vmatprep.subr.bf16.mxu1 %v17010_v56  ;;  %v16914_v41 = vcombine.high %v480_v35, %v488_v36  ;;  %v16913_v48 = vcombine.low %v480_v35, %v488_v36  ;;  %v578_v55 = vld [vmem:[#allocation14 + $0x328] sm:$0xff] }
 0x383   :  { %1443 = vmatprep.mubr.bf16.mxu0 %v21045_v39  ;;  %1484 = vmatprep.mubr.bf16.mxu1 %v21045_v39  ;;  %v586_v56 = vld [vmem:[#allocation14 + $0x368] sm:$0xff] }
 0x384   :  { %v17014_v60 = vcombine.high %v578_v55, %v586_v56  ;;  %v17013_v2 = vcombine.low %v578_v55, %v586_v56 }
 0x385   :  { %1414 = vmatpush1.bf16.msra.mxu0 %v17007_v44  ;;  %1455 = vmatpush1.bf16.msra.mxu1 %v17009_v61  ;;  %v561_v44 = vld [vmem:[#allocation14 + $0x2a0] sm:$0xff] }
 0x386   :  { %1415 = vmatprep.subr.bf16.mxu0 %v16992_v62  ;;  %1456 = vmatprep.subr.bf16.mxu1 %v16994_v63  ;;  %v569_v61 = vld [vmem:[#allocation14 + $0x2e0] sm:$0xff]  ;;  %v562_v62 = vld [vmem:[#allocation14 + $0x2a8] sm:$0xff] }
 0x387   :  { %v570_v63 = vld [vmem:[#allocation14 + $0x2e8] sm:$0xff]  ;;  %v16996_v3 = vcombine.high %v561_v44, %v569_v61  ;;  %v16995_v9 = vcombine.low %v561_v44, %v569_v61 }
 0x388   :  { %v16998_v4 = vcombine.high %v562_v62, %v570_v63  ;;  %v16997_v10 = vcombine.low %v562_v62, %v570_v63 }
 0x389   :  { %1416 = vmatpush1.bf16.msra.mxu0 %v16991_v5  ;;  %1457 = vmatpush1.bf16.msra.mxu1 %v16993_v6  ;;  %v545_v5 = vld [vmem:[#allocation14 + $0x220] sm:$0xff] }
 0x38a   :  { %1417 = vmatprep.subr.bf16.mxu0 %v16976_v7  ;;  %1458 = vmatprep.subr.bf16.mxu1 %v16978_v8  ;;  %v553_v6 = vld [vmem:[#allocation14 + $0x260] sm:$0xff]  ;;  %v546_v7 = vld [vmem:[#allocation14 + $0x228] sm:$0xff] }
 0x38b   :  { %v554_v8 = vld [vmem:[#allocation14 + $0x268] sm:$0xff]  ;;  %v16980_v11 = vcombine.high %v545_v5, %v553_v6  ;;  %v16979_v17 = vcombine.low %v545_v5, %v553_v6 }
 0x38c   :  { %v16982_v12 = vcombine.high %v546_v7, %v554_v8  ;;  %v16981_v18 = vcombine.low %v546_v7, %v554_v8 }
 0x38d   :  { %1418 = vmatpush1.bf16.msra.mxu0 %v16975_v13  ;;  %1459 = vmatpush1.bf16.msra.mxu1 %v16977_v14  ;;  %v529_v13 = vld [vmem:[#allocation14 + $0x1a0] sm:$0xff] }
 0x38e   :  { %1419 = vmatprep.subr.bf16.mxu0 %v16960_v15  ;;  %1460 = vmatprep.subr.bf16.mxu1 %v16962_v16  ;;  %v537_v14 = vld [vmem:[#allocation14 + $0x1e0] sm:$0xff]  ;;  %v530_v15 = vld [vmem:[#allocation14 + $0x1a8] sm:$0xff] }
 0x38f   :  { %v538_v16 = vld [vmem:[#allocation14 + $0x1e8] sm:$0xff]  ;;  %v16964_v19 = vcombine.high %v529_v13, %v537_v14  ;;  %v16963_v25 = vcombine.low %v529_v13, %v537_v14 }
 0x390   :  { %v16966_v20 = vcombine.high %v530_v15, %v538_v16  ;;  %v16965_v26 = vcombine.low %v530_v15, %v538_v16 }
 0x391   :  { %1420 = vmatpush1.bf16.msra.mxu0 %v16959_v21  ;;  %1461 = vmatpush1.bf16.msra.mxu1 %v16961_v22  ;;  %v513_v21 = vld [vmem:[#allocation14 + $0x120] sm:$0xff] }
 0x392   :  { %1421 = vmatprep.subr.bf16.mxu0 %v16944_v23  ;;  %1462 = vmatprep.subr.bf16.mxu1 %v16946_v24  ;;  %v521_v22 = vld [vmem:[#allocation14 + $0x160] sm:$0xff]  ;;  %v514_v23 = vld [vmem:[#allocation14 + $0x128] sm:$0xff] }
 0x393   :  { %v522_v24 = vld [vmem:[#allocation14 + $0x168] sm:$0xff]  ;;  %v16948_v27 = vcombine.high %v513_v21, %v521_v22  ;;  %v16947_v33 = vcombine.low %v513_v21, %v521_v22 }
 0x394   :  { %v16950_v28 = vcombine.high %v514_v23, %v522_v24  ;;  %v16949_v34 = vcombine.low %v514_v23, %v522_v24 }
 0x395   :  { %1422 = vmatpush1.bf16.msra.mxu0 %v16943_v29  ;;  %1463 = vmatpush1.bf16.msra.mxu1 %v16945_v30  ;;  %v497_v29 = vld [vmem:[#allocation14 + $0xa0] sm:$0xff] }
 0x396   :  { %1423 = vmatprep.subr.bf16.mxu0 %v16928_v31  ;;  %1464 = vmatprep.subr.bf16.mxu1 %v16930_v32  ;;  %v505_v30 = vld [vmem:[#allocation14 + $0xe0] sm:$0xff]  ;;  %v498_v31 = vld [vmem:[#allocation14 + $0xa8] sm:$0xff] }
 0x397   :  { %v506_v32 = vld [vmem:[#allocation14 + $0xe8] sm:$0xff]  ;;  %v16932_v35 = vcombine.high %v497_v29, %v505_v30  ;;  %v16931_v42 = vcombine.low %v497_v29, %v505_v30 }
 0x398   :  { %v16934_v36 = vcombine.high %v498_v31, %v506_v32  ;;  %v16933_v43 = vcombine.low %v498_v31, %v506_v32 }
 0x399   :  { %1424 = vmatpush1.bf16.msra.mxu0 %v16927_v37  ;;  %1465 = vmatpush1.bf16.msra.mxu1 %v16929_v38  ;;  %v481_v37 = vld [vmem:[#allocation14 + $0x20] sm:$0xff] }
 0x39a   :  { %1425 = vmatprep.subr.bf16.mxu0 %v16912_v40  ;;  %1466 = vmatprep.subr.bf16.mxu1 %v16914_v41  ;;  %v489_v38 = vld [vmem:[#allocation14 + $0x60] sm:$0xff]  ;;  %v482_v40 = vld [vmem:[#allocation14 + $0x28] sm:$0xff] }
 0x39b   :  { %v490_v41 = vld [vmem:[#allocation14 + $0x68] sm:$0xff]  ;;  %v16916_v45 = vcombine.high %v481_v37, %v489_v38  ;;  %v16915_v51 = vcombine.low %v481_v37, %v489_v38 }
 0x39c   :  { %v16918_v46 = vcombine.high %v482_v40, %v490_v41  ;;  %v16917_v52 = vcombine.low %v482_v40, %v490_v41 }
 0x39d   :  { %1426 = vmatpush1.bf16.msra.mxu0 %v16911_v47  ;;  %1467 = vmatpush1.bf16.msra.mxu1 %v16913_v48  ;;  %v595_v47 = vld [vmem:[#allocation14 + $0x3b0] sm:$0xff] }
 0x39e   :  { %1493 = vmatprep.subr.bf16.mxu0 %v17028_v49  ;;  %1534 = vmatprep.subr.bf16.mxu1 %v17030_v50  ;;  %v603_v48 = vld [vmem:[#allocation14 + $0x3f0] sm:$0xff]  ;;  %v596_v49 = vld [vmem:[#allocation14 + $0x3b8] sm:$0xff] }
 0x39f   :  { %v604_v50 = vld [vmem:[#allocation14 + $0x3f8] sm:$0xff]  ;;  %v17032_v55 = vcombine.high %v595_v47, %v603_v48  ;;  %v17031_v44 = vcombine.low %v595_v47, %v603_v48 }
 0x3a0   :  { %1444 = vmatmul.mubr.bf16.vlgmr.msra.gmra.mxu0 %v21231_v54  ;;  %1485 = vmatmul.mubr.bf16.vlgmr.msra.gmra.mxu1 %v21231_v54  ;;  %v17034_v56 = vcombine.high %v596_v49, %v604_v50  ;;  %v17033_v61 = vcombine.low %v596_v49, %v604_v50 }
 0x3a1   :  { %1494 = vmatpush1.bf16.msra.mxu0 %v17027_v57  ;;  %1535 = vmatpush1.bf16.msra.mxu1 %v17029_v58  ;;  %v579_v57 = vld [vmem:[#allocation14 + $0x330] sm:$0xff] }
 0x3a2   :  { %1495 = vmatprep.subr.bf16.mxu0 %v17012_v59  ;;  %1536 = vmatprep.subr.bf16.mxu1 %v17014_v60  ;;  %v587_v58 = vld [vmem:[#allocation14 + $0x370] sm:$0xff]  ;;  %v580_v59 = vld [vmem:[#allocation14 + $0x338] sm:$0xff] }
 0x3a3   :  { %1525 = vmatprep.mubr.bf16.mxu0 %v21045_v39  ;;  %1566 = vmatprep.mubr.bf16.mxu1 %v21045_v39  ;;  %v588_v60 = vld [vmem:[#allocation14 + $0x378] sm:$0xff]  ;;  %v17016_v62 = vcombine.high %v579_v57, %v587_v58  ;;  %v17015_v5 = vcombine.low %v579_v57, %v587_v58 }
 0x3a4   :  { %v17018_v63 = vcombine.high %v580_v59, %v588_v60  ;;  %v17017_v6 = vcombine.low %v580_v59, %v588_v60  ;;  %v19852_v57 = vld [vmem:[#allocation17 + $0x38] sm:$0xff]   ;;  %v19854_v59 = vld [vmem:[#allocation17 + $0x70] sm:$0xff]  }
 0x3a5   :  { %1496 = vmatpush1.bf16.msra.mxu0 %v17011_v1  ;;  %1537 = vmatpush1.bf16.msra.mxu1 %v17013_v2  ;;  %v563_v1 = vld [vmem:[#allocation14 + $0x2b0] sm:$0xff]  ;;  %v19853_v58 = vld [vmem:[#allocation17 + $0xb8] sm:$0xff]  }
 0x3a6   :  { %1497 = vmatprep.subr.bf16.mxu0 %v16996_v3  ;;  %1538 = vmatprep.subr.bf16.mxu1 %v16998_v4  ;;  %v571_v2 = vld [vmem:[#allocation14 + $0x2f0] sm:$0xff]  ;;  %v564_v3 = vld [vmem:[#allocation14 + $0x2b8] sm:$0xff] }
 0x3a7   :  { %v572_v4 = vld [vmem:[#allocation14 + $0x2f8] sm:$0xff]  ;;  %v17000_v7 = vcombine.high %v563_v1, %v571_v2  ;;  %v16999_v13 = vcombine.low %v563_v1, %v571_v2  ;;  %v19855_v60 = vld [vmem:[#allocation17 + $0xf0] sm:$0xff]   ;;  %v19860_v1 = vld [vmem:[#allocation17 + $0x28] sm:$0xff]  }
 0x3a8   :  { %v17002_v8 = vcombine.high %v564_v3, %v572_v4  ;;  %v17001_v14 = vcombine.low %v564_v3, %v572_v4  ;;  %v19861_v2 = vld [vmem:[#allocation17 + $0xa8] sm:$0xff]   ;;  %v19862_v3 = vld [vmem:[#allocation17 + $0x60] sm:$0xff]  }
 0x3a9   :  { %1498 = vmatpush1.bf16.msra.mxu0 %v16995_v9  ;;  %1539 = vmatpush1.bf16.msra.mxu1 %v16997_v10  ;;  %v547_v9 = vld [vmem:[#allocation14 + $0x230] sm:$0xff]  ;;  %v19863_v4 = vld [vmem:[#allocation17 + $0xe0] sm:$0xff]  }
 0x3aa   :  { %1499 = vmatprep.subr.bf16.mxu0 %v16980_v11  ;;  %1540 = vmatprep.subr.bf16.mxu1 %v16982_v12  ;;  %v555_v10 = vld [vmem:[#allocation14 + $0x270] sm:$0xff]  ;;  %v548_v11 = vld [vmem:[#allocation14 + $0x238] sm:$0xff] }
 0x3ab   :  { %v556_v12 = vld [vmem:[#allocation14 + $0x278] sm:$0xff]  ;;  %v16984_v15 = vcombine.high %v547_v9, %v555_v10  ;;  %v16983_v21 = vcombine.low %v547_v9, %v555_v10  ;;  %v19870_v10 = vld [vmem:[#allocation17 + $0x50] sm:$0xff]  }
 0x3ac   :  { %v16986_v16 = vcombine.high %v548_v11, %v556_v12  ;;  %v16985_v22 = vcombine.low %v548_v11, %v556_v12  ;;  %v19869_v9 = vld [vmem:[#allocation17 + $0x98] sm:$0xff]   ;;  %v19871_v11 = vld [vmem:[#allocation17 + $0xd0] sm:$0xff]  }
 0x3ad   :  { %1500 = vmatpush1.bf16.msra.mxu0 %v16979_v17  ;;  %1541 = vmatpush1.bf16.msra.mxu1 %v16981_v18  ;;  %v531_v17 = vld [vmem:[#allocation14 + $0x1b0] sm:$0xff] }
 0x3ae   :  { %1501 = vmatprep.subr.bf16.mxu0 %v16964_v19  ;;  %1542 = vmatprep.subr.bf16.mxu1 %v16966_v20  ;;  %v539_v18 = vld [vmem:[#allocation14 + $0x1f0] sm:$0xff]  ;;  %v532_v19 = vld [vmem:[#allocation14 + $0x1b8] sm:$0xff] }
 0x3af   :  { %v540_v20 = vld [vmem:[#allocation14 + $0x1f8] sm:$0xff]  ;;  %v16968_v23 = vcombine.high %v531_v17, %v539_v18  ;;  %v16967_v29 = vcombine.low %v531_v17, %v539_v18  ;;  %v19872_v12 = vld [vmem:[#allocation17 + $0x10] sm:$0xff]   ;;  %v19877_v17 = vld [vmem:[#allocation17 + $0x88] sm:$0xff]  }
 0x3b0   :  { %v16970_v24 = vcombine.high %v532_v19, %v540_v20  ;;  %v16969_v30 = vcombine.low %v532_v19, %v540_v20  ;;  %v19878_v18 = vld [vmem:[#allocation17 + $0x40] sm:$0xff]  }
 0x3b1   :  { %1502 = vmatpush1.bf16.msra.mxu0 %v16963_v25  ;;  %1543 = vmatpush1.bf16.msra.mxu1 %v16965_v26  ;;  %v515_v25 = vld [vmem:[#allocation14 + $0x130] sm:$0xff]  ;;  %v19879_v19 = vld [vmem:[#allocation17 + $0xc0] sm:$0xff]  }
 0x3b2   :  { %1503 = vmatprep.subr.bf16.mxu0 %v16948_v27  ;;  %1544 = vmatprep.subr.bf16.mxu1 %v16950_v28  ;;  %v523_v26 = vld [vmem:[#allocation14 + $0x170] sm:$0xff]  ;;  %v516_v27 = vld [vmem:[#allocation14 + $0x138] sm:$0xff]  ;;  %v19880_v20 = vld [vmem:[#allocation17] sm:$0xff]  }
 0x3b3   :  { %v524_v28 = vld [vmem:[#allocation14 + $0x178] sm:$0xff]  ;;  %v16952_v31 = vcombine.high %v515_v25, %v523_v26  ;;  %v16951_v37 = vcombine.low %v515_v25, %v523_v26 }
 0x3b4   :  { %v16954_v32 = vcombine.high %v516_v27, %v524_v28  ;;  %v16953_v38 = vcombine.low %v516_v27, %v524_v28  ;;  %v21255_v28 = vld [vmem:[#allocation16] sm:$0xff] }
 0x3b5   :  { %1504 = vmatpush1.bf16.msra.mxu0 %v16947_v33  ;;  %1545 = vmatpush1.bf16.msra.mxu1 %v16949_v34  ;;  %v499_v33 = vld [vmem:[#allocation14 + $0xb0] sm:$0xff] }
 0x3b6   :  { %1505 = vmatprep.subr.bf16.mxu0 %v16932_v35  ;;  %1546 = vmatprep.subr.bf16.mxu1 %v16934_v36  ;;  %v507_v34 = vld [vmem:[#allocation14 + $0xf0] sm:$0xff]  ;;  %v500_v35 = vld [vmem:[#allocation14 + $0xb8] sm:$0xff] }
 0x3b7   :  { %v508_v36 = vld [vmem:[#allocation14 + $0xf8] sm:$0xff]  ;;  %v16936_v40 = vcombine.high %v499_v33, %v507_v34  ;;  %v16935_v47 = vcombine.low %v499_v33, %v507_v34 }
 0x3b8   :  { %v16938_v41 = vcombine.high %v500_v35, %v508_v36  ;;  %v16937_v48 = vcombine.low %v500_v35, %v508_v36 }
 0x3b9   :  { %1506 = vmatpush1.bf16.msra.mxu0 %v16931_v42  ;;  %1547 = vmatpush1.bf16.msra.mxu1 %v16933_v43  ;;  %v483_v42 = vld [vmem:[#allocation14 + $0x30] sm:$0xff] }
 0x3ba   :  { %1507 = vmatprep.subr.bf16.mxu0 %v16916_v45  ;;  %1548 = vmatprep.subr.bf16.mxu1 %v16918_v46  ;;  %v491_v43 = vld [vmem:[#allocation14 + $0x70] sm:$0xff]  ;;  %v484_v45 = vld [vmem:[#allocation14 + $0x38] sm:$0xff] }
 0x3bb   :  { %v492_v46 = vld [vmem:[#allocation14 + $0x78] sm:$0xff]  ;;  %v16920_v49 = vcombine.high %v483_v42, %v491_v43 }
 0x3bc   :  { %v16922_v50 = vcombine.high %v484_v45, %v492_v46 }
 0x3bd   :  { %1508 = vmatpush1.bf16.msra.mxu0 %v16915_v51  ;;  %1549 = vmatpush1.bf16.msra.mxu1 %v16917_v52  ;;  %v16919_v51 = vcombine.low %v483_v42, %v491_v43  ;;  %v16921_v52 = vcombine.low %v484_v45, %v492_v46 }
 0x3be   :  { %1575 = vmatprep.subr.bf16.mxu0 %v17032_v55  ;;  %1616 = vmatprep.subr.bf16.mxu1 %v17034_v56  ;;  %v19850_v55 = vld [vmem:[#allocation17 + $0x78] sm:$0xff]  }
 0x3bf   :  { %v19851_v56 = vld [vmem:[#allocation17 + $0xf8] sm:$0xff]  }
 0x3c0   :  { %1526 = vmatmul.mubr.bf16.vlgmr.msra.gmra.mxu0 %v21231_v54  ;;  %1567 = vmatmul.mubr.bf16.vlgmr.msra.gmra.mxu1 %v21231_v54 }
 0x3c1   :  { %1576 = vmatpush1.bf16.msra.mxu0 %v17031_v44  ;;  %1617 = vmatpush1.bf16.msra.mxu1 %v17033_v61  ;;  %v19856_v44 = vld [vmem:[#allocation17 + $0x30] sm:$0xff]  }
 0x3c2   :  { %1577 = vmatprep.subr.bf16.mxu0 %v17016_v62  ;;  %1618 = vmatprep.subr.bf16.mxu1 %v17018_v63  ;;  %v19857_v61 = vld [vmem:[#allocation17 + $0xb0] sm:$0xff]   ;;  %v19858_v62 = vld [vmem:[#allocation17 + $0x68] sm:$0xff]  }
 0x3c3   :  { %1607 = vmatprep.mubr.bf16.mxu0 %v21045_v39  ;;  %1648 = vmatprep.mubr.bf16.mxu1 %v21045_v39  ;;  %v19859_v63 = vld [vmem:[#allocation17 + $0xe8] sm:$0xff]  }
 0x3c5   :  { %1578 = vmatpush1.bf16.msra.mxu0 %v17015_v5  ;;  %1619 = vmatpush1.bf16.msra.mxu1 %v17017_v6  ;;  %v19864_v5 = vld [vmem:[#allocation17 + $0x20] sm:$0xff]   ;;  %v19866_v6 = vld [vmem:[#allocation17 + $0x58] sm:$0xff]  }
 0x3c6   :  { %1579 = vmatprep.subr.bf16.mxu0 %v17000_v7  ;;  %1620 = vmatprep.subr.bf16.mxu1 %v17002_v8  ;;  %v19867_v7 = vld [vmem:[#allocation17 + $0xd8] sm:$0xff]  }
 0x3c7   :  { %v19868_v8 = vld [vmem:[#allocation17 + $0x18] sm:$0xff]  }
 0x3c9   :  { %1580 = vmatpush1.bf16.msra.mxu0 %v16999_v13  ;;  %1621 = vmatpush1.bf16.msra.mxu1 %v17001_v14  ;;  %v19873_v13 = vld [vmem:[#allocation17 + $0x90] sm:$0xff]   ;;  %v19874_v14 = vld [vmem:[#allocation17 + $0x48] sm:$0xff]  }
 0x3ca   :  { %1581 = vmatprep.subr.bf16.mxu0 %v16984_v15  ;;  %1622 = vmatprep.subr.bf16.mxu1 %v16986_v16  ;;  %v19875_v15 = vld [vmem:[#allocation17 + $0xc8] sm:$0xff]  }
 0x3cb   :  { %v19876_v16 = vld [vmem:[#allocation17 + $0x8] sm:$0xff]  }
 0x3cd   :  { %1582 = vmatpush1.bf16.msra.mxu0 %v16983_v21  ;;  %1623 = vmatpush1.bf16.msra.mxu1 %v16985_v22  ;;  %v19881_v21 = vld [vmem:[#allocation17 + $0x80] sm:$0xff]   ;;  %v19882_v22 = vld [vmem:[#allocation17 + $0x178] sm:$0xff]  }
 0x3ce   :  { %1583 = vmatprep.subr.bf16.mxu0 %v16968_v23  ;;  %1624 = vmatprep.subr.bf16.mxu1 %v16970_v24  ;;  %v19883_v23 = vld [vmem:[#allocation17 + $0x1f8] sm:$0xff]   ;;  %v609_v24 = vlaneseq }
 0x3d0   :  { %v21247_v25 = vshrl.u32 %v609_v24, 7 }
 0x3d1   :  { %1584 = vmatpush1.bf16.msra.mxu0 %v16967_v29  ;;  %1625 = vmatpush1.bf16.msra.mxu1 %v16969_v30 }
 0x3d2   :  { %1585 = vmatprep.subr.bf16.mxu0 %v16952_v31  ;;  %1626 = vmatprep.subr.bf16.mxu1 %v16954_v32  ;;  %v21250_v26 = vsub.s32 0, %v21247_v25  ;;  %v21253_v27 = vsub.s32 2, %v21247_v25  ;;  %v21258_v29 = vsub.s32 1, %v21247_v25  ;;  %v21261_v30 = vsub.s32 3, %v21247_v25 }
 0x3d4   :  { %v612_v31 = vrot.slane %v21255_v28, %v21250_v26  ;;  %v620_v32 = vrot.slane %v21255_v28, %v21253_v27  ;;  %v616_v33 = vrot.slane %v21255_v28, %v21258_v29  ;;  %v624_v34 = vrot.slane %v21255_v28, %v21261_v30 }
 0x3d5   :  { %1586 = vmatpush1.bf16.msra.mxu0 %v16951_v37  ;;  %1627 = vmatpush1.bf16.msra.mxu1 %v16953_v38 }
 0x3d6   :  { %1587 = vmatprep.subr.bf16.mxu0 %v16936_v40  ;;  %1628 = vmatprep.subr.bf16.mxu1 %v16938_v41 }
 0x3d9   :  { %1588 = vmatpush1.bf16.msra.mxu0 %v16935_v47  ;;  %1629 = vmatpush1.bf16.msra.mxu1 %v16937_v48 }
 0x3da   :  { %1589 = vmatprep.subr.bf16.mxu0 %v16920_v49  ;;  %1630 = vmatprep.subr.bf16.mxu1 %v16922_v50 }
 0x3dd   :  { %1590 = vmatpush1.bf16.msra.mxu0 %v16919_v51  ;;  %1631 = vmatpush1.bf16.msra.mxu1 %v16921_v52 }
 0x3de   :  { %18531 = vmatprep.subr.bf16.mxu0 %v19850_v55  ;;  %18553 = vmatprep.subr.bf16.mxu1 %v19851_v56 }
 0x3e0   :  { %1608 = vmatmul.mubr.bf16.vlgmr.msra.gmra.mxu0 %v21231_v54  ;;  %1649 = vmatmul.mubr.bf16.vlgmr.msra.gmra.mxu1 %v21231_v54  ;;  %v19865_v54 = vld [vmem:[#allocation17 + $0xa0] sm:$0xff]  }
 0x3e1   :  { %18532 = vmatpush3.bf16.msra.mxu0 %v19852_v57  ;;  %18554 = vmatpush3.bf16.msra.mxu1 %v19853_v58  ;;  %v19884_v57 = vld [vmem:[#allocation17 + $0x138] sm:$0xff]  }
 0x3e2   :  { %18533 = vmatprep.subr.bf16.mxu0 %v19854_v59  ;;  %18555 = vmatprep.subr.bf16.mxu1 %v19855_v60  ;;  %v19885_v58 = vld [vmem:[#allocation17 + $0x1b8] sm:$0xff]  }
 0x3e5   :  { %18534 = vmatpush3.bf16.msra.mxu0 %v19856_v44  ;;  %18556 = vmatpush3.bf16.msra.mxu1 %v19857_v61  ;;  %v19886_v44 = vld [vmem:[#allocation17 + $0x170] sm:$0xff]  }
 0x3e6   :  { %18535 = vmatprep.subr.bf16.mxu0 %v19858_v62  ;;  %18557 = vmatprep.subr.bf16.mxu1 %v19859_v63  ;;  %v19887_v61 = vld [vmem:[#allocation17 + $0x1f0] sm:$0xff]  }
 0x3e7   :  { %v19888_v62 = vld [vmem:[#allocation17 + $0x130] sm:$0xff]  }
 0x3e8   :  { %v19889_v63 = vld [vmem:[#allocation17 + $0x1b0] sm:$0xff]  }
 0x3e9   :  { %18536 = vmatpush3.bf16.msra.mxu0 %v19860_v1  ;;  %18558 = vmatpush3.bf16.msra.mxu1 %v19861_v2  ;;  %v19890_v1 = vld [vmem:[#allocation17 + $0x168] sm:$0xff]  }
 0x3ea   :  { %18537 = vmatprep.subr.bf16.mxu0 %v19862_v3  ;;  %18559 = vmatprep.subr.bf16.mxu1 %v19863_v4  ;;  %v19891_v2 = vld [vmem:[#allocation17 + $0x1e8] sm:$0xff]  }
 0x3eb   :  { %v19892_v3 = vld [vmem:[#allocation17 + $0x128] sm:$0xff]  }
 0x3ec   :  { %v19893_v4 = vld [vmem:[#allocation17 + $0x1a8] sm:$0xff]  }
 0x3ed   :  { %18538 = vmatpush3.bf16.msra.mxu0 %v19864_v5  ;;  %18560 = vmatpush3.bf16.msra.mxu1 %v19865_v54  ;;  %v19894_v5 = vld [vmem:[#allocation17 + $0x160] sm:$0xff]  }
 0x3ee   :  { %18539 = vmatprep.subr.bf16.mxu0 %v19866_v6  ;;  %18561 = vmatprep.subr.bf16.mxu1 %v19867_v7  ;;  %v19895_v54 = vld [vmem:[#allocation17 + $0x1e0] sm:$0xff]  }
 0x3ef   :  { %v19896_v6 = vld [vmem:[#allocation17 + $0x120] sm:$0xff]  }
 0x3f0   :  { %v19897_v7 = vld [vmem:[#allocation17 + $0x1a0] sm:$0xff]  }
 0x3f1   :  { %18540 = vmatpush3.bf16.msra.mxu0 %v19868_v8  ;;  %18562 = vmatpush3.bf16.msra.mxu1 %v19869_v9  ;;  %v19898_v8 = vld [vmem:[#allocation17 + $0x158] sm:$0xff]  }
 0x3f2   :  { %18541 = vmatprep.subr.bf16.mxu0 %v19870_v10  ;;  %18563 = vmatprep.subr.bf16.mxu1 %v19871_v11  ;;  %v19899_v9 = vld [vmem:[#allocation17 + $0x1d8] sm:$0xff]  }
 0x3f3   :  { %v19900_v10 = vld [vmem:[#allocation17 + $0x118] sm:$0xff]  }
 0x3f4   :  { %v19901_v11 = vld [vmem:[#allocation17 + $0x198] sm:$0xff]  }
 0x3f5   :  { %18542 = vmatpush3.bf16.msra.mxu0 %v19872_v12  ;;  %18564 = vmatpush3.bf16.msra.mxu1 %v19873_v13  ;;  %v19902_v12 = vld [vmem:[#allocation17 + $0x150] sm:$0xff]  }
 0x3f6   :  { %18543 = vmatprep.subr.bf16.mxu0 %v19874_v14  ;;  %18565 = vmatprep.subr.bf16.mxu1 %v19875_v15  ;;  %v19903_v13 = vld [vmem:[#allocation17 + $0x1d0] sm:$0xff]   ;;  %v21272_v14 = vsub.s32 4, %v21247_v25  ;;  %v21275_v15 = vsub.s32 6, %v21247_v25 }
 0x3f9   :  { %18544 = vmatpush3.bf16.msra.mxu0 %v19876_v16  ;;  %18566 = vmatpush3.bf16.msra.mxu1 %v19877_v17  ;;  %v19904_v16 = vld [vmem:[#allocation17 + $0x110] sm:$0xff]  }
 0x3fa   :  { %18545 = vmatprep.subr.bf16.mxu0 %v19878_v18  ;;  %18567 = vmatprep.subr.bf16.mxu1 %v19879_v19  ;;  %v19905_v17 = vld [vmem:[#allocation17 + $0x190] sm:$0xff]   ;;  %v21278_v18 = vsub.s32 5, %v21247_v25  ;;  %v21281_v19 = vsub.s32 7, %v21247_v25  ;;  %v19908_v25 = vld [vmem:[#allocation17 + $0x108] sm:$0xff]  }
 0x3fc   :  { %v632_v24 = vrot.slane %v21255_v28, %v21278_v18 }
 0x3fd   :  { %18546 = vmatpush3.bf16.msra.mxu0 %v19880_v20  ;;  %18568 = vmatpush3.bf16.msra.mxu1 %v19881_v21  ;;  %v19906_v20 = vld [vmem:[#allocation17 + $0x148] sm:$0xff]  }
 0x3fe   :  { %18575 = vmatprep.subr.bf16.mxu0 %v19882_v22  ;;  %18597 = vmatprep.subr.bf16.mxu1 %v19883_v23  ;;  %v19907_v21 = vld [vmem:[#allocation17 + $0x1c8] sm:$0xff]   ;;  %v628_v22 = vrot.slane %v21255_v28, %v21272_v14  ;;  %v636_v23 = vrot.slane %v21255_v28, %v21275_v15 }
 0x440   :  { %v1363_v35 = vpop.f32.mrf.mxu0  ;;  %v1404_v36 = vpop.f32.mrf.mxu1 }
 0x441   :  { %v1364_v37 = vadd.f32 %v1363_v35, %v612_v31  ;;  %v1405_v38 = vadd.f32 %v1404_v36, %v620_v32  ;;  %v640_v31 = vrot.slane %v21255_v28, %v21281_v19  ;;  %v19909_v32 = vld [vmem:[#allocation17 + $0x188] sm:$0xff]   ;;  %v19910_v35 = vld [vmem:[#allocation17 + $0x140] sm:$0xff]  }
 0x442   :  { %v1365_v40 = vpop.f32.mrf.mxu0  ;;  %v1406_v41 = vpop.f32.mrf.mxu1  ;;  %v19911_v36 = vld [vmem:[#allocation17 + $0x1c0] sm:$0xff]  }
 0x443   :  { %v1366_v42 = vadd.f32 %v1365_v40, %v616_v33  ;;  %v1407_v43 = vadd.f32 %v1406_v41, %v624_v34  ;;  %v1657_v45 = vmax.f32 %v1364_v37, 0.0  ;;  %v1659_v46 = vmax.f32 %v1405_v38, 0.0 }
 0x444   :  { %v1367_v47 = vpop.f32.mrf.mxu0  ;;  %v1408_v48 = vpop.f32.mrf.mxu1 }
 0x445   :  { %v1658_v49 = vmax.f32 %v1366_v42, 0.0  ;;  %v1660_v50 = vmax.f32 %v1407_v43, 0.0  ;;  %v1673_v59 = vpack.c.bf16 %v1657_v45, %v1657_v45  ;;  %v1675_v60 = vpack.c.bf16 %v1659_v46, %v1659_v46  ;;  %v19912_v45 = vld [vmem:[#allocation17 + $0x100] sm:$0xff]  }
 0x446   :  { %v1368_v51 = vpop.f32.mrf.mxu0  ;;  %v1409_v52 = vpop.f32.mrf.mxu1  ;;  %v19913_v46 = vld [vmem:[#allocation17 + $0x180] sm:$0xff]  }
 0x447   :  { %v1674_v55 = vpack.c.bf16 %v1658_v49, %v1658_v49  ;;  %v1676_v56 = vpack.c.bf16 %v1660_v50, %v1660_v50  ;;  %v19914_v50 = vld [vmem:[#allocation17 + $0x278] sm:$0xff]  }
 0x448   :  { %v19915_v51 = vld [vmem:[#allocation17 + $0x2f8] sm:$0xff]  }
 0x449   :  { %2752 = vmatprep.mubr.bf16.mxu0 %v1674_v55  ;;  %2792 = vmatprep.mubr.bf16.mxu1 %v1676_v56 }
 0x44a   :  { %2753 = vmatmul.mubr.bf16.vlgmr.msra.gmra.mxu0 %v1673_v59  ;;  %2793 = vmatmul.mubr.bf16.vlgmr.msra.gmra.mxu1 %v1675_v60  ;;  %v19916_v60 = vld [vmem:[#allocation17 + $0x238] sm:$0xff]  }
 0x44b   :  { %18576 = vmatpush3.bf16.msra.mxu0 %v19884_v57  ;;  %18598 = vmatpush3.bf16.msra.mxu1 %v19885_v58 }
 0x44c   :  { %18577 = vmatprep.subr.bf16.mxu0 %v19886_v44  ;;  %18599 = vmatprep.subr.bf16.mxu1 %v19887_v61  ;;  %v19917_v44 = vld [vmem:[#allocation17 + $0x2b8] sm:$0xff]  }
 0x44f   :  { %18578 = vmatpush3.bf16.msra.mxu0 %v19888_v62  ;;  %18600 = vmatpush3.bf16.msra.mxu1 %v19889_v63  ;;  %v19918_v63 = vld [vmem:[#allocation17 + $0x270] sm:$0xff]  }
 0x450   :  { %18579 = vmatprep.subr.bf16.mxu0 %v19890_v1  ;;  %18601 = vmatprep.subr.bf16.mxu1 %v19891_v2  ;;  %v19919_v1 = vld [vmem:[#allocation17 + $0x2f0] sm:$0xff]  }
 0x451   :  { %v19920_v2 = vld [vmem:[#allocation17 + $0x230] sm:$0xff]  }
 0x453   :  { %18580 = vmatpush3.bf16.msra.mxu0 %v19892_v3  ;;  %18602 = vmatpush3.bf16.msra.mxu1 %v19893_v4  ;;  %v19921_v3 = vld [vmem:[#allocation17 + $0x2b0] sm:$0xff]   ;;  %v19922_v4 = vld [vmem:[#allocation17 + $0x268] sm:$0xff]  }
 0x454   :  { %18581 = vmatprep.subr.bf16.mxu0 %v19894_v5  ;;  %18603 = vmatprep.subr.bf16.mxu1 %v19895_v54  ;;  %v19923_v5 = vld [vmem:[#allocation17 + $0x2e8] sm:$0xff]  }
 0x455   :  { %v19924_v54 = vld [vmem:[#allocation17 + $0x228] sm:$0xff]  }
 0x457   :  { %18582 = vmatpush3.bf16.msra.mxu0 %v19896_v6  ;;  %18604 = vmatpush3.bf16.msra.mxu1 %v19897_v7  ;;  %v19925_v6 = vld [vmem:[#allocation17 + $0x2a8] sm:$0xff]   ;;  %v19926_v7 = vld [vmem:[#allocation17 + $0x260] sm:$0xff]  }
 0x458   :  { %18583 = vmatprep.subr.bf16.mxu0 %v19898_v8  ;;  %18605 = vmatprep.subr.bf16.mxu1 %v19899_v9  ;;  %v19927_v8 = vld [vmem:[#allocation17 + $0x2e0] sm:$0xff]  }
 0x459   :  { %v19928_v9 = vld [vmem:[#allocation17 + $0x220] sm:$0xff]  }
 0x45b   :  { %18584 = vmatpush3.bf16.msra.mxu0 %v19900_v10  ;;  %18606 = vmatpush3.bf16.msra.mxu1 %v19901_v11  ;;  %v19929_v10 = vld [vmem:[#allocation17 + $0x2a0] sm:$0xff]   ;;  %v19930_v11 = vld [vmem:[#allocation17 + $0x258] sm:$0xff]  }
 0x45c   :  { %18585 = vmatprep.subr.bf16.mxu0 %v19902_v12  ;;  %18607 = vmatprep.subr.bf16.mxu1 %v19903_v13  ;;  %v19931_v12 = vld [vmem:[#allocation17 + $0x2d8] sm:$0xff]  }
 0x45d   :  { %v19932_v13 = vld [vmem:[#allocation17 + $0x218] sm:$0xff]  }
 0x45f   :  { %18586 = vmatpush3.bf16.msra.mxu0 %v19904_v16  ;;  %18608 = vmatpush3.bf16.msra.mxu1 %v19905_v17  ;;  %v19933_v16 = vld [vmem:[#allocation17 + $0x298] sm:$0xff]   ;;  %v19934_v17 = vld [vmem:[#allocation17 + $0x250] sm:$0xff]  }
 0x460   :  { %v1445_v33 = vpop.f32.mrf.mxu0  ;;  %v1486_v34 = vpop.f32.mrf.mxu1  ;;  %18587 = vmatprep.subr.bf16.mxu0 %v19906_v20  ;;  %18609 = vmatprep.subr.bf16.mxu1 %v19907_v21  ;;  %v19935_v20 = vld [vmem:[#allocation17 + $0x2d0] sm:$0xff]   ;;  %v21291_v21 = vld [vmem:[#allocation16 + $0x8] sm:$0xff] }
 0x461   :  { %v1446_v37 = vadd.f32 %v1445_v33, %v628_v22  ;;  %v1487_v38 = vadd.f32 %v1486_v34, %v636_v23  ;;  %v19936_v22 = vld [vmem:[#allocation17 + $0x210] sm:$0xff]   ;;  %v648_v33 = vrot.slane %v21291_v21, %v21258_v29  ;;  %v656_v34 = vrot.slane %v21291_v21, %v21261_v30 }
 0x462   :  { %v1447_v40 = vpop.f32.mrf.mxu0  ;;  %v1488_v41 = vpop.f32.mrf.mxu1  ;;  %v19937_v23 = vld [vmem:[#allocation17 + $0x290] sm:$0xff]  }
 0x463   :  { %v1448_v42 = vadd.f32 %v1447_v40, %v632_v24  ;;  %v1489_v43 = vadd.f32 %v1488_v41, %v640_v31  ;;  %18588 = vmatpush3.bf16.msra.mxu0 %v19908_v25  ;;  %18610 = vmatpush3.bf16.msra.mxu1 %v19909_v32  ;;  %v1661_v47 = vmax.f32 %v1446_v37, 0.0  ;;  %v1663_v28 = vmax.f32 %v1487_v38, 0.0  ;;  %v19938_v24 = vld [vmem:[#allocation17 + $0x248] sm:$0xff]   ;;  %v19942_v40 = vld [vmem:[#allocation17 + $0x240] sm:$0xff]  }
 0x464   :  { %v1449_v48 = vpop.f32.mrf.mxu0  ;;  %v1490_v49 = vpop.f32.mrf.mxu1  ;;  %18589 = vmatprep.subr.bf16.mxu0 %v19910_v35  ;;  %18611 = vmatprep.subr.bf16.mxu1 %v19911_v36  ;;  %v19939_v31 = vld [vmem:[#allocation17 + $0x2c8] sm:$0xff]   ;;  %v644_v25 = vrot.slane %v21291_v21, %v21250_v26  ;;  %v652_v32 = vrot.slane %v21291_v21, %v21253_v27  ;;  %v19943_v41 = vld [vmem:[#allocation17 + $0x2c0] sm:$0xff]  }
 0x465   :  { %v1662_v52 = vmax.f32 %v1448_v42, 0.0  ;;  %v1664_v55 = vmax.f32 %v1489_v43, 0.0  ;;  %v1677_v61 = vpack.c.bf16 %v1661_v47, %v1661_v47  ;;  %v1679_v62 = vpack.c.bf16 %v1663_v28, %v1663_v28  ;;  %v19940_v35 = vld [vmem:[#allocation17 + $0x208] sm:$0xff]   ;;  %v19944_v48 = vld [vmem:[#allocation17 + $0x200] sm:$0xff]  }
 0x466   :  { %v1450_v56 = vpop.f32.mrf.mxu0  ;;  %v1491_v57 = vpop.f32.mrf.mxu1  ;;  %v19941_v36 = vld [vmem:[#allocation17 + $0x288] sm:$0xff]   ;;  %v19945_v49 = vld [vmem:[#allocation17 + $0x280] sm:$0xff]  }
 0x467   :  { %v1678_v58 = vpack.c.bf16 %v1662_v52, %v1662_v52  ;;  %v1680_v59 = vpack.c.bf16 %v1664_v55, %v1664_v55  ;;  %18590 = vmatpush3.bf16.msra.mxu0 %v19912_v45  ;;  %18612 = vmatpush3.bf16.msra.mxu1 %v19913_v46  ;;  %v19946_v56 = vld [vmem:[#allocation17 + $0x378] sm:$0xff]  }
 0x468   :  { %18619 = vmatprep.subr.bf16.mxu0 %v19914_v50  ;;  %18641 = vmatprep.subr.bf16.mxu1 %v19915_v51  ;;  %v19947_v57 = vld [vmem:[#allocation17 + $0x3f8] sm:$0xff]  }
 0x469   :  { %2832 = vmatprep.mubr.bf16.mxu0 %v1678_v58  ;;  %2872 = vmatprep.mubr.bf16.mxu1 %v1680_v59 }
 0x46a   :  { %2833 = vmatmul.mubr.bf16.vlgmr.msra.gmra.mxu0 %v1677_v61  ;;  %2873 = vmatmul.mubr.bf16.vlgmr.msra.gmra.mxu1 %v1679_v62 }
 0x46b   :  { %18620 = vmatpush3.bf16.msra.mxu0 %v19916_v60  ;;  %18642 = vmatpush3.bf16.msra.mxu1 %v19917_v44 }
 0x46c   :  { %18621 = vmatprep.subr.bf16.mxu0 %v19918_v63  ;;  %18643 = vmatprep.subr.bf16.mxu1 %v19919_v1  ;;  %v19948_v63 = vld [vmem:[#allocation17 + $0x338] sm:$0xff]  }
 0x46d   :  { %v19949_v1 = vld [vmem:[#allocation17 + $0x3b8] sm:$0xff]  }
 0x46f   :  { %18622 = vmatpush3.bf16.msra.mxu0 %v19920_v2  ;;  %18644 = vmatpush3.bf16.msra.mxu1 %v19921_v3 }
 0x470   :  { %18623 = vmatprep.subr.bf16.mxu0 %v19922_v4  ;;  %18645 = vmatprep.subr.bf16.mxu1 %v19923_v5  ;;  %v19950_v4 = vld [vmem:[#allocation17 + $0x370] sm:$0xff]  }
 0x471   :  { %v19951_v5 = vld [vmem:[#allocation17 + $0x3f0] sm:$0xff]  }
 0x473   :  { %18624 = vmatpush3.bf16.msra.mxu0 %v19924_v54  ;;  %18646 = vmatpush3.bf16.msra.mxu1 %v19925_v6  ;;  %v19952_v54 = vld [vmem:[#allocation17 + $0x330] sm:$0xff]  }
 0x474   :  { %18625 = vmatprep.subr.bf16.mxu0 %v19926_v7  ;;  %18647 = vmatprep.subr.bf16.mxu1 %v19927_v8  ;;  %v19953_v6 = vld [vmem:[#allocation17 + $0x3b0] sm:$0xff]   ;;  %v19954_v7 = vld [vmem:[#allocation17 + $0x368] sm:$0xff]  }
 0x475   :  { %v19955_v8 = vld [vmem:[#allocation17 + $0x3e8] sm:$0xff]  }
 0x477   :  { %18626 = vmatpush3.bf16.msra.mxu0 %v19928_v9  ;;  %18648 = vmatpush3.bf16.msra.mxu1 %v19929_v10  ;;  %v19956_v9 = vld [vmem:[#allocation17 + $0x328] sm:$0xff]  }
 0x478   :  { %18627 = vmatprep.subr.bf16.mxu0 %v19930_v11  ;;  %18649 = vmatprep.subr.bf16.mxu1 %v19931_v12  ;;  %v19957_v10 = vld [vmem:[#allocation17 + $0x3a8] sm:$0xff]   ;;  %v19958_v11 = vld [vmem:[#allocation17 + $0x360] sm:$0xff]  }
 0x479   :  { %v19959_v12 = vld [vmem:[#allocation17 + $0x3e0] sm:$0xff]  }
 0x47b   :  { %18628 = vmatpush3.bf16.msra.mxu0 %v19932_v13  ;;  %18650 = vmatpush3.bf16.msra.mxu1 %v19933_v16  ;;  %v19960_v13 = vld [vmem:[#allocation17 + $0x320] sm:$0xff]  }
 0x47c   :  { %18629 = vmatprep.subr.bf16.mxu0 %v19934_v17  ;;  %18651 = vmatprep.subr.bf16.mxu1 %v19935_v20  ;;  %v19961_v16 = vld [vmem:[#allocation17 + $0x3a0] sm:$0xff]   ;;  %v19962_v17 = vld [vmem:[#allocation17 + $0x358] sm:$0xff]  }
 0x47d   :  { %v19963_v20 = vld [vmem:[#allocation17 + $0x3d8] sm:$0xff]  }
 0x47f   :  { %18630 = vmatpush3.bf16.msra.mxu0 %v19936_v22  ;;  %18652 = vmatpush3.bf16.msra.mxu1 %v19937_v23  ;;  %v19964_v22 = vld [vmem:[#allocation17 + $0x318] sm:$0xff]  }
 0x480   :  { %v1527_v37 = vpop.f32.mrf.mxu0  ;;  %v1568_v38 = vpop.f32.mrf.mxu1  ;;  %18631 = vmatprep.subr.bf16.mxu0 %v19938_v24  ;;  %18653 = vmatprep.subr.bf16.mxu1 %v19939_v31  ;;  %v19965_v23 = vld [vmem:[#allocation17 + $0x398] sm:$0xff]   ;;  %v19966_v24 = vld [vmem:[#allocation17 + $0x350] sm:$0xff]  }
 0x481   :  { %v1528_v42 = vadd.f32 %v1527_v37, %v644_v25  ;;  %v1569_v43 = vadd.f32 %v1568_v38, %v652_v32  ;;  %v19967_v31 = vld [vmem:[#allocation17 + $0x3d0] sm:$0xff]   ;;  %v664_v37 = vrot.slane %v21291_v21, %v21278_v18  ;;  %v672_v38 = vrot.slane %v21291_v21, %v21281_v19 }
 0x482   :  { %v1529_v45 = vpop.f32.mrf.mxu0  ;;  %v1570_v46 = vpop.f32.mrf.mxu1  ;;  %v19968_v25 = vld [vmem:[#allocation17 + $0x310] sm:$0xff]  }
 0x483   :  { %v1530_v47 = vadd.f32 %v1529_v45, %v648_v33  ;;  %v1571_v28 = vadd.f32 %v1570_v46, %v656_v34  ;;  %18632 = vmatpush3.bf16.msra.mxu0 %v19940_v35  ;;  %18654 = vmatpush3.bf16.msra.mxu1 %v19941_v36  ;;  %v1665_v50 = vmax.f32 %v1528_v42, 0.0  ;;  %v1667_v51 = vmax.f32 %v1569_v43, 0.0  ;;  %v19969_v32 = vld [vmem:[#allocation17 + $0x390] sm:$0xff]   ;;  %v19970_v33 = vld [vmem:[#allocation17 + $0x348] sm:$0xff]   ;;  %v19974_v45 = vld [vmem:[#allocation17 + $0x340] sm:$0xff]  }
 0x484   :  { %v1531_v52 = vpop.f32.mrf.mxu0  ;;  %v1572_v55 = vpop.f32.mrf.mxu1  ;;  %18633 = vmatprep.subr.bf16.mxu0 %v19942_v40  ;;  %18655 = vmatprep.subr.bf16.mxu1 %v19943_v41  ;;  %v19971_v34 = vld [vmem:[#allocation17 + $0x3c8] sm:$0xff]   ;;  %v660_v35 = vrot.slane %v21291_v21, %v21272_v14  ;;  %v668_v36 = vrot.slane %v21291_v21, %v21275_v15  ;;  %v19975_v46 = vld [vmem:[#allocation17 + $0x3c0] sm:$0xff]  }
 0x485   :  { %v1666_v58 = vmax.f32 %v1530_v47, 0.0  ;;  %v1668_v59 = vmax.f32 %v1571_v28, 0.0  ;;  %v1681_v2 = vpack.c.bf16 %v1665_v50, %v1665_v50  ;;  %v1683_v3 = vpack.c.bf16 %v1667_v51, %v1667_v51  ;;  %v19972_v40 = vld [vmem:[#allocation17 + $0x308] sm:$0xff]   ;;  %v19976_v52 = vld [vmem:[#allocation17 + $0x300] sm:$0xff]  }
 0x486   :  { %v1532_v60 = vpop.f32.mrf.mxu0  ;;  %v1573_v44 = vpop.f32.mrf.mxu1  ;;  %v19973_v41 = vld [vmem:[#allocation17 + $0x388] sm:$0xff]   ;;  %v19977_v55 = vld [vmem:[#allocation17 + $0x380] sm:$0xff]  }
 0x487   :  { %v1682_v61 = vpack.c.bf16 %v1666_v58, %v1666_v58  ;;  %v1684_v62 = vpack.c.bf16 %v1668_v59, %v1668_v59  ;;  %18634 = vmatpush3.bf16.msra.mxu0 %v19944_v48  ;;  %18656 = vmatpush3.bf16.msra.mxu1 %v19945_v49 }
 0x488   :  { %18663 = vmatprep.subr.bf16.mxu0 %v19946_v56  ;;  %18685 = vmatprep.subr.bf16.mxu1 %v19947_v57 }
 0x489   :  { %2912 = vmatprep.mubr.bf16.mxu0 %v1682_v61  ;;  %2952 = vmatprep.mubr.bf16.mxu1 %v1684_v62 }
 0x48a   :  { %2913 = vmatmul.mubr.bf16.vlgmr.msra.gmra.mxu0 %v1681_v2  ;;  %2953 = vmatmul.mubr.bf16.vlgmr.msra.gmra.mxu1 %v1683_v3 }
 0x48b   :  { %18664 = vmatpush3.bf16.msra.mxu0 %v19948_v63  ;;  %18686 = vmatpush3.bf16.msra.mxu1 %v19949_v1 }
 0x48c   :  { %18665 = vmatprep.subr.bf16.mxu0 %v19950_v4  ;;  %18687 = vmatprep.subr.bf16.mxu1 %v19951_v5  ;;  %v17035_v5 = vld [vmem:[#allocation19] ss:$0 sm:$0xff] }
 0x48f   :  { %18666 = vmatpush3.bf16.msra.mxu0 %v19952_v54  ;;  %18688 = vmatpush3.bf16.msra.mxu1 %v19953_v6 }
 0x490   :  { %18667 = vmatprep.subr.bf16.mxu0 %v19954_v7  ;;  %18689 = vmatprep.subr.bf16.mxu1 %v19955_v8 }
 0x493   :  { %18668 = vmatpush3.bf16.msra.mxu0 %v19956_v9  ;;  %18690 = vmatpush3.bf16.msra.mxu1 %v19957_v10 }
 0x494   :  { %18669 = vmatprep.subr.bf16.mxu0 %v19958_v11  ;;  %18691 = vmatprep.subr.bf16.mxu1 %v19959_v12 }
 0x497   :  { %18670 = vmatpush3.bf16.msra.mxu0 %v19960_v13  ;;  %18692 = vmatpush3.bf16.msra.mxu1 %v19961_v16 }
 0x498   :  { %18671 = vmatprep.subr.bf16.mxu0 %v19962_v17  ;;  %18693 = vmatprep.subr.bf16.mxu1 %v19963_v20 }
 0x49b   :  { %18672 = vmatpush3.bf16.msra.mxu0 %v19964_v22  ;;  %18694 = vmatpush3.bf16.msra.mxu1 %v19965_v23 }
 0x49c   :  { %18673 = vmatprep.subr.bf16.mxu0 %v19966_v24  ;;  %18695 = vmatprep.subr.bf16.mxu1 %v19967_v31 }
 0x49f   :  { %18674 = vmatpush3.bf16.msra.mxu0 %v19968_v25  ;;  %18696 = vmatpush3.bf16.msra.mxu1 %v19969_v32 }
 0x4a0   :  { %v1609_v42 = vpop.f32.mrf.mxu0  ;;  %v1650_v43 = vpop.f32.mrf.mxu1  ;;  %18675 = vmatprep.subr.bf16.mxu0 %v19970_v33  ;;  %18697 = vmatprep.subr.bf16.mxu1 %v19971_v34 }
 0x4a1   :  { %v1610_v47 = vadd.f32 %v1609_v42, %v660_v35  ;;  %v1651_v28 = vadd.f32 %v1650_v43, %v668_v36 }
 0x4a2   :  { %v1611_v48 = vpop.f32.mrf.mxu0  ;;  %v1652_v49 = vpop.f32.mrf.mxu1 }
 0x4a3   :  { %v1612_v50 = vadd.f32 %v1611_v48, %v664_v37  ;;  %v1653_v51 = vadd.f32 %v1652_v49, %v672_v38  ;;  %18676 = vmatpush3.bf16.msra.mxu0 %v19972_v40  ;;  %18698 = vmatpush3.bf16.msra.mxu1 %v19973_v41  ;;  %v1669_v56 = vmax.f32 %v1610_v47, 0.0  ;;  %v1671_v21 = vmax.f32 %v1651_v28, 0.0 }
 0x4a4   :  { %v1613_v57 = vpop.f32.mrf.mxu0  ;;  %v1654_v58 = vpop.f32.mrf.mxu1  ;;  %18677 = vmatprep.subr.bf16.mxu0 %v19974_v45  ;;  %18699 = vmatprep.subr.bf16.mxu1 %v19975_v46 }
 0x4a5   :  { %v1670_v59 = vmax.f32 %v1612_v50, 0.0  ;;  %v1672_v60 = vmax.f32 %v1653_v51, 0.0  ;;  %v1685_v1 = vpack.c.bf16 %v1669_v56, %v1669_v56  ;;  %v1687_v2 = vpack.c.bf16 %v1671_v21, %v1671_v21 }
 0x4a6   :  { %v1614_v44 = vpop.f32.mrf.mxu0  ;;  %v1655_v61 = vpop.f32.mrf.mxu1 }
 0x4a7   :  { %v1686_v62 = vpack.c.bf16 %v1670_v59, %v1670_v59  ;;  %v1688_v63 = vpack.c.bf16 %v1672_v60, %v1672_v60  ;;  %18678 = vmatpush3.bf16.msra.mxu0 %v19976_v52  ;;  %18700 = vmatpush3.bf16.msra.mxu1 %v19977_v55 }
 0x4a8   :  { %19680 = vmatprep.subr.bf16.mxu0 %v21043_v0 }
 0x4a9   :  { %2992 = vmatprep.mubr.bf16.mxu0 %v1686_v62  ;;  %3032 = vmatprep.mubr.bf16.mxu1 %v1688_v63  ;;  %v19978_v63 = vld [vmem:[#allocation8 + $0x78] sm:$0xff]  }
 0x4aa   :  { %2993 = vmatmul.mubr.bf16.vlgmr.msra.gmra.mxu0 %v1685_v1  ;;  %3033 = vmatmul.mubr.bf16.vlgmr.msra.gmra.mxu1 %v1687_v2  ;;  %v19979_v1 = vld [vmem:[#allocation8 + $0x70] sm:$0xff]  }
 0x4ab   :  { %19696 = vmatprep.mubr.msk.bf16.mxu0 %vm21044_vm0, %v21043_v0  ;;  %4099 = vmatprep.mubr.bf16.mxu1 %v21045_v39 }
 0x4ac   :  { %19681 = vmatpush3.bf16.msra.mxu0 %v19978_v63 }
 0x4ad   :  { %19682 = vmatprep.subr.bf16.mxu0 %v21043_v0 }
 0x4b0   :  { %19683 = vmatpush3.bf16.msra.mxu0 %v19979_v1 }
 0x4b1   :  { %19684 = vmatprep.subr.bf16.mxu0 %v21043_v0 }
 0x50a   :  { %v18547_v3 = vpop.f32.mrf.mxu0  ;;  %v18569_v4 = vpop.f32.mrf.mxu1 }
 0x50c   :  { %v18548_v54 = vpop.f32.mrf.mxu0  ;;  %v18570_v6 = vpop.f32.mrf.mxu1 }
 0x50d   :  { %v18549_v7 = vadd.f32 %v18548_v54, %v18547_v3  ;;  %v18571_v8 = vadd.f32 %v18570_v6, %v18569_v4  ;;  %v19980_v54 = vld [vmem:[#allocation8 + $0x68] sm:$0xff]   ;;  %v19981_v6 = vld [vmem:[#allocation8 + $0x60] sm:$0xff]  }
 0x50e   :  { %v18550_v9 = vpop.f32.mrf.mxu0  ;;  %v18572_v10 = vpop.f32.mrf.mxu1  ;;  %19685 = vmatpush3.bf16.msra.mxu0 %v19980_v54 }
 0x50f   :  { %v2755_v11 = vadd.f32 %v18549_v7, %v17035_v5  ;;  %19686 = vmatprep.subr.bf16.mxu0 %v21043_v0  ;;  %v19983_v7 = vld [vmem:[#allocation8 + $0x50] sm:$0xff]   ;;  %v19985_v9 = vld [vmem:[#allocation8 + $0x40] sm:$0xff]  }
 0x510   :  { %v18551_v12 = vpop.f32.mrf.mxu0  ;;  %v18573_v13 = vpop.f32.mrf.mxu1 }
 0x511   :  { %v2795_v16 = vadd.f32 %v18571_v8, %v2755_v11  ;;  %v19984_v8 = vld [vmem:[#allocation8 + $0x48] sm:$0xff]  }
 0x512   :  { %19687 = vmatpush3.bf16.msra.mxu0 %v19981_v6  ;;  %v3287_v6 = vld [vmem:[#allocation14 + $0x648] sm:$0xff] }
 0x513   :  { %19688 = vmatprep.subr.bf16.mxu0 %v21043_v0 }
 0x52a   :  { %v18591_v17 = vpop.f32.mrf.mxu0  ;;  %v18613_v20 = vpop.f32.mrf.mxu1 }
 0x52c   :  { %v18592_v22 = vpop.f32.mrf.mxu0  ;;  %v18614_v23 = vpop.f32.mrf.mxu1 }
 0x52d   :  { %v18593_v42 = vadd.f32 %v18592_v22, %v18591_v17  ;;  %v18615_v45 = vadd.f32 %v18614_v23, %v18613_v20  ;;  %v17165_v20 = vld [vmem:[#allocation22] ss:$0 sm:$0xff] }
 0x52e   :  { %v18594_v24 = vpop.f32.mrf.mxu0  ;;  %v18616_v31 = vpop.f32.mrf.mxu1 }
 0x52f   :  { %v2835_v43 = vadd.f32 %v18593_v42, %v2795_v16  ;;  %v17164_v16 = vld [vmem:[#allocation20] ss:$0 sm:$0xff]  ;;  %v17166_v31 = vld [vmem:[#allocation10 + $0x1] ss:$0 sm:$0xff] }
 0x530   :  { %v18595_v25 = vpop.f32.mrf.mxu0  ;;  %v18617_v32 = vpop.f32.mrf.mxu1 }
 0x531   :  { %v2875_v47 = vadd.f32 %v18615_v45, %v2835_v43  ;;  %v3335_v43 = vld [vmem:[#allocation14 + $0x7c8] sm:$0xff]  ;;  %v3310_v45 = vld [vmem:[#allocation14 + $0x700] sm:$0xff] }
 0x54a   :  { %v18635_v33 = vpop.f32.mrf.mxu0  ;;  %v18657_v34 = vpop.f32.mrf.mxu1 }
 0x54c   :  { %v18636_v35 = vpop.f32.mrf.mxu0  ;;  %v18658_v36 = vpop.f32.mrf.mxu1 }
 0x54d   :  { %v18637_v46 = vadd.f32 %v18636_v35, %v18635_v33  ;;  %v18659_v50 = vadd.f32 %v18658_v36, %v18657_v34 }
 0x54e   :  { %v18638_v37 = vpop.f32.mrf.mxu0  ;;  %v18660_v38 = vpop.f32.mrf.mxu1 }
 0x54f   :  { %v2915_v28 = vadd.f32 %v18637_v46, %v2875_v47  ;;  %v3326_v37 = vld [vmem:[#allocation14 + $0x780] sm:$0xff] }
 0x550   :  { %v18639_v40 = vpop.f32.mrf.mxu0  ;;  %v18661_v41 = vpop.f32.mrf.mxu1  ;;  %v3334_v38 = vld [vmem:[#allocation14 + $0x7c0] sm:$0xff] }
 0x551   :  { %v2955_v55 = vadd.f32 %v18659_v50, %v2915_v28  ;;  %v3327_v40 = vld [vmem:[#allocation14 + $0x788] sm:$0xff]  ;;  %v17289_v41 = vcombine.low %v3326_v37, %v3334_v38  ;;  %v17290_v42 = vcombine.high %v3326_v37, %v3334_v38  ;;  %v3318_v46 = vld [vmem:[#allocation14 + $0x740] sm:$0xff] }
 0x552   :  { %v17291_v47 = vcombine.low %v3327_v40, %v3335_v43  ;;  %v17292_v28 = vcombine.high %v3327_v40, %v3335_v43  ;;  %v3319_v50 = vld [vmem:[#allocation14 + $0x748] sm:$0xff] }
 0x553   :  { %4067 = vmatprep.subr.bf16.mxu1 %v17290_v42  ;;  %v3231_v37 = vld [vmem:[#allocation14 + $0x488] sm:$0xff] }
 0x554   :  { %4068 = vmatpush1.bf16.msra.mxu1 %v17289_v41  ;;  %v3239_v40 = vld [vmem:[#allocation14 + $0x4c8] sm:$0xff] }
 0x555   :  { %v17195_v42 = vcombine.low %v3231_v37, %v3239_v40  ;;  %v17196_v43 = vcombine.high %v3231_v37, %v3239_v40  ;;  %v3264_v37 = vld [vmem:[#allocation14 + $0x590] sm:$0xff]  ;;  %v3265_v40 = vld [vmem:[#allocation14 + $0x598] sm:$0xff] }
 0x56a   :  { %v18679_v48 = vpop.f32.mrf.mxu0  ;;  %v18701_v49 = vpop.f32.mrf.mxu1 }
 0x56c   :  { %v18680_v51 = vpop.f32.mrf.mxu0  ;;  %v18702_v52 = vpop.f32.mrf.mxu1 }
 0x56d   :  { %v18681_v56 = vadd.f32 %v18680_v51, %v18679_v48  ;;  %v18703_v59 = vadd.f32 %v18702_v52, %v18701_v49  ;;  %v17274_v48 = vcombine.high %v3310_v45, %v3318_v46  ;;  %v3311_v49 = vld [vmem:[#allocation14 + $0x708] sm:$0xff]  ;;  %v17273_v52 = vcombine.low %v3310_v45, %v3318_v46  ;;  %v3214_v45 = vld [vmem:[#allocation14 + $0x400] sm:$0xff] }
 0x56e   :  { %v18682_v21 = vpop.f32.mrf.mxu0  ;;  %v18704_v57 = vpop.f32.mrf.mxu1  ;;  %v17276_v51 = vcombine.high %v3311_v49, %v3319_v50  ;;  %v3222_v46 = vld [vmem:[#allocation14 + $0x440] sm:$0xff] }
 0x56f   :  { %v2995_v58 = vadd.f32 %v18681_v56, %v2955_v55  ;;  %4069 = vmatprep.subr.bf16.mxu1 %v17274_v48  ;;  %v17275_v55 = vcombine.low %v3311_v49, %v3319_v50  ;;  %v3223_v48 = vld [vmem:[#allocation14 + $0x448] sm:$0xff]  ;;  %v17177_v49 = vcombine.low %v3214_v45, %v3222_v46 }
 0x570   :  { %v18683_v60 = vpop.f32.mrf.mxu0  ;;  %v18705_v44 = vpop.f32.mrf.mxu1  ;;  %4070 = vmatpush1.bf16.msra.mxu1 %v17273_v52  ;;  %v3328_v52 = vld [vmem:[#allocation14 + $0x790] sm:$0xff] }
 0x571   :  { %v3035_v61 = vadd.f32 %v18703_v59, %v2995_v58  ;;  %v3294_v59 = vld [vmem:[#allocation14 + $0x680] sm:$0xff]  ;;  %v3295_v44 = vld [vmem:[#allocation14 + $0x688] sm:$0xff] }
 0x572   :  { %v3302_v60 = vld [vmem:[#allocation14 + $0x6c0] sm:$0xff] }
 0x573   :  { %v3040_v62 = vadd.f32 %v3035_v61, %v21227_v53  ;;  %v19982_v53 = vld [vmem:[#allocation8 + $0x58] sm:$0xff]   ;;  %v17258_v61 = vcombine.high %v3294_v59, %v3302_v60  ;;  %v17257_v63 = vcombine.low %v3294_v59, %v3302_v60 }
 0x574   :  { %19689 = vmatpush3.bf16.msra.mxu0 %v19982_v53 }
 0x575   :  { %3043 = vadd.xlane.f32.xlu1 %v3040_v62  ;;  %19690 = vmatprep.subr.bf16.mxu0 %v21043_v0 }
 0x576   :  { %4071 = vmatprep.subr.bf16.mxu1 %v17258_v61 }
 0x577   :  { %4072 = vmatpush1.bf16.msra.mxu1 %v17257_v63 }
 0x578   :  { %19691 = vmatpush3.bf16.msra.mxu0 %v19983_v7 }
 0x579   :  { %19692 = vmatprep.subr.bf16.mxu0 %v21043_v0 }
 0x57c   :  { %19693 = vmatpush3.bf16.msra.mxu0 %v19984_v8 }
 0x57d   :  { %19694 = vmatprep.subr.bf16.mxu0 %v21043_v0 }
 0x580   :  { %19695 = vmatpush3.bf16.msra.mxu0 %v19985_v9  ;;  %v3262_v9 = vld [vmem:[#allocation14 + $0x580] sm:$0xff] }
 0x581   :  { %4108 = vmatprep.subr.bf16.mxu0 %v17292_v28  ;;  %v17178_v28 = vcombine.high %v3214_v45, %v3222_v46 }
 0x5fe   :  { %v3044_v2 = vpop.xlane.xlu1 %3043 }
 0x5ff   :  { %v3045_v3 = vmul.f32 0.0078125, %v3044_v2 }
 0x601   :  { %v3046_v4 = vsub.f32 %v3040_v62, %v3045_v3  ;;  %v3303_v62 = vld [vmem:[#allocation14 + $0x6c8] sm:$0xff]  ;;  %v3278_v3 = vld [vmem:[#allocation14 + $0x600] sm:$0xff] }
 0x602   :  { %v17259_v1 = vcombine.low %v3295_v44, %v3303_v62  ;;  %v17260_v2 = vcombine.high %v3295_v44, %v3303_v62 }
 0x603   :  { %v3047_v5 = vmul.f32 %v3046_v4, %v3046_v4 }
 0x605   :  { %3048 = vadd.xlane.f32.xlu1 %v3047_v5  ;;  %v3279_v5 = vld [vmem:[#allocation14 + $0x608] sm:$0xff] }
 0x606   :  { %v17243_v7 = vcombine.low %v3279_v5, %v3287_v6  ;;  %v17244_v8 = vcombine.high %v3279_v5, %v3287_v6  ;;  %v3320_v6 = vld [vmem:[#allocation14 + $0x750] sm:$0xff] }
 0x68e   :  { %v3049_v10 = vpop.xlane.xlu1 %3048 }
 0x68f   :  { %v3050_v11 = vmul.f32 0.0078125, %v3049_v10  ;;  %v3270_v10 = vld [vmem:[#allocation14 + $0x5c0] sm:$0xff] }
 0x691   :  { %v3051_v12 = vadd.f32 1e-05, %v3050_v11  ;;  %v3263_v11 = vld [vmem:[#allocation14 + $0x588] sm:$0xff] }
 0x693   :  { %20660 = vrsqrt.f32 %v3051_v12  ;;  %v17226_v12 = vcombine.high %v3262_v9, %v3270_v10 }
 0x6a0   :  { %v20661_v13 = vpop.eup %20660 }
 0x6a1   :  { %v3053_v17 = vmul.f32 %v20661_v13, %v3046_v4  ;;  %v3286_v4 = vld [vmem:[#allocation14 + $0x640] sm:$0xff]  ;;  %v3271_v13 = vld [vmem:[#allocation14 + $0x5c8] sm:$0xff] }
 0x6a2   :  { %v17242_v54 = vcombine.high %v3278_v3, %v3286_v4  ;;  %v17241_v53 = vcombine.low %v3278_v3, %v3286_v4  ;;  %v17176_v4 = vld [vmem:[#allocation13 + $0x1] ss:$0 sm:$0xff] }
 0x6a3   :  { %v3060_v22 = vmul.f32 %v17164_v16, %v3053_v17  ;;  %v17225_v16 = vcombine.low %v3262_v9, %v3270_v10  ;;  %v17227_v17 = vcombine.low %v3263_v11, %v3271_v13 }
 0x6a4   :  { %4073 = vmatprep.subr.bf16.mxu1 %v17242_v54  ;;  %v3312_v54 = vld [vmem:[#allocation14 + $0x710] sm:$0xff] }
 0x6a5   :  { %v3067_v23 = vadd.f32 %v17165_v20, %v3060_v22  ;;  %4074 = vmatpush1.bf16.msra.mxu1 %v17241_v53  ;;  %v17228_v20 = vcombine.high %v3263_v11, %v3271_v13  ;;  %v3246_v22 = vld [vmem:[#allocation14 + $0x500] sm:$0xff]  ;;  %v3313_v53 = vld [vmem:[#allocation14 + $0x718] sm:$0xff]  ;;  %v17278_v10 = vcombine.high %v3312_v54, %v3320_v6  ;;  %v3304_v13 = vld [vmem:[#allocation14 + $0x6d0] sm:$0xff] }
 0x6a6   :  { %4075 = vmatprep.subr.bf16.mxu1 %v17226_v12  ;;  %v3296_v12 = vld [vmem:[#allocation14 + $0x690] sm:$0xff] }
 0x6a7   :  { %v3068_v24 = vpack.c.bf16 %v3067_v23, %v3067_v23 }
 0x6a9   :  { %19697 = vmatmul.mubr.bf16.vlgmr.msra.gmra.mxu0 %v3068_v24  ;;  %4076 = vmatpush1.bf16.msra.mxu1 %v17225_v16  ;;  %v3247_v24 = vld [vmem:[#allocation14 + $0x508] sm:$0xff]  ;;  %v3297_v16 = vld [vmem:[#allocation14 + $0x698] sm:$0xff] }
 0x6aa   :  { %4140 = vmatprep.mubr.bf16.mxu0 %v21045_v39  ;;  %4109 = vmatpush1.bf16.msra.mxu0 %v17291_v47  ;;  %v3215_v47 = vld [vmem:[#allocation14 + $0x408] sm:$0xff] }
 0x6ab   :  { %4110 = vmatprep.subr.bf16.mxu0 %v17276_v51  ;;  %v17179_v50 = vcombine.low %v3215_v47, %v3223_v48  ;;  %v17180_v51 = vcombine.high %v3215_v47, %v3223_v48  ;;  %v3248_v47 = vld [vmem:[#allocation14 + $0x510] sm:$0xff]  ;;  %v3249_v48 = vld [vmem:[#allocation14 + $0x518] sm:$0xff] }
 0x6ae   :  { %4111 = vmatpush1.bf16.msra.mxu0 %v17275_v55  ;;  %v3336_v55 = vld [vmem:[#allocation14 + $0x7d0] sm:$0xff] }
 0x6af   :  { %4112 = vmatprep.subr.bf16.mxu0 %v17260_v2  ;;  %v17293_v59 = vcombine.low %v3328_v52, %v3336_v55  ;;  %v17175_v2 = vld [vmem:[#allocation11 + $0x1] ss:$0 sm:$0xff] }
 0x6b2   :  { %4113 = vmatpush1.bf16.msra.mxu0 %v17259_v1 }
 0x6b3   :  { %4114 = vmatprep.subr.bf16.mxu0 %v17244_v8 }
 0x6b6   :  { %4115 = vmatpush1.bf16.msra.mxu0 %v17243_v7  ;;  %v3321_v7 = vld [vmem:[#allocation14 + $0x758] sm:$0xff] }
 0x6b7   :  { %4116 = vmatprep.subr.bf16.mxu0 %v17228_v20  ;;  %v17280_v11 = vcombine.high %v3313_v53, %v3321_v7  ;;  %v17279_v20 = vcombine.low %v3313_v53, %v3321_v7  ;;  %v3330_v53 = vld [vmem:[#allocation14 + $0x7a0] sm:$0xff] }
 0x6b8   :  { %v3338_v7 = vld [vmem:[#allocation14 + $0x7e0] sm:$0xff] }
 0x6ba   :  { %4117 = vmatpush1.bf16.msra.mxu0 %v17227_v17  ;;  %v3305_v17 = vld [vmem:[#allocation14 + $0x6d8] sm:$0xff] }
 0x769   :  { %v3176_v25 = vpop.f32.mrf.mxu0 }
 0x76a   :  { %v3177_v32 = vadd.f32 %v17166_v31, %v3176_v25  ;;  %v3255_v25 = vld [vmem:[#allocation14 + $0x548] sm:$0xff] }
 0x76b   :  { %v19698_v33 = vpop.f32.mrf.mxu0 }
 0x76c   :  { %v3182_v34 = vadd.f32 %v3177_v32, %v3067_v23  ;;  %v3254_v23 = vld [vmem:[#allocation14 + $0x540] sm:$0xff]  ;;  %v17211_v33 = vcombine.low %v3247_v24, %v3255_v25 }
 0x76d   :  { %v3179_v35 = vpop.f32.mrf.mxu0  ;;  %v17210_v31 = vcombine.high %v3246_v22, %v3254_v23  ;;  %v17209_v32 = vcombine.low %v3246_v22, %v3254_v23  ;;  %v17262_v22 = vcombine.high %v3296_v12, %v3304_v13  ;;  %v17264_v23 = vcombine.high %v3297_v16, %v3305_v17 }
 0x76e   :  { %3187 = vadd.xlane.f32.xlu0 %v3182_v34  ;;  %v3230_v35 = vld [vmem:[#allocation14 + $0x480] sm:$0xff] }
 0x76f   :  { %v19699_v36 = vpop.f32.mrf.mxu0  ;;  %4077 = vmatprep.subr.bf16.mxu1 %v17210_v31  ;;  %v3288_v31 = vld [vmem:[#allocation14 + $0x650] sm:$0xff] }
 0x770   :  { %4078 = vmatpush1.bf16.msra.mxu1 %v17209_v32  ;;  %v3238_v36 = vld [vmem:[#allocation14 + $0x4c0] sm:$0xff]  ;;  %v3289_v32 = vld [vmem:[#allocation14 + $0x658] sm:$0xff] }
 0x771   :  { %v17194_v38 = vcombine.high %v3230_v35, %v3238_v36  ;;  %v17193_v41 = vcombine.low %v3230_v35, %v3238_v36 }
 0x773   :  { %4079 = vmatprep.subr.bf16.mxu1 %v17194_v38  ;;  %v3272_v38 = vld [vmem:[#allocation14 + $0x5d0] sm:$0xff] }
 0x774   :  { %4080 = vmatpush1.bf16.msra.mxu1 %v17193_v41  ;;  %v3273_v41 = vld [vmem:[#allocation14 + $0x5d8] sm:$0xff]  ;;  %v17230_v45 = vcombine.high %v3264_v37, %v3272_v38 }
 0x775   :  { %4081 = vmatprep.subr.bf16.mxu1 %v17178_v28  ;;  %v17232_v46 = vcombine.high %v3265_v40, %v3273_v41  ;;  %v3256_v28 = vld [vmem:[#allocation14 + $0x550] sm:$0xff] }
 0x778   :  { %4082 = vmatpush1.bf16.msra.mxu1 %v17177_v49  ;;  %v3257_v49 = vld [vmem:[#allocation14 + $0x558] sm:$0xff] }
 0x7f7   :  { %v3188_v56 = vpop.xlane.xlu0 %3187 }
 0x7f8   :  { %v3189_v21 = vmul.f32 0.0078125, %v3188_v56  ;;  %v3329_v56 = vld [vmem:[#allocation14 + $0x798] sm:$0xff] }
 0x7fa   :  { %v21322_v57 = vsub.f32 %v3182_v34, %v3189_v21  ;;  %v17212_v34 = vcombine.high %v3247_v24, %v3255_v25  ;;  %v17294_v21 = vcombine.high %v3328_v52, %v3336_v55  ;;  %v3280_v24 = vld [vmem:[#allocation14 + $0x610] sm:$0xff]  ;;  %v3281_v25 = vld [vmem:[#allocation14 + $0x618] sm:$0xff]  ;;  %v17214_v52 = vcombine.high %v3248_v47, %v3256_v28 }
 0x7fb   :  { %v17246_v35 = vcombine.high %v3280_v24, %v3288_v31  ;;  %v17248_v36 = vcombine.high %v3281_v25, %v3289_v32  ;;  %v17216_v55 = vcombine.high %v3249_v48, %v3257_v49 }
 0x7fc   :  { %v3191_v58 = vmul.f32 %v21322_v57, %v21322_v57  ;;  %4118 = vmatprep.subr.bf16.mxu0 %v17212_v34  ;;  %4149 = vmatprep.subr.bf16.mxu1 %v17294_v21  ;;  %v17263_v34 = vcombine.low %v3297_v16, %v3305_v17  ;;  %v3240_v21 = vld [vmem:[#allocation14 + $0x4d0] sm:$0xff]  ;;  %v17298_v16 = vcombine.high %v3330_v53, %v3338_v7 }
 0x7fd   :  { %4119 = vmatpush1.bf16.msra.mxu0 %v17211_v33  ;;  %v17261_v33 = vcombine.low %v3296_v12, %v3304_v13 }
 0x7fe   :  { %3192 = vadd.xlane.f32.xlu1 %v3191_v58  ;;  %4120 = vmatprep.subr.bf16.mxu0 %v17196_v43  ;;  %v3337_v58 = vld [vmem:[#allocation14 + $0x7d8] sm:$0xff]  ;;  %v17247_v43 = vcombine.low %v3281_v25, %v3289_v32 }
 0x7ff   :  { %v17295_v60 = vcombine.low %v3329_v56, %v3337_v58  ;;  %v17296_v44 = vcombine.high %v3329_v56, %v3337_v58  ;;  %v3232_v56 = vld [vmem:[#allocation14 + $0x490] sm:$0xff]  ;;  %v3233_v58 = vld [vmem:[#allocation14 + $0x498] sm:$0xff] }
 0x801   :  { %4121 = vmatpush1.bf16.msra.mxu0 %v17195_v42  ;;  %v17245_v42 = vcombine.low %v3280_v24, %v3288_v31  ;;  %v17297_v24 = vcombine.low %v3330_v53, %v3338_v7 }
 0x802   :  { %4122 = vmatprep.subr.bf16.mxu0 %v17180_v51  ;;  %v17231_v51 = vcombine.low %v3265_v40, %v3273_v41 }
 0x805   :  { %4123 = vmatpush1.bf16.msra.mxu0 %v17179_v50  ;;  %v17229_v50 = vcombine.low %v3264_v37, %v3272_v38 }
 0x806   :  { %4190 = vmatprep.subr.bf16.mxu0 %v17296_v44  ;;  %v17215_v44 = vcombine.low %v3249_v48, %v3257_v49 }
 0x887   :  { %v3193_v61 = vpop.xlane.xlu1 %3192 }
 0x888   :  { %v3194_v62 = vmul.f32 0.0078125, %v3193_v61  ;;  %v17198_v61 = vcombine.high %v3232_v56, %v3240_v21 }
 0x88a   :  { %v3195_v63 = vadd.f32 1e-05, %v3194_v62 }
 0x88c   :  { %20662 = vrsqrt.f32 %v3195_v63  ;;  %v3216_v63 = vld [vmem:[#allocation14 + $0x410] sm:$0xff] }
 0x899   :  { %v20663_v1 = vpop.eup %20662 }
 0x89a   :  { %v3197_v3 = vmul.f32 %v20663_v1, %v21322_v57  ;;  %v17277_v57 = vcombine.low %v3312_v54, %v3320_v6  ;;  %v3224_v1 = vld [vmem:[#allocation14 + $0x450] sm:$0xff] }
 0x89b   :  { %v17182_v54 = vcombine.high %v3216_v63, %v3224_v1  ;;  %v17181_v12 = vcombine.low %v3216_v63, %v3224_v1 }
 0x89c   :  { %v3204_v5 = vmul.f32 %v17175_v2, %v3197_v3  ;;  %v3217_v2 = vld [vmem:[#allocation14 + $0x418] sm:$0xff] }
 0x89d   :  { %v3225_v3 = vld [vmem:[#allocation14 + $0x458] sm:$0xff] }
 0x89e   :  { %v21327_v8 = vadd.f32 %v17176_v4, %v3204_v5  ;;  %v17197_v4 = vcombine.low %v3232_v56, %v3240_v21  ;;  %v17184_v6 = vcombine.high %v3217_v2, %v3225_v3  ;;  %v17183_v13 = vcombine.low %v3217_v2, %v3225_v3 }
 0x8a0   :  { %v21331_v9 = vpack.c.bf16 %v21327_v8, %v21327_v8 }
 0x8a2   :  { %4100 = vmatmul.mubr.bf16.vlgmr.msra.gmra.mxu1 %v21331_v9  ;;  %4141 = vmatmul.mubr.bf16.vlgmr.msra.gmra.mxu0 %v21331_v9 }
 0x8a3   :  { %4150 = vmatpush1.bf16.msra.mxu1 %v17293_v59  ;;  %4191 = vmatpush1.bf16.msra.mxu0 %v17295_v60  ;;  %v3241_v59 = vld [vmem:[#allocation14 + $0x4d8] sm:$0xff]  ;;  %v17213_v60 = vcombine.low %v3248_v47, %v3256_v28 }
 0x8a4   :  { %4151 = vmatprep.subr.bf16.mxu1 %v17278_v10  ;;  %4192 = vmatprep.subr.bf16.mxu0 %v17280_v11  ;;  %v17200_v62 = vcombine.high %v3233_v58, %v3241_v59  ;;  %v17199_v5 = vcombine.low %v3233_v58, %v3241_v59  ;;  %v3331_v10 = vld [vmem:[#allocation14 + $0x7a8] sm:$0xff] }
 0x8a5   :  { %4181 = vmatprep.mubr.bf16.mxu1 %v21045_v39  ;;  %4222 = vmatprep.mubr.bf16.mxu0 %v21045_v39  ;;  %v3339_v11 = vld [vmem:[#allocation14 + $0x7e8] sm:$0xff] }
 0x8a6   :  { %v17300_v17 = vcombine.high %v3331_v10, %v3339_v11  ;;  %v17299_v31 = vcombine.low %v3331_v10, %v3339_v11 }
 0x8a7   :  { %4152 = vmatpush1.bf16.msra.mxu1 %v17277_v57  ;;  %4193 = vmatpush1.bf16.msra.mxu0 %v17279_v20  ;;  %v3314_v57 = vld [vmem:[#allocation14 + $0x720] sm:$0xff] }
 0x8a8   :  { %4153 = vmatprep.subr.bf16.mxu1 %v17262_v22  ;;  %4194 = vmatprep.subr.bf16.mxu0 %v17264_v23  ;;  %v3322_v20 = vld [vmem:[#allocation14 + $0x760] sm:$0xff]  ;;  %v3315_v22 = vld [vmem:[#allocation14 + $0x728] sm:$0xff] }
 0x8a9   :  { %v3323_v23 = vld [vmem:[#allocation14 + $0x768] sm:$0xff]  ;;  %v17282_v25 = vcombine.high %v3314_v57, %v3322_v20  ;;  %v17281_v37 = vcombine.low %v3314_v57, %v3322_v20 }
 0x8aa   :  { %v17284_v32 = vcombine.high %v3315_v22, %v3323_v23  ;;  %v17283_v38 = vcombine.low %v3315_v22, %v3323_v23 }
 0x8ab   :  { %4154 = vmatpush1.bf16.msra.mxu1 %v17261_v33  ;;  %4195 = vmatpush1.bf16.msra.mxu0 %v17263_v34  ;;  %v3298_v33 = vld [vmem:[#allocation14 + $0x6a0] sm:$0xff] }
 0x8ac   :  { %4155 = vmatprep.subr.bf16.mxu1 %v17246_v35  ;;  %4196 = vmatprep.subr.bf16.mxu0 %v17248_v36  ;;  %v3306_v34 = vld [vmem:[#allocation14 + $0x6e0] sm:$0xff]  ;;  %v3299_v35 = vld [vmem:[#allocation14 + $0x6a8] sm:$0xff] }
 0x8ad   :  { %v3307_v36 = vld [vmem:[#allocation14 + $0x6e8] sm:$0xff]  ;;  %v17266_v40 = vcombine.high %v3298_v33, %v3306_v34  ;;  %v17265_v47 = vcombine.low %v3298_v33, %v3306_v34 }
 0x8ae   :  { %v17268_v41 = vcombine.high %v3299_v35, %v3307_v36  ;;  %v17267_v28 = vcombine.low %v3299_v35, %v3307_v36 }
 0x8af   :  { %4156 = vmatpush1.bf16.msra.mxu1 %v17245_v42  ;;  %4197 = vmatpush1.bf16.msra.mxu0 %v17247_v43  ;;  %v3282_v42 = vld [vmem:[#allocation14 + $0x620] sm:$0xff] }
 0x8b0   :  { %4157 = vmatprep.subr.bf16.mxu1 %v17230_v45  ;;  %4198 = vmatprep.subr.bf16.mxu0 %v17232_v46  ;;  %v3290_v43 = vld [vmem:[#allocation14 + $0x660] sm:$0xff]  ;;  %v3283_v45 = vld [vmem:[#allocation14 + $0x628] sm:$0xff] }
 0x8b1   :  { %v3291_v46 = vld [vmem:[#allocation14 + $0x668] sm:$0xff]  ;;  %v17250_v48 = vcombine.high %v3282_v42, %v3290_v43  ;;  %v17249_v56 = vcombine.low %v3282_v42, %v3290_v43 }
 0x8b2   :  { %v17252_v49 = vcombine.high %v3283_v45, %v3291_v46  ;;  %v17251_v21 = vcombine.low %v3283_v45, %v3291_v46 }
 0x8b3   :  { %4158 = vmatpush1.bf16.msra.mxu1 %v17229_v50  ;;  %4199 = vmatpush1.bf16.msra.mxu0 %v17231_v51  ;;  %v3266_v50 = vld [vmem:[#allocation14 + $0x5a0] sm:$0xff] }
 0x8b4   :  { %4159 = vmatprep.subr.bf16.mxu1 %v17214_v52  ;;  %4200 = vmatprep.subr.bf16.mxu0 %v17216_v55  ;;  %v3274_v51 = vld [vmem:[#allocation14 + $0x5e0] sm:$0xff]  ;;  %v3267_v52 = vld [vmem:[#allocation14 + $0x5a8] sm:$0xff] }
 0x8b5   :  { %v3275_v55 = vld [vmem:[#allocation14 + $0x5e8] sm:$0xff]  ;;  %v17234_v58 = vcombine.high %v3266_v50, %v3274_v51  ;;  %v17233_v63 = vcombine.low %v3266_v50, %v3274_v51 }
 0x8b6   :  { %v17236_v59 = vcombine.high %v3267_v52, %v3275_v55  ;;  %v17235_v1 = vcombine.low %v3267_v52, %v3275_v55 }
 0x8b7   :  { %4160 = vmatpush1.bf16.msra.mxu1 %v17213_v60  ;;  %4201 = vmatpush1.bf16.msra.mxu0 %v17215_v44  ;;  %v3250_v60 = vld [vmem:[#allocation14 + $0x520] sm:$0xff] }
 0x8b8   :  { %4161 = vmatprep.subr.bf16.mxu1 %v17198_v61  ;;  %4202 = vmatprep.subr.bf16.mxu0 %v17200_v62  ;;  %v3258_v44 = vld [vmem:[#allocation14 + $0x560] sm:$0xff]  ;;  %v3251_v61 = vld [vmem:[#allocation14 + $0x528] sm:$0xff] }
 0x8b9   :  { %v3259_v62 = vld [vmem:[#allocation14 + $0x568] sm:$0xff]  ;;  %v17218_v2 = vcombine.high %v3250_v60, %v3258_v44  ;;  %v17217_v53 = vcombine.low %v3250_v60, %v3258_v44 }
 0x8ba   :  { %v17220_v3 = vcombine.high %v3251_v61, %v3259_v62  ;;  %v17219_v7 = vcombine.low %v3251_v61, %v3259_v62 }
 0x8bb   :  { %4162 = vmatpush1.bf16.msra.mxu1 %v17197_v4  ;;  %4203 = vmatpush1.bf16.msra.mxu0 %v17199_v5  ;;  %v3234_v4 = vld [vmem:[#allocation14 + $0x4a0] sm:$0xff] }
 0x8bc   :  { %4163 = vmatprep.subr.bf16.mxu1 %v17182_v54  ;;  %4204 = vmatprep.subr.bf16.mxu0 %v17184_v6  ;;  %v3242_v5 = vld [vmem:[#allocation14 + $0x4e0] sm:$0xff]  ;;  %v3235_v54 = vld [vmem:[#allocation14 + $0x4a8] sm:$0xff] }
 0x8bd   :  { %v3243_v6 = vld [vmem:[#allocation14 + $0x4e8] sm:$0xff]  ;;  %v17202_v10 = vcombine.high %v3234_v4, %v3242_v5  ;;  %v17201_v57 = vcombine.low %v3234_v4, %v3242_v5 }
 0x8be   :  { %v17204_v11 = vcombine.high %v3235_v54, %v3243_v6  ;;  %v17203_v20 = vcombine.low %v3235_v54, %v3243_v6 }
 0x8bf   :  { %4164 = vmatpush1.bf16.msra.mxu1 %v17181_v12  ;;  %4205 = vmatpush1.bf16.msra.mxu0 %v17183_v13  ;;  %v3218_v12 = vld [vmem:[#allocation14 + $0x420] sm:$0xff] }
 0x8c0   :  { %4231 = vmatprep.subr.bf16.mxu1 %v17298_v16  ;;  %4272 = vmatprep.subr.bf16.mxu0 %v17300_v17  ;;  %v3226_v13 = vld [vmem:[#allocation14 + $0x460] sm:$0xff]  ;;  %v3219_v16 = vld [vmem:[#allocation14 + $0x428] sm:$0xff] }
 0x8c1   :  { %v3227_v17 = vld [vmem:[#allocation14 + $0x468] sm:$0xff]  ;;  %v17186_v22 = vcombine.high %v3218_v12, %v3226_v13  ;;  %v17185_v33 = vcombine.low %v3218_v12, %v3226_v13 }
 0x8c2   :  { %4182 = vmatmul.mubr.bf16.vlgmr.msra.gmra.mxu1 %v21331_v9  ;;  %4223 = vmatmul.mubr.bf16.vlgmr.msra.gmra.mxu0 %v21331_v9  ;;  %v17188_v23 = vcombine.high %v3219_v16, %v3227_v17  ;;  %v17187_v34 = vcombine.low %v3219_v16, %v3227_v17 }
 0x8c3   :  { %4232 = vmatpush1.bf16.msra.mxu1 %v17297_v24  ;;  %4273 = vmatpush1.bf16.msra.mxu0 %v17299_v31  ;;  %v3332_v24 = vld [vmem:[#allocation14 + $0x7b0] sm:$0xff] }
 0x8c4   :  { %4233 = vmatprep.subr.bf16.mxu1 %v17282_v25  ;;  %4274 = vmatprep.subr.bf16.mxu0 %v17284_v32  ;;  %v3340_v31 = vld [vmem:[#allocation14 + $0x7f0] sm:$0xff]  ;;  %v3333_v25 = vld [vmem:[#allocation14 + $0x7b8] sm:$0xff] }
 0x8c5   :  { %4263 = vmatprep.mubr.bf16.mxu1 %v21045_v39  ;;  %4304 = vmatprep.mubr.bf16.mxu0 %v21045_v39  ;;  %v3341_v32 = vld [vmem:[#allocation14 + $0x7f8] sm:$0xff]  ;;  %v17302_v35 = vcombine.high %v3332_v24, %v3340_v31  ;;  %v17301_v42 = vcombine.low %v3332_v24, %v3340_v31 }
 0x8c6   :  { %v17304_v36 = vcombine.high %v3333_v25, %v3341_v32  ;;  %v17303_v43 = vcombine.low %v3333_v25, %v3341_v32 }
 0x8c7   :  { %4234 = vmatpush1.bf16.msra.mxu1 %v17281_v37  ;;  %4275 = vmatpush1.bf16.msra.mxu0 %v17283_v38  ;;  %v3316_v37 = vld [vmem:[#allocation14 + $0x730] sm:$0xff] }
 0x8c8   :  { %4235 = vmatprep.subr.bf16.mxu1 %v17266_v40  ;;  %4276 = vmatprep.subr.bf16.mxu0 %v17268_v41  ;;  %v3324_v38 = vld [vmem:[#allocation14 + $0x770] sm:$0xff]  ;;  %v3317_v40 = vld [vmem:[#allocation14 + $0x738] sm:$0xff] }
 0x8c9   :  { %v3325_v41 = vld [vmem:[#allocation14 + $0x778] sm:$0xff]  ;;  %v17286_v45 = vcombine.high %v3316_v37, %v3324_v38  ;;  %v17285_v50 = vcombine.low %v3316_v37, %v3324_v38 }
 0x8ca   :  { %v17288_v46 = vcombine.high %v3317_v40, %v3325_v41  ;;  %v17287_v51 = vcombine.low %v3317_v40, %v3325_v41 }
 0x8cb   :  { %4236 = vmatpush1.bf16.msra.mxu1 %v17265_v47  ;;  %4277 = vmatpush1.bf16.msra.mxu0 %v17267_v28  ;;  %v3300_v47 = vld [vmem:[#allocation14 + $0x6b0] sm:$0xff] }
 0x8cc   :  { %4237 = vmatprep.subr.bf16.mxu1 %v17250_v48  ;;  %4278 = vmatprep.subr.bf16.mxu0 %v17252_v49  ;;  %v3308_v28 = vld [vmem:[#allocation14 + $0x6f0] sm:$0xff]  ;;  %v3301_v48 = vld [vmem:[#allocation14 + $0x6b8] sm:$0xff] }
 0x8cd   :  { %v3309_v49 = vld [vmem:[#allocation14 + $0x6f8] sm:$0xff]  ;;  %v17270_v52 = vcombine.high %v3300_v47, %v3308_v28  ;;  %v17269_v60 = vcombine.low %v3300_v47, %v3308_v28 }
 0x8ce   :  { %v17272_v55 = vcombine.high %v3301_v48, %v3309_v49  ;;  %v17271_v44 = vcombine.low %v3301_v48, %v3309_v49  ;;  %v19988_v47 = vld [vmem:[#allocation17 + $0x438] sm:$0xff]   ;;  %v19990_v48 = vld [vmem:[#allocation17 + $0x470] sm:$0xff]  }
 0x8cf   :  { %4238 = vmatpush1.bf16.msra.mxu1 %v17249_v56  ;;  %4279 = vmatpush1.bf16.msra.mxu0 %v17251_v21  ;;  %v3284_v56 = vld [vmem:[#allocation14 + $0x630] sm:$0xff]  ;;  %v19989_v28 = vld [vmem:[#allocation17 + $0x4b8] sm:$0xff]  }
 0x8d0   :  { %4239 = vmatprep.subr.bf16.mxu1 %v17234_v58  ;;  %4280 = vmatprep.subr.bf16.mxu0 %v17236_v59  ;;  %v3292_v21 = vld [vmem:[#allocation14 + $0x670] sm:$0xff]  ;;  %v3285_v58 = vld [vmem:[#allocation14 + $0x638] sm:$0xff] }
 0x8d1   :  { %v3293_v59 = vld [vmem:[#allocation14 + $0x678] sm:$0xff]  ;;  %v17254_v61 = vcombine.high %v3284_v56, %v3292_v21  ;;  %v17253_v4 = vcombine.low %v3284_v56, %v3292_v21  ;;  %v19991_v49 = vld [vmem:[#allocation17 + $0x4f0] sm:$0xff]   ;;  %v19996_v56 = vld [vmem:[#allocation17 + $0x428] sm:$0xff]  }
 0x8d2   :  { %v17256_v62 = vcombine.high %v3285_v58, %v3293_v59  ;;  %v17255_v5 = vcombine.low %v3285_v58, %v3293_v59  ;;  %v19997_v21 = vld [vmem:[#allocation17 + $0x4a8] sm:$0xff]   ;;  %v19998_v58 = vld [vmem:[#allocation17 + $0x460] sm:$0xff]  }
 0x8d3   :  { %4240 = vmatpush1.bf16.msra.mxu1 %v17233_v63  ;;  %4281 = vmatpush1.bf16.msra.mxu0 %v17235_v1  ;;  %v3268_v63 = vld [vmem:[#allocation14 + $0x5b0] sm:$0xff]  ;;  %v19999_v59 = vld [vmem:[#allocation17 + $0x4e0] sm:$0xff]  }
 0x8d4   :  { %4241 = vmatprep.subr.bf16.mxu1 %v17218_v2  ;;  %4282 = vmatprep.subr.bf16.mxu0 %v17220_v3  ;;  %v3276_v1 = vld [vmem:[#allocation14 + $0x5f0] sm:$0xff]  ;;  %v3269_v2 = vld [vmem:[#allocation14 + $0x5b8] sm:$0xff] }
 0x8d5   :  { %v3277_v3 = vld [vmem:[#allocation14 + $0x5f8] sm:$0xff]  ;;  %v17238_v54 = vcombine.high %v3268_v63, %v3276_v1  ;;  %v17237_v12 = vcombine.low %v3268_v63, %v3276_v1  ;;  %v20006_v1 = vld [vmem:[#allocation17 + $0x450] sm:$0xff]  }
 0x8d6   :  { %v17240_v6 = vcombine.high %v3269_v2, %v3277_v3  ;;  %v17239_v13 = vcombine.low %v3269_v2, %v3277_v3  ;;  %v20005_v63 = vld [vmem:[#allocation17 + $0x498] sm:$0xff]   ;;  %v20007_v2 = vld [vmem:[#allocation17 + $0x4d0] sm:$0xff]  }
 0x8d7   :  { %4242 = vmatpush1.bf16.msra.mxu1 %v17217_v53  ;;  %4283 = vmatpush1.bf16.msra.mxu0 %v17219_v7  ;;  %v3252_v53 = vld [vmem:[#allocation14 + $0x530] sm:$0xff] }
 0x8d8   :  { %4243 = vmatprep.subr.bf16.mxu1 %v17202_v10  ;;  %4284 = vmatprep.subr.bf16.mxu0 %v17204_v11  ;;  %v3260_v7 = vld [vmem:[#allocation14 + $0x570] sm:$0xff]  ;;  %v3253_v10 = vld [vmem:[#allocation14 + $0x538] sm:$0xff] }
 0x8d9   :  { %v3261_v11 = vld [vmem:[#allocation14 + $0x578] sm:$0xff]  ;;  %v17222_v16 = vcombine.high %v3252_v53, %v3260_v7  ;;  %v17221_v24 = vcombine.low %v3252_v53, %v3260_v7  ;;  %v20008_v3 = vld [vmem:[#allocation17 + $0x410] sm:$0xff]   ;;  %v20013_v53 = vld [vmem:[#allocation17 + $0x488] sm:$0xff]  }
 0x8da   :  { %v17224_v17 = vcombine.high %v3253_v10, %v3261_v11  ;;  %v17223_v31 = vcombine.low %v3253_v10, %v3261_v11  ;;  %v20014_v7 = vld [vmem:[#allocation17 + $0x440] sm:$0xff]  }
 0x8db   :  { %4244 = vmatpush1.bf16.msra.mxu1 %v17201_v57  ;;  %4285 = vmatpush1.bf16.msra.mxu0 %v17203_v20  ;;  %v3236_v57 = vld [vmem:[#allocation14 + $0x4b0] sm:$0xff]  ;;  %v20015_v10 = vld [vmem:[#allocation17 + $0x4c0] sm:$0xff]  }
 0x8dc   :  { %4245 = vmatprep.subr.bf16.mxu1 %v17186_v22  ;;  %4286 = vmatprep.subr.bf16.mxu0 %v17188_v23  ;;  %v3244_v20 = vld [vmem:[#allocation14 + $0x4f0] sm:$0xff]  ;;  %v3237_v22 = vld [vmem:[#allocation14 + $0x4b8] sm:$0xff]  ;;  %v20016_v11 = vld [vmem:[#allocation17 + $0x400] sm:$0xff]  }
 0x8dd   :  { %v3245_v23 = vld [vmem:[#allocation14 + $0x4f8] sm:$0xff]  ;;  %v17206_v25 = vcombine.high %v3236_v57, %v3244_v20  ;;  %v17205_v37 = vcombine.low %v3236_v57, %v3244_v20 }
 0x8de   :  { %v17208_v32 = vcombine.high %v3237_v22, %v3245_v23  ;;  %v17207_v38 = vcombine.low %v3237_v22, %v3245_v23 }
 0x8df   :  { %4246 = vmatpush1.bf16.msra.mxu1 %v17185_v33  ;;  %4287 = vmatpush1.bf16.msra.mxu0 %v17187_v34  ;;  %v3220_v33 = vld [vmem:[#allocation14 + $0x430] sm:$0xff] }
 0x8e0   :  { %4313 = vmatprep.subr.bf16.mxu1 %v17302_v35  ;;  %4354 = vmatprep.subr.bf16.mxu0 %v17304_v36  ;;  %v3228_v34 = vld [vmem:[#allocation14 + $0x470] sm:$0xff]  ;;  %v3221_v35 = vld [vmem:[#allocation14 + $0x438] sm:$0xff] }
 0x8e1   :  { %v3229_v36 = vld [vmem:[#allocation14 + $0x478] sm:$0xff]  ;;  %v17190_v40 = vcombine.high %v3220_v33, %v3228_v34 }
 0x8e2   :  { %4264 = vmatmul.mubr.bf16.vlgmr.msra.gmra.mxu1 %v21331_v9  ;;  %4305 = vmatmul.mubr.bf16.vlgmr.msra.gmra.mxu0 %v21331_v9  ;;  %v17192_v41 = vcombine.high %v3221_v35, %v3229_v36 }
 0x8e3   :  { %4314 = vmatpush1.bf16.msra.mxu1 %v17301_v42  ;;  %4355 = vmatpush1.bf16.msra.mxu0 %v17303_v43  ;;  %v17189_v42 = vcombine.low %v3220_v33, %v3228_v34  ;;  %v17191_v43 = vcombine.low %v3221_v35, %v3229_v36 }
 0x8e4   :  { %4315 = vmatprep.subr.bf16.mxu1 %v17286_v45  ;;  %4356 = vmatprep.subr.bf16.mxu0 %v17288_v46  ;;  %v19986_v45 = vld [vmem:[#allocation17 + $0x478] sm:$0xff]  }
 0x8e5   :  { %4345 = vmatprep.mubr.bf16.mxu1 %v21045_v39  ;;  %4386 = vmatprep.mubr.bf16.mxu0 %v21045_v39  ;;  %v19987_v46 = vld [vmem:[#allocation17 + $0x4f8] sm:$0xff]  }
 0x8e7   :  { %4316 = vmatpush1.bf16.msra.mxu1 %v17285_v50  ;;  %4357 = vmatpush1.bf16.msra.mxu0 %v17287_v51  ;;  %v19992_v50 = vld [vmem:[#allocation17 + $0x430] sm:$0xff]  }
 0x8e8   :  { %4317 = vmatprep.subr.bf16.mxu1 %v17270_v52  ;;  %4358 = vmatprep.subr.bf16.mxu0 %v17272_v55  ;;  %v19993_v51 = vld [vmem:[#allocation17 + $0x4b0] sm:$0xff]   ;;  %v19994_v52 = vld [vmem:[#allocation17 + $0x468] sm:$0xff]  }
 0x8e9   :  { %v19995_v55 = vld [vmem:[#allocation17 + $0x4e8] sm:$0xff]  }
 0x8eb   :  { %4318 = vmatpush1.bf16.msra.mxu1 %v17269_v60  ;;  %4359 = vmatpush1.bf16.msra.mxu0 %v17271_v44  ;;  %v20000_v60 = vld [vmem:[#allocation17 + $0x420] sm:$0xff]   ;;  %v20002_v44 = vld [vmem:[#allocation17 + $0x458] sm:$0xff]  }
 0x8ec   :  { %4319 = vmatprep.subr.bf16.mxu1 %v17254_v61  ;;  %4360 = vmatprep.subr.bf16.mxu0 %v17256_v62  ;;  %v20003_v61 = vld [vmem:[#allocation17 + $0x4d8] sm:$0xff]  }
 0x8ed   :  { %v20004_v62 = vld [vmem:[#allocation17 + $0x418] sm:$0xff]  }
 0x8ef   :  { %4320 = vmatpush1.bf16.msra.mxu1 %v17253_v4  ;;  %4361 = vmatpush1.bf16.msra.mxu0 %v17255_v5  ;;  %v20009_v4 = vld [vmem:[#allocation17 + $0x490] sm:$0xff]   ;;  %v20010_v5 = vld [vmem:[#allocation17 + $0x448] sm:$0xff]  }
 0x8f0   :  { %4321 = vmatprep.subr.bf16.mxu1 %v17238_v54  ;;  %4362 = vmatprep.subr.bf16.mxu0 %v17240_v6  ;;  %v20011_v54 = vld [vmem:[#allocation17 + $0x4c8] sm:$0xff]  }
 0x8f1   :  { %v20012_v6 = vld [vmem:[#allocation17 + $0x408] sm:$0xff]  }
 0x8f3   :  { %4322 = vmatpush1.bf16.msra.mxu1 %v17237_v12  ;;  %4363 = vmatpush1.bf16.msra.mxu0 %v17239_v13  ;;  %v20017_v12 = vld [vmem:[#allocation17 + $0x480] sm:$0xff]   ;;  %v20018_v13 = vld [vmem:[#allocation17 + $0x578] sm:$0xff]  }
 0x8f4   :  { %4323 = vmatprep.subr.bf16.mxu1 %v17222_v16  ;;  %4364 = vmatprep.subr.bf16.mxu0 %v17224_v17  ;;  %v20019_v16 = vld [vmem:[#allocation17 + $0x5f8] sm:$0xff]   ;;  %v21347_v17 = vld [vmem:[#allocation16 + $0x10] sm:$0xff] }
 0x8f5   :  { %v3350_v57 = vrot.slane %v21347_v17, %v21250_v26  ;;  %v3358_v20 = vrot.slane %v21347_v17, %v21253_v27  ;;  %v3354_v22 = vrot.slane %v21347_v17, %v21258_v29  ;;  %v3362_v23 = vrot.slane %v21347_v17, %v21261_v30 }
 0x8f7   :  { %4324 = vmatpush1.bf16.msra.mxu1 %v17221_v24  ;;  %4365 = vmatpush1.bf16.msra.mxu0 %v17223_v31 }
 0x8f8   :  { %4325 = vmatprep.subr.bf16.mxu1 %v17206_v25  ;;  %4366 = vmatprep.subr.bf16.mxu0 %v17208_v32 }
 0x8fb   :  { %4326 = vmatpush1.bf16.msra.mxu1 %v17205_v37  ;;  %4367 = vmatpush1.bf16.msra.mxu0 %v17207_v38 }
 0x8fc   :  { %4327 = vmatprep.subr.bf16.mxu1 %v17190_v40  ;;  %4368 = vmatprep.subr.bf16.mxu0 %v17192_v41 }
 0x8ff   :  { %4328 = vmatpush1.bf16.msra.mxu1 %v17189_v42  ;;  %4369 = vmatpush1.bf16.msra.mxu0 %v17191_v43 }
 0x900   :  { %18716 = vmatprep.subr.bf16.mxu1 %v19986_v45  ;;  %18738 = vmatprep.subr.bf16.mxu0 %v19987_v46 }
 0x902   :  { %4346 = vmatmul.mubr.bf16.vlgmr.msra.gmra.mxu1 %v21331_v9  ;;  %4387 = vmatmul.mubr.bf16.vlgmr.msra.gmra.mxu0 %v21331_v9  ;;  %v20001_v9 = vld [vmem:[#allocation17 + $0x4a0] sm:$0xff]  }
 0x903   :  { %18717 = vmatpush3.bf16.msra.mxu1 %v19988_v47  ;;  %18739 = vmatpush3.bf16.msra.mxu0 %v19989_v28 }
 0x904   :  { %18718 = vmatprep.subr.bf16.mxu1 %v19990_v48  ;;  %18740 = vmatprep.subr.bf16.mxu0 %v19991_v49  ;;  %v20020_v48 = vld [vmem:[#allocation17 + $0x538] sm:$0xff]  }
 0x905   :  { %v20021_v49 = vld [vmem:[#allocation17 + $0x5b8] sm:$0xff]  }
 0x907   :  { %18719 = vmatpush3.bf16.msra.mxu1 %v19992_v50  ;;  %18741 = vmatpush3.bf16.msra.mxu0 %v19993_v51 }
 0x908   :  { %18720 = vmatprep.subr.bf16.mxu1 %v19994_v52  ;;  %18742 = vmatprep.subr.bf16.mxu0 %v19995_v55  ;;  %v20022_v52 = vld [vmem:[#allocation17 + $0x570] sm:$0xff]  }
 0x909   :  { %v20023_v55 = vld [vmem:[#allocation17 + $0x5f0] sm:$0xff]  }
 0x90b   :  { %18721 = vmatpush3.bf16.msra.mxu1 %v19996_v56  ;;  %18743 = vmatpush3.bf16.msra.mxu0 %v19997_v21  ;;  %v20024_v56 = vld [vmem:[#allocation17 + $0x530] sm:$0xff]  }
 0x90c   :  { %18722 = vmatprep.subr.bf16.mxu1 %v19998_v58  ;;  %18744 = vmatprep.subr.bf16.mxu0 %v19999_v59  ;;  %v20025_v21 = vld [vmem:[#allocation17 + $0x5b0] sm:$0xff]   ;;  %v20026_v58 = vld [vmem:[#allocation17 + $0x568] sm:$0xff]  }
 0x90d   :  { %v20027_v59 = vld [vmem:[#allocation17 + $0x5e8] sm:$0xff]  }
 0x90f   :  { %18723 = vmatpush3.bf16.msra.mxu1 %v20000_v60  ;;  %18745 = vmatpush3.bf16.msra.mxu0 %v20001_v9  ;;  %v20028_v60 = vld [vmem:[#allocation17 + $0x528] sm:$0xff]  }
 0x910   :  { %18724 = vmatprep.subr.bf16.mxu1 %v20002_v44  ;;  %18746 = vmatprep.subr.bf16.mxu0 %v20003_v61  ;;  %v20029_v9 = vld [vmem:[#allocation17 + $0x5a8] sm:$0xff]   ;;  %v20030_v44 = vld [vmem:[#allocation17 + $0x560] sm:$0xff]  }
 0x911   :  { %v20031_v61 = vld [vmem:[#allocation17 + $0x5e0] sm:$0xff]  }
 0x913   :  { %18725 = vmatpush3.bf16.msra.mxu1 %v20004_v62  ;;  %18747 = vmatpush3.bf16.msra.mxu0 %v20005_v63  ;;  %v20032_v62 = vld [vmem:[#allocation17 + $0x520] sm:$0xff]  }
 0x914   :  { %18726 = vmatprep.subr.bf16.mxu1 %v20006_v1  ;;  %18748 = vmatprep.subr.bf16.mxu0 %v20007_v2  ;;  %v20033_v63 = vld [vmem:[#allocation17 + $0x5a0] sm:$0xff]   ;;  %v20034_v1 = vld [vmem:[#allocation17 + $0x558] sm:$0xff]  }
 0x915   :  { %v20035_v2 = vld [vmem:[#allocation17 + $0x5d8] sm:$0xff]  }
 0x917   :  { %18727 = vmatpush3.bf16.msra.mxu1 %v20008_v3  ;;  %18749 = vmatpush3.bf16.msra.mxu0 %v20009_v4  ;;  %v20036_v3 = vld [vmem:[#allocation17 + $0x518] sm:$0xff]  }
 0x918   :  { %18728 = vmatprep.subr.bf16.mxu1 %v20010_v5  ;;  %18750 = vmatprep.subr.bf16.mxu0 %v20011_v54  ;;  %v20037_v4 = vld [vmem:[#allocation17 + $0x598] sm:$0xff]   ;;  %v20038_v5 = vld [vmem:[#allocation17 + $0x550] sm:$0xff]  }
 0x919   :  { %v20039_v54 = vld [vmem:[#allocation17 + $0x5d0] sm:$0xff]  }
 0x91b   :  { %18729 = vmatpush3.bf16.msra.mxu1 %v20012_v6  ;;  %18751 = vmatpush3.bf16.msra.mxu0 %v20013_v53  ;;  %v20040_v6 = vld [vmem:[#allocation17 + $0x510] sm:$0xff]  }
 0x91c   :  { %18730 = vmatprep.subr.bf16.mxu1 %v20014_v7  ;;  %18752 = vmatprep.subr.bf16.mxu0 %v20015_v10  ;;  %v20041_v53 = vld [vmem:[#allocation17 + $0x590] sm:$0xff]   ;;  %v20042_v7 = vld [vmem:[#allocation17 + $0x548] sm:$0xff]  }
 0x91d   :  { %v20043_v10 = vld [vmem:[#allocation17 + $0x5c8] sm:$0xff]  }
 0x91f   :  { %18731 = vmatpush3.bf16.msra.mxu1 %v20016_v11  ;;  %18753 = vmatpush3.bf16.msra.mxu0 %v20017_v12  ;;  %v3366_v11 = vrot.slane %v21347_v17, %v21272_v14  ;;  %v3374_v12 = vrot.slane %v21347_v17, %v21275_v15 }
 0x920   :  { %18760 = vmatprep.subr.bf16.mxu1 %v20018_v13  ;;  %18782 = vmatprep.subr.bf16.mxu0 %v20019_v16  ;;  %v3370_v13 = vrot.slane %v21347_v17, %v21278_v18  ;;  %v3378_v16 = vrot.slane %v21347_v17, %v21281_v19 }
 0x962   :  { %v4101_v24 = vpop.f32.mrf.mxu1  ;;  %v4142_v31 = vpop.f32.mrf.mxu0 }
 0x963   :  { %v4102_v25 = vadd.f32 %v4101_v24, %v3350_v57  ;;  %v4143_v32 = vadd.f32 %v4142_v31, %v3358_v20  ;;  %v20044_v57 = vld [vmem:[#allocation17 + $0x508] sm:$0xff]   ;;  %v20046_v24 = vld [vmem:[#allocation17 + $0x540] sm:$0xff]  }
 0x964   :  { %v4103_v33 = vpop.f32.mrf.mxu1  ;;  %v4144_v34 = vpop.f32.mrf.mxu0  ;;  %v20045_v20 = vld [vmem:[#allocation17 + $0x588] sm:$0xff]   ;;  %v20047_v31 = vld [vmem:[#allocation17 + $0x5c0] sm:$0xff]  }
 0x965   :  { %v4104_v35 = vadd.f32 %v4103_v33, %v3354_v22  ;;  %v4145_v36 = vadd.f32 %v4144_v34, %v3362_v23  ;;  %v4395_v37 = vmax.f32 %v4102_v25, 0.0  ;;  %v4397_v38 = vmax.f32 %v4143_v32, 0.0 }
 0x966   :  { %v4105_v40 = vpop.f32.mrf.mxu1  ;;  %v4146_v41 = vpop.f32.mrf.mxu0 }
 0x967   :  { %v4396_v42 = vmax.f32 %v4104_v35, 0.0  ;;  %v4398_v43 = vmax.f32 %v4145_v36, 0.0  ;;  %v4411_v50 = vpack.c.bf16 %v4395_v37, %v4395_v37  ;;  %v4413_v51 = vpack.c.bf16 %v4397_v38, %v4397_v38  ;;  %v20048_v37 = vld [vmem:[#allocation17 + $0x500] sm:$0xff]  }
 0x968   :  { %v4106_v45 = vpop.f32.mrf.mxu1  ;;  %v4147_v46 = vpop.f32.mrf.mxu0  ;;  %v20049_v38 = vld [vmem:[#allocation17 + $0x580] sm:$0xff]  }
 0x969   :  { %v4412_v47 = vpack.c.bf16 %v4396_v42, %v4396_v42  ;;  %v4414_v28 = vpack.c.bf16 %v4398_v43, %v4398_v43  ;;  %v20050_v43 = vld [vmem:[#allocation17 + $0x678] sm:$0xff]  }
 0x96a   :  { %v20051_v45 = vld [vmem:[#allocation17 + $0x6f8] sm:$0xff]  }
 0x96b   :  { %5492 = vmatprep.mubr.bf16.mxu1 %v4412_v47  ;;  %5532 = vmatprep.mubr.bf16.mxu0 %v4414_v28 }
 0x96c   :  { %5493 = vmatmul.mubr.bf16.vlgmr.msra.gmra.mxu1 %v4411_v50  ;;  %5533 = vmatmul.mubr.bf16.vlgmr.msra.gmra.mxu0 %v4413_v51  ;;  %v20052_v51 = vld [vmem:[#allocation17 + $0x638] sm:$0xff]  }
 0x96d   :  { %18761 = vmatpush3.bf16.msra.mxu1 %v20020_v48  ;;  %18783 = vmatpush3.bf16.msra.mxu0 %v20021_v49 }
 0x96e   :  { %18762 = vmatprep.subr.bf16.mxu1 %v20022_v52  ;;  %18784 = vmatprep.subr.bf16.mxu0 %v20023_v55  ;;  %v20053_v52 = vld [vmem:[#allocation17 + $0x6b8] sm:$0xff]  }
 0x971   :  { %18763 = vmatpush3.bf16.msra.mxu1 %v20024_v56  ;;  %18785 = vmatpush3.bf16.msra.mxu0 %v20025_v21  ;;  %v20054_v21 = vld [vmem:[#allocation17 + $0x670] sm:$0xff]  }
 0x972   :  { %18764 = vmatprep.subr.bf16.mxu1 %v20026_v58  ;;  %18786 = vmatprep.subr.bf16.mxu0 %v20027_v59  ;;  %v20055_v58 = vld [vmem:[#allocation17 + $0x6f0] sm:$0xff]  }
 0x973   :  { %v20056_v59 = vld [vmem:[#allocation17 + $0x630] sm:$0xff]  }
 0x975   :  { %18765 = vmatpush3.bf16.msra.mxu1 %v20028_v60  ;;  %18787 = vmatpush3.bf16.msra.mxu0 %v20029_v9  ;;  %v20057_v60 = vld [vmem:[#allocation17 + $0x6b0] sm:$0xff]   ;;  %v20058_v9 = vld [vmem:[#allocation17 + $0x668] sm:$0xff]  }
 0x976   :  { %18766 = vmatprep.subr.bf16.mxu1 %v20030_v44  ;;  %18788 = vmatprep.subr.bf16.mxu0 %v20031_v61  ;;  %v20059_v44 = vld [vmem:[#allocation17 + $0x6e8] sm:$0xff]  }
 0x977   :  { %v20060_v61 = vld [vmem:[#allocation17 + $0x628] sm:$0xff]  }
 0x979   :  { %18767 = vmatpush3.bf16.msra.mxu1 %v20032_v62  ;;  %18789 = vmatpush3.bf16.msra.mxu0 %v20033_v63  ;;  %v20061_v62 = vld [vmem:[#allocation17 + $0x6a8] sm:$0xff]   ;;  %v20062_v63 = vld [vmem:[#allocation17 + $0x660] sm:$0xff]  }
 0x97a   :  { %18768 = vmatprep.subr.bf16.mxu1 %v20034_v1  ;;  %18790 = vmatprep.subr.bf16.mxu0 %v20035_v2  ;;  %v20063_v1 = vld [vmem:[#allocation17 + $0x6e0] sm:$0xff]  }
 0x97b   :  { %v20064_v2 = vld [vmem:[#allocation17 + $0x620] sm:$0xff]  }
 0x97d   :  { %18769 = vmatpush3.bf16.msra.mxu1 %v20036_v3  ;;  %18791 = vmatpush3.bf16.msra.mxu0 %v20037_v4  ;;  %v20065_v3 = vld [vmem:[#allocation17 + $0x6a0] sm:$0xff]   ;;  %v20066_v4 = vld [vmem:[#allocation17 + $0x658] sm:$0xff]  }
 0x97e   :  { %18770 = vmatprep.subr.bf16.mxu1 %v20038_v5  ;;  %18792 = vmatprep.subr.bf16.mxu0 %v20039_v54  ;;  %v20067_v5 = vld [vmem:[#allocation17 + $0x6d8] sm:$0xff]  }
 0x97f   :  { %v20068_v54 = vld [vmem:[#allocation17 + $0x618] sm:$0xff]  }
 0x981   :  { %18771 = vmatpush3.bf16.msra.mxu1 %v20040_v6  ;;  %18793 = vmatpush3.bf16.msra.mxu0 %v20041_v53  ;;  %v20069_v6 = vld [vmem:[#allocation17 + $0x698] sm:$0xff]   ;;  %v20070_v53 = vld [vmem:[#allocation17 + $0x650] sm:$0xff]  }
 0x982   :  { %v4183_v22 = vpop.f32.mrf.mxu1  ;;  %v4224_v23 = vpop.f32.mrf.mxu0  ;;  %18772 = vmatprep.subr.bf16.mxu1 %v20042_v7  ;;  %18794 = vmatprep.subr.bf16.mxu0 %v20043_v10  ;;  %v20071_v7 = vld [vmem:[#allocation17 + $0x6d0] sm:$0xff]   ;;  %v21365_v10 = vld [vmem:[#allocation16 + $0x18] sm:$0xff] }
 0x983   :  { %v4184_v25 = vadd.f32 %v4183_v22, %v3366_v11  ;;  %v4225_v32 = vadd.f32 %v4224_v23, %v3374_v12  ;;  %v20072_v11 = vld [vmem:[#allocation17 + $0x610] sm:$0xff]   ;;  %v3386_v22 = vrot.slane %v21365_v10, %v21258_v29  ;;  %v3394_v23 = vrot.slane %v21365_v10, %v21261_v30 }
 0x984   :  { %v4185_v33 = vpop.f32.mrf.mxu1  ;;  %v4226_v34 = vpop.f32.mrf.mxu0  ;;  %v20073_v12 = vld [vmem:[#allocation17 + $0x690] sm:$0xff]  }
 0x985   :  { %v4186_v35 = vadd.f32 %v4185_v33, %v3370_v13  ;;  %v4227_v36 = vadd.f32 %v4226_v34, %v3378_v16  ;;  %18773 = vmatpush3.bf16.msra.mxu1 %v20044_v57  ;;  %18795 = vmatpush3.bf16.msra.mxu0 %v20045_v20  ;;  %v4399_v40 = vmax.f32 %v4184_v25, 0.0  ;;  %v4401_v17 = vmax.f32 %v4225_v32, 0.0  ;;  %v20074_v13 = vld [vmem:[#allocation17 + $0x648] sm:$0xff]   ;;  %v20078_v33 = vld [vmem:[#allocation17 + $0x640] sm:$0xff]  }
 0x986   :  { %v4187_v41 = vpop.f32.mrf.mxu1  ;;  %v4228_v42 = vpop.f32.mrf.mxu0  ;;  %18774 = vmatprep.subr.bf16.mxu1 %v20046_v24  ;;  %18796 = vmatprep.subr.bf16.mxu0 %v20047_v31  ;;  %v20075_v16 = vld [vmem:[#allocation17 + $0x6c8] sm:$0xff]   ;;  %v3382_v57 = vrot.slane %v21365_v10, %v21250_v26  ;;  %v3390_v20 = vrot.slane %v21365_v10, %v21253_v27  ;;  %v20079_v34 = vld [vmem:[#allocation17 + $0x6c0] sm:$0xff]  }
 0x987   :  { %v4400_v46 = vmax.f32 %v4186_v35, 0.0  ;;  %v4402_v47 = vmax.f32 %v4227_v36, 0.0  ;;  %v4415_v55 = vpack.c.bf16 %v4399_v40, %v4399_v40  ;;  %v4417_v56 = vpack.c.bf16 %v4401_v17, %v4401_v17  ;;  %v20076_v24 = vld [vmem:[#allocation17 + $0x608] sm:$0xff]   ;;  %v20080_v41 = vld [vmem:[#allocation17 + $0x600] sm:$0xff]  }
 0x988   :  { %v4188_v28 = vpop.f32.mrf.mxu1  ;;  %v4229_v48 = vpop.f32.mrf.mxu0  ;;  %v20077_v31 = vld [vmem:[#allocation17 + $0x688] sm:$0xff]   ;;  %v20081_v42 = vld [vmem:[#allocation17 + $0x680] sm:$0xff]  }
 0x989   :  { %v4416_v49 = vpack.c.bf16 %v4400_v46, %v4400_v46  ;;  %v4418_v50 = vpack.c.bf16 %v4402_v47, %v4402_v47  ;;  %18775 = vmatpush3.bf16.msra.mxu1 %v20048_v37  ;;  %18797 = vmatpush3.bf16.msra.mxu0 %v20049_v38  ;;  %v20082_v28 = vld [vmem:[#allocation17 + $0x778] sm:$0xff]  }
 0x98a   :  { %18804 = vmatprep.subr.bf16.mxu1 %v20050_v43  ;;  %18826 = vmatprep.subr.bf16.mxu0 %v20051_v45  ;;  %v20083_v48 = vld [vmem:[#allocation17 + $0x7f8] sm:$0xff]  }
 0x98b   :  { %5572 = vmatprep.mubr.bf16.mxu1 %v4416_v49  ;;  %5612 = vmatprep.mubr.bf16.mxu0 %v4418_v50 }
 0x98c   :  { %5573 = vmatmul.mubr.bf16.vlgmr.msra.gmra.mxu1 %v4415_v55  ;;  %5613 = vmatmul.mubr.bf16.vlgmr.msra.gmra.mxu0 %v4417_v56 }
 0x98d   :  { %18805 = vmatpush3.bf16.msra.mxu1 %v20052_v51  ;;  %18827 = vmatpush3.bf16.msra.mxu0 %v20053_v52 }
 0x98e   :  { %18806 = vmatprep.subr.bf16.mxu1 %v20054_v21  ;;  %18828 = vmatprep.subr.bf16.mxu0 %v20055_v58  ;;  %v20084_v21 = vld [vmem:[#allocation17 + $0x738] sm:$0xff]  }
 0x98f   :  { %v20085_v58 = vld [vmem:[#allocation17 + $0x7b8] sm:$0xff]  }
 0x991   :  { %18807 = vmatpush3.bf16.msra.mxu1 %v20056_v59  ;;  %18829 = vmatpush3.bf16.msra.mxu0 %v20057_v60 }
 0x992   :  { %18808 = vmatprep.subr.bf16.mxu1 %v20058_v9  ;;  %18830 = vmatprep.subr.bf16.mxu0 %v20059_v44  ;;  %v20086_v9 = vld [vmem:[#allocation17 + $0x770] sm:$0xff]  }
 0x993   :  { %v20087_v44 = vld [vmem:[#allocation17 + $0x7f0] sm:$0xff]  }
 0x995   :  { %18809 = vmatpush3.bf16.msra.mxu1 %v20060_v61  ;;  %18831 = vmatpush3.bf16.msra.mxu0 %v20061_v62  ;;  %v20088_v61 = vld [vmem:[#allocation17 + $0x730] sm:$0xff]  }
 0x996   :  { %18810 = vmatprep.subr.bf16.mxu1 %v20062_v63  ;;  %18832 = vmatprep.subr.bf16.mxu0 %v20063_v1  ;;  %v20089_v62 = vld [vmem:[#allocation17 + $0x7b0] sm:$0xff]   ;;  %v20090_v63 = vld [vmem:[#allocation17 + $0x768] sm:$0xff]  }
 0x997   :  { %v20091_v1 = vld [vmem:[#allocation17 + $0x7e8] sm:$0xff]  }
 0x999   :  { %18811 = vmatpush3.bf16.msra.mxu1 %v20064_v2  ;;  %18833 = vmatpush3.bf16.msra.mxu0 %v20065_v3  ;;  %v20092_v2 = vld [vmem:[#allocation17 + $0x728] sm:$0xff]  }
 0x99a   :  { %18812 = vmatprep.subr.bf16.mxu1 %v20066_v4  ;;  %18834 = vmatprep.subr.bf16.mxu0 %v20067_v5  ;;  %v20093_v3 = vld [vmem:[#allocation17 + $0x7a8] sm:$0xff]   ;;  %v20094_v4 = vld [vmem:[#allocation17 + $0x760] sm:$0xff]  }
 0x99b   :  { %v20095_v5 = vld [vmem:[#allocation17 + $0x7e0] sm:$0xff]  }
 0x99d   :  { %18813 = vmatpush3.bf16.msra.mxu1 %v20068_v54  ;;  %18835 = vmatpush3.bf16.msra.mxu0 %v20069_v6  ;;  %v20096_v54 = vld [vmem:[#allocation17 + $0x720] sm:$0xff]  }
 0x99e   :  { %18814 = vmatprep.subr.bf16.mxu1 %v20070_v53  ;;  %18836 = vmatprep.subr.bf16.mxu0 %v20071_v7  ;;  %v20097_v6 = vld [vmem:[#allocation17 + $0x7a0] sm:$0xff]   ;;  %v20098_v53 = vld [vmem:[#allocation17 + $0x758] sm:$0xff]  }
 0x99f   :  { %v20099_v7 = vld [vmem:[#allocation17 + $0x7d8] sm:$0xff]  }
 0x9a1   :  { %18815 = vmatpush3.bf16.msra.mxu1 %v20072_v11  ;;  %18837 = vmatpush3.bf16.msra.mxu0 %v20073_v12  ;;  %v20100_v11 = vld [vmem:[#allocation17 + $0x718] sm:$0xff]  }
 0x9a2   :  { %v4265_v25 = vpop.f32.mrf.mxu1  ;;  %v4306_v32 = vpop.f32.mrf.mxu0  ;;  %18816 = vmatprep.subr.bf16.mxu1 %v20074_v13  ;;  %18838 = vmatprep.subr.bf16.mxu0 %v20075_v16  ;;  %v20101_v12 = vld [vmem:[#allocation17 + $0x798] sm:$0xff]   ;;  %v20102_v13 = vld [vmem:[#allocation17 + $0x750] sm:$0xff]  }
 0x9a3   :  { %v4266_v35 = vadd.f32 %v4265_v25, %v3382_v57  ;;  %v4307_v36 = vadd.f32 %v4306_v32, %v3390_v20  ;;  %v20103_v16 = vld [vmem:[#allocation17 + $0x7d0] sm:$0xff]   ;;  %v3402_v25 = vrot.slane %v21365_v10, %v21278_v18  ;;  %v3410_v32 = vrot.slane %v21365_v10, %v21281_v19 }
 0x9a4   :  { %v4267_v37 = vpop.f32.mrf.mxu1  ;;  %v4308_v38 = vpop.f32.mrf.mxu0  ;;  %v20104_v57 = vld [vmem:[#allocation17 + $0x710] sm:$0xff]  }
 0x9a5   :  { %v4268_v40 = vadd.f32 %v4267_v37, %v3386_v22  ;;  %v4309_v17 = vadd.f32 %v4308_v38, %v3394_v23  ;;  %18817 = vmatpush3.bf16.msra.mxu1 %v20076_v24  ;;  %18839 = vmatpush3.bf16.msra.mxu0 %v20077_v31  ;;  %v4403_v43 = vmax.f32 %v4266_v35, 0.0  ;;  %v4405_v45 = vmax.f32 %v4307_v36, 0.0  ;;  %v20105_v20 = vld [vmem:[#allocation17 + $0x790] sm:$0xff]   ;;  %v20106_v22 = vld [vmem:[#allocation17 + $0x748] sm:$0xff]   ;;  %v20110_v37 = vld [vmem:[#allocation17 + $0x740] sm:$0xff]  }
 0x9a6   :  { %v4269_v46 = vpop.f32.mrf.mxu1  ;;  %v4310_v47 = vpop.f32.mrf.mxu0  ;;  %18818 = vmatprep.subr.bf16.mxu1 %v20078_v33  ;;  %18840 = vmatprep.subr.bf16.mxu0 %v20079_v34  ;;  %v20107_v23 = vld [vmem:[#allocation17 + $0x7c8] sm:$0xff]   ;;  %v3398_v24 = vrot.slane %v21365_v10, %v21272_v14  ;;  %v3406_v31 = vrot.slane %v21365_v10, %v21275_v15  ;;  %v20111_v38 = vld [vmem:[#allocation17 + $0x7c0] sm:$0xff]  }
 0x9a7   :  { %v4404_v49 = vmax.f32 %v4268_v40, 0.0  ;;  %v4406_v50 = vmax.f32 %v4309_v17, 0.0  ;;  %v4419_v59 = vpack.c.bf16 %v4403_v43, %v4403_v43  ;;  %v4421_v60 = vpack.c.bf16 %v4405_v45, %v4405_v45  ;;  %v20108_v33 = vld [vmem:[#allocation17 + $0x708] sm:$0xff]   ;;  %v20112_v46 = vld [vmem:[#allocation17 + $0x700] sm:$0xff]  }
 0x9a8   :  { %v4270_v51 = vpop.f32.mrf.mxu1  ;;  %v4311_v52 = vpop.f32.mrf.mxu0  ;;  %v20109_v34 = vld [vmem:[#allocation17 + $0x788] sm:$0xff]   ;;  %v20113_v47 = vld [vmem:[#allocation17 + $0x780] sm:$0xff]  }
 0x9a9   :  { %v4420_v55 = vpack.c.bf16 %v4404_v49, %v4404_v49  ;;  %v4422_v56 = vpack.c.bf16 %v4406_v50, %v4406_v50  ;;  %18819 = vmatpush3.bf16.msra.mxu1 %v20080_v41  ;;  %18841 = vmatpush3.bf16.msra.mxu0 %v20081_v42 }
 0x9aa   :  { %18848 = vmatprep.subr.bf16.mxu1 %v20082_v28  ;;  %18870 = vmatprep.subr.bf16.mxu0 %v20083_v48 }
 0x9ab   :  { %5652 = vmatprep.mubr.bf16.mxu1 %v4420_v55  ;;  %5692 = vmatprep.mubr.bf16.mxu0 %v4422_v56 }
 0x9ac   :  { %5653 = vmatmul.mubr.bf16.vlgmr.msra.gmra.mxu1 %v4419_v59  ;;  %5693 = vmatmul.mubr.bf16.vlgmr.msra.gmra.mxu0 %v4421_v60 }
 0x9ad   :  { %18849 = vmatpush3.bf16.msra.mxu1 %v20084_v21  ;;  %18871 = vmatpush3.bf16.msra.mxu0 %v20085_v58 }
 0x9ae   :  { %18850 = vmatprep.subr.bf16.mxu1 %v20086_v9  ;;  %18872 = vmatprep.subr.bf16.mxu0 %v20087_v44  ;;  %v17305_v44 = vld [vmem:[#allocation19 + $0x1] ss:$0 sm:$0xff] }
 0x9b1   :  { %18851 = vmatpush3.bf16.msra.mxu1 %v20088_v61  ;;  %18873 = vmatpush3.bf16.msra.mxu0 %v20089_v62 }
 0x9b2   :  { %18852 = vmatprep.subr.bf16.mxu1 %v20090_v63  ;;  %18874 = vmatprep.subr.bf16.mxu0 %v20091_v1 }
 0x9b5   :  { %18853 = vmatpush3.bf16.msra.mxu1 %v20092_v2  ;;  %18875 = vmatpush3.bf16.msra.mxu0 %v20093_v3 }
 0x9b6   :  { %18854 = vmatprep.subr.bf16.mxu1 %v20094_v4  ;;  %18876 = vmatprep.subr.bf16.mxu0 %v20095_v5 }
 0x9b9   :  { %18855 = vmatpush3.bf16.msra.mxu1 %v20096_v54  ;;  %18877 = vmatpush3.bf16.msra.mxu0 %v20097_v6 }
 0x9ba   :  { %18856 = vmatprep.subr.bf16.mxu1 %v20098_v53  ;;  %18878 = vmatprep.subr.bf16.mxu0 %v20099_v7 }
 0x9bd   :  { %18857 = vmatpush3.bf16.msra.mxu1 %v20100_v11  ;;  %18879 = vmatpush3.bf16.msra.mxu0 %v20101_v12 }
 0x9be   :  { %18858 = vmatprep.subr.bf16.mxu1 %v20102_v13  ;;  %18880 = vmatprep.subr.bf16.mxu0 %v20103_v16 }
 0x9c1   :  { %18859 = vmatpush3.bf16.msra.mxu1 %v20104_v57  ;;  %18881 = vmatpush3.bf16.msra.mxu0 %v20105_v20 }
 0x9c2   :  { %v4347_v35 = vpop.f32.mrf.mxu1  ;;  %v4388_v36 = vpop.f32.mrf.mxu0  ;;  %18860 = vmatprep.subr.bf16.mxu1 %v20106_v22  ;;  %18882 = vmatprep.subr.bf16.mxu0 %v20107_v23 }
 0x9c3   :  { %v4348_v40 = vadd.f32 %v4347_v35, %v3398_v24  ;;  %v4389_v17 = vadd.f32 %v4388_v36, %v3406_v31 }
 0x9c4   :  { %v4349_v41 = vpop.f32.mrf.mxu1  ;;  %v4390_v42 = vpop.f32.mrf.mxu0 }
 0x9c5   :  { %v4350_v43 = vadd.f32 %v4349_v41, %v3402_v25  ;;  %v4391_v45 = vadd.f32 %v4390_v42, %v3410_v32  ;;  %18861 = vmatpush3.bf16.msra.mxu1 %v20108_v33  ;;  %18883 = vmatpush3.bf16.msra.mxu0 %v20109_v34  ;;  %v4407_v28 = vmax.f32 %v4348_v40, 0.0  ;;  %v4409_v10 = vmax.f32 %v4389_v17, 0.0 }
 0x9c6   :  { %v4351_v48 = vpop.f32.mrf.mxu1  ;;  %v4392_v49 = vpop.f32.mrf.mxu0  ;;  %18862 = vmatprep.subr.bf16.mxu1 %v20110_v37  ;;  %18884 = vmatprep.subr.bf16.mxu0 %v20111_v38 }
 0x9c7   :  { %v4408_v50 = vmax.f32 %v4350_v43, 0.0  ;;  %v4410_v51 = vmax.f32 %v4391_v45, 0.0  ;;  %v4423_v58 = vpack.c.bf16 %v4407_v28, %v4407_v28  ;;  %v4425_v59 = vpack.c.bf16 %v4409_v10, %v4409_v10 }
 0x9c8   :  { %v4352_v52 = vpop.f32.mrf.mxu1  ;;  %v4393_v55 = vpop.f32.mrf.mxu0 }
 0x9c9   :  { %v4424_v56 = vpack.c.bf16 %v4408_v50, %v4408_v50  ;;  %v4426_v21 = vpack.c.bf16 %v4410_v51, %v4410_v51  ;;  %18863 = vmatpush3.bf16.msra.mxu1 %v20112_v46  ;;  %18885 = vmatpush3.bf16.msra.mxu0 %v20113_v47 }
 0x9ca   :  { %19700 = vmatprep.subr.bf16.mxu1 %v21043_v0 }
 0x9cb   :  { %5732 = vmatprep.mubr.bf16.mxu1 %v4424_v56  ;;  %5772 = vmatprep.mubr.bf16.mxu0 %v4426_v21  ;;  %v20114_v21 = vld [vmem:[#allocation8 + $0xb8] sm:$0xff]  }
 0x9cc   :  { %5733 = vmatmul.mubr.bf16.vlgmr.msra.gmra.mxu1 %v4423_v58  ;;  %5773 = vmatmul.mubr.bf16.vlgmr.msra.gmra.mxu0 %v4425_v59  ;;  %v20115_v58 = vld [vmem:[#allocation8 + $0xb0] sm:$0xff]  }
 0x9cd   :  { %19716 = vmatprep.mubr.msk.bf16.mxu1 %vm21044_vm0, %v21043_v0  ;;  %6841 = vmatprep.mubr.bf16.mxu0 %v21045_v39 }
 0x9ce   :  { %19701 = vmatpush3.bf16.msra.mxu1 %v20114_v21 }
 0x9cf   :  { %19702 = vmatprep.subr.bf16.mxu1 %v21043_v0 }
 0x9d2   :  { %19703 = vmatpush3.bf16.msra.mxu1 %v20115_v58 }
 0x9d3   :  { %19704 = vmatprep.subr.bf16.mxu1 %v21043_v0 }
 0xa2c   :  { %v18732_v60 = vpop.f32.mrf.mxu1  ;;  %v18754_v9 = vpop.f32.mrf.mxu0 }
 0xa2e   :  { %v18733_v61 = vpop.f32.mrf.mxu1  ;;  %v18755_v62 = vpop.f32.mrf.mxu0 }
 0xa2f   :  { %v18734_v63 = vadd.f32 %v18733_v61, %v18732_v60  ;;  %v18756_v1 = vadd.f32 %v18755_v62, %v18754_v9  ;;  %v20116_v61 = vld [vmem:[#allocation8 + $0xa8] sm:$0xff]   ;;  %v20117_v62 = vld [vmem:[#allocation8 + $0xa0] sm:$0xff]  }
 0xa30   :  { %v18735_v2 = vpop.f32.mrf.mxu1  ;;  %v18757_v3 = vpop.f32.mrf.mxu0  ;;  %19705 = vmatpush3.bf16.msra.mxu1 %v20116_v61 }
 0xa31   :  { %v5495_v4 = vadd.f32 %v18734_v63, %v17305_v44  ;;  %19706 = vmatprep.subr.bf16.mxu1 %v21043_v0  ;;  %v20119_v63 = vld [vmem:[#allocation8 + $0x90] sm:$0xff]   ;;  %v20121_v2 = vld [vmem:[#allocation8 + $0x80] sm:$0xff]  }
 0xa32   :  { %v18736_v5 = vpop.f32.mrf.mxu1  ;;  %v18758_v54 = vpop.f32.mrf.mxu0 }
 0xa33   :  { %v5535_v6 = vadd.f32 %v18756_v1, %v5495_v4  ;;  %v20120_v1 = vld [vmem:[#allocation8 + $0x88] sm:$0xff]  }
 0xa34   :  { %19707 = vmatpush3.bf16.msra.mxu1 %v20117_v62  ;;  %v6029_v62 = vld [vmem:[#allocation14 + $0xa48] sm:$0xff] }
 0xa35   :  { %19708 = vmatprep.subr.bf16.mxu1 %v21043_v0 }
 0xa4c   :  { %v18776_v53 = vpop.f32.mrf.mxu1  ;;  %v18798_v7 = vpop.f32.mrf.mxu0 }
 0xa4e   :  { %v18777_v11 = vpop.f32.mrf.mxu1  ;;  %v18799_v12 = vpop.f32.mrf.mxu0 }
 0xa4f   :  { %v18778_v35 = vadd.f32 %v18777_v11, %v18776_v53  ;;  %v18800_v37 = vadd.f32 %v18799_v12, %v18798_v7  ;;  %v17435_v7 = vld [vmem:[#allocation22 + $0x1] ss:$0 sm:$0xff] }
 0xa50   :  { %v18779_v13 = vpop.f32.mrf.mxu1  ;;  %v18801_v16 = vpop.f32.mrf.mxu0 }
 0xa51   :  { %v5575_v36 = vadd.f32 %v18778_v35, %v5535_v6  ;;  %v17434_v6 = vld [vmem:[#allocation20 + $0x1] ss:$0 sm:$0xff]  ;;  %v17436_v16 = vld [vmem:[#allocation10 + $0x2] ss:$0 sm:$0xff] }
 0xa52   :  { %v18780_v57 = vpop.f32.mrf.mxu1  ;;  %v18802_v20 = vpop.f32.mrf.mxu0 }
 0xa53   :  { %v5615_v40 = vadd.f32 %v18800_v37, %v5575_v36  ;;  %v6077_v36 = vld [vmem:[#allocation14 + $0xbc8] sm:$0xff]  ;;  %v6052_v37 = vld [vmem:[#allocation14 + $0xb00] sm:$0xff] }
 0xa6c   :  { %v18820_v22 = vpop.f32.mrf.mxu1  ;;  %v18842_v23 = vpop.f32.mrf.mxu0 }
 0xa6e   :  { %v18821_v24 = vpop.f32.mrf.mxu1  ;;  %v18843_v31 = vpop.f32.mrf.mxu0 }
 0xa6f   :  { %v18822_v38 = vadd.f32 %v18821_v24, %v18820_v22  ;;  %v18844_v43 = vadd.f32 %v18843_v31, %v18842_v23 }
 0xa70   :  { %v18823_v25 = vpop.f32.mrf.mxu1  ;;  %v18845_v32 = vpop.f32.mrf.mxu0 }
 0xa71   :  { %v5655_v17 = vadd.f32 %v18822_v38, %v5615_v40  ;;  %v6068_v25 = vld [vmem:[#allocation14 + $0xb80] sm:$0xff] }
 0xa72   :  { %v18824_v33 = vpop.f32.mrf.mxu1  ;;  %v18846_v34 = vpop.f32.mrf.mxu0  ;;  %v6076_v32 = vld [vmem:[#allocation14 + $0xbc0] sm:$0xff] }
 0xa73   :  { %v5695_v47 = vadd.f32 %v18844_v43, %v5655_v17  ;;  %v6069_v33 = vld [vmem:[#allocation14 + $0xb88] sm:$0xff]  ;;  %v17559_v34 = vcombine.low %v6068_v25, %v6076_v32  ;;  %v17560_v35 = vcombine.high %v6068_v25, %v6076_v32  ;;  %v6060_v38 = vld [vmem:[#allocation14 + $0xb40] sm:$0xff] }
 0xa74   :  { %v17561_v40 = vcombine.low %v6069_v33, %v6077_v36  ;;  %v17562_v17 = vcombine.high %v6069_v33, %v6077_v36  ;;  %v6061_v43 = vld [vmem:[#allocation14 + $0xb48] sm:$0xff] }
 0xa75   :  { %6809 = vmatprep.subr.bf16.mxu0 %v17560_v35  ;;  %v5973_v25 = vld [vmem:[#allocation14 + $0x888] sm:$0xff] }
 0xa76   :  { %6810 = vmatpush1.bf16.msra.mxu0 %v17559_v34  ;;  %v5981_v33 = vld [vmem:[#allocation14 + $0x8c8] sm:$0xff] }
 0xa77   :  { %v17465_v35 = vcombine.low %v5973_v25, %v5981_v33  ;;  %v17466_v36 = vcombine.high %v5973_v25, %v5981_v33  ;;  %v6006_v25 = vld [vmem:[#allocation14 + $0x990] sm:$0xff]  ;;  %v6007_v33 = vld [vmem:[#allocation14 + $0x998] sm:$0xff] }
 0xa8c   :  { %v18864_v41 = vpop.f32.mrf.mxu1  ;;  %v18886_v42 = vpop.f32.mrf.mxu0 }
 0xa8e   :  { %v18865_v45 = vpop.f32.mrf.mxu1  ;;  %v18887_v46 = vpop.f32.mrf.mxu0 }
 0xa8f   :  { %v18866_v28 = vadd.f32 %v18865_v45, %v18864_v41  ;;  %v18888_v50 = vadd.f32 %v18887_v46, %v18886_v42  ;;  %v17544_v41 = vcombine.high %v6052_v37, %v6060_v38  ;;  %v6053_v42 = vld [vmem:[#allocation14 + $0xb08] sm:$0xff]  ;;  %v17543_v46 = vcombine.low %v6052_v37, %v6060_v38  ;;  %v5956_v37 = vld [vmem:[#allocation14 + $0x800] sm:$0xff] }
 0xa90   :  { %v18867_v10 = vpop.f32.mrf.mxu1  ;;  %v18889_v48 = vpop.f32.mrf.mxu0  ;;  %v17546_v45 = vcombine.high %v6053_v42, %v6061_v43  ;;  %v5964_v38 = vld [vmem:[#allocation14 + $0x840] sm:$0xff] }
 0xa91   :  { %v5735_v49 = vadd.f32 %v18866_v28, %v5695_v47  ;;  %6811 = vmatprep.subr.bf16.mxu0 %v17544_v41  ;;  %v17545_v47 = vcombine.low %v6053_v42, %v6061_v43  ;;  %v5965_v41 = vld [vmem:[#allocation14 + $0x848] sm:$0xff]  ;;  %v17447_v42 = vcombine.low %v5956_v37, %v5964_v38 }
 0xa92   :  { %v18868_v51 = vpop.f32.mrf.mxu1  ;;  %v18890_v52 = vpop.f32.mrf.mxu0  ;;  %6812 = vmatpush1.bf16.msra.mxu0 %v17543_v46  ;;  %v6070_v46 = vld [vmem:[#allocation14 + $0xb90] sm:$0xff] }
 0xa93   :  { %v5775_v55 = vadd.f32 %v18888_v50, %v5735_v49  ;;  %v6036_v50 = vld [vmem:[#allocation14 + $0xa80] sm:$0xff]  ;;  %v6037_v52 = vld [vmem:[#allocation14 + $0xa88] sm:$0xff] }
 0xa94   :  { %v6044_v51 = vld [vmem:[#allocation14 + $0xac0] sm:$0xff] }
 0xa95   :  { %v5780_v56 = vadd.f32 %v5775_v55, %v21327_v8  ;;  %v20118_v8 = vld [vmem:[#allocation8 + $0x98] sm:$0xff]   ;;  %v17528_v55 = vcombine.high %v6036_v50, %v6044_v51  ;;  %v17527_v21 = vcombine.low %v6036_v50, %v6044_v51 }
 0xa96   :  { %19709 = vmatpush3.bf16.msra.mxu1 %v20118_v8 }
 0xa97   :  { %5785 = vadd.xlane.f32.xlu0 %v5780_v56  ;;  %19710 = vmatprep.subr.bf16.mxu1 %v21043_v0 }
 0xa98   :  { %6813 = vmatprep.subr.bf16.mxu0 %v17528_v55 }
 0xa99   :  { %6814 = vmatpush1.bf16.msra.mxu0 %v17527_v21 }
 0xa9a   :  { %19711 = vmatpush3.bf16.msra.mxu1 %v20119_v63 }
 0xa9b   :  { %19712 = vmatprep.subr.bf16.mxu1 %v21043_v0 }
 0xa9e   :  { %19713 = vmatpush3.bf16.msra.mxu1 %v20120_v1 }
 0xa9f   :  { %19714 = vmatprep.subr.bf16.mxu1 %v21043_v0 }
 0xaa2   :  { %19715 = vmatpush3.bf16.msra.mxu1 %v20121_v2  ;;  %v6004_v2 = vld [vmem:[#allocation14 + $0x980] sm:$0xff] }
 0xaa3   :  { %6850 = vmatprep.subr.bf16.mxu1 %v17562_v17  ;;  %v17448_v17 = vcombine.high %v5956_v37, %v5964_v38 }
 0xb20   :  { %v5786_v59 = vpop.xlane.xlu0 %5785 }
 0xb21   :  { %v5787_v60 = vmul.f32 0.0078125, %v5786_v59 }
 0xb23   :  { %v5788_v9 = vsub.f32 %v5780_v56, %v5787_v60  ;;  %v6045_v56 = vld [vmem:[#allocation14 + $0xac8] sm:$0xff]  ;;  %v6020_v60 = vld [vmem:[#allocation14 + $0xa00] sm:$0xff] }
 0xb24   :  { %v17529_v58 = vcombine.low %v6037_v52, %v6045_v56  ;;  %v17530_v59 = vcombine.high %v6037_v52, %v6045_v56 }
 0xb25   :  { %v5789_v44 = vmul.f32 %v5788_v9, %v5788_v9 }
 0xb27   :  { %5790 = vadd.xlane.f32.xlu1 %v5789_v44  ;;  %v6021_v44 = vld [vmem:[#allocation14 + $0xa08] sm:$0xff] }
 0xb28   :  { %v17513_v63 = vcombine.low %v6021_v44, %v6029_v62  ;;  %v17514_v1 = vcombine.high %v6021_v44, %v6029_v62  ;;  %v6062_v62 = vld [vmem:[#allocation14 + $0xb50] sm:$0xff] }
 0xbb0   :  { %v5791_v3 = vpop.xlane.xlu1 %5790 }
 0xbb1   :  { %v5792_v4 = vmul.f32 0.0078125, %v5791_v3  ;;  %v6012_v3 = vld [vmem:[#allocation14 + $0x9c0] sm:$0xff] }
 0xbb3   :  { %v5793_v5 = vadd.f32 1e-05, %v5792_v4  ;;  %v6005_v4 = vld [vmem:[#allocation14 + $0x988] sm:$0xff] }
 0xbb5   :  { %20664 = vrsqrt.f32 %v5793_v5  ;;  %v17496_v5 = vcombine.high %v6004_v2, %v6012_v3 }
 0xbc2   :  { %v20665_v54 = vpop.eup %20664 }
 0xbc3   :  { %v5795_v53 = vmul.f32 %v20665_v54, %v5788_v9  ;;  %v6028_v9 = vld [vmem:[#allocation14 + $0xa40] sm:$0xff]  ;;  %v6013_v54 = vld [vmem:[#allocation14 + $0x9c8] sm:$0xff] }
 0xbc4   :  { %v17512_v61 = vcombine.high %v6020_v60, %v6028_v9  ;;  %v17511_v8 = vcombine.low %v6020_v60, %v6028_v9  ;;  %v17446_v9 = vld [vmem:[#allocation13 + $0x2] ss:$0 sm:$0xff] }
 0xbc5   :  { %v5802_v11 = vmul.f32 %v17434_v6, %v5795_v53  ;;  %v17495_v6 = vcombine.low %v6004_v2, %v6012_v3  ;;  %v17497_v53 = vcombine.low %v6005_v4, %v6013_v54 }
 0xbc6   :  { %6815 = vmatprep.subr.bf16.mxu0 %v17512_v61  ;;  %v6054_v61 = vld [vmem:[#allocation14 + $0xb10] sm:$0xff] }
 0xbc7   :  { %v5809_v12 = vadd.f32 %v17435_v7, %v5802_v11  ;;  %6816 = vmatpush1.bf16.msra.mxu0 %v17511_v8  ;;  %v17498_v7 = vcombine.high %v6005_v4, %v6013_v54  ;;  %v5988_v11 = vld [vmem:[#allocation14 + $0x900] sm:$0xff]  ;;  %v6055_v8 = vld [vmem:[#allocation14 + $0xb18] sm:$0xff]  ;;  %v17548_v3 = vcombine.high %v6054_v61, %v6062_v62  ;;  %v6046_v54 = vld [vmem:[#allocation14 + $0xad0] sm:$0xff] }
 0xbc8   :  { %6817 = vmatprep.subr.bf16.mxu0 %v17496_v5  ;;  %v6038_v5 = vld [vmem:[#allocation14 + $0xa90] sm:$0xff] }
 0xbc9   :  { %v5810_v13 = vpack.c.bf16 %v5809_v12, %v5809_v12 }
 0xbcb   :  { %19717 = vmatmul.mubr.bf16.vlgmr.msra.gmra.mxu1 %v5810_v13  ;;  %6818 = vmatpush1.bf16.msra.mxu0 %v17495_v6  ;;  %v5989_v13 = vld [vmem:[#allocation14 + $0x908] sm:$0xff]  ;;  %v6039_v6 = vld [vmem:[#allocation14 + $0xa98] sm:$0xff] }
 0xbcc   :  { %6882 = vmatprep.mubr.bf16.mxu1 %v21045_v39  ;;  %6851 = vmatpush1.bf16.msra.mxu1 %v17561_v40  ;;  %v5957_v40 = vld [vmem:[#allocation14 + $0x808] sm:$0xff] }
 0xbcd   :  { %6852 = vmatprep.subr.bf16.mxu1 %v17546_v45  ;;  %v17449_v43 = vcombine.low %v5957_v40, %v5965_v41  ;;  %v17450_v45 = vcombine.high %v5957_v40, %v5965_v41  ;;  %v5990_v40 = vld [vmem:[#allocation14 + $0x910] sm:$0xff]  ;;  %v5991_v41 = vld [vmem:[#allocation14 + $0x918] sm:$0xff] }
 0xbd0   :  { %6853 = vmatpush1.bf16.msra.mxu1 %v17545_v47  ;;  %v6078_v47 = vld [vmem:[#allocation14 + $0xbd0] sm:$0xff] }
 0xbd1   :  { %6854 = vmatprep.subr.bf16.mxu1 %v17530_v59  ;;  %v17563_v50 = vcombine.low %v6070_v46, %v6078_v47  ;;  %v17445_v59 = vld [vmem:[#allocation11 + $0x2] ss:$0 sm:$0xff] }
 0xbd4   :  { %6855 = vmatpush1.bf16.msra.mxu1 %v17529_v58 }
 0xbd5   :  { %6856 = vmatprep.subr.bf16.mxu1 %v17514_v1 }
 0xbd8   :  { %6857 = vmatpush1.bf16.msra.mxu1 %v17513_v63  ;;  %v6063_v63 = vld [vmem:[#allocation14 + $0xb58] sm:$0xff] }
 0xbd9   :  { %6858 = vmatprep.subr.bf16.mxu1 %v17498_v7  ;;  %v17550_v4 = vcombine.high %v6055_v8, %v6063_v63  ;;  %v17549_v7 = vcombine.low %v6055_v8, %v6063_v63  ;;  %v6072_v8 = vld [vmem:[#allocation14 + $0xba0] sm:$0xff] }
 0xbda   :  { %v6080_v63 = vld [vmem:[#allocation14 + $0xbe0] sm:$0xff] }
 0xbdc   :  { %6859 = vmatpush1.bf16.msra.mxu1 %v17497_v53  ;;  %v6047_v53 = vld [vmem:[#allocation14 + $0xad8] sm:$0xff] }
 0xc8b   :  { %v5918_v57 = vpop.f32.mrf.mxu1 }
 0xc8c   :  { %v5919_v20 = vadd.f32 %v17436_v16, %v5918_v57  ;;  %v5997_v57 = vld [vmem:[#allocation14 + $0x948] sm:$0xff] }
 0xc8d   :  { %v19718_v22 = vpop.f32.mrf.mxu1 }
 0xc8e   :  { %v5924_v23 = vadd.f32 %v5919_v20, %v5809_v12  ;;  %v5996_v12 = vld [vmem:[#allocation14 + $0x940] sm:$0xff]  ;;  %v17481_v22 = vcombine.low %v5989_v13, %v5997_v57 }
 0xc8f   :  { %v5921_v24 = vpop.f32.mrf.mxu1  ;;  %v17480_v16 = vcombine.high %v5988_v11, %v5996_v12  ;;  %v17479_v20 = vcombine.low %v5988_v11, %v5996_v12  ;;  %v17532_v11 = vcombine.high %v6038_v5, %v6046_v54  ;;  %v17534_v12 = vcombine.high %v6039_v6, %v6047_v53 }
 0xc90   :  { %5929 = vadd.xlane.f32.xlu0 %v5924_v23  ;;  %v5972_v24 = vld [vmem:[#allocation14 + $0x880] sm:$0xff] }
 0xc91   :  { %v19719_v31 = vpop.f32.mrf.mxu1  ;;  %6819 = vmatprep.subr.bf16.mxu0 %v17480_v16  ;;  %v6030_v16 = vld [vmem:[#allocation14 + $0xa50] sm:$0xff] }
 0xc92   :  { %6820 = vmatpush1.bf16.msra.mxu0 %v17479_v20  ;;  %v5980_v31 = vld [vmem:[#allocation14 + $0x8c0] sm:$0xff]  ;;  %v6031_v20 = vld [vmem:[#allocation14 + $0xa58] sm:$0xff] }
 0xc93   :  { %v17464_v32 = vcombine.high %v5972_v24, %v5980_v31  ;;  %v17463_v34 = vcombine.low %v5972_v24, %v5980_v31 }
 0xc95   :  { %6821 = vmatprep.subr.bf16.mxu0 %v17464_v32  ;;  %v6014_v32 = vld [vmem:[#allocation14 + $0x9d0] sm:$0xff] }
 0xc96   :  { %6822 = vmatpush1.bf16.msra.mxu0 %v17463_v34  ;;  %v6015_v34 = vld [vmem:[#allocation14 + $0x9d8] sm:$0xff]  ;;  %v17500_v37 = vcombine.high %v6006_v25, %v6014_v32 }
 0xc97   :  { %6823 = vmatprep.subr.bf16.mxu0 %v17448_v17  ;;  %v17502_v38 = vcombine.high %v6007_v33, %v6015_v34  ;;  %v5998_v17 = vld [vmem:[#allocation14 + $0x950] sm:$0xff] }
 0xc9a   :  { %6824 = vmatpush1.bf16.msra.mxu0 %v17447_v42  ;;  %v5999_v42 = vld [vmem:[#allocation14 + $0x958] sm:$0xff] }
 0xd19   :  { %v5930_v28 = vpop.xlane.xlu0 %5929 }
 0xd1a   :  { %v5931_v10 = vmul.f32 0.0078125, %v5930_v28  ;;  %v6071_v28 = vld [vmem:[#allocation14 + $0xb98] sm:$0xff] }
 0xd1c   :  { %v21396_v48 = vsub.f32 %v5924_v23, %v5931_v10  ;;  %v17482_v23 = vcombine.high %v5989_v13, %v5997_v57  ;;  %v17564_v10 = vcombine.high %v6070_v46, %v6078_v47  ;;  %v6022_v13 = vld [vmem:[#allocation14 + $0xa10] sm:$0xff]  ;;  %v6023_v57 = vld [vmem:[#allocation14 + $0xa18] sm:$0xff]  ;;  %v17484_v46 = vcombine.high %v5990_v40, %v5998_v17 }
 0xd1d   :  { %v17516_v24 = vcombine.high %v6022_v13, %v6030_v16  ;;  %v17518_v31 = vcombine.high %v6023_v57, %v6031_v20  ;;  %v17486_v47 = vcombine.high %v5991_v41, %v5999_v42 }
 0xd1e   :  { %v5933_v49 = vmul.f32 %v21396_v48, %v21396_v48  ;;  %6860 = vmatprep.subr.bf16.mxu1 %v17482_v23  ;;  %6891 = vmatprep.subr.bf16.mxu0 %v17564_v10  ;;  %v17533_v23 = vcombine.low %v6039_v6, %v6047_v53  ;;  %v5982_v10 = vld [vmem:[#allocation14 + $0x8d0] sm:$0xff]  ;;  %v17568_v6 = vcombine.high %v6072_v8, %v6080_v63 }
 0xd1f   :  { %6861 = vmatpush1.bf16.msra.mxu1 %v17481_v22  ;;  %v17531_v22 = vcombine.low %v6038_v5, %v6046_v54 }
 0xd20   :  { %5934 = vadd.xlane.f32.xlu1 %v5933_v49  ;;  %6862 = vmatprep.subr.bf16.mxu1 %v17466_v36  ;;  %v6079_v49 = vld [vmem:[#allocation14 + $0xbd8] sm:$0xff]  ;;  %v17517_v36 = vcombine.low %v6023_v57, %v6031_v20 }
 0xd21   :  { %v17565_v51 = vcombine.low %v6071_v28, %v6079_v49  ;;  %v17566_v52 = vcombine.high %v6071_v28, %v6079_v49  ;;  %v5974_v28 = vld [vmem:[#allocation14 + $0x890] sm:$0xff]  ;;  %v5975_v49 = vld [vmem:[#allocation14 + $0x898] sm:$0xff] }
 0xd23   :  { %6863 = vmatpush1.bf16.msra.mxu1 %v17465_v35  ;;  %v17515_v35 = vcombine.low %v6022_v13, %v6030_v16  ;;  %v17567_v13 = vcombine.low %v6072_v8, %v6080_v63 }
 0xd24   :  { %6864 = vmatprep.subr.bf16.mxu1 %v17450_v45  ;;  %v17501_v45 = vcombine.low %v6007_v33, %v6015_v34 }
 0xd27   :  { %6865 = vmatpush1.bf16.msra.mxu1 %v17449_v43  ;;  %v17499_v43 = vcombine.low %v6006_v25, %v6014_v32 }
 0xd28   :  { %6932 = vmatprep.subr.bf16.mxu1 %v17566_v52  ;;  %v17485_v52 = vcombine.low %v5991_v41, %v5999_v42 }
 0xda9   :  { %v5935_v55 = vpop.xlane.xlu1 %5934 }
 0xdaa   :  { %v5936_v56 = vmul.f32 0.0078125, %v5935_v55  ;;  %v17468_v55 = vcombine.high %v5974_v28, %v5982_v10 }
 0xdac   :  { %v5937_v21 = vadd.f32 1e-05, %v5936_v56 }
 0xdae   :  { %20666 = vrsqrt.f32 %v5937_v21  ;;  %v5958_v21 = vld [vmem:[#allocation14 + $0x810] sm:$0xff] }
 0xdbb   :  { %v20667_v58 = vpop.eup %20666 }
 0xdbc   :  { %v5939_v60 = vmul.f32 %v20667_v58, %v21396_v48  ;;  %v17547_v48 = vcombine.low %v6054_v61, %v6062_v62  ;;  %v5966_v58 = vld [vmem:[#allocation14 + $0x850] sm:$0xff] }
 0xdbd   :  { %v17452_v61 = vcombine.high %v5958_v21, %v5966_v58  ;;  %v17451_v5 = vcombine.low %v5958_v21, %v5966_v58 }
 0xdbe   :  { %v5946_v44 = vmul.f32 %v17445_v59, %v5939_v60  ;;  %v5959_v59 = vld [vmem:[#allocation14 + $0x818] sm:$0xff] }
 0xdbf   :  { %v5967_v60 = vld [vmem:[#allocation14 + $0x858] sm:$0xff] }
 0xdc0   :  { %v21401_v1 = vadd.f32 %v17446_v9, %v5946_v44  ;;  %v17467_v9 = vcombine.low %v5974_v28, %v5982_v10  ;;  %v17454_v62 = vcombine.high %v5959_v59, %v5967_v60  ;;  %v17453_v54 = vcombine.low %v5959_v59, %v5967_v60 }
 0xdc2   :  { %v21405_v2 = vpack.c.bf16 %v21401_v1, %v21401_v1 }
 0xdc4   :  { %6842 = vmatmul.mubr.bf16.vlgmr.msra.gmra.mxu0 %v21405_v2  ;;  %6883 = vmatmul.mubr.bf16.vlgmr.msra.gmra.mxu1 %v21405_v2 }
 0xdc5   :  { %6892 = vmatpush1.bf16.msra.mxu0 %v17563_v50  ;;  %6933 = vmatpush1.bf16.msra.mxu1 %v17565_v51  ;;  %v5983_v50 = vld [vmem:[#allocation14 + $0x8d8] sm:$0xff]  ;;  %v17483_v51 = vcombine.low %v5990_v40, %v5998_v17 }
 0xdc6   :  { %6893 = vmatprep.subr.bf16.mxu0 %v17548_v3  ;;  %6934 = vmatprep.subr.bf16.mxu1 %v17550_v4  ;;  %v17470_v56 = vcombine.high %v5975_v49, %v5983_v50  ;;  %v17469_v44 = vcombine.low %v5975_v49, %v5983_v50  ;;  %v6073_v3 = vld [vmem:[#allocation14 + $0xba8] sm:$0xff] }
 0xdc7   :  { %6923 = vmatprep.mubr.bf16.mxu0 %v21045_v39  ;;  %6964 = vmatprep.mubr.bf16.mxu1 %v21045_v39  ;;  %v6081_v4 = vld [vmem:[#allocation14 + $0xbe8] sm:$0xff] }
 0xdc8   :  { %v17570_v53 = vcombine.high %v6073_v3, %v6081_v4  ;;  %v17569_v16 = vcombine.low %v6073_v3, %v6081_v4 }
 0xdc9   :  { %6894 = vmatpush1.bf16.msra.mxu0 %v17547_v48  ;;  %6935 = vmatpush1.bf16.msra.mxu1 %v17549_v7  ;;  %v6056_v48 = vld [vmem:[#allocation14 + $0xb20] sm:$0xff] }
 0xdca   :  { %6895 = vmatprep.subr.bf16.mxu0 %v17532_v11  ;;  %6936 = vmatprep.subr.bf16.mxu1 %v17534_v12  ;;  %v6064_v7 = vld [vmem:[#allocation14 + $0xb60] sm:$0xff]  ;;  %v6057_v11 = vld [vmem:[#allocation14 + $0xb28] sm:$0xff] }
 0xdcb   :  { %v6065_v12 = vld [vmem:[#allocation14 + $0xb68] sm:$0xff]  ;;  %v17552_v57 = vcombine.high %v6056_v48, %v6064_v7  ;;  %v17551_v25 = vcombine.low %v6056_v48, %v6064_v7 }
 0xdcc   :  { %v17554_v20 = vcombine.high %v6057_v11, %v6065_v12  ;;  %v17553_v32 = vcombine.low %v6057_v11, %v6065_v12 }
 0xdcd   :  { %6896 = vmatpush1.bf16.msra.mxu0 %v17531_v22  ;;  %6937 = vmatpush1.bf16.msra.mxu1 %v17533_v23  ;;  %v6040_v22 = vld [vmem:[#allocation14 + $0xaa0] sm:$0xff] }
 0xdce   :  { %6897 = vmatprep.subr.bf16.mxu0 %v17516_v24  ;;  %6938 = vmatprep.subr.bf16.mxu1 %v17518_v31  ;;  %v6048_v23 = vld [vmem:[#allocation14 + $0xae0] sm:$0xff]  ;;  %v6041_v24 = vld [vmem:[#allocation14 + $0xaa8] sm:$0xff] }
 0xdcf   :  { %v6049_v31 = vld [vmem:[#allocation14 + $0xae8] sm:$0xff]  ;;  %v17536_v33 = vcombine.high %v6040_v22, %v6048_v23  ;;  %v17535_v40 = vcombine.low %v6040_v22, %v6048_v23 }
 0xdd0   :  { %v17538_v34 = vcombine.high %v6041_v24, %v6049_v31  ;;  %v17537_v17 = vcombine.low %v6041_v24, %v6049_v31 }
 0xdd1   :  { %6898 = vmatpush1.bf16.msra.mxu0 %v17515_v35  ;;  %6939 = vmatpush1.bf16.msra.mxu1 %v17517_v36  ;;  %v6024_v35 = vld [vmem:[#allocation14 + $0xa20] sm:$0xff] }
 0xdd2   :  { %6899 = vmatprep.subr.bf16.mxu0 %v17500_v37  ;;  %6940 = vmatprep.subr.bf16.mxu1 %v17502_v38  ;;  %v6032_v36 = vld [vmem:[#allocation14 + $0xa60] sm:$0xff]  ;;  %v6025_v37 = vld [vmem:[#allocation14 + $0xa28] sm:$0xff] }
 0xdd3   :  { %v6033_v38 = vld [vmem:[#allocation14 + $0xa68] sm:$0xff]  ;;  %v17520_v41 = vcombine.high %v6024_v35, %v6032_v36  ;;  %v17519_v28 = vcombine.low %v6024_v35, %v6032_v36 }
 0xdd4   :  { %v17522_v42 = vcombine.high %v6025_v37, %v6033_v38  ;;  %v17521_v10 = vcombine.low %v6025_v37, %v6033_v38 }
 0xdd5   :  { %6900 = vmatpush1.bf16.msra.mxu0 %v17499_v43  ;;  %6941 = vmatpush1.bf16.msra.mxu1 %v17501_v45  ;;  %v6008_v43 = vld [vmem:[#allocation14 + $0x9a0] sm:$0xff] }
 0xdd6   :  { %6901 = vmatprep.subr.bf16.mxu0 %v17484_v46  ;;  %6942 = vmatprep.subr.bf16.mxu1 %v17486_v47  ;;  %v6016_v45 = vld [vmem:[#allocation14 + $0x9e0] sm:$0xff]  ;;  %v6009_v46 = vld [vmem:[#allocation14 + $0x9a8] sm:$0xff] }
 0xdd7   :  { %v6017_v47 = vld [vmem:[#allocation14 + $0x9e8] sm:$0xff]  ;;  %v17504_v49 = vcombine.high %v6008_v43, %v6016_v45  ;;  %v17503_v21 = vcombine.low %v6008_v43, %v6016_v45 }
 0xdd8   :  { %v17506_v50 = vcombine.high %v6009_v46, %v6017_v47  ;;  %v17505_v58 = vcombine.low %v6009_v46, %v6017_v47 }
 0xdd9   :  { %6902 = vmatpush1.bf16.msra.mxu0 %v17483_v51  ;;  %6943 = vmatpush1.bf16.msra.mxu1 %v17485_v52  ;;  %v5992_v51 = vld [vmem:[#allocation14 + $0x920] sm:$0xff] }
 0xdda   :  { %6903 = vmatprep.subr.bf16.mxu0 %v17468_v55  ;;  %6944 = vmatprep.subr.bf16.mxu1 %v17470_v56  ;;  %v6000_v52 = vld [vmem:[#allocation14 + $0x960] sm:$0xff]  ;;  %v5993_v55 = vld [vmem:[#allocation14 + $0x928] sm:$0xff] }
 0xddb   :  { %v6001_v56 = vld [vmem:[#allocation14 + $0x968] sm:$0xff]  ;;  %v17488_v59 = vcombine.high %v5992_v51, %v6000_v52  ;;  %v17487_v8 = vcombine.low %v5992_v51, %v6000_v52 }
 0xddc   :  { %v17490_v60 = vcombine.high %v5993_v55, %v6001_v56  ;;  %v17489_v63 = vcombine.low %v5993_v55, %v6001_v56 }
 0xddd   :  { %6904 = vmatpush1.bf16.msra.mxu0 %v17467_v9  ;;  %6945 = vmatpush1.bf16.msra.mxu1 %v17469_v44  ;;  %v5976_v9 = vld [vmem:[#allocation14 + $0x8a0] sm:$0xff] }
 0xdde   :  { %6905 = vmatprep.subr.bf16.mxu0 %v17452_v61  ;;  %6946 = vmatprep.subr.bf16.mxu1 %v17454_v62  ;;  %v5984_v44 = vld [vmem:[#allocation14 + $0x8e0] sm:$0xff]  ;;  %v5977_v61 = vld [vmem:[#allocation14 + $0x8a8] sm:$0xff] }
 0xddf   :  { %v5985_v62 = vld [vmem:[#allocation14 + $0x8e8] sm:$0xff]  ;;  %v17472_v3 = vcombine.high %v5976_v9, %v5984_v44  ;;  %v17471_v48 = vcombine.low %v5976_v9, %v5984_v44 }
 0xde0   :  { %v17474_v4 = vcombine.high %v5977_v61, %v5985_v62  ;;  %v17473_v7 = vcombine.low %v5977_v61, %v5985_v62 }
 0xde1   :  { %6906 = vmatpush1.bf16.msra.mxu0 %v17451_v5  ;;  %6947 = vmatpush1.bf16.msra.mxu1 %v17453_v54  ;;  %v5960_v5 = vld [vmem:[#allocation14 + $0x820] sm:$0xff] }
 0xde2   :  { %6973 = vmatprep.subr.bf16.mxu0 %v17568_v6  ;;  %7014 = vmatprep.subr.bf16.mxu1 %v17570_v53  ;;  %v5968_v54 = vld [vmem:[#allocation14 + $0x860] sm:$0xff]  ;;  %v5961_v6 = vld [vmem:[#allocation14 + $0x828] sm:$0xff] }
 0xde3   :  { %v5969_v53 = vld [vmem:[#allocation14 + $0x868] sm:$0xff]  ;;  %v17456_v11 = vcombine.high %v5960_v5, %v5968_v54  ;;  %v17455_v22 = vcombine.low %v5960_v5, %v5968_v54 }
 0xde4   :  { %6924 = vmatmul.mubr.bf16.vlgmr.msra.gmra.mxu0 %v21405_v2  ;;  %6965 = vmatmul.mubr.bf16.vlgmr.msra.gmra.mxu1 %v21405_v2  ;;  %v17458_v12 = vcombine.high %v5961_v6, %v5969_v53  ;;  %v17457_v23 = vcombine.low %v5961_v6, %v5969_v53 }
 0xde5   :  { %6974 = vmatpush1.bf16.msra.mxu0 %v17567_v13  ;;  %7015 = vmatpush1.bf16.msra.mxu1 %v17569_v16  ;;  %v6074_v13 = vld [vmem:[#allocation14 + $0xbb0] sm:$0xff] }
 0xde6   :  { %6975 = vmatprep.subr.bf16.mxu0 %v17552_v57  ;;  %7016 = vmatprep.subr.bf16.mxu1 %v17554_v20  ;;  %v6082_v16 = vld [vmem:[#allocation14 + $0xbf0] sm:$0xff]  ;;  %v6075_v57 = vld [vmem:[#allocation14 + $0xbb8] sm:$0xff] }
 0xde7   :  { %7005 = vmatprep.mubr.bf16.mxu0 %v21045_v39  ;;  %7046 = vmatprep.mubr.bf16.mxu1 %v21045_v39  ;;  %v6083_v20 = vld [vmem:[#allocation14 + $0xbf8] sm:$0xff]  ;;  %v17572_v24 = vcombine.high %v6074_v13, %v6082_v16  ;;  %v17571_v35 = vcombine.low %v6074_v13, %v6082_v16 }
 0xde8   :  { %v17574_v31 = vcombine.high %v6075_v57, %v6083_v20  ;;  %v17573_v36 = vcombine.low %v6075_v57, %v6083_v20 }
 0xde9   :  { %6976 = vmatpush1.bf16.msra.mxu0 %v17551_v25  ;;  %7017 = vmatpush1.bf16.msra.mxu1 %v17553_v32  ;;  %v6058_v25 = vld [vmem:[#allocation14 + $0xb30] sm:$0xff] }
 0xdea   :  { %6977 = vmatprep.subr.bf16.mxu0 %v17536_v33  ;;  %7018 = vmatprep.subr.bf16.mxu1 %v17538_v34  ;;  %v6066_v32 = vld [vmem:[#allocation14 + $0xb70] sm:$0xff]  ;;  %v6059_v33 = vld [vmem:[#allocation14 + $0xb38] sm:$0xff] }
 0xdeb   :  { %v6067_v34 = vld [vmem:[#allocation14 + $0xb78] sm:$0xff]  ;;  %v17556_v37 = vcombine.high %v6058_v25, %v6066_v32  ;;  %v17555_v43 = vcombine.low %v6058_v25, %v6066_v32 }
 0xdec   :  { %v17558_v38 = vcombine.high %v6059_v33, %v6067_v34  ;;  %v17557_v45 = vcombine.low %v6059_v33, %v6067_v34 }
 0xded   :  { %6978 = vmatpush1.bf16.msra.mxu0 %v17535_v40  ;;  %7019 = vmatpush1.bf16.msra.mxu1 %v17537_v17  ;;  %v6042_v40 = vld [vmem:[#allocation14 + $0xab0] sm:$0xff] }
 0xdee   :  { %6979 = vmatprep.subr.bf16.mxu0 %v17520_v41  ;;  %7020 = vmatprep.subr.bf16.mxu1 %v17522_v42  ;;  %v6050_v17 = vld [vmem:[#allocation14 + $0xaf0] sm:$0xff]  ;;  %v6043_v41 = vld [vmem:[#allocation14 + $0xab8] sm:$0xff] }
 0xdef   :  { %v6051_v42 = vld [vmem:[#allocation14 + $0xaf8] sm:$0xff]  ;;  %v17540_v46 = vcombine.high %v6042_v40, %v6050_v17  ;;  %v17539_v51 = vcombine.low %v6042_v40, %v6050_v17 }
 0xdf0   :  { %v17542_v47 = vcombine.high %v6043_v41, %v6051_v42  ;;  %v17541_v52 = vcombine.low %v6043_v41, %v6051_v42  ;;  %v20124_v40 = vld [vmem:[#allocation17 + $0x838] sm:$0xff]   ;;  %v20126_v41 = vld [vmem:[#allocation17 + $0x870] sm:$0xff]  }
 0xdf1   :  { %6980 = vmatpush1.bf16.msra.mxu0 %v17519_v28  ;;  %7021 = vmatpush1.bf16.msra.mxu1 %v17521_v10  ;;  %v6026_v28 = vld [vmem:[#allocation14 + $0xa30] sm:$0xff]  ;;  %v20125_v17 = vld [vmem:[#allocation17 + $0x8b8] sm:$0xff]  }
 0xdf2   :  { %6981 = vmatprep.subr.bf16.mxu0 %v17504_v49  ;;  %7022 = vmatprep.subr.bf16.mxu1 %v17506_v50  ;;  %v6034_v10 = vld [vmem:[#allocation14 + $0xa70] sm:$0xff]  ;;  %v6027_v49 = vld [vmem:[#allocation14 + $0xa38] sm:$0xff] }
 0xdf3   :  { %v6035_v50 = vld [vmem:[#allocation14 + $0xa78] sm:$0xff]  ;;  %v17524_v55 = vcombine.high %v6026_v28, %v6034_v10  ;;  %v17523_v9 = vcombine.low %v6026_v28, %v6034_v10  ;;  %v20127_v42 = vld [vmem:[#allocation17 + $0x8f0] sm:$0xff]   ;;  %v20132_v28 = vld [vmem:[#allocation17 + $0x828] sm:$0xff]  }
 0xdf4   :  { %v17526_v56 = vcombine.high %v6027_v49, %v6035_v50  ;;  %v17525_v44 = vcombine.low %v6027_v49, %v6035_v50  ;;  %v20133_v10 = vld [vmem:[#allocation17 + $0x8a8] sm:$0xff]   ;;  %v20134_v49 = vld [vmem:[#allocation17 + $0x860] sm:$0xff]  }
 0xdf5   :  { %6982 = vmatpush1.bf16.msra.mxu0 %v17503_v21  ;;  %7023 = vmatpush1.bf16.msra.mxu1 %v17505_v58  ;;  %v6010_v21 = vld [vmem:[#allocation14 + $0x9b0] sm:$0xff]  ;;  %v20135_v50 = vld [vmem:[#allocation17 + $0x8e0] sm:$0xff]  }
 0xdf6   :  { %6983 = vmatprep.subr.bf16.mxu0 %v17488_v59  ;;  %7024 = vmatprep.subr.bf16.mxu1 %v17490_v60  ;;  %v6018_v58 = vld [vmem:[#allocation14 + $0x9f0] sm:$0xff]  ;;  %v6011_v59 = vld [vmem:[#allocation14 + $0x9b8] sm:$0xff] }
 0xdf7   :  { %v6019_v60 = vld [vmem:[#allocation14 + $0x9f8] sm:$0xff]  ;;  %v17508_v61 = vcombine.high %v6010_v21, %v6018_v58  ;;  %v17507_v5 = vcombine.low %v6010_v21, %v6018_v58  ;;  %v20142_v58 = vld [vmem:[#allocation17 + $0x850] sm:$0xff]  }
 0xdf8   :  { %v17510_v62 = vcombine.high %v6011_v59, %v6019_v60  ;;  %v17509_v54 = vcombine.low %v6011_v59, %v6019_v60  ;;  %v20141_v21 = vld [vmem:[#allocation17 + $0x898] sm:$0xff]   ;;  %v20143_v59 = vld [vmem:[#allocation17 + $0x8d0] sm:$0xff]  }
 0xdf9   :  { %6984 = vmatpush1.bf16.msra.mxu0 %v17487_v8  ;;  %7025 = vmatpush1.bf16.msra.mxu1 %v17489_v63  ;;  %v5994_v8 = vld [vmem:[#allocation14 + $0x930] sm:$0xff] }
 0xdfa   :  { %6985 = vmatprep.subr.bf16.mxu0 %v17472_v3  ;;  %7026 = vmatprep.subr.bf16.mxu1 %v17474_v4  ;;  %v6002_v63 = vld [vmem:[#allocation14 + $0x970] sm:$0xff]  ;;  %v5995_v3 = vld [vmem:[#allocation14 + $0x938] sm:$0xff] }
 0xdfb   :  { %v6003_v4 = vld [vmem:[#allocation14 + $0x978] sm:$0xff]  ;;  %v17492_v6 = vcombine.high %v5994_v8, %v6002_v63  ;;  %v17491_v13 = vcombine.low %v5994_v8, %v6002_v63  ;;  %v20144_v60 = vld [vmem:[#allocation17 + $0x810] sm:$0xff]   ;;  %v20149_v8 = vld [vmem:[#allocation17 + $0x888] sm:$0xff]  }
 0xdfc   :  { %v17494_v53 = vcombine.high %v5995_v3, %v6003_v4  ;;  %v17493_v16 = vcombine.low %v5995_v3, %v6003_v4  ;;  %v20150_v63 = vld [vmem:[#allocation17 + $0x840] sm:$0xff]  }
 0xdfd   :  { %6986 = vmatpush1.bf16.msra.mxu0 %v17471_v48  ;;  %7027 = vmatpush1.bf16.msra.mxu1 %v17473_v7  ;;  %v5978_v48 = vld [vmem:[#allocation14 + $0x8b0] sm:$0xff]  ;;  %v20151_v3 = vld [vmem:[#allocation17 + $0x8c0] sm:$0xff]  }
 0xdfe   :  { %6987 = vmatprep.subr.bf16.mxu0 %v17456_v11  ;;  %7028 = vmatprep.subr.bf16.mxu1 %v17458_v12  ;;  %v5986_v7 = vld [vmem:[#allocation14 + $0x8f0] sm:$0xff]  ;;  %v5979_v11 = vld [vmem:[#allocation14 + $0x8b8] sm:$0xff]  ;;  %v20152_v4 = vld [vmem:[#allocation17 + $0x800] sm:$0xff]  }
 0xdff   :  { %v5987_v12 = vld [vmem:[#allocation14 + $0x8f8] sm:$0xff]  ;;  %v17476_v57 = vcombine.high %v5978_v48, %v5986_v7  ;;  %v17475_v25 = vcombine.low %v5978_v48, %v5986_v7 }
 0xe00   :  { %v17478_v20 = vcombine.high %v5979_v11, %v5987_v12  ;;  %v17477_v32 = vcombine.low %v5979_v11, %v5987_v12 }
 0xe01   :  { %6988 = vmatpush1.bf16.msra.mxu0 %v17455_v22  ;;  %7029 = vmatpush1.bf16.msra.mxu1 %v17457_v23  ;;  %v5962_v22 = vld [vmem:[#allocation14 + $0x830] sm:$0xff] }
 0xe02   :  { %7055 = vmatprep.subr.bf16.mxu0 %v17572_v24  ;;  %7096 = vmatprep.subr.bf16.mxu1 %v17574_v31  ;;  %v5970_v23 = vld [vmem:[#allocation14 + $0x870] sm:$0xff]  ;;  %v5963_v24 = vld [vmem:[#allocation14 + $0x838] sm:$0xff] }
 0xe03   :  { %v5971_v31 = vld [vmem:[#allocation14 + $0x878] sm:$0xff]  ;;  %v17460_v33 = vcombine.high %v5962_v22, %v5970_v23 }
 0xe04   :  { %7006 = vmatmul.mubr.bf16.vlgmr.msra.gmra.mxu0 %v21405_v2  ;;  %7047 = vmatmul.mubr.bf16.vlgmr.msra.gmra.mxu1 %v21405_v2  ;;  %v17462_v34 = vcombine.high %v5963_v24, %v5971_v31 }
 0xe05   :  { %7056 = vmatpush1.bf16.msra.mxu0 %v17571_v35  ;;  %7097 = vmatpush1.bf16.msra.mxu1 %v17573_v36  ;;  %v17459_v35 = vcombine.low %v5962_v22, %v5970_v23  ;;  %v17461_v36 = vcombine.low %v5963_v24, %v5971_v31 }
 0xe06   :  { %7057 = vmatprep.subr.bf16.mxu0 %v17556_v37  ;;  %7098 = vmatprep.subr.bf16.mxu1 %v17558_v38  ;;  %v20122_v37 = vld [vmem:[#allocation17 + $0x878] sm:$0xff]  }
 0xe07   :  { %7087 = vmatprep.mubr.bf16.mxu0 %v21045_v39  ;;  %7128 = vmatprep.mubr.bf16.mxu1 %v21045_v39  ;;  %v20123_v38 = vld [vmem:[#allocation17 + $0x8f8] sm:$0xff]  }
 0xe09   :  { %7058 = vmatpush1.bf16.msra.mxu0 %v17555_v43  ;;  %7099 = vmatpush1.bf16.msra.mxu1 %v17557_v45  ;;  %v20128_v43 = vld [vmem:[#allocation17 + $0x830] sm:$0xff]  }
 0xe0a   :  { %7059 = vmatprep.subr.bf16.mxu0 %v17540_v46  ;;  %7100 = vmatprep.subr.bf16.mxu1 %v17542_v47  ;;  %v20129_v45 = vld [vmem:[#allocation17 + $0x8b0] sm:$0xff]   ;;  %v20130_v46 = vld [vmem:[#allocation17 + $0x868] sm:$0xff]  }
 0xe0b   :  { %v20131_v47 = vld [vmem:[#allocation17 + $0x8e8] sm:$0xff]  }
 0xe0d   :  { %7060 = vmatpush1.bf16.msra.mxu0 %v17539_v51  ;;  %7101 = vmatpush1.bf16.msra.mxu1 %v17541_v52  ;;  %v20136_v51 = vld [vmem:[#allocation17 + $0x820] sm:$0xff]   ;;  %v20138_v52 = vld [vmem:[#allocation17 + $0x858] sm:$0xff]  }
 0xe0e   :  { %7061 = vmatprep.subr.bf16.mxu0 %v17524_v55  ;;  %7102 = vmatprep.subr.bf16.mxu1 %v17526_v56  ;;  %v20139_v55 = vld [vmem:[#allocation17 + $0x8d8] sm:$0xff]  }
 0xe0f   :  { %v20140_v56 = vld [vmem:[#allocation17 + $0x818] sm:$0xff]  }
 0xe11   :  { %7062 = vmatpush1.bf16.msra.mxu0 %v17523_v9  ;;  %7103 = vmatpush1.bf16.msra.mxu1 %v17525_v44  ;;  %v20145_v9 = vld [vmem:[#allocation17 + $0x890] sm:$0xff]   ;;  %v20146_v44 = vld [vmem:[#allocation17 + $0x848] sm:$0xff]  }
 0xe12   :  { %7063 = vmatprep.subr.bf16.mxu0 %v17508_v61  ;;  %7104 = vmatprep.subr.bf16.mxu1 %v17510_v62  ;;  %v20147_v61 = vld [vmem:[#allocation17 + $0x8c8] sm:$0xff]  }
 0xe13   :  { %v20148_v62 = vld [vmem:[#allocation17 + $0x808] sm:$0xff]  }
 0xe15   :  { %7064 = vmatpush1.bf16.msra.mxu0 %v17507_v5  ;;  %7105 = vmatpush1.bf16.msra.mxu1 %v17509_v54  ;;  %v20153_v5 = vld [vmem:[#allocation17 + $0x880] sm:$0xff]   ;;  %v20154_v54 = vld [vmem:[#allocation17 + $0x978] sm:$0xff]  }
 0xe16   :  { %7065 = vmatprep.subr.bf16.mxu0 %v17492_v6  ;;  %7106 = vmatprep.subr.bf16.mxu1 %v17494_v53  ;;  %v20155_v6 = vld [vmem:[#allocation17 + $0x9f8] sm:$0xff]   ;;  %v21421_v53 = vld [vmem:[#allocation16 + $0x20] sm:$0xff] }
 0xe17   :  { %v6092_v48 = vrot.slane %v21421_v53, %v21250_v26  ;;  %v6100_v7 = vrot.slane %v21421_v53, %v21253_v27  ;;  %v6096_v11 = vrot.slane %v21421_v53, %v21258_v29  ;;  %v6104_v12 = vrot.slane %v21421_v53, %v21261_v30 }
 0xe19   :  { %7066 = vmatpush1.bf16.msra.mxu0 %v17491_v13  ;;  %7107 = vmatpush1.bf16.msra.mxu1 %v17493_v16 }
 0xe1a   :  { %7067 = vmatprep.subr.bf16.mxu0 %v17476_v57  ;;  %7108 = vmatprep.subr.bf16.mxu1 %v17478_v20 }
 0xe1d   :  { %7068 = vmatpush1.bf16.msra.mxu0 %v17475_v25  ;;  %7109 = vmatpush1.bf16.msra.mxu1 %v17477_v32 }
 0xe1e   :  { %7069 = vmatprep.subr.bf16.mxu0 %v17460_v33  ;;  %7110 = vmatprep.subr.bf16.mxu1 %v17462_v34 }
 0xe21   :  { %7070 = vmatpush1.bf16.msra.mxu0 %v17459_v35  ;;  %7111 = vmatpush1.bf16.msra.mxu1 %v17461_v36 }
 0xe22   :  { %18901 = vmatprep.subr.bf16.mxu0 %v20122_v37  ;;  %18923 = vmatprep.subr.bf16.mxu1 %v20123_v38 }
 0xe24   :  { %7088 = vmatmul.mubr.bf16.vlgmr.msra.gmra.mxu0 %v21405_v2  ;;  %7129 = vmatmul.mubr.bf16.vlgmr.msra.gmra.mxu1 %v21405_v2  ;;  %v20137_v2 = vld [vmem:[#allocation17 + $0x8a0] sm:$0xff]  }
 0xe25   :  { %18902 = vmatpush3.bf16.msra.mxu0 %v20124_v40  ;;  %18924 = vmatpush3.bf16.msra.mxu1 %v20125_v17 }
 0xe26   :  { %18903 = vmatprep.subr.bf16.mxu0 %v20126_v41  ;;  %18925 = vmatprep.subr.bf16.mxu1 %v20127_v42  ;;  %v20156_v41 = vld [vmem:[#allocation17 + $0x938] sm:$0xff]  }
 0xe27   :  { %v20157_v42 = vld [vmem:[#allocation17 + $0x9b8] sm:$0xff]  }
 0xe29   :  { %18904 = vmatpush3.bf16.msra.mxu0 %v20128_v43  ;;  %18926 = vmatpush3.bf16.msra.mxu1 %v20129_v45 }
 0xe2a   :  { %18905 = vmatprep.subr.bf16.mxu0 %v20130_v46  ;;  %18927 = vmatprep.subr.bf16.mxu1 %v20131_v47  ;;  %v20158_v46 = vld [vmem:[#allocation17 + $0x970] sm:$0xff]  }
 0xe2b   :  { %v20159_v47 = vld [vmem:[#allocation17 + $0x9f0] sm:$0xff]  }
 0xe2d   :  { %18906 = vmatpush3.bf16.msra.mxu0 %v20132_v28  ;;  %18928 = vmatpush3.bf16.msra.mxu1 %v20133_v10  ;;  %v20160_v28 = vld [vmem:[#allocation17 + $0x930] sm:$0xff]  }
 0xe2e   :  { %18907 = vmatprep.subr.bf16.mxu0 %v20134_v49  ;;  %18929 = vmatprep.subr.bf16.mxu1 %v20135_v50  ;;  %v20161_v10 = vld [vmem:[#allocation17 + $0x9b0] sm:$0xff]   ;;  %v20162_v49 = vld [vmem:[#allocation17 + $0x968] sm:$0xff]  }
 0xe2f   :  { %v20163_v50 = vld [vmem:[#allocation17 + $0x9e8] sm:$0xff]  }
 0xe31   :  { %18908 = vmatpush3.bf16.msra.mxu0 %v20136_v51  ;;  %18930 = vmatpush3.bf16.msra.mxu1 %v20137_v2  ;;  %v20164_v51 = vld [vmem:[#allocation17 + $0x928] sm:$0xff]  }
 0xe32   :  { %18909 = vmatprep.subr.bf16.mxu0 %v20138_v52  ;;  %18931 = vmatprep.subr.bf16.mxu1 %v20139_v55  ;;  %v20165_v2 = vld [vmem:[#allocation17 + $0x9a8] sm:$0xff]   ;;  %v20166_v52 = vld [vmem:[#allocation17 + $0x960] sm:$0xff]  }
 0xe33   :  { %v20167_v55 = vld [vmem:[#allocation17 + $0x9e0] sm:$0xff]  }
 0xe35   :  { %18910 = vmatpush3.bf16.msra.mxu0 %v20140_v56  ;;  %18932 = vmatpush3.bf16.msra.mxu1 %v20141_v21  ;;  %v20168_v56 = vld [vmem:[#allocation17 + $0x920] sm:$0xff]  }
 0xe36   :  { %18911 = vmatprep.subr.bf16.mxu0 %v20142_v58  ;;  %18933 = vmatprep.subr.bf16.mxu1 %v20143_v59  ;;  %v20169_v21 = vld [vmem:[#allocation17 + $0x9a0] sm:$0xff]   ;;  %v20170_v58 = vld [vmem:[#allocation17 + $0x958] sm:$0xff]  }
 0xe37   :  { %v20171_v59 = vld [vmem:[#allocation17 + $0x9d8] sm:$0xff]  }
 0xe39   :  { %18912 = vmatpush3.bf16.msra.mxu0 %v20144_v60  ;;  %18934 = vmatpush3.bf16.msra.mxu1 %v20145_v9  ;;  %v20172_v60 = vld [vmem:[#allocation17 + $0x918] sm:$0xff]  }
 0xe3a   :  { %18913 = vmatprep.subr.bf16.mxu0 %v20146_v44  ;;  %18935 = vmatprep.subr.bf16.mxu1 %v20147_v61  ;;  %v20173_v9 = vld [vmem:[#allocation17 + $0x998] sm:$0xff]   ;;  %v20174_v44 = vld [vmem:[#allocation17 + $0x950] sm:$0xff]  }
 0xe3b   :  { %v20175_v61 = vld [vmem:[#allocation17 + $0x9d0] sm:$0xff]  }
 0xe3d   :  { %18914 = vmatpush3.bf16.msra.mxu0 %v20148_v62  ;;  %18936 = vmatpush3.bf16.msra.mxu1 %v20149_v8  ;;  %v20176_v62 = vld [vmem:[#allocation17 + $0x910] sm:$0xff]  }
 0xe3e   :  { %18915 = vmatprep.subr.bf16.mxu0 %v20150_v63  ;;  %18937 = vmatprep.subr.bf16.mxu1 %v20151_v3  ;;  %v20177_v8 = vld [vmem:[#allocation17 + $0x990] sm:$0xff]   ;;  %v20178_v63 = vld [vmem:[#allocation17 + $0x948] sm:$0xff]  }
 0xe3f   :  { %v20179_v3 = vld [vmem:[#allocation17 + $0x9c8] sm:$0xff]  }
 0xe41   :  { %18916 = vmatpush3.bf16.msra.mxu0 %v20152_v4  ;;  %18938 = vmatpush3.bf16.msra.mxu1 %v20153_v5  ;;  %v6108_v4 = vrot.slane %v21421_v53, %v21272_v14  ;;  %v6116_v5 = vrot.slane %v21421_v53, %v21275_v15 }
 0xe42   :  { %18945 = vmatprep.subr.bf16.mxu0 %v20154_v54  ;;  %18967 = vmatprep.subr.bf16.mxu1 %v20155_v6  ;;  %v6112_v54 = vrot.slane %v21421_v53, %v21278_v18  ;;  %v6120_v6 = vrot.slane %v21421_v53, %v21281_v19 }
 0xe84   :  { %v6843_v13 = vpop.f32.mrf.mxu0  ;;  %v6884_v16 = vpop.f32.mrf.mxu1 }
 0xe85   :  { %v6844_v57 = vadd.f32 %v6843_v13, %v6092_v48  ;;  %v6885_v20 = vadd.f32 %v6884_v16, %v6100_v7  ;;  %v20180_v48 = vld [vmem:[#allocation17 + $0x908] sm:$0xff]   ;;  %v20182_v13 = vld [vmem:[#allocation17 + $0x940] sm:$0xff]  }
 0xe86   :  { %v6845_v22 = vpop.f32.mrf.mxu0  ;;  %v6886_v23 = vpop.f32.mrf.mxu1  ;;  %v20181_v7 = vld [vmem:[#allocation17 + $0x988] sm:$0xff]   ;;  %v20183_v16 = vld [vmem:[#allocation17 + $0x9c0] sm:$0xff]  }
 0xe87   :  { %v6846_v24 = vadd.f32 %v6845_v22, %v6096_v11  ;;  %v6887_v31 = vadd.f32 %v6886_v23, %v6104_v12  ;;  %v7137_v25 = vmax.f32 %v6844_v57, 0.0  ;;  %v7139_v32 = vmax.f32 %v6885_v20, 0.0 }
 0xe88   :  { %v6847_v33 = vpop.f32.mrf.mxu0  ;;  %v6888_v34 = vpop.f32.mrf.mxu1 }
 0xe89   :  { %v7138_v35 = vmax.f32 %v6846_v24, 0.0  ;;  %v7140_v36 = vmax.f32 %v6887_v31, 0.0  ;;  %v7153_v43 = vpack.c.bf16 %v7137_v25, %v7137_v25  ;;  %v7155_v45 = vpack.c.bf16 %v7139_v32, %v7139_v32  ;;  %v20184_v25 = vld [vmem:[#allocation17 + $0x900] sm:$0xff]  }
 0xe8a   :  { %v6848_v37 = vpop.f32.mrf.mxu0  ;;  %v6889_v38 = vpop.f32.mrf.mxu1  ;;  %v20185_v32 = vld [vmem:[#allocation17 + $0x980] sm:$0xff]  }
 0xe8b   :  { %v7154_v40 = vpack.c.bf16 %v7138_v35, %v7138_v35  ;;  %v7156_v17 = vpack.c.bf16 %v7140_v36, %v7140_v36  ;;  %v20186_v36 = vld [vmem:[#allocation17 + $0xa78] sm:$0xff]  }
 0xe8c   :  { %v20187_v37 = vld [vmem:[#allocation17 + $0xaf8] sm:$0xff]  }
 0xe8d   :  { %8234 = vmatprep.mubr.bf16.mxu0 %v7154_v40  ;;  %8274 = vmatprep.mubr.bf16.mxu1 %v7156_v17 }
 0xe8e   :  { %8235 = vmatmul.mubr.bf16.vlgmr.msra.gmra.mxu0 %v7153_v43  ;;  %8275 = vmatmul.mubr.bf16.vlgmr.msra.gmra.mxu1 %v7155_v45  ;;  %v20188_v45 = vld [vmem:[#allocation17 + $0xa38] sm:$0xff]  }
 0xe8f   :  { %18946 = vmatpush3.bf16.msra.mxu0 %v20156_v41  ;;  %18968 = vmatpush3.bf16.msra.mxu1 %v20157_v42 }
 0xe90   :  { %18947 = vmatprep.subr.bf16.mxu0 %v20158_v46  ;;  %18969 = vmatprep.subr.bf16.mxu1 %v20159_v47  ;;  %v20189_v46 = vld [vmem:[#allocation17 + $0xab8] sm:$0xff]  }
 0xe93   :  { %18948 = vmatpush3.bf16.msra.mxu0 %v20160_v28  ;;  %18970 = vmatpush3.bf16.msra.mxu1 %v20161_v10  ;;  %v20190_v10 = vld [vmem:[#allocation17 + $0xa70] sm:$0xff]  }
 0xe94   :  { %18949 = vmatprep.subr.bf16.mxu0 %v20162_v49  ;;  %18971 = vmatprep.subr.bf16.mxu1 %v20163_v50  ;;  %v20191_v49 = vld [vmem:[#allocation17 + $0xaf0] sm:$0xff]  }
 0xe95   :  { %v20192_v50 = vld [vmem:[#allocation17 + $0xa30] sm:$0xff]  }
 0xe97   :  { %18950 = vmatpush3.bf16.msra.mxu0 %v20164_v51  ;;  %18972 = vmatpush3.bf16.msra.mxu1 %v20165_v2  ;;  %v20193_v51 = vld [vmem:[#allocation17 + $0xab0] sm:$0xff]   ;;  %v20194_v2 = vld [vmem:[#allocation17 + $0xa68] sm:$0xff]  }
 0xe98   :  { %18951 = vmatprep.subr.bf16.mxu0 %v20166_v52  ;;  %18973 = vmatprep.subr.bf16.mxu1 %v20167_v55  ;;  %v20195_v52 = vld [vmem:[#allocation17 + $0xae8] sm:$0xff]  }
 0xe99   :  { %v20196_v55 = vld [vmem:[#allocation17 + $0xa28] sm:$0xff]  }
 0xe9b   :  { %18952 = vmatpush3.bf16.msra.mxu0 %v20168_v56  ;;  %18974 = vmatpush3.bf16.msra.mxu1 %v20169_v21  ;;  %v20197_v56 = vld [vmem:[#allocation17 + $0xaa8] sm:$0xff]   ;;  %v20198_v21 = vld [vmem:[#allocation17 + $0xa60] sm:$0xff]  }
 0xe9c   :  { %18953 = vmatprep.subr.bf16.mxu0 %v20170_v58  ;;  %18975 = vmatprep.subr.bf16.mxu1 %v20171_v59  ;;  %v20199_v58 = vld [vmem:[#allocation17 + $0xae0] sm:$0xff]  }
 0xe9d   :  { %v20200_v59 = vld [vmem:[#allocation17 + $0xa20] sm:$0xff]  }
 0xe9f   :  { %18954 = vmatpush3.bf16.msra.mxu0 %v20172_v60  ;;  %18976 = vmatpush3.bf16.msra.mxu1 %v20173_v9  ;;  %v20201_v60 = vld [vmem:[#allocation17 + $0xaa0] sm:$0xff]   ;;  %v20202_v9 = vld [vmem:[#allocation17 + $0xa58] sm:$0xff]  }
 0xea0   :  { %18955 = vmatprep.subr.bf16.mxu0 %v20174_v44  ;;  %18977 = vmatprep.subr.bf16.mxu1 %v20175_v61  ;;  %v20203_v44 = vld [vmem:[#allocation17 + $0xad8] sm:$0xff]  }
 0xea1   :  { %v20204_v61 = vld [vmem:[#allocation17 + $0xa18] sm:$0xff]  }
 0xea3   :  { %18956 = vmatpush3.bf16.msra.mxu0 %v20176_v62  ;;  %18978 = vmatpush3.bf16.msra.mxu1 %v20177_v8  ;;  %v20205_v62 = vld [vmem:[#allocation17 + $0xa98] sm:$0xff]   ;;  %v20206_v8 = vld [vmem:[#allocation17 + $0xa50] sm:$0xff]  }
 0xea4   :  { %v6925_v11 = vpop.f32.mrf.mxu0  ;;  %v6966_v12 = vpop.f32.mrf.mxu1  ;;  %18957 = vmatprep.subr.bf16.mxu0 %v20178_v63  ;;  %18979 = vmatprep.subr.bf16.mxu1 %v20179_v3  ;;  %v20207_v63 = vld [vmem:[#allocation17 + $0xad0] sm:$0xff]   ;;  %v21439_v3 = vld [vmem:[#allocation16 + $0x28] sm:$0xff] }
 0xea5   :  { %v6926_v57 = vadd.f32 %v6925_v11, %v6108_v4  ;;  %v6967_v20 = vadd.f32 %v6966_v12, %v6116_v5  ;;  %v20208_v4 = vld [vmem:[#allocation17 + $0xa10] sm:$0xff]   ;;  %v6128_v11 = vrot.slane %v21439_v3, %v21258_v29  ;;  %v6136_v12 = vrot.slane %v21439_v3, %v21261_v30 }
 0xea6   :  { %v6927_v22 = vpop.f32.mrf.mxu0  ;;  %v6968_v23 = vpop.f32.mrf.mxu1  ;;  %v20209_v5 = vld [vmem:[#allocation17 + $0xa90] sm:$0xff]  }
 0xea7   :  { %v6928_v24 = vadd.f32 %v6927_v22, %v6112_v54  ;;  %v6969_v31 = vadd.f32 %v6968_v23, %v6120_v6  ;;  %18958 = vmatpush3.bf16.msra.mxu0 %v20180_v48  ;;  %18980 = vmatpush3.bf16.msra.mxu1 %v20181_v7  ;;  %v7141_v33 = vmax.f32 %v6926_v57, 0.0  ;;  %v7143_v53 = vmax.f32 %v6967_v20, 0.0  ;;  %v20210_v54 = vld [vmem:[#allocation17 + $0xa48] sm:$0xff]   ;;  %v20214_v22 = vld [vmem:[#allocation17 + $0xa40] sm:$0xff]  }
 0xea8   :  { %v6929_v34 = vpop.f32.mrf.mxu0  ;;  %v6970_v35 = vpop.f32.mrf.mxu1  ;;  %18959 = vmatprep.subr.bf16.mxu0 %v20182_v13  ;;  %18981 = vmatprep.subr.bf16.mxu1 %v20183_v16  ;;  %v20211_v6 = vld [vmem:[#allocation17 + $0xac8] sm:$0xff]   ;;  %v6124_v48 = vrot.slane %v21439_v3, %v21250_v26  ;;  %v6132_v7 = vrot.slane %v21439_v3, %v21253_v27  ;;  %v20215_v23 = vld [vmem:[#allocation17 + $0xac0] sm:$0xff]  }
 0xea9   :  { %v7142_v38 = vmax.f32 %v6928_v24, 0.0  ;;  %v7144_v40 = vmax.f32 %v6969_v31, 0.0  ;;  %v7157_v47 = vpack.c.bf16 %v7141_v33, %v7141_v33  ;;  %v7159_v28 = vpack.c.bf16 %v7143_v53, %v7143_v53  ;;  %v20212_v13 = vld [vmem:[#allocation17 + $0xa08] sm:$0xff]   ;;  %v20216_v34 = vld [vmem:[#allocation17 + $0xa00] sm:$0xff]  }
 0xeaa   :  { %v6930_v17 = vpop.f32.mrf.mxu0  ;;  %v6971_v41 = vpop.f32.mrf.mxu1  ;;  %v20213_v16 = vld [vmem:[#allocation17 + $0xa88] sm:$0xff]   ;;  %v20217_v35 = vld [vmem:[#allocation17 + $0xa80] sm:$0xff]  }
 0xeab   :  { %v7158_v42 = vpack.c.bf16 %v7142_v38, %v7142_v38  ;;  %v7160_v43 = vpack.c.bf16 %v7144_v40, %v7144_v40  ;;  %18960 = vmatpush3.bf16.msra.mxu0 %v20184_v25  ;;  %18982 = vmatpush3.bf16.msra.mxu1 %v20185_v32  ;;  %v20218_v17 = vld [vmem:[#allocation17 + $0xb78] sm:$0xff]  }
 0xeac   :  { %18989 = vmatprep.subr.bf16.mxu0 %v20186_v36  ;;  %19011 = vmatprep.subr.bf16.mxu1 %v20187_v37  ;;  %v20219_v41 = vld [vmem:[#allocation17 + $0xbf8] sm:$0xff]  }
 0xead   :  { %8314 = vmatprep.mubr.bf16.mxu0 %v7158_v42  ;;  %8354 = vmatprep.mubr.bf16.mxu1 %v7160_v43 }
 0xeae   :  { %8315 = vmatmul.mubr.bf16.vlgmr.msra.gmra.mxu0 %v7157_v47  ;;  %8355 = vmatmul.mubr.bf16.vlgmr.msra.gmra.mxu1 %v7159_v28 }
 0xeaf   :  { %18990 = vmatpush3.bf16.msra.mxu0 %v20188_v45  ;;  %19012 = vmatpush3.bf16.msra.mxu1 %v20189_v46 }
 0xeb0   :  { %18991 = vmatprep.subr.bf16.mxu0 %v20190_v10  ;;  %19013 = vmatprep.subr.bf16.mxu1 %v20191_v49  ;;  %v20220_v10 = vld [vmem:[#allocation17 + $0xb38] sm:$0xff]  }
 0xeb1   :  { %v20221_v49 = vld [vmem:[#allocation17 + $0xbb8] sm:$0xff]  }
 0xeb3   :  { %18992 = vmatpush3.bf16.msra.mxu0 %v20192_v50  ;;  %19014 = vmatpush3.bf16.msra.mxu1 %v20193_v51 }
 0xeb4   :  { %18993 = vmatprep.subr.bf16.mxu0 %v20194_v2  ;;  %19015 = vmatprep.subr.bf16.mxu1 %v20195_v52  ;;  %v20222_v2 = vld [vmem:[#allocation17 + $0xb70] sm:$0xff]  }
 0xeb5   :  { %v20223_v52 = vld [vmem:[#allocation17 + $0xbf0] sm:$0xff]  }
 0xeb7   :  { %18994 = vmatpush3.bf16.msra.mxu0 %v20196_v55  ;;  %19016 = vmatpush3.bf16.msra.mxu1 %v20197_v56  ;;  %v20224_v55 = vld [vmem:[#allocation17 + $0xb30] sm:$0xff]  }
 0xeb8   :  { %18995 = vmatprep.subr.bf16.mxu0 %v20198_v21  ;;  %19017 = vmatprep.subr.bf16.mxu1 %v20199_v58  ;;  %v20225_v56 = vld [vmem:[#allocation17 + $0xbb0] sm:$0xff]   ;;  %v20226_v21 = vld [vmem:[#allocation17 + $0xb68] sm:$0xff]  }
 0xeb9   :  { %v20227_v58 = vld [vmem:[#allocation17 + $0xbe8] sm:$0xff]  }
 0xebb   :  { %18996 = vmatpush3.bf16.msra.mxu0 %v20200_v59  ;;  %19018 = vmatpush3.bf16.msra.mxu1 %v20201_v60  ;;  %v20228_v59 = vld [vmem:[#allocation17 + $0xb28] sm:$0xff]  }
 0xebc   :  { %18997 = vmatprep.subr.bf16.mxu0 %v20202_v9  ;;  %19019 = vmatprep.subr.bf16.mxu1 %v20203_v44  ;;  %v20229_v60 = vld [vmem:[#allocation17 + $0xba8] sm:$0xff]   ;;  %v20230_v9 = vld [vmem:[#allocation17 + $0xb60] sm:$0xff]  }
 0xebd   :  { %v20231_v44 = vld [vmem:[#allocation17 + $0xbe0] sm:$0xff]  }
 0xebf   :  { %18998 = vmatpush3.bf16.msra.mxu0 %v20204_v61  ;;  %19020 = vmatpush3.bf16.msra.mxu1 %v20205_v62  ;;  %v20232_v61 = vld [vmem:[#allocation17 + $0xb20] sm:$0xff]  }
 0xec0   :  { %18999 = vmatprep.subr.bf16.mxu0 %v20206_v8  ;;  %19021 = vmatprep.subr.bf16.mxu1 %v20207_v63  ;;  %v20233_v62 = vld [vmem:[#allocation17 + $0xba0] sm:$0xff]   ;;  %v20234_v8 = vld [vmem:[#allocation17 + $0xb58] sm:$0xff]  }
 0xec1   :  { %v20235_v63 = vld [vmem:[#allocation17 + $0xbd8] sm:$0xff]  }
 0xec3   :  { %19000 = vmatpush3.bf16.msra.mxu0 %v20208_v4  ;;  %19022 = vmatpush3.bf16.msra.mxu1 %v20209_v5  ;;  %v20236_v4 = vld [vmem:[#allocation17 + $0xb18] sm:$0xff]  }
 0xec4   :  { %v7007_v57 = vpop.f32.mrf.mxu0  ;;  %v7048_v20 = vpop.f32.mrf.mxu1  ;;  %19001 = vmatprep.subr.bf16.mxu0 %v20210_v54  ;;  %19023 = vmatprep.subr.bf16.mxu1 %v20211_v6  ;;  %v20237_v5 = vld [vmem:[#allocation17 + $0xb98] sm:$0xff]   ;;  %v20238_v54 = vld [vmem:[#allocation17 + $0xb50] sm:$0xff]  }
 0xec5   :  { %v7008_v24 = vadd.f32 %v7007_v57, %v6124_v48  ;;  %v7049_v31 = vadd.f32 %v7048_v20, %v6132_v7  ;;  %v20239_v6 = vld [vmem:[#allocation17 + $0xbd0] sm:$0xff]   ;;  %v6144_v57 = vrot.slane %v21439_v3, %v21278_v18  ;;  %v6152_v20 = vrot.slane %v21439_v3, %v21281_v19 }
 0xec6   :  { %v7009_v25 = vpop.f32.mrf.mxu0  ;;  %v7050_v32 = vpop.f32.mrf.mxu1  ;;  %v20240_v48 = vld [vmem:[#allocation17 + $0xb10] sm:$0xff]  }
 0xec7   :  { %v7010_v33 = vadd.f32 %v7009_v25, %v6128_v11  ;;  %v7051_v53 = vadd.f32 %v7050_v32, %v6136_v12  ;;  %19002 = vmatpush3.bf16.msra.mxu0 %v20212_v13  ;;  %19024 = vmatpush3.bf16.msra.mxu1 %v20213_v16  ;;  %v7145_v36 = vmax.f32 %v7008_v24, 0.0  ;;  %v7147_v37 = vmax.f32 %v7049_v31, 0.0  ;;  %v20241_v7 = vld [vmem:[#allocation17 + $0xb90] sm:$0xff]   ;;  %v20242_v11 = vld [vmem:[#allocation17 + $0xb48] sm:$0xff]   ;;  %v20246_v25 = vld [vmem:[#allocation17 + $0xb40] sm:$0xff]  }
 0xec8   :  { %v7011_v38 = vpop.f32.mrf.mxu0  ;;  %v7052_v40 = vpop.f32.mrf.mxu1  ;;  %19003 = vmatprep.subr.bf16.mxu0 %v20214_v22  ;;  %19025 = vmatprep.subr.bf16.mxu1 %v20215_v23  ;;  %v20243_v12 = vld [vmem:[#allocation17 + $0xbc8] sm:$0xff]   ;;  %v6140_v13 = vrot.slane %v21439_v3, %v21272_v14  ;;  %v6148_v16 = vrot.slane %v21439_v3, %v21275_v15  ;;  %v20247_v32 = vld [vmem:[#allocation17 + $0xbc0] sm:$0xff]  }
 0xec9   :  { %v7146_v42 = vmax.f32 %v7010_v33, 0.0  ;;  %v7148_v43 = vmax.f32 %v7051_v53, 0.0  ;;  %v7161_v50 = vpack.c.bf16 %v7145_v36, %v7145_v36  ;;  %v7163_v51 = vpack.c.bf16 %v7147_v37, %v7147_v37  ;;  %v20244_v22 = vld [vmem:[#allocation17 + $0xb08] sm:$0xff]   ;;  %v20248_v38 = vld [vmem:[#allocation17 + $0xb00] sm:$0xff]  }
 0xeca   :  { %v7012_v45 = vpop.f32.mrf.mxu0  ;;  %v7053_v46 = vpop.f32.mrf.mxu1  ;;  %v20245_v23 = vld [vmem:[#allocation17 + $0xb88] sm:$0xff]   ;;  %v20249_v40 = vld [vmem:[#allocation17 + $0xb80] sm:$0xff]  }
 0xecb   :  { %v7162_v47 = vpack.c.bf16 %v7146_v42, %v7146_v42  ;;  %v7164_v28 = vpack.c.bf16 %v7148_v43, %v7148_v43  ;;  %19004 = vmatpush3.bf16.msra.mxu0 %v20216_v34  ;;  %19026 = vmatpush3.bf16.msra.mxu1 %v20217_v35 }
 0xecc   :  { %19033 = vmatprep.subr.bf16.mxu0 %v20218_v17  ;;  %19055 = vmatprep.subr.bf16.mxu1 %v20219_v41 }
 0xecd   :  { %8394 = vmatprep.mubr.bf16.mxu0 %v7162_v47  ;;  %8434 = vmatprep.mubr.bf16.mxu1 %v7164_v28 }
 0xece   :  { %8395 = vmatmul.mubr.bf16.vlgmr.msra.gmra.mxu0 %v7161_v50  ;;  %8435 = vmatmul.mubr.bf16.vlgmr.msra.gmra.mxu1 %v7163_v51 }
 0xecf   :  { %19034 = vmatpush3.bf16.msra.mxu0 %v20220_v10  ;;  %19056 = vmatpush3.bf16.msra.mxu1 %v20221_v49 }
 0xed0   :  { %19035 = vmatprep.subr.bf16.mxu0 %v20222_v2  ;;  %19057 = vmatprep.subr.bf16.mxu1 %v20223_v52  ;;  %v17575_v52 = vld [vmem:[#allocation19 + $0x2] ss:$0 sm:$0xff] }
 0xed3   :  { %19036 = vmatpush3.bf16.msra.mxu0 %v20224_v55  ;;  %19058 = vmatpush3.bf16.msra.mxu1 %v20225_v56 }
 0xed4   :  { %19037 = vmatprep.subr.bf16.mxu0 %v20226_v21  ;;  %19059 = vmatprep.subr.bf16.mxu1 %v20227_v58 }
 0xed7   :  { %19038 = vmatpush3.bf16.msra.mxu0 %v20228_v59  ;;  %19060 = vmatpush3.bf16.msra.mxu1 %v20229_v60 }
 0xed8   :  { %19039 = vmatprep.subr.bf16.mxu0 %v20230_v9  ;;  %19061 = vmatprep.subr.bf16.mxu1 %v20231_v44 }
 0xedb   :  { %19040 = vmatpush3.bf16.msra.mxu0 %v20232_v61  ;;  %19062 = vmatpush3.bf16.msra.mxu1 %v20233_v62 }
 0xedc   :  { %19041 = vmatprep.subr.bf16.mxu0 %v20234_v8  ;;  %19063 = vmatprep.subr.bf16.mxu1 %v20235_v63 }
 0xedf   :  { %19042 = vmatpush3.bf16.msra.mxu0 %v20236_v4  ;;  %19064 = vmatpush3.bf16.msra.mxu1 %v20237_v5 }
 0xee0   :  { %19043 = vmatprep.subr.bf16.mxu0 %v20238_v54  ;;  %19065 = vmatprep.subr.bf16.mxu1 %v20239_v6 }
 0xee3   :  { %19044 = vmatpush3.bf16.msra.mxu0 %v20240_v48  ;;  %19066 = vmatpush3.bf16.msra.mxu1 %v20241_v7 }
 0xee4   :  { %v7089_v24 = vpop.f32.mrf.mxu0  ;;  %v7130_v31 = vpop.f32.mrf.mxu1  ;;  %19045 = vmatprep.subr.bf16.mxu0 %v20242_v11  ;;  %19067 = vmatprep.subr.bf16.mxu1 %v20243_v12 }
 0xee5   :  { %v7090_v33 = vadd.f32 %v7089_v24, %v6140_v13  ;;  %v7131_v53 = vadd.f32 %v7130_v31, %v6148_v16 }
 0xee6   :  { %v7091_v34 = vpop.f32.mrf.mxu0  ;;  %v7132_v35 = vpop.f32.mrf.mxu1 }
 0xee7   :  { %v7092_v36 = vadd.f32 %v7091_v34, %v6144_v57  ;;  %v7133_v37 = vadd.f32 %v7132_v35, %v6152_v20  ;;  %19046 = vmatpush3.bf16.msra.mxu0 %v20244_v22  ;;  %19068 = vmatpush3.bf16.msra.mxu1 %v20245_v23  ;;  %v7149_v17 = vmax.f32 %v7090_v33, 0.0  ;;  %v7151_v3 = vmax.f32 %v7131_v53, 0.0 }
 0xee8   :  { %v7093_v41 = vpop.f32.mrf.mxu0  ;;  %v7134_v42 = vpop.f32.mrf.mxu1  ;;  %19047 = vmatprep.subr.bf16.mxu0 %v20246_v25  ;;  %19069 = vmatprep.subr.bf16.mxu1 %v20247_v32 }
 0xee9   :  { %v7150_v43 = vmax.f32 %v7092_v36, 0.0  ;;  %v7152_v45 = vmax.f32 %v7133_v37, 0.0  ;;  %v7165_v49 = vpack.c.bf16 %v7149_v17, %v7149_v17  ;;  %v7167_v50 = vpack.c.bf16 %v7151_v3, %v7151_v3 }
 0xeea   :  { %v7094_v46 = vpop.f32.mrf.mxu0  ;;  %v7135_v47 = vpop.f32.mrf.mxu1 }
 0xeeb   :  { %v7166_v28 = vpack.c.bf16 %v7150_v43, %v7150_v43  ;;  %v7168_v10 = vpack.c.bf16 %v7152_v45, %v7152_v45  ;;  %19048 = vmatpush3.bf16.msra.mxu0 %v20248_v38  ;;  %19070 = vmatpush3.bf16.msra.mxu1 %v20249_v40 }
 0xeec   :  { %19720 = vmatprep.subr.bf16.mxu0 %v21043_v0 }
 0xeed   :  { %8474 = vmatprep.mubr.bf16.mxu0 %v7166_v28  ;;  %8514 = vmatprep.mubr.bf16.mxu1 %v7168_v10  ;;  %v20250_v10 = vld [vmem:[#allocation8 + $0xf8] sm:$0xff]  }
 0xeee   :  { %8475 = vmatmul.mubr.bf16.vlgmr.msra.gmra.mxu0 %v7165_v49  ;;  %8515 = vmatmul.mubr.bf16.vlgmr.msra.gmra.mxu1 %v7167_v50  ;;  %v20251_v49 = vld [vmem:[#allocation8 + $0xf0] sm:$0xff]  }
 0xeef   :  { %19736 = vmatprep.mubr.msk.bf16.mxu0 %vm21044_vm0, %v21043_v0  ;;  %9583 = vmatprep.mubr.bf16.mxu1 %v21045_v39 }
 0xef0   :  { %19721 = vmatpush3.bf16.msra.mxu0 %v20250_v10 }
 0xef1   :  { %19722 = vmatprep.subr.bf16.mxu0 %v21043_v0 }
 0xef4   :  { %19723 = vmatpush3.bf16.msra.mxu0 %v20251_v49 }
 0xef5   :  { %19724 = vmatprep.subr.bf16.mxu0 %v21043_v0 }
 0xf4e   :  { %v18917_v51 = vpop.f32.mrf.mxu0  ;;  %v18939_v2 = vpop.f32.mrf.mxu1 }
 0xf50   :  { %v18918_v55 = vpop.f32.mrf.mxu0  ;;  %v18940_v56 = vpop.f32.mrf.mxu1 }
 0xf51   :  { %v18919_v21 = vadd.f32 %v18918_v55, %v18917_v51  ;;  %v18941_v58 = vadd.f32 %v18940_v56, %v18939_v2  ;;  %v20252_v55 = vld [vmem:[#allocation8 + $0xe8] sm:$0xff]   ;;  %v20253_v56 = vld [vmem:[#allocation8 + $0xe0] sm:$0xff]  }
 0xf52   :  { %v18920_v59 = vpop.f32.mrf.mxu0  ;;  %v18942_v60 = vpop.f32.mrf.mxu1  ;;  %19725 = vmatpush3.bf16.msra.mxu0 %v20252_v55 }
 0xf53   :  { %v8237_v9 = vadd.f32 %v18919_v21, %v17575_v52  ;;  %19726 = vmatprep.subr.bf16.mxu0 %v21043_v0  ;;  %v20255_v21 = vld [vmem:[#allocation8 + $0xd0] sm:$0xff]   ;;  %v20257_v59 = vld [vmem:[#allocation8 + $0xc0] sm:$0xff]  }
 0xf54   :  { %v18921_v44 = vpop.f32.mrf.mxu0  ;;  %v18943_v61 = vpop.f32.mrf.mxu1 }
 0xf55   :  { %v8277_v62 = vadd.f32 %v18941_v58, %v8237_v9  ;;  %v20256_v58 = vld [vmem:[#allocation8 + $0xc8] sm:$0xff]  }
 0xf56   :  { %19727 = vmatpush3.bf16.msra.mxu0 %v20253_v56  ;;  %v8771_v56 = vld [vmem:[#allocation14 + $0xe48] sm:$0xff] }
 0xf57   :  { %19728 = vmatprep.subr.bf16.mxu0 %v21043_v0 }
 0xf6e   :  { %v18961_v8 = vpop.f32.mrf.mxu0  ;;  %v18983_v63 = vpop.f32.mrf.mxu1 }
 0xf70   :  { %v18962_v4 = vpop.f32.mrf.mxu0  ;;  %v18984_v5 = vpop.f32.mrf.mxu1 }
 0xf71   :  { %v18963_v24 = vadd.f32 %v18962_v4, %v18961_v8  ;;  %v18985_v25 = vadd.f32 %v18984_v5, %v18983_v63  ;;  %v17705_v63 = vld [vmem:[#allocation22 + $0x2] ss:$0 sm:$0xff] }
 0xf72   :  { %v18964_v54 = vpop.f32.mrf.mxu0  ;;  %v18986_v6 = vpop.f32.mrf.mxu1 }
 0xf73   :  { %v8317_v31 = vadd.f32 %v18963_v24, %v8277_v62  ;;  %v17704_v62 = vld [vmem:[#allocation20 + $0x2] ss:$0 sm:$0xff]  ;;  %v17706_v6 = vld [vmem:[#allocation10 + $0x3] ss:$0 sm:$0xff] }
 0xf74   :  { %v18965_v48 = vpop.f32.mrf.mxu0  ;;  %v18987_v7 = vpop.f32.mrf.mxu1 }
 0xf75   :  { %v8357_v33 = vadd.f32 %v18985_v25, %v8317_v31  ;;  %v8819_v31 = vld [vmem:[#allocation14 + $0xfc8] sm:$0xff]  ;;  %v8794_v25 = vld [vmem:[#allocation14 + $0xf00] sm:$0xff] }
 0xf8e   :  { %v19005_v11 = vpop.f32.mrf.mxu0  ;;  %v19027_v12 = vpop.f32.mrf.mxu1 }
 0xf90   :  { %v19006_v13 = vpop.f32.mrf.mxu0  ;;  %v19028_v16 = vpop.f32.mrf.mxu1 }
 0xf91   :  { %v19007_v32 = vadd.f32 %v19006_v13, %v19005_v11  ;;  %v19029_v36 = vadd.f32 %v19028_v16, %v19027_v12 }
 0xf92   :  { %v19008_v57 = vpop.f32.mrf.mxu0  ;;  %v19030_v20 = vpop.f32.mrf.mxu1 }
 0xf93   :  { %v8397_v53 = vadd.f32 %v19007_v32, %v8357_v33  ;;  %v8810_v57 = vld [vmem:[#allocation14 + $0xf80] sm:$0xff] }
 0xf94   :  { %v19009_v22 = vpop.f32.mrf.mxu0  ;;  %v19031_v23 = vpop.f32.mrf.mxu1  ;;  %v8818_v20 = vld [vmem:[#allocation14 + $0xfc0] sm:$0xff] }
 0xf95   :  { %v8437_v40 = vadd.f32 %v19029_v36, %v8397_v53  ;;  %v8811_v22 = vld [vmem:[#allocation14 + $0xf88] sm:$0xff]  ;;  %v17829_v23 = vcombine.low %v8810_v57, %v8818_v20  ;;  %v17830_v24 = vcombine.high %v8810_v57, %v8818_v20  ;;  %v8802_v32 = vld [vmem:[#allocation14 + $0xf40] sm:$0xff] }
 0xf96   :  { %v17831_v33 = vcombine.low %v8811_v22, %v8819_v31  ;;  %v17832_v53 = vcombine.high %v8811_v22, %v8819_v31  ;;  %v8803_v36 = vld [vmem:[#allocation14 + $0xf48] sm:$0xff] }
 0xf97   :  { %9551 = vmatprep.subr.bf16.mxu1 %v17830_v24  ;;  %v8715_v57 = vld [vmem:[#allocation14 + $0xc88] sm:$0xff] }
 0xf98   :  { %9552 = vmatpush1.bf16.msra.mxu1 %v17829_v23  ;;  %v8723_v22 = vld [vmem:[#allocation14 + $0xcc8] sm:$0xff] }
 0xf99   :  { %v17735_v24 = vcombine.low %v8715_v57, %v8723_v22  ;;  %v17736_v31 = vcombine.high %v8715_v57, %v8723_v22  ;;  %v8748_v57 = vld [vmem:[#allocation14 + $0xd90] sm:$0xff]  ;;  %v8749_v22 = vld [vmem:[#allocation14 + $0xd98] sm:$0xff] }
 0xfae   :  { %v19049_v34 = vpop.f32.mrf.mxu0  ;;  %v19071_v35 = vpop.f32.mrf.mxu1 }
 0xfb0   :  { %v19050_v37 = vpop.f32.mrf.mxu0  ;;  %v19072_v38 = vpop.f32.mrf.mxu1 }
 0xfb1   :  { %v19051_v17 = vadd.f32 %v19050_v37, %v19049_v34  ;;  %v19073_v43 = vadd.f32 %v19072_v38, %v19071_v35  ;;  %v17814_v34 = vcombine.high %v8794_v25, %v8802_v32  ;;  %v8795_v35 = vld [vmem:[#allocation14 + $0xf08] sm:$0xff]  ;;  %v17813_v38 = vcombine.low %v8794_v25, %v8802_v32  ;;  %v8698_v25 = vld [vmem:[#allocation14 + $0xc00] sm:$0xff] }
 0xfb2   :  { %v19052_v3 = vpop.f32.mrf.mxu0  ;;  %v19074_v41 = vpop.f32.mrf.mxu1  ;;  %v17816_v37 = vcombine.high %v8795_v35, %v8803_v36  ;;  %v8706_v32 = vld [vmem:[#allocation14 + $0xc40] sm:$0xff] }
 0xfb3   :  { %v8477_v42 = vadd.f32 %v19051_v17, %v8437_v40  ;;  %9553 = vmatprep.subr.bf16.mxu1 %v17814_v34  ;;  %v17815_v40 = vcombine.low %v8795_v35, %v8803_v36  ;;  %v8707_v34 = vld [vmem:[#allocation14 + $0xc48] sm:$0xff]  ;;  %v17717_v35 = vcombine.low %v8698_v25, %v8706_v32 }
 0xfb4   :  { %v19053_v45 = vpop.f32.mrf.mxu0  ;;  %v19075_v46 = vpop.f32.mrf.mxu1  ;;  %9554 = vmatpush1.bf16.msra.mxu1 %v17813_v38  ;;  %v8812_v38 = vld [vmem:[#allocation14 + $0xf90] sm:$0xff] }
 0xfb5   :  { %v8517_v47 = vadd.f32 %v19073_v43, %v8477_v42  ;;  %v8778_v43 = vld [vmem:[#allocation14 + $0xe80] sm:$0xff]  ;;  %v8779_v46 = vld [vmem:[#allocation14 + $0xe88] sm:$0xff] }
 0xfb6   :  { %v8786_v45 = vld [vmem:[#allocation14 + $0xec0] sm:$0xff] }
 0xfb7   :  { %v8522_v28 = vadd.f32 %v8517_v47, %v21401_v1  ;;  %v20254_v1 = vld [vmem:[#allocation8 + $0xd8] sm:$0xff]   ;;  %v17798_v47 = vcombine.high %v8778_v43, %v8786_v45  ;;  %v17797_v10 = vcombine.low %v8778_v43, %v8786_v45 }
 0xfb8   :  { %19729 = vmatpush3.bf16.msra.mxu0 %v20254_v1 }
 0xfb9   :  { %8527 = vadd.xlane.f32.xlu0 %v8522_v28  ;;  %19730 = vmatprep.subr.bf16.mxu0 %v21043_v0 }
 0xfba   :  { %9555 = vmatprep.subr.bf16.mxu1 %v17798_v47 }
 0xfbb   :  { %9556 = vmatpush1.bf16.msra.mxu1 %v17797_v10 }
 0xfbc   :  { %19731 = vmatpush3.bf16.msra.mxu0 %v20255_v21 }
 0xfbd   :  { %19732 = vmatprep.subr.bf16.mxu0 %v21043_v0 }
 0xfc0   :  { %19733 = vmatpush3.bf16.msra.mxu0 %v20256_v58 }
 0xfc1   :  { %19734 = vmatprep.subr.bf16.mxu0 %v21043_v0 }
 0xfc4   :  { %19735 = vmatpush3.bf16.msra.mxu0 %v20257_v59  ;;  %v8746_v59 = vld [vmem:[#allocation14 + $0xd80] sm:$0xff] }
 0xfc5   :  { %9592 = vmatprep.subr.bf16.mxu0 %v17832_v53  ;;  %v17718_v53 = vcombine.high %v8698_v25, %v8706_v32 }
0x1042   :  { %v8528_v50 = vpop.xlane.xlu0 %8527 }
0x1043   :  { %v8529_v51 = vmul.f32 0.0078125, %v8528_v50 }
0x1045   :  { %v8530_v2 = vsub.f32 %v8522_v28, %v8529_v51  ;;  %v8787_v28 = vld [vmem:[#allocation14 + $0xec8] sm:$0xff]  ;;  %v8762_v51 = vld [vmem:[#allocation14 + $0xe00] sm:$0xff] }
0x1046   :  { %v17799_v49 = vcombine.low %v8779_v46, %v8787_v28  ;;  %v17800_v50 = vcombine.high %v8779_v46, %v8787_v28 }
0x1047   :  { %v8531_v52 = vmul.f32 %v8530_v2, %v8530_v2 }
0x1049   :  { %8532 = vadd.xlane.f32.xlu1 %v8531_v52  ;;  %v8763_v52 = vld [vmem:[#allocation14 + $0xe08] sm:$0xff] }
0x104a   :  { %v17783_v21 = vcombine.low %v8763_v52, %v8771_v56  ;;  %v17784_v58 = vcombine.high %v8763_v52, %v8771_v56  ;;  %v8804_v56 = vld [vmem:[#allocation14 + $0xf50] sm:$0xff] }
0x10d2   :  { %v8533_v60 = vpop.xlane.xlu1 %8532 }
0x10d3   :  { %v8534_v9 = vmul.f32 0.0078125, %v8533_v60  ;;  %v8754_v60 = vld [vmem:[#allocation14 + $0xdc0] sm:$0xff] }
0x10d5   :  { %v8535_v44 = vadd.f32 1e-05, %v8534_v9  ;;  %v8747_v9 = vld [vmem:[#allocation14 + $0xd88] sm:$0xff] }
0x10d7   :  { %20668 = vrsqrt.f32 %v8535_v44  ;;  %v17766_v44 = vcombine.high %v8746_v59, %v8754_v60 }
0x10e4   :  { %v20669_v61 = vpop.eup %20668 }
0x10e5   :  { %v8537_v8 = vmul.f32 %v20669_v61, %v8530_v2  ;;  %v8770_v2 = vld [vmem:[#allocation14 + $0xe40] sm:$0xff]  ;;  %v8755_v61 = vld [vmem:[#allocation14 + $0xdc8] sm:$0xff] }
0x10e6   :  { %v17782_v55 = vcombine.high %v8762_v51, %v8770_v2  ;;  %v17781_v1 = vcombine.low %v8762_v51, %v8770_v2  ;;  %v17716_v2 = vld [vmem:[#allocation13 + $0x3] ss:$0 sm:$0xff] }
0x10e7   :  { %v8544_v4 = vmul.f32 %v17704_v62, %v8537_v8  ;;  %v17765_v62 = vcombine.low %v8746_v59, %v8754_v60  ;;  %v17767_v8 = vcombine.low %v8747_v9, %v8755_v61 }
0x10e8   :  { %9557 = vmatprep.subr.bf16.mxu1 %v17782_v55  ;;  %v8796_v55 = vld [vmem:[#allocation14 + $0xf10] sm:$0xff] }
0x10e9   :  { %v8551_v5 = vadd.f32 %v17705_v63, %v8544_v4  ;;  %9558 = vmatpush1.bf16.msra.mxu1 %v17781_v1  ;;  %v17768_v63 = vcombine.high %v8747_v9, %v8755_v61  ;;  %v8730_v4 = vld [vmem:[#allocation14 + $0xd00] sm:$0xff]  ;;  %v8797_v1 = vld [vmem:[#allocation14 + $0xf18] sm:$0xff]  ;;  %v17818_v60 = vcombine.high %v8796_v55, %v8804_v56  ;;  %v8788_v61 = vld [vmem:[#allocation14 + $0xed0] sm:$0xff] }
0x10ea   :  { %9559 = vmatprep.subr.bf16.mxu1 %v17766_v44  ;;  %v8780_v44 = vld [vmem:[#allocation14 + $0xe90] sm:$0xff] }
0x10eb   :  { %v8552_v54 = vpack.c.bf16 %v8551_v5, %v8551_v5 }
0x10ed   :  { %19737 = vmatmul.mubr.bf16.vlgmr.msra.gmra.mxu0 %v8552_v54  ;;  %9560 = vmatpush1.bf16.msra.mxu1 %v17765_v62  ;;  %v8731_v54 = vld [vmem:[#allocation14 + $0xd08] sm:$0xff]  ;;  %v8781_v62 = vld [vmem:[#allocation14 + $0xe98] sm:$0xff] }
0x10ee   :  { %9624 = vmatprep.mubr.bf16.mxu0 %v21045_v39  ;;  %9593 = vmatpush1.bf16.msra.mxu0 %v17831_v33  ;;  %v8699_v33 = vld [vmem:[#allocation14 + $0xc08] sm:$0xff] }
0x10ef   :  { %9594 = vmatprep.subr.bf16.mxu0 %v17816_v37  ;;  %v17719_v36 = vcombine.low %v8699_v33, %v8707_v34  ;;  %v17720_v37 = vcombine.high %v8699_v33, %v8707_v34  ;;  %v8732_v33 = vld [vmem:[#allocation14 + $0xd10] sm:$0xff]  ;;  %v8733_v34 = vld [vmem:[#allocation14 + $0xd18] sm:$0xff] }
0x10f2   :  { %9595 = vmatpush1.bf16.msra.mxu0 %v17815_v40  ;;  %v8820_v40 = vld [vmem:[#allocation14 + $0xfd0] sm:$0xff] }
0x10f3   :  { %9596 = vmatprep.subr.bf16.mxu0 %v17800_v50  ;;  %v17833_v43 = vcombine.low %v8812_v38, %v8820_v40  ;;  %v17715_v50 = vld [vmem:[#allocation11 + $0x3] ss:$0 sm:$0xff] }
0x10f6   :  { %9597 = vmatpush1.bf16.msra.mxu0 %v17799_v49 }
0x10f7   :  { %9598 = vmatprep.subr.bf16.mxu0 %v17784_v58 }
0x10fa   :  { %9599 = vmatpush1.bf16.msra.mxu0 %v17783_v21  ;;  %v8805_v21 = vld [vmem:[#allocation14 + $0xf58] sm:$0xff] }
0x10fb   :  { %9600 = vmatprep.subr.bf16.mxu0 %v17768_v63  ;;  %v17820_v9 = vcombine.high %v8797_v1, %v8805_v21  ;;  %v17819_v63 = vcombine.low %v8797_v1, %v8805_v21  ;;  %v8814_v1 = vld [vmem:[#allocation14 + $0xfa0] sm:$0xff] }
0x10fc   :  { %v8822_v21 = vld [vmem:[#allocation14 + $0xfe0] sm:$0xff] }
0x10fe   :  { %9601 = vmatpush1.bf16.msra.mxu0 %v17767_v8  ;;  %v8789_v8 = vld [vmem:[#allocation14 + $0xed8] sm:$0xff] }
0x11ad   :  { %v8660_v48 = vpop.f32.mrf.mxu0 }
0x11ae   :  { %v8661_v7 = vadd.f32 %v17706_v6, %v8660_v48  ;;  %v8739_v48 = vld [vmem:[#allocation14 + $0xd48] sm:$0xff] }
0x11af   :  { %v19738_v11 = vpop.f32.mrf.mxu0 }
0x11b0   :  { %v8666_v12 = vadd.f32 %v8661_v7, %v8551_v5  ;;  %v8738_v5 = vld [vmem:[#allocation14 + $0xd40] sm:$0xff]  ;;  %v17751_v11 = vcombine.low %v8731_v54, %v8739_v48 }
0x11b1   :  { %v8663_v13 = vpop.f32.mrf.mxu0  ;;  %v17750_v6 = vcombine.high %v8730_v4, %v8738_v5  ;;  %v17749_v7 = vcombine.low %v8730_v4, %v8738_v5  ;;  %v17802_v4 = vcombine.high %v8780_v44, %v8788_v61  ;;  %v17804_v5 = vcombine.high %v8781_v62, %v8789_v8 }
0x11b2   :  { %8671 = vadd.xlane.f32.xlu0 %v8666_v12  ;;  %v8714_v13 = vld [vmem:[#allocation14 + $0xc80] sm:$0xff] }
0x11b3   :  { %v19739_v16 = vpop.f32.mrf.mxu0  ;;  %9561 = vmatprep.subr.bf16.mxu1 %v17750_v6  ;;  %v8772_v6 = vld [vmem:[#allocation14 + $0xe50] sm:$0xff] }
0x11b4   :  { %9562 = vmatpush1.bf16.msra.mxu1 %v17749_v7  ;;  %v8722_v16 = vld [vmem:[#allocation14 + $0xcc0] sm:$0xff]  ;;  %v8773_v7 = vld [vmem:[#allocation14 + $0xe58] sm:$0xff] }
0x11b5   :  { %v17734_v20 = vcombine.high %v8714_v13, %v8722_v16  ;;  %v17733_v23 = vcombine.low %v8714_v13, %v8722_v16 }
0x11b7   :  { %9563 = vmatprep.subr.bf16.mxu1 %v17734_v20  ;;  %v8756_v20 = vld [vmem:[#allocation14 + $0xdd0] sm:$0xff] }
0x11b8   :  { %9564 = vmatpush1.bf16.msra.mxu1 %v17733_v23  ;;  %v8757_v23 = vld [vmem:[#allocation14 + $0xdd8] sm:$0xff]  ;;  %v17770_v25 = vcombine.high %v8748_v57, %v8756_v20 }
0x11b9   :  { %9565 = vmatprep.subr.bf16.mxu1 %v17718_v53  ;;  %v17772_v32 = vcombine.high %v8749_v22, %v8757_v23  ;;  %v8740_v53 = vld [vmem:[#allocation14 + $0xd50] sm:$0xff] }
0x11bc   :  { %9566 = vmatpush1.bf16.msra.mxu1 %v17717_v35  ;;  %v8741_v35 = vld [vmem:[#allocation14 + $0xd58] sm:$0xff] }
0x123b   :  { %v8672_v17 = vpop.xlane.xlu0 %8671 }
0x123c   :  { %v8673_v3 = vmul.f32 0.0078125, %v8672_v17  ;;  %v8813_v17 = vld [vmem:[#allocation14 + $0xf98] sm:$0xff] }
0x123e   :  { %v21470_v41 = vsub.f32 %v8666_v12, %v8673_v3  ;;  %v17752_v12 = vcombine.high %v8731_v54, %v8739_v48  ;;  %v17834_v3 = vcombine.high %v8812_v38, %v8820_v40  ;;  %v8764_v54 = vld [vmem:[#allocation14 + $0xe10] sm:$0xff]  ;;  %v8765_v48 = vld [vmem:[#allocation14 + $0xe18] sm:$0xff]  ;;  %v17754_v38 = vcombine.high %v8732_v33, %v8740_v53 }
0x123f   :  { %v17786_v13 = vcombine.high %v8764_v54, %v8772_v6  ;;  %v17788_v16 = vcombine.high %v8765_v48, %v8773_v7  ;;  %v17756_v40 = vcombine.high %v8733_v34, %v8741_v35 }
0x1240   :  { %v8675_v42 = vmul.f32 %v21470_v41, %v21470_v41  ;;  %9602 = vmatprep.subr.bf16.mxu0 %v17752_v12  ;;  %9633 = vmatprep.subr.bf16.mxu1 %v17834_v3  ;;  %v17803_v12 = vcombine.low %v8781_v62, %v8789_v8  ;;  %v8724_v3 = vld [vmem:[#allocation14 + $0xcd0] sm:$0xff]  ;;  %v17838_v62 = vcombine.high %v8814_v1, %v8822_v21 }
0x1241   :  { %9603 = vmatpush1.bf16.msra.mxu0 %v17751_v11  ;;  %v17801_v11 = vcombine.low %v8780_v44, %v8788_v61 }
0x1242   :  { %8676 = vadd.xlane.f32.xlu1 %v8675_v42  ;;  %9604 = vmatprep.subr.bf16.mxu0 %v17736_v31  ;;  %v8821_v42 = vld [vmem:[#allocation14 + $0xfd8] sm:$0xff]  ;;  %v17787_v31 = vcombine.low %v8765_v48, %v8773_v7 }
0x1243   :  { %v17835_v45 = vcombine.low %v8813_v17, %v8821_v42  ;;  %v17836_v46 = vcombine.high %v8813_v17, %v8821_v42  ;;  %v8716_v17 = vld [vmem:[#allocation14 + $0xc90] sm:$0xff]  ;;  %v8717_v42 = vld [vmem:[#allocation14 + $0xc98] sm:$0xff] }
0x1245   :  { %9605 = vmatpush1.bf16.msra.mxu0 %v17735_v24  ;;  %v17785_v24 = vcombine.low %v8764_v54, %v8772_v6  ;;  %v17837_v54 = vcombine.low %v8814_v1, %v8822_v21 }
0x1246   :  { %9606 = vmatprep.subr.bf16.mxu0 %v17720_v37  ;;  %v17771_v37 = vcombine.low %v8749_v22, %v8757_v23 }
0x1249   :  { %9607 = vmatpush1.bf16.msra.mxu0 %v17719_v36  ;;  %v17769_v36 = vcombine.low %v8748_v57, %v8756_v20 }
0x124a   :  { %9674 = vmatprep.subr.bf16.mxu0 %v17836_v46  ;;  %v17755_v46 = vcombine.low %v8733_v34, %v8741_v35 }
0x12cb   :  { %v8677_v47 = vpop.xlane.xlu1 %8676 }
0x12cc   :  { %v8678_v28 = vmul.f32 0.0078125, %v8677_v47  ;;  %v17738_v47 = vcombine.high %v8716_v17, %v8724_v3 }
0x12ce   :  { %v8679_v10 = vadd.f32 1e-05, %v8678_v28 }
0x12d0   :  { %20670 = vrsqrt.f32 %v8679_v10  ;;  %v8700_v10 = vld [vmem:[#allocation14 + $0xc10] sm:$0xff] }
0x12dd   :  { %v20671_v49 = vpop.eup %20670 }
0x12de   :  { %v8681_v51 = vmul.f32 %v20671_v49, %v21470_v41  ;;  %v17817_v41 = vcombine.low %v8796_v55, %v8804_v56  ;;  %v8708_v49 = vld [vmem:[#allocation14 + $0xc50] sm:$0xff] }
0x12df   :  { %v17722_v55 = vcombine.high %v8700_v10, %v8708_v49  ;;  %v17721_v44 = vcombine.low %v8700_v10, %v8708_v49 }
0x12e0   :  { %v8688_v52 = vmul.f32 %v17715_v50, %v8681_v51  ;;  %v8701_v50 = vld [vmem:[#allocation14 + $0xc18] sm:$0xff] }
0x12e1   :  { %v8709_v51 = vld [vmem:[#allocation14 + $0xc58] sm:$0xff] }
0x12e2   :  { %v21475_v58 = vadd.f32 %v17716_v2, %v8688_v52  ;;  %v17737_v2 = vcombine.low %v8716_v17, %v8724_v3  ;;  %v17724_v56 = vcombine.high %v8701_v50, %v8709_v51  ;;  %v17723_v61 = vcombine.low %v8701_v50, %v8709_v51 }
0x12e4   :  { %v21479_v59 = vpack.c.bf16 %v21475_v58, %v21475_v58 }
0x12e6   :  { %9584 = vmatmul.mubr.bf16.vlgmr.msra.gmra.mxu1 %v21479_v59  ;;  %9625 = vmatmul.mubr.bf16.vlgmr.msra.gmra.mxu0 %v21479_v59 }
0x12e7   :  { %9634 = vmatpush1.bf16.msra.mxu1 %v17833_v43  ;;  %9675 = vmatpush1.bf16.msra.mxu0 %v17835_v45  ;;  %v8725_v43 = vld [vmem:[#allocation14 + $0xcd8] sm:$0xff]  ;;  %v17753_v45 = vcombine.low %v8732_v33, %v8740_v53 }
0x12e8   :  { %9635 = vmatprep.subr.bf16.mxu1 %v17818_v60  ;;  %9676 = vmatprep.subr.bf16.mxu0 %v17820_v9  ;;  %v17740_v28 = vcombine.high %v8717_v42, %v8725_v43  ;;  %v17739_v52 = vcombine.low %v8717_v42, %v8725_v43  ;;  %v8815_v60 = vld [vmem:[#allocation14 + $0xfa8] sm:$0xff] }
0x12e9   :  { %9665 = vmatprep.mubr.bf16.mxu1 %v21045_v39  ;;  %9706 = vmatprep.mubr.bf16.mxu0 %v21045_v39  ;;  %v8823_v9 = vld [vmem:[#allocation14 + $0xfe8] sm:$0xff] }
0x12ea   :  { %v17840_v8 = vcombine.high %v8815_v60, %v8823_v9  ;;  %v17839_v6 = vcombine.low %v8815_v60, %v8823_v9 }
0x12eb   :  { %9636 = vmatpush1.bf16.msra.mxu1 %v17817_v41  ;;  %9677 = vmatpush1.bf16.msra.mxu0 %v17819_v63  ;;  %v8798_v41 = vld [vmem:[#allocation14 + $0xf20] sm:$0xff] }
0x12ec   :  { %9637 = vmatprep.subr.bf16.mxu1 %v17802_v4  ;;  %9678 = vmatprep.subr.bf16.mxu0 %v17804_v5  ;;  %v8806_v63 = vld [vmem:[#allocation14 + $0xf60] sm:$0xff]  ;;  %v8799_v4 = vld [vmem:[#allocation14 + $0xf28] sm:$0xff] }
0x12ed   :  { %v8807_v5 = vld [vmem:[#allocation14 + $0xf68] sm:$0xff]  ;;  %v17822_v48 = vcombine.high %v8798_v41, %v8806_v63  ;;  %v17821_v57 = vcombine.low %v8798_v41, %v8806_v63 }
0x12ee   :  { %v17824_v7 = vcombine.high %v8799_v4, %v8807_v5  ;;  %v17823_v20 = vcombine.low %v8799_v4, %v8807_v5 }
0x12ef   :  { %9638 = vmatpush1.bf16.msra.mxu1 %v17801_v11  ;;  %9679 = vmatpush1.bf16.msra.mxu0 %v17803_v12  ;;  %v8782_v11 = vld [vmem:[#allocation14 + $0xea0] sm:$0xff] }
0x12f0   :  { %9639 = vmatprep.subr.bf16.mxu1 %v17786_v13  ;;  %9680 = vmatprep.subr.bf16.mxu0 %v17788_v16  ;;  %v8790_v12 = vld [vmem:[#allocation14 + $0xee0] sm:$0xff]  ;;  %v8783_v13 = vld [vmem:[#allocation14 + $0xea8] sm:$0xff] }
0x12f1   :  { %v8791_v16 = vld [vmem:[#allocation14 + $0xee8] sm:$0xff]  ;;  %v17806_v22 = vcombine.high %v8782_v11, %v8790_v12  ;;  %v17805_v33 = vcombine.low %v8782_v11, %v8790_v12 }
0x12f2   :  { %v17808_v23 = vcombine.high %v8783_v13, %v8791_v16  ;;  %v17807_v53 = vcombine.low %v8783_v13, %v8791_v16 }
0x12f3   :  { %9640 = vmatpush1.bf16.msra.mxu1 %v17785_v24  ;;  %9681 = vmatpush1.bf16.msra.mxu0 %v17787_v31  ;;  %v8766_v24 = vld [vmem:[#allocation14 + $0xe20] sm:$0xff] }
0x12f4   :  { %9641 = vmatprep.subr.bf16.mxu1 %v17770_v25  ;;  %9682 = vmatprep.subr.bf16.mxu0 %v17772_v32  ;;  %v8774_v31 = vld [vmem:[#allocation14 + $0xe60] sm:$0xff]  ;;  %v8767_v25 = vld [vmem:[#allocation14 + $0xe28] sm:$0xff] }
0x12f5   :  { %v8775_v32 = vld [vmem:[#allocation14 + $0xe68] sm:$0xff]  ;;  %v17790_v34 = vcombine.high %v8766_v24, %v8774_v31  ;;  %v17789_v17 = vcombine.low %v8766_v24, %v8774_v31 }
0x12f6   :  { %v17792_v35 = vcombine.high %v8767_v25, %v8775_v32  ;;  %v17791_v3 = vcombine.low %v8767_v25, %v8775_v32 }
0x12f7   :  { %9642 = vmatpush1.bf16.msra.mxu1 %v17769_v36  ;;  %9683 = vmatpush1.bf16.msra.mxu0 %v17771_v37  ;;  %v8750_v36 = vld [vmem:[#allocation14 + $0xda0] sm:$0xff] }
0x12f8   :  { %9643 = vmatprep.subr.bf16.mxu1 %v17754_v38  ;;  %9684 = vmatprep.subr.bf16.mxu0 %v17756_v40  ;;  %v8758_v37 = vld [vmem:[#allocation14 + $0xde0] sm:$0xff]  ;;  %v8751_v38 = vld [vmem:[#allocation14 + $0xda8] sm:$0xff] }
0x12f9   :  { %v8759_v40 = vld [vmem:[#allocation14 + $0xde8] sm:$0xff]  ;;  %v17774_v42 = vcombine.high %v8750_v36, %v8758_v37  ;;  %v17773_v10 = vcombine.low %v8750_v36, %v8758_v37 }
0x12fa   :  { %v17776_v43 = vcombine.high %v8751_v38, %v8759_v40  ;;  %v17775_v49 = vcombine.low %v8751_v38, %v8759_v40 }
0x12fb   :  { %9644 = vmatpush1.bf16.msra.mxu1 %v17753_v45  ;;  %9685 = vmatpush1.bf16.msra.mxu0 %v17755_v46  ;;  %v8734_v45 = vld [vmem:[#allocation14 + $0xd20] sm:$0xff] }
0x12fc   :  { %9645 = vmatprep.subr.bf16.mxu1 %v17738_v47  ;;  %9686 = vmatprep.subr.bf16.mxu0 %v17740_v28  ;;  %v8742_v46 = vld [vmem:[#allocation14 + $0xd60] sm:$0xff]  ;;  %v8735_v47 = vld [vmem:[#allocation14 + $0xd28] sm:$0xff] }
0x12fd   :  { %v8743_v28 = vld [vmem:[#allocation14 + $0xd68] sm:$0xff]  ;;  %v17758_v50 = vcombine.high %v8734_v45, %v8742_v46  ;;  %v17757_v1 = vcombine.low %v8734_v45, %v8742_v46 }
0x12fe   :  { %v17760_v51 = vcombine.high %v8735_v47, %v8743_v28  ;;  %v17759_v21 = vcombine.low %v8735_v47, %v8743_v28 }
0x12ff   :  { %9646 = vmatpush1.bf16.msra.mxu1 %v17737_v2  ;;  %9687 = vmatpush1.bf16.msra.mxu0 %v17739_v52  ;;  %v8718_v2 = vld [vmem:[#allocation14 + $0xca0] sm:$0xff] }
0x1300   :  { %9647 = vmatprep.subr.bf16.mxu1 %v17722_v55  ;;  %9688 = vmatprep.subr.bf16.mxu0 %v17724_v56  ;;  %v8726_v52 = vld [vmem:[#allocation14 + $0xce0] sm:$0xff]  ;;  %v8719_v55 = vld [vmem:[#allocation14 + $0xca8] sm:$0xff] }
0x1301   :  { %v8727_v56 = vld [vmem:[#allocation14 + $0xce8] sm:$0xff]  ;;  %v17742_v60 = vcombine.high %v8718_v2, %v8726_v52  ;;  %v17741_v41 = vcombine.low %v8718_v2, %v8726_v52 }
0x1302   :  { %v17744_v9 = vcombine.high %v8719_v55, %v8727_v56  ;;  %v17743_v63 = vcombine.low %v8719_v55, %v8727_v56 }
0x1303   :  { %9648 = vmatpush1.bf16.msra.mxu1 %v17721_v44  ;;  %9689 = vmatpush1.bf16.msra.mxu0 %v17723_v61  ;;  %v8702_v44 = vld [vmem:[#allocation14 + $0xc20] sm:$0xff] }
0x1304   :  { %9715 = vmatprep.subr.bf16.mxu1 %v17838_v62  ;;  %9756 = vmatprep.subr.bf16.mxu0 %v17840_v8  ;;  %v8710_v61 = vld [vmem:[#allocation14 + $0xc60] sm:$0xff]  ;;  %v8703_v62 = vld [vmem:[#allocation14 + $0xc28] sm:$0xff] }
0x1305   :  { %v8711_v8 = vld [vmem:[#allocation14 + $0xc68] sm:$0xff]  ;;  %v17726_v4 = vcombine.high %v8702_v44, %v8710_v61  ;;  %v17725_v11 = vcombine.low %v8702_v44, %v8710_v61 }
0x1306   :  { %9666 = vmatmul.mubr.bf16.vlgmr.msra.gmra.mxu1 %v21479_v59  ;;  %9707 = vmatmul.mubr.bf16.vlgmr.msra.gmra.mxu0 %v21479_v59  ;;  %v17728_v5 = vcombine.high %v8703_v62, %v8711_v8  ;;  %v17727_v12 = vcombine.low %v8703_v62, %v8711_v8 }
0x1307   :  { %9716 = vmatpush1.bf16.msra.mxu1 %v17837_v54  ;;  %9757 = vmatpush1.bf16.msra.mxu0 %v17839_v6  ;;  %v8816_v54 = vld [vmem:[#allocation14 + $0xfb0] sm:$0xff] }
0x1308   :  { %9717 = vmatprep.subr.bf16.mxu1 %v17822_v48  ;;  %9758 = vmatprep.subr.bf16.mxu0 %v17824_v7  ;;  %v8824_v6 = vld [vmem:[#allocation14 + $0xff0] sm:$0xff]  ;;  %v8817_v48 = vld [vmem:[#allocation14 + $0xfb8] sm:$0xff] }
0x1309   :  { %9747 = vmatprep.mubr.bf16.mxu1 %v21045_v39  ;;  %9788 = vmatprep.mubr.bf16.mxu0 %v21045_v39  ;;  %v8825_v7 = vld [vmem:[#allocation14 + $0xff8] sm:$0xff]  ;;  %v17842_v13 = vcombine.high %v8816_v54, %v8824_v6  ;;  %v17841_v24 = vcombine.low %v8816_v54, %v8824_v6 }
0x130a   :  { %v17844_v16 = vcombine.high %v8817_v48, %v8825_v7  ;;  %v17843_v31 = vcombine.low %v8817_v48, %v8825_v7 }
0x130b   :  { %9718 = vmatpush1.bf16.msra.mxu1 %v17821_v57  ;;  %9759 = vmatpush1.bf16.msra.mxu0 %v17823_v20  ;;  %v8800_v57 = vld [vmem:[#allocation14 + $0xf30] sm:$0xff] }
0x130c   :  { %9719 = vmatprep.subr.bf16.mxu1 %v17806_v22  ;;  %9760 = vmatprep.subr.bf16.mxu0 %v17808_v23  ;;  %v8808_v20 = vld [vmem:[#allocation14 + $0xf70] sm:$0xff]  ;;  %v8801_v22 = vld [vmem:[#allocation14 + $0xf38] sm:$0xff] }
0x130d   :  { %v8809_v23 = vld [vmem:[#allocation14 + $0xf78] sm:$0xff]  ;;  %v17826_v25 = vcombine.high %v8800_v57, %v8808_v20  ;;  %v17825_v36 = vcombine.low %v8800_v57, %v8808_v20 }
0x130e   :  { %v17828_v32 = vcombine.high %v8801_v22, %v8809_v23  ;;  %v17827_v37 = vcombine.low %v8801_v22, %v8809_v23 }
0x130f   :  { %9720 = vmatpush1.bf16.msra.mxu1 %v17805_v33  ;;  %9761 = vmatpush1.bf16.msra.mxu0 %v17807_v53  ;;  %v8784_v33 = vld [vmem:[#allocation14 + $0xeb0] sm:$0xff] }
0x1310   :  { %9721 = vmatprep.subr.bf16.mxu1 %v17790_v34  ;;  %9762 = vmatprep.subr.bf16.mxu0 %v17792_v35  ;;  %v8792_v53 = vld [vmem:[#allocation14 + $0xef0] sm:$0xff]  ;;  %v8785_v34 = vld [vmem:[#allocation14 + $0xeb8] sm:$0xff] }
0x1311   :  { %v8793_v35 = vld [vmem:[#allocation14 + $0xef8] sm:$0xff]  ;;  %v17810_v38 = vcombine.high %v8784_v33, %v8792_v53  ;;  %v17809_v45 = vcombine.low %v8784_v33, %v8792_v53 }
0x1312   :  { %v17812_v40 = vcombine.high %v8785_v34, %v8793_v35  ;;  %v17811_v46 = vcombine.low %v8785_v34, %v8793_v35  ;;  %v20260_v33 = vld [vmem:[#allocation17 + $0xc38] sm:$0xff]   ;;  %v20262_v34 = vld [vmem:[#allocation17 + $0xc70] sm:$0xff]  }
0x1313   :  { %9722 = vmatpush1.bf16.msra.mxu1 %v17789_v17  ;;  %9763 = vmatpush1.bf16.msra.mxu0 %v17791_v3  ;;  %v8768_v17 = vld [vmem:[#allocation14 + $0xe30] sm:$0xff]  ;;  %v20261_v53 = vld [vmem:[#allocation17 + $0xcb8] sm:$0xff]  }
0x1314   :  { %9723 = vmatprep.subr.bf16.mxu1 %v17774_v42  ;;  %9764 = vmatprep.subr.bf16.mxu0 %v17776_v43  ;;  %v8776_v3 = vld [vmem:[#allocation14 + $0xe70] sm:$0xff]  ;;  %v8769_v42 = vld [vmem:[#allocation14 + $0xe38] sm:$0xff] }
0x1315   :  { %v8777_v43 = vld [vmem:[#allocation14 + $0xe78] sm:$0xff]  ;;  %v17794_v47 = vcombine.high %v8768_v17, %v8776_v3  ;;  %v17793_v2 = vcombine.low %v8768_v17, %v8776_v3  ;;  %v20263_v35 = vld [vmem:[#allocation17 + $0xcf0] sm:$0xff]   ;;  %v20268_v17 = vld [vmem:[#allocation17 + $0xc28] sm:$0xff]  }
0x1316   :  { %v17796_v28 = vcombine.high %v8769_v42, %v8777_v43  ;;  %v17795_v52 = vcombine.low %v8769_v42, %v8777_v43  ;;  %v20269_v3 = vld [vmem:[#allocation17 + $0xca8] sm:$0xff]   ;;  %v20270_v42 = vld [vmem:[#allocation17 + $0xc60] sm:$0xff]  }
0x1317   :  { %9724 = vmatpush1.bf16.msra.mxu1 %v17773_v10  ;;  %9765 = vmatpush1.bf16.msra.mxu0 %v17775_v49  ;;  %v8752_v10 = vld [vmem:[#allocation14 + $0xdb0] sm:$0xff]  ;;  %v20271_v43 = vld [vmem:[#allocation17 + $0xce0] sm:$0xff]  }
0x1318   :  { %9725 = vmatprep.subr.bf16.mxu1 %v17758_v50  ;;  %9766 = vmatprep.subr.bf16.mxu0 %v17760_v51  ;;  %v8760_v49 = vld [vmem:[#allocation14 + $0xdf0] sm:$0xff]  ;;  %v8753_v50 = vld [vmem:[#allocation14 + $0xdb8] sm:$0xff] }
0x1319   :  { %v8761_v51 = vld [vmem:[#allocation14 + $0xdf8] sm:$0xff]  ;;  %v17778_v55 = vcombine.high %v8752_v10, %v8760_v49  ;;  %v17777_v44 = vcombine.low %v8752_v10, %v8760_v49  ;;  %v20278_v49 = vld [vmem:[#allocation17 + $0xc50] sm:$0xff]  }
0x131a   :  { %v17780_v56 = vcombine.high %v8753_v50, %v8761_v51  ;;  %v17779_v61 = vcombine.low %v8753_v50, %v8761_v51  ;;  %v20277_v10 = vld [vmem:[#allocation17 + $0xc98] sm:$0xff]   ;;  %v20279_v50 = vld [vmem:[#allocation17 + $0xcd0] sm:$0xff]  }
0x131b   :  { %9726 = vmatpush1.bf16.msra.mxu1 %v17757_v1  ;;  %9767 = vmatpush1.bf16.msra.mxu0 %v17759_v21  ;;  %v8736_v1 = vld [vmem:[#allocation14 + $0xd30] sm:$0xff] }
0x131c   :  { %9727 = vmatprep.subr.bf16.mxu1 %v17742_v60  ;;  %9768 = vmatprep.subr.bf16.mxu0 %v17744_v9  ;;  %v8744_v21 = vld [vmem:[#allocation14 + $0xd70] sm:$0xff]  ;;  %v8737_v60 = vld [vmem:[#allocation14 + $0xd38] sm:$0xff] }
0x131d   :  { %v8745_v9 = vld [vmem:[#allocation14 + $0xd78] sm:$0xff]  ;;  %v17762_v62 = vcombine.high %v8736_v1, %v8744_v21  ;;  %v17761_v54 = vcombine.low %v8736_v1, %v8744_v21  ;;  %v20280_v51 = vld [vmem:[#allocation17 + $0xc10] sm:$0xff]   ;;  %v20285_v1 = vld [vmem:[#allocation17 + $0xc88] sm:$0xff]  }
0x131e   :  { %v17764_v8 = vcombine.high %v8737_v60, %v8745_v9  ;;  %v17763_v6 = vcombine.low %v8737_v60, %v8745_v9  ;;  %v20286_v21 = vld [vmem:[#allocation17 + $0xc40] sm:$0xff]  }
0x131f   :  { %9728 = vmatpush1.bf16.msra.mxu1 %v17741_v41  ;;  %9769 = vmatpush1.bf16.msra.mxu0 %v17743_v63  ;;  %v8720_v41 = vld [vmem:[#allocation14 + $0xcb0] sm:$0xff]  ;;  %v20287_v60 = vld [vmem:[#allocation17 + $0xcc0] sm:$0xff]  }
0x1320   :  { %9729 = vmatprep.subr.bf16.mxu1 %v17726_v4  ;;  %9770 = vmatprep.subr.bf16.mxu0 %v17728_v5  ;;  %v8728_v63 = vld [vmem:[#allocation14 + $0xcf0] sm:$0xff]  ;;  %v8721_v4 = vld [vmem:[#allocation14 + $0xcb8] sm:$0xff]  ;;  %v20288_v9 = vld [vmem:[#allocation17 + $0xc00] sm:$0xff]  }
0x1321   :  { %v8729_v5 = vld [vmem:[#allocation14 + $0xcf8] sm:$0xff]  ;;  %v17746_v48 = vcombine.high %v8720_v41, %v8728_v63  ;;  %v17745_v57 = vcombine.low %v8720_v41, %v8728_v63 }
0x1322   :  { %v17748_v7 = vcombine.high %v8721_v4, %v8729_v5  ;;  %v17747_v20 = vcombine.low %v8721_v4, %v8729_v5 }
0x1323   :  { %9730 = vmatpush1.bf16.msra.mxu1 %v17725_v11  ;;  %9771 = vmatpush1.bf16.msra.mxu0 %v17727_v12  ;;  %v8704_v11 = vld [vmem:[#allocation14 + $0xc30] sm:$0xff] }
0x1324   :  { %9797 = vmatprep.subr.bf16.mxu1 %v17842_v13  ;;  %9838 = vmatprep.subr.bf16.mxu0 %v17844_v16  ;;  %v8712_v12 = vld [vmem:[#allocation14 + $0xc70] sm:$0xff]  ;;  %v8705_v13 = vld [vmem:[#allocation14 + $0xc38] sm:$0xff] }
0x1325   :  { %v8713_v16 = vld [vmem:[#allocation14 + $0xc78] sm:$0xff]  ;;  %v17730_v22 = vcombine.high %v8704_v11, %v8712_v12 }
0x1326   :  { %9748 = vmatmul.mubr.bf16.vlgmr.msra.gmra.mxu1 %v21479_v59  ;;  %9789 = vmatmul.mubr.bf16.vlgmr.msra.gmra.mxu0 %v21479_v59  ;;  %v17732_v23 = vcombine.high %v8705_v13, %v8713_v16 }
0x1327   :  { %9798 = vmatpush1.bf16.msra.mxu1 %v17841_v24  ;;  %9839 = vmatpush1.bf16.msra.mxu0 %v17843_v31  ;;  %v17729_v24 = vcombine.low %v8704_v11, %v8712_v12  ;;  %v17731_v31 = vcombine.low %v8705_v13, %v8713_v16 }
0x1328   :  { %9799 = vmatprep.subr.bf16.mxu1 %v17826_v25  ;;  %9840 = vmatprep.subr.bf16.mxu0 %v17828_v32  ;;  %v20258_v25 = vld [vmem:[#allocation17 + $0xc78] sm:$0xff]  }
0x1329   :  { %9829 = vmatprep.mubr.bf16.mxu1 %v21045_v39  ;;  %9870 = vmatprep.mubr.bf16.mxu0 %v21045_v39  ;;  %v20259_v32 = vld [vmem:[#allocation17 + $0xcf8] sm:$0xff]  }
0x132b   :  { %9800 = vmatpush1.bf16.msra.mxu1 %v17825_v36  ;;  %9841 = vmatpush1.bf16.msra.mxu0 %v17827_v37  ;;  %v20264_v36 = vld [vmem:[#allocation17 + $0xc30] sm:$0xff]  }
0x132c   :  { %9801 = vmatprep.subr.bf16.mxu1 %v17810_v38  ;;  %9842 = vmatprep.subr.bf16.mxu0 %v17812_v40  ;;  %v20265_v37 = vld [vmem:[#allocation17 + $0xcb0] sm:$0xff]   ;;  %v20266_v38 = vld [vmem:[#allocation17 + $0xc68] sm:$0xff]  }
0x132d   :  { %v20267_v40 = vld [vmem:[#allocation17 + $0xce8] sm:$0xff]  }
0x132f   :  { %9802 = vmatpush1.bf16.msra.mxu1 %v17809_v45  ;;  %9843 = vmatpush1.bf16.msra.mxu0 %v17811_v46  ;;  %v20272_v45 = vld [vmem:[#allocation17 + $0xc20] sm:$0xff]   ;;  %v20274_v46 = vld [vmem:[#allocation17 + $0xc58] sm:$0xff]  }
0x1330   :  { %9803 = vmatprep.subr.bf16.mxu1 %v17794_v47  ;;  %9844 = vmatprep.subr.bf16.mxu0 %v17796_v28  ;;  %v20275_v47 = vld [vmem:[#allocation17 + $0xcd8] sm:$0xff]  }
0x1331   :  { %v20276_v28 = vld [vmem:[#allocation17 + $0xc18] sm:$0xff]  }
0x1333   :  { %9804 = vmatpush1.bf16.msra.mxu1 %v17793_v2  ;;  %9845 = vmatpush1.bf16.msra.mxu0 %v17795_v52  ;;  %v20281_v2 = vld [vmem:[#allocation17 + $0xc90] sm:$0xff]   ;;  %v20282_v52 = vld [vmem:[#allocation17 + $0xc48] sm:$0xff]  }
0x1334   :  { %9805 = vmatprep.subr.bf16.mxu1 %v17778_v55  ;;  %9846 = vmatprep.subr.bf16.mxu0 %v17780_v56  ;;  %v20283_v55 = vld [vmem:[#allocation17 + $0xcc8] sm:$0xff]  }
0x1335   :  { %v20284_v56 = vld [vmem:[#allocation17 + $0xc08] sm:$0xff]  }
0x1337   :  { %9806 = vmatpush1.bf16.msra.mxu1 %v17777_v44  ;;  %9847 = vmatpush1.bf16.msra.mxu0 %v17779_v61  ;;  %v20289_v44 = vld [vmem:[#allocation17 + $0xc80] sm:$0xff]   ;;  %v20290_v61 = vld [vmem:[#allocation17 + $0xd78] sm:$0xff]  }
0x1338   :  { %9807 = vmatprep.subr.bf16.mxu1 %v17762_v62  ;;  %9848 = vmatprep.subr.bf16.mxu0 %v17764_v8  ;;  %v20291_v62 = vld [vmem:[#allocation17 + $0xdf8] sm:$0xff]   ;;  %v21495_v8 = vld [vmem:[#allocation16 + $0x30] sm:$0xff] }
0x1339   :  { %v8834_v41 = vrot.slane %v21495_v8, %v21250_v26  ;;  %v8842_v63 = vrot.slane %v21495_v8, %v21253_v27  ;;  %v8838_v4 = vrot.slane %v21495_v8, %v21258_v29  ;;  %v8846_v5 = vrot.slane %v21495_v8, %v21261_v30 }
0x133b   :  { %9808 = vmatpush1.bf16.msra.mxu1 %v17761_v54  ;;  %9849 = vmatpush1.bf16.msra.mxu0 %v17763_v6 }
0x133c   :  { %9809 = vmatprep.subr.bf16.mxu1 %v17746_v48  ;;  %9850 = vmatprep.subr.bf16.mxu0 %v17748_v7 }
0x133f   :  { %9810 = vmatpush1.bf16.msra.mxu1 %v17745_v57  ;;  %9851 = vmatpush1.bf16.msra.mxu0 %v17747_v20 }
0x1340   :  { %9811 = vmatprep.subr.bf16.mxu1 %v17730_v22  ;;  %9852 = vmatprep.subr.bf16.mxu0 %v17732_v23 }
0x1343   :  { %9812 = vmatpush1.bf16.msra.mxu1 %v17729_v24  ;;  %9853 = vmatpush1.bf16.msra.mxu0 %v17731_v31 }
0x1344   :  { %19086 = vmatprep.subr.bf16.mxu1 %v20258_v25  ;;  %19108 = vmatprep.subr.bf16.mxu0 %v20259_v32 }
0x1346   :  { %9830 = vmatmul.mubr.bf16.vlgmr.msra.gmra.mxu1 %v21479_v59  ;;  %9871 = vmatmul.mubr.bf16.vlgmr.msra.gmra.mxu0 %v21479_v59  ;;  %v20273_v59 = vld [vmem:[#allocation17 + $0xca0] sm:$0xff]  }
0x1347   :  { %19087 = vmatpush3.bf16.msra.mxu1 %v20260_v33  ;;  %19109 = vmatpush3.bf16.msra.mxu0 %v20261_v53 }
0x1348   :  { %19088 = vmatprep.subr.bf16.mxu1 %v20262_v34  ;;  %19110 = vmatprep.subr.bf16.mxu0 %v20263_v35  ;;  %v20292_v34 = vld [vmem:[#allocation17 + $0xd38] sm:$0xff]  }
0x1349   :  { %v20293_v35 = vld [vmem:[#allocation17 + $0xdb8] sm:$0xff]  }
0x134b   :  { %19089 = vmatpush3.bf16.msra.mxu1 %v20264_v36  ;;  %19111 = vmatpush3.bf16.msra.mxu0 %v20265_v37 }
0x134c   :  { %19090 = vmatprep.subr.bf16.mxu1 %v20266_v38  ;;  %19112 = vmatprep.subr.bf16.mxu0 %v20267_v40  ;;  %v20294_v38 = vld [vmem:[#allocation17 + $0xd70] sm:$0xff]  }
0x134d   :  { %v20295_v40 = vld [vmem:[#allocation17 + $0xdf0] sm:$0xff]  }
0x134f   :  { %19091 = vmatpush3.bf16.msra.mxu1 %v20268_v17  ;;  %19113 = vmatpush3.bf16.msra.mxu0 %v20269_v3  ;;  %v20296_v17 = vld [vmem:[#allocation17 + $0xd30] sm:$0xff]  }
0x1350   :  { %19092 = vmatprep.subr.bf16.mxu1 %v20270_v42  ;;  %19114 = vmatprep.subr.bf16.mxu0 %v20271_v43  ;;  %v20297_v3 = vld [vmem:[#allocation17 + $0xdb0] sm:$0xff]   ;;  %v20298_v42 = vld [vmem:[#allocation17 + $0xd68] sm:$0xff]  }
0x1351   :  { %v20299_v43 = vld [vmem:[#allocation17 + $0xde8] sm:$0xff]  }
0x1353   :  { %19093 = vmatpush3.bf16.msra.mxu1 %v20272_v45  ;;  %19115 = vmatpush3.bf16.msra.mxu0 %v20273_v59  ;;  %v20300_v45 = vld [vmem:[#allocation17 + $0xd28] sm:$0xff]  }
0x1354   :  { %19094 = vmatprep.subr.bf16.mxu1 %v20274_v46  ;;  %19116 = vmatprep.subr.bf16.mxu0 %v20275_v47  ;;  %v20301_v59 = vld [vmem:[#allocation17 + $0xda8] sm:$0xff]   ;;  %v20302_v46 = vld [vmem:[#allocation17 + $0xd60] sm:$0xff]  }
0x1355   :  { %v20303_v47 = vld [vmem:[#allocation17 + $0xde0] sm:$0xff]  }
0x1357   :  { %19095 = vmatpush3.bf16.msra.mxu1 %v20276_v28  ;;  %19117 = vmatpush3.bf16.msra.mxu0 %v20277_v10  ;;  %v20304_v28 = vld [vmem:[#allocation17 + $0xd20] sm:$0xff]  }
0x1358   :  { %19096 = vmatprep.subr.bf16.mxu1 %v20278_v49  ;;  %19118 = vmatprep.subr.bf16.mxu0 %v20279_v50  ;;  %v20305_v10 = vld [vmem:[#allocation17 + $0xda0] sm:$0xff]   ;;  %v20306_v49 = vld [vmem:[#allocation17 + $0xd58] sm:$0xff]  }
0x1359   :  { %v20307_v50 = vld [vmem:[#allocation17 + $0xdd8] sm:$0xff]  }
0x135b   :  { %19097 = vmatpush3.bf16.msra.mxu1 %v20280_v51  ;;  %19119 = vmatpush3.bf16.msra.mxu0 %v20281_v2  ;;  %v20308_v51 = vld [vmem:[#allocation17 + $0xd18] sm:$0xff]  }
0x135c   :  { %19098 = vmatprep.subr.bf16.mxu1 %v20282_v52  ;;  %19120 = vmatprep.subr.bf16.mxu0 %v20283_v55  ;;  %v20309_v2 = vld [vmem:[#allocation17 + $0xd98] sm:$0xff]   ;;  %v20310_v52 = vld [vmem:[#allocation17 + $0xd50] sm:$0xff]  }
0x135d   :  { %v20311_v55 = vld [vmem:[#allocation17 + $0xdd0] sm:$0xff]  }
0x135f   :  { %19099 = vmatpush3.bf16.msra.mxu1 %v20284_v56  ;;  %19121 = vmatpush3.bf16.msra.mxu0 %v20285_v1  ;;  %v20312_v56 = vld [vmem:[#allocation17 + $0xd10] sm:$0xff]  }
0x1360   :  { %19100 = vmatprep.subr.bf16.mxu1 %v20286_v21  ;;  %19122 = vmatprep.subr.bf16.mxu0 %v20287_v60  ;;  %v20313_v1 = vld [vmem:[#allocation17 + $0xd90] sm:$0xff]   ;;  %v20314_v21 = vld [vmem:[#allocation17 + $0xd48] sm:$0xff]  }
0x1361   :  { %v20315_v60 = vld [vmem:[#allocation17 + $0xdc8] sm:$0xff]  }
0x1363   :  { %19101 = vmatpush3.bf16.msra.mxu1 %v20288_v9  ;;  %19123 = vmatpush3.bf16.msra.mxu0 %v20289_v44  ;;  %v8850_v9 = vrot.slane %v21495_v8, %v21272_v14  ;;  %v8858_v44 = vrot.slane %v21495_v8, %v21275_v15 }
0x1364   :  { %19130 = vmatprep.subr.bf16.mxu1 %v20290_v61  ;;  %19152 = vmatprep.subr.bf16.mxu0 %v20291_v62  ;;  %v8854_v61 = vrot.slane %v21495_v8, %v21278_v18  ;;  %v8862_v62 = vrot.slane %v21495_v8, %v21281_v19 }
0x13a6   :  { %v9585_v54 = vpop.f32.mrf.mxu1  ;;  %v9626_v6 = vpop.f32.mrf.mxu0 }
0x13a7   :  { %v9586_v48 = vadd.f32 %v9585_v54, %v8834_v41  ;;  %v9627_v7 = vadd.f32 %v9626_v6, %v8842_v63  ;;  %v20316_v41 = vld [vmem:[#allocation17 + $0xd08] sm:$0xff]   ;;  %v20318_v54 = vld [vmem:[#allocation17 + $0xd40] sm:$0xff]  }
0x13a8   :  { %v9587_v11 = vpop.f32.mrf.mxu1  ;;  %v9628_v12 = vpop.f32.mrf.mxu0  ;;  %v20317_v63 = vld [vmem:[#allocation17 + $0xd88] sm:$0xff]   ;;  %v20319_v6 = vld [vmem:[#allocation17 + $0xdc0] sm:$0xff]  }
0x13a9   :  { %v9588_v13 = vadd.f32 %v9587_v11, %v8838_v4  ;;  %v9629_v16 = vadd.f32 %v9628_v12, %v8846_v5  ;;  %v9879_v57 = vmax.f32 %v9586_v48, 0.0  ;;  %v9881_v20 = vmax.f32 %v9627_v7, 0.0 }
0x13aa   :  { %v9589_v22 = vpop.f32.mrf.mxu1  ;;  %v9630_v23 = vpop.f32.mrf.mxu0 }
0x13ab   :  { %v9880_v24 = vmax.f32 %v9588_v13, 0.0  ;;  %v9882_v31 = vmax.f32 %v9629_v16, 0.0  ;;  %v9895_v36 = vpack.c.bf16 %v9879_v57, %v9879_v57  ;;  %v9897_v37 = vpack.c.bf16 %v9881_v20, %v9881_v20  ;;  %v20320_v57 = vld [vmem:[#allocation17 + $0xd00] sm:$0xff]  }
0x13ac   :  { %v9590_v25 = vpop.f32.mrf.mxu1  ;;  %v9631_v32 = vpop.f32.mrf.mxu0  ;;  %v20321_v20 = vld [vmem:[#allocation17 + $0xd80] sm:$0xff]  }
0x13ad   :  { %v9896_v33 = vpack.c.bf16 %v9880_v24, %v9880_v24  ;;  %v9898_v53 = vpack.c.bf16 %v9882_v31, %v9882_v31  ;;  %v20322_v31 = vld [vmem:[#allocation17 + $0xe78] sm:$0xff]  }
0x13ae   :  { %v20323_v25 = vld [vmem:[#allocation17 + $0xef8] sm:$0xff]  }
0x13af   :  { %10976 = vmatprep.mubr.bf16.mxu1 %v9896_v33  ;;  %11016 = vmatprep.mubr.bf16.mxu0 %v9898_v53 }
0x13b0   :  { %10977 = vmatmul.mubr.bf16.vlgmr.msra.gmra.mxu1 %v9895_v36  ;;  %11017 = vmatmul.mubr.bf16.vlgmr.msra.gmra.mxu0 %v9897_v37  ;;  %v20324_v37 = vld [vmem:[#allocation17 + $0xe38] sm:$0xff]  }
0x13b1   :  { %19131 = vmatpush3.bf16.msra.mxu1 %v20292_v34  ;;  %19153 = vmatpush3.bf16.msra.mxu0 %v20293_v35 }
0x13b2   :  { %19132 = vmatprep.subr.bf16.mxu1 %v20294_v38  ;;  %19154 = vmatprep.subr.bf16.mxu0 %v20295_v40  ;;  %v20325_v38 = vld [vmem:[#allocation17 + $0xeb8] sm:$0xff]  }
0x13b5   :  { %19133 = vmatpush3.bf16.msra.mxu1 %v20296_v17  ;;  %19155 = vmatpush3.bf16.msra.mxu0 %v20297_v3  ;;  %v20326_v3 = vld [vmem:[#allocation17 + $0xe70] sm:$0xff]  }
0x13b6   :  { %19134 = vmatprep.subr.bf16.mxu1 %v20298_v42  ;;  %19156 = vmatprep.subr.bf16.mxu0 %v20299_v43  ;;  %v20327_v42 = vld [vmem:[#allocation17 + $0xef0] sm:$0xff]  }
0x13b7   :  { %v20328_v43 = vld [vmem:[#allocation17 + $0xe30] sm:$0xff]  }
0x13b9   :  { %19135 = vmatpush3.bf16.msra.mxu1 %v20300_v45  ;;  %19157 = vmatpush3.bf16.msra.mxu0 %v20301_v59  ;;  %v20329_v45 = vld [vmem:[#allocation17 + $0xeb0] sm:$0xff]   ;;  %v20330_v59 = vld [vmem:[#allocation17 + $0xe68] sm:$0xff]  }
0x13ba   :  { %19136 = vmatprep.subr.bf16.mxu1 %v20302_v46  ;;  %19158 = vmatprep.subr.bf16.mxu0 %v20303_v47  ;;  %v20331_v46 = vld [vmem:[#allocation17 + $0xee8] sm:$0xff]  }
0x13bb   :  { %v20332_v47 = vld [vmem:[#allocation17 + $0xe28] sm:$0xff]  }
0x13bd   :  { %19137 = vmatpush3.bf16.msra.mxu1 %v20304_v28  ;;  %19159 = vmatpush3.bf16.msra.mxu0 %v20305_v10  ;;  %v20333_v28 = vld [vmem:[#allocation17 + $0xea8] sm:$0xff]   ;;  %v20334_v10 = vld [vmem:[#allocation17 + $0xe60] sm:$0xff]  }
0x13be   :  { %19138 = vmatprep.subr.bf16.mxu1 %v20306_v49  ;;  %19160 = vmatprep.subr.bf16.mxu0 %v20307_v50  ;;  %v20335_v49 = vld [vmem:[#allocation17 + $0xee0] sm:$0xff]  }
0x13bf   :  { %v20336_v50 = vld [vmem:[#allocation17 + $0xe20] sm:$0xff]  }
0x13c1   :  { %19139 = vmatpush3.bf16.msra.mxu1 %v20308_v51  ;;  %19161 = vmatpush3.bf16.msra.mxu0 %v20309_v2  ;;  %v20337_v51 = vld [vmem:[#allocation17 + $0xea0] sm:$0xff]   ;;  %v20338_v2 = vld [vmem:[#allocation17 + $0xe58] sm:$0xff]  }
0x13c2   :  { %19140 = vmatprep.subr.bf16.mxu1 %v20310_v52  ;;  %19162 = vmatprep.subr.bf16.mxu0 %v20311_v55  ;;  %v20339_v52 = vld [vmem:[#allocation17 + $0xed8] sm:$0xff]  }
0x13c3   :  { %v20340_v55 = vld [vmem:[#allocation17 + $0xe18] sm:$0xff]  }
0x13c5   :  { %19141 = vmatpush3.bf16.msra.mxu1 %v20312_v56  ;;  %19163 = vmatpush3.bf16.msra.mxu0 %v20313_v1  ;;  %v20341_v56 = vld [vmem:[#allocation17 + $0xe98] sm:$0xff]   ;;  %v20342_v1 = vld [vmem:[#allocation17 + $0xe50] sm:$0xff]  }
0x13c6   :  { %v9667_v4 = vpop.f32.mrf.mxu1  ;;  %v9708_v5 = vpop.f32.mrf.mxu0  ;;  %19142 = vmatprep.subr.bf16.mxu1 %v20314_v21  ;;  %19164 = vmatprep.subr.bf16.mxu0 %v20315_v60  ;;  %v20343_v21 = vld [vmem:[#allocation17 + $0xed0] sm:$0xff]   ;;  %v21513_v60 = vld [vmem:[#allocation16 + $0x38] sm:$0xff] }
0x13c7   :  { %v9668_v48 = vadd.f32 %v9667_v4, %v8850_v9  ;;  %v9709_v7 = vadd.f32 %v9708_v5, %v8858_v44  ;;  %v20344_v9 = vld [vmem:[#allocation17 + $0xe10] sm:$0xff]   ;;  %v8870_v4 = vrot.slane %v21513_v60, %v21258_v29  ;;  %v8878_v5 = vrot.slane %v21513_v60, %v21261_v30 }
0x13c8   :  { %v9669_v11 = vpop.f32.mrf.mxu1  ;;  %v9710_v12 = vpop.f32.mrf.mxu0  ;;  %v20345_v44 = vld [vmem:[#allocation17 + $0xe90] sm:$0xff]  }
0x13c9   :  { %v9670_v13 = vadd.f32 %v9669_v11, %v8854_v61  ;;  %v9711_v16 = vadd.f32 %v9710_v12, %v8862_v62  ;;  %19143 = vmatpush3.bf16.msra.mxu1 %v20316_v41  ;;  %19165 = vmatpush3.bf16.msra.mxu0 %v20317_v63  ;;  %v9883_v22 = vmax.f32 %v9668_v48, 0.0  ;;  %v9885_v8 = vmax.f32 %v9709_v7, 0.0  ;;  %v20346_v61 = vld [vmem:[#allocation17 + $0xe48] sm:$0xff]   ;;  %v20350_v11 = vld [vmem:[#allocation17 + $0xe40] sm:$0xff]  }
0x13ca   :  { %v9671_v23 = vpop.f32.mrf.mxu1  ;;  %v9712_v24 = vpop.f32.mrf.mxu0  ;;  %19144 = vmatprep.subr.bf16.mxu1 %v20318_v54  ;;  %19166 = vmatprep.subr.bf16.mxu0 %v20319_v6  ;;  %v20347_v62 = vld [vmem:[#allocation17 + $0xec8] sm:$0xff]   ;;  %v8866_v41 = vrot.slane %v21513_v60, %v21250_v26  ;;  %v8874_v63 = vrot.slane %v21513_v60, %v21253_v27  ;;  %v20351_v12 = vld [vmem:[#allocation17 + $0xec0] sm:$0xff]  }
0x13cb   :  { %v9884_v32 = vmax.f32 %v9670_v13, 0.0  ;;  %v9886_v33 = vmax.f32 %v9711_v16, 0.0  ;;  %v9899_v40 = vpack.c.bf16 %v9883_v22, %v9883_v22  ;;  %v9901_v17 = vpack.c.bf16 %v9885_v8, %v9885_v8  ;;  %v20348_v54 = vld [vmem:[#allocation17 + $0xe08] sm:$0xff]   ;;  %v20352_v23 = vld [vmem:[#allocation17 + $0xe00] sm:$0xff]  }
0x13cc   :  { %v9672_v53 = vpop.f32.mrf.mxu1  ;;  %v9713_v34 = vpop.f32.mrf.mxu0  ;;  %v20349_v6 = vld [vmem:[#allocation17 + $0xe88] sm:$0xff]   ;;  %v20353_v24 = vld [vmem:[#allocation17 + $0xe80] sm:$0xff]  }
0x13cd   :  { %v9900_v35 = vpack.c.bf16 %v9884_v32, %v9884_v32  ;;  %v9902_v36 = vpack.c.bf16 %v9886_v33, %v9886_v33  ;;  %19145 = vmatpush3.bf16.msra.mxu1 %v20320_v57  ;;  %19167 = vmatpush3.bf16.msra.mxu0 %v20321_v20  ;;  %v20354_v53 = vld [vmem:[#allocation17 + $0xf78] sm:$0xff]  }
0x13ce   :  { %19174 = vmatprep.subr.bf16.mxu1 %v20322_v31  ;;  %19196 = vmatprep.subr.bf16.mxu0 %v20323_v25  ;;  %v20355_v34 = vld [vmem:[#allocation17 + $0xff8] sm:$0xff]  }
0x13cf   :  { %11056 = vmatprep.mubr.bf16.mxu1 %v9900_v35  ;;  %11096 = vmatprep.mubr.bf16.mxu0 %v9902_v36 }
0x13d0   :  { %11057 = vmatmul.mubr.bf16.vlgmr.msra.gmra.mxu1 %v9899_v40  ;;  %11097 = vmatmul.mubr.bf16.vlgmr.msra.gmra.mxu0 %v9901_v17 }
0x13d1   :  { %19175 = vmatpush3.bf16.msra.mxu1 %v20324_v37  ;;  %19197 = vmatpush3.bf16.msra.mxu0 %v20325_v38 }
0x13d2   :  { %19176 = vmatprep.subr.bf16.mxu1 %v20326_v3  ;;  %19198 = vmatprep.subr.bf16.mxu0 %v20327_v42  ;;  %v20356_v3 = vld [vmem:[#allocation17 + $0xf38] sm:$0xff]  }
0x13d3   :  { %v20357_v42 = vld [vmem:[#allocation17 + $0xfb8] sm:$0xff]  }
0x13d5   :  { %19177 = vmatpush3.bf16.msra.mxu1 %v20328_v43  ;;  %19199 = vmatpush3.bf16.msra.mxu0 %v20329_v45 }
0x13d6   :  { %19178 = vmatprep.subr.bf16.mxu1 %v20330_v59  ;;  %19200 = vmatprep.subr.bf16.mxu0 %v20331_v46  ;;  %v20358_v59 = vld [vmem:[#allocation17 + $0xf70] sm:$0xff]  }
0x13d7   :  { %v20359_v46 = vld [vmem:[#allocation17 + $0xff0] sm:$0xff]  }
0x13d9   :  { %19179 = vmatpush3.bf16.msra.mxu1 %v20332_v47  ;;  %19201 = vmatpush3.bf16.msra.mxu0 %v20333_v28  ;;  %v20360_v47 = vld [vmem:[#allocation17 + $0xf30] sm:$0xff]  }
0x13da   :  { %19180 = vmatprep.subr.bf16.mxu1 %v20334_v10  ;;  %19202 = vmatprep.subr.bf16.mxu0 %v20335_v49  ;;  %v20361_v28 = vld [vmem:[#allocation17 + $0xfb0] sm:$0xff]   ;;  %v20362_v10 = vld [vmem:[#allocation17 + $0xf68] sm:$0xff]  }
0x13db   :  { %v20363_v49 = vld [vmem:[#allocation17 + $0xfe8] sm:$0xff]  }
0x13dd   :  { %19181 = vmatpush3.bf16.msra.mxu1 %v20336_v50  ;;  %19203 = vmatpush3.bf16.msra.mxu0 %v20337_v51  ;;  %v20364_v50 = vld [vmem:[#allocation17 + $0xf28] sm:$0xff]  }
0x13de   :  { %19182 = vmatprep.subr.bf16.mxu1 %v20338_v2  ;;  %19204 = vmatprep.subr.bf16.mxu0 %v20339_v52  ;;  %v20365_v51 = vld [vmem:[#allocation17 + $0xfa8] sm:$0xff]   ;;  %v20366_v2 = vld [vmem:[#allocation17 + $0xf60] sm:$0xff]  }
0x13df   :  { %v20367_v52 = vld [vmem:[#allocation17 + $0xfe0] sm:$0xff]  }
0x13e1   :  { %19183 = vmatpush3.bf16.msra.mxu1 %v20340_v55  ;;  %19205 = vmatpush3.bf16.msra.mxu0 %v20341_v56  ;;  %v20368_v55 = vld [vmem:[#allocation17 + $0xf20] sm:$0xff]  }
0x13e2   :  { %19184 = vmatprep.subr.bf16.mxu1 %v20342_v1  ;;  %19206 = vmatprep.subr.bf16.mxu0 %v20343_v21  ;;  %v20369_v56 = vld [vmem:[#allocation17 + $0xfa0] sm:$0xff]   ;;  %v20370_v1 = vld [vmem:[#allocation17 + $0xf58] sm:$0xff]  }
0x13e3   :  { %v20371_v21 = vld [vmem:[#allocation17 + $0xfd8] sm:$0xff]  }
0x13e5   :  { %19185 = vmatpush3.bf16.msra.mxu1 %v20344_v9  ;;  %19207 = vmatpush3.bf16.msra.mxu0 %v20345_v44  ;;  %v20372_v9 = vld [vmem:[#allocation17 + $0xf18] sm:$0xff]  }
0x13e6   :  { %v9749_v48 = vpop.f32.mrf.mxu1  ;;  %v9790_v7 = vpop.f32.mrf.mxu0  ;;  %19186 = vmatprep.subr.bf16.mxu1 %v20346_v61  ;;  %19208 = vmatprep.subr.bf16.mxu0 %v20347_v62  ;;  %v20373_v44 = vld [vmem:[#allocation17 + $0xf98] sm:$0xff]   ;;  %v20374_v61 = vld [vmem:[#allocation17 + $0xf50] sm:$0xff]  }
0x13e7   :  { %v9750_v13 = vadd.f32 %v9749_v48, %v8866_v41  ;;  %v9791_v16 = vadd.f32 %v9790_v7, %v8874_v63  ;;  %v20375_v62 = vld [vmem:[#allocation17 + $0xfd0] sm:$0xff]   ;;  %v8886_v48 = vrot.slane %v21513_v60, %v21278_v18  ;;  %v8894_v7 = vrot.slane %v21513_v60, %v21281_v19 }
0x13e8   :  { %v9751_v57 = vpop.f32.mrf.mxu1  ;;  %v9792_v20 = vpop.f32.mrf.mxu0  ;;  %v20376_v41 = vld [vmem:[#allocation17 + $0xf10] sm:$0xff]  }
0x13e9   :  { %v9752_v22 = vadd.f32 %v9751_v57, %v8870_v4  ;;  %v9793_v8 = vadd.f32 %v9792_v20, %v8878_v5  ;;  %19187 = vmatpush3.bf16.msra.mxu1 %v20348_v54  ;;  %19209 = vmatpush3.bf16.msra.mxu0 %v20349_v6  ;;  %v9887_v31 = vmax.f32 %v9750_v13, 0.0  ;;  %v9889_v25 = vmax.f32 %v9791_v16, 0.0  ;;  %v20377_v63 = vld [vmem:[#allocation17 + $0xf90] sm:$0xff]   ;;  %v20378_v4 = vld [vmem:[#allocation17 + $0xf48] sm:$0xff]   ;;  %v20382_v57 = vld [vmem:[#allocation17 + $0xf40] sm:$0xff]  }
0x13ea   :  { %v9753_v32 = vpop.f32.mrf.mxu1  ;;  %v9794_v33 = vpop.f32.mrf.mxu0  ;;  %19188 = vmatprep.subr.bf16.mxu1 %v20350_v11  ;;  %19210 = vmatprep.subr.bf16.mxu0 %v20351_v12  ;;  %v20379_v5 = vld [vmem:[#allocation17 + $0xfc8] sm:$0xff]   ;;  %v8882_v54 = vrot.slane %v21513_v60, %v21272_v14  ;;  %v8890_v6 = vrot.slane %v21513_v60, %v21275_v15  ;;  %v20383_v20 = vld [vmem:[#allocation17 + $0xfc0] sm:$0xff]  }
0x13eb   :  { %v9888_v35 = vmax.f32 %v9752_v22, 0.0  ;;  %v9890_v36 = vmax.f32 %v9793_v8, 0.0  ;;  %v9903_v43 = vpack.c.bf16 %v9887_v31, %v9887_v31  ;;  %v9905_v45 = vpack.c.bf16 %v9889_v25, %v9889_v25  ;;  %v20380_v11 = vld [vmem:[#allocation17 + $0xf08] sm:$0xff]   ;;  %v20384_v32 = vld [vmem:[#allocation17 + $0xf00] sm:$0xff]  }
0x13ec   :  { %v9754_v37 = vpop.f32.mrf.mxu1  ;;  %v9795_v38 = vpop.f32.mrf.mxu0  ;;  %v20381_v12 = vld [vmem:[#allocation17 + $0xf88] sm:$0xff]   ;;  %v20385_v33 = vld [vmem:[#allocation17 + $0xf80] sm:$0xff]  }
0x13ed   :  { %v9904_v40 = vpack.c.bf16 %v9888_v35, %v9888_v35  ;;  %v9906_v17 = vpack.c.bf16 %v9890_v36, %v9890_v36  ;;  %19189 = vmatpush3.bf16.msra.mxu1 %v20352_v23  ;;  %19211 = vmatpush3.bf16.msra.mxu0 %v20353_v24 }
0x13ee   :  { %19218 = vmatprep.subr.bf16.mxu1 %v20354_v53  ;;  %19240 = vmatprep.subr.bf16.mxu0 %v20355_v34 }
0x13ef   :  { %11136 = vmatprep.mubr.bf16.mxu1 %v9904_v40  ;;  %11176 = vmatprep.mubr.bf16.mxu0 %v9906_v17 }
0x13f0   :  { %11137 = vmatmul.mubr.bf16.vlgmr.msra.gmra.mxu1 %v9903_v43  ;;  %11177 = vmatmul.mubr.bf16.vlgmr.msra.gmra.mxu0 %v9905_v45 }
0x13f1   :  { %19219 = vmatpush3.bf16.msra.mxu1 %v20356_v3  ;;  %19241 = vmatpush3.bf16.msra.mxu0 %v20357_v42 }
0x13f2   :  { %19220 = vmatprep.subr.bf16.mxu1 %v20358_v59  ;;  %19242 = vmatprep.subr.bf16.mxu0 %v20359_v46  ;;  %v17845_v46 = vld [vmem:[#allocation19 + $0x3] ss:$0 sm:$0xff] }
0x13f5   :  { %19221 = vmatpush3.bf16.msra.mxu1 %v20360_v47  ;;  %19243 = vmatpush3.bf16.msra.mxu0 %v20361_v28 }
0x13f6   :  { %19222 = vmatprep.subr.bf16.mxu1 %v20362_v10  ;;  %19244 = vmatprep.subr.bf16.mxu0 %v20363_v49 }
0x13f9   :  { %19223 = vmatpush3.bf16.msra.mxu1 %v20364_v50  ;;  %19245 = vmatpush3.bf16.msra.mxu0 %v20365_v51 }
0x13fa   :  { %19224 = vmatprep.subr.bf16.mxu1 %v20366_v2  ;;  %19246 = vmatprep.subr.bf16.mxu0 %v20367_v52 }
0x13fd   :  { %19225 = vmatpush3.bf16.msra.mxu1 %v20368_v55  ;;  %19247 = vmatpush3.bf16.msra.mxu0 %v20369_v56 }
0x13fe   :  { %19226 = vmatprep.subr.bf16.mxu1 %v20370_v1  ;;  %19248 = vmatprep.subr.bf16.mxu0 %v20371_v21 }
0x1401   :  { %19227 = vmatpush3.bf16.msra.mxu1 %v20372_v9  ;;  %19249 = vmatpush3.bf16.msra.mxu0 %v20373_v44 }
0x1402   :  { %19228 = vmatprep.subr.bf16.mxu1 %v20374_v61  ;;  %19250 = vmatprep.subr.bf16.mxu0 %v20375_v62 }
0x1405   :  { %19229 = vmatpush3.bf16.msra.mxu1 %v20376_v41  ;;  %19251 = vmatpush3.bf16.msra.mxu0 %v20377_v63 }
0x1406   :  { %v9831_v13 = vpop.f32.mrf.mxu1  ;;  %v9872_v16 = vpop.f32.mrf.mxu0  ;;  %19230 = vmatprep.subr.bf16.mxu1 %v20378_v4  ;;  %19252 = vmatprep.subr.bf16.mxu0 %v20379_v5 }
0x1407   :  { %v9832_v22 = vadd.f32 %v9831_v13, %v8882_v54  ;;  %v9873_v8 = vadd.f32 %v9872_v16, %v8890_v6 }
0x1408   :  { %v9833_v23 = vpop.f32.mrf.mxu1  ;;  %v9874_v24 = vpop.f32.mrf.mxu0 }
0x1409   :  { %v9834_v31 = vadd.f32 %v9833_v23, %v8886_v48  ;;  %v9875_v25 = vadd.f32 %v9874_v24, %v8894_v7  ;;  %19231 = vmatpush3.bf16.msra.mxu1 %v20380_v11  ;;  %19253 = vmatpush3.bf16.msra.mxu0 %v20381_v12  ;;  %v9891_v53 = vmax.f32 %v9832_v22, 0.0  ;;  %v9893_v60 = vmax.f32 %v9873_v8, 0.0 }
0x140a   :  { %v9835_v34 = vpop.f32.mrf.mxu1  ;;  %v9876_v35 = vpop.f32.mrf.mxu0  ;;  %19232 = vmatprep.subr.bf16.mxu1 %v20382_v57  ;;  %19254 = vmatprep.subr.bf16.mxu0 %v20383_v20 }
0x140b   :  { %v9892_v36 = vmax.f32 %v9834_v31, 0.0  ;;  %v9894_v37 = vmax.f32 %v9875_v25, 0.0  ;;  %v9907_v42 = vpack.c.bf16 %v9891_v53, %v9891_v53  ;;  %v9909_v43 = vpack.c.bf16 %v9893_v60, %v9893_v60 }
0x140c   :  { %v9836_v38 = vpop.f32.mrf.mxu1  ;;  %v9877_v40 = vpop.f32.mrf.mxu0 }
0x140d   :  { %v9908_v17 = vpack.c.bf16 %v9892_v36, %v9892_v36  ;;  %v9910_v3 = vpack.c.bf16 %v9894_v37, %v9894_v37  ;;  %19233 = vmatpush3.bf16.msra.mxu1 %v20384_v32  ;;  %19255 = vmatpush3.bf16.msra.mxu0 %v20385_v33 }
0x140e   :  { %19740 = vmatprep.subr.bf16.mxu1 %v21043_v0 }
0x140f   :  { %11216 = vmatprep.mubr.bf16.mxu1 %v9908_v17  ;;  %11256 = vmatprep.mubr.bf16.mxu0 %v9910_v3  ;;  %v20386_v3 = vld [vmem:[#allocation8 + $0x138] sm:$0xff]  }
0x1410   :  { %11217 = vmatmul.mubr.bf16.vlgmr.msra.gmra.mxu1 %v9907_v42  ;;  %11257 = vmatmul.mubr.bf16.vlgmr.msra.gmra.mxu0 %v9909_v43  ;;  %v20387_v42 = vld [vmem:[#allocation8 + $0x130] sm:$0xff]  }
0x1411   :  { %19756 = vmatprep.mubr.msk.bf16.mxu1 %vm21044_vm0, %v21043_v0  ;;  %12325 = vmatprep.mubr.bf16.mxu0 %v21045_v39 }
0x1412   :  { %19741 = vmatpush3.bf16.msra.mxu1 %v20386_v3 }
0x1413   :  { %19742 = vmatprep.subr.bf16.mxu1 %v21043_v0 }
0x1416   :  { %19743 = vmatpush3.bf16.msra.mxu1 %v20387_v42 }
0x1417   :  { %19744 = vmatprep.subr.bf16.mxu1 %v21043_v0 }
0x1470   :  { %v19102_v45 = vpop.f32.mrf.mxu1  ;;  %v19124_v59 = vpop.f32.mrf.mxu0 }
0x1472   :  { %v19103_v47 = vpop.f32.mrf.mxu1  ;;  %v19125_v28 = vpop.f32.mrf.mxu0 }
0x1473   :  { %v19104_v10 = vadd.f32 %v19103_v47, %v19102_v45  ;;  %v19126_v49 = vadd.f32 %v19125_v28, %v19124_v59  ;;  %v20388_v47 = vld [vmem:[#allocation8 + $0x128] sm:$0xff]   ;;  %v20389_v28 = vld [vmem:[#allocation8 + $0x120] sm:$0xff]  }
0x1474   :  { %v19105_v50 = vpop.f32.mrf.mxu1  ;;  %v19127_v51 = vpop.f32.mrf.mxu0  ;;  %19745 = vmatpush3.bf16.msra.mxu1 %v20388_v47 }
0x1475   :  { %v10979_v2 = vadd.f32 %v19104_v10, %v17845_v46  ;;  %19746 = vmatprep.subr.bf16.mxu1 %v21043_v0  ;;  %v20391_v10 = vld [vmem:[#allocation8 + $0x110] sm:$0xff]   ;;  %v20393_v50 = vld [vmem:[#allocation8 + $0x100] sm:$0xff]  }
0x1476   :  { %v19106_v52 = vpop.f32.mrf.mxu1  ;;  %v19128_v55 = vpop.f32.mrf.mxu0 }
0x1477   :  { %v11019_v56 = vadd.f32 %v19126_v49, %v10979_v2  ;;  %v20392_v49 = vld [vmem:[#allocation8 + $0x108] sm:$0xff]  }
0x1478   :  { %19747 = vmatpush3.bf16.msra.mxu1 %v20389_v28  ;;  %v11513_v28 = vld [vmem:[#allocation14 + $0x1248] sm:$0xff] }
0x1479   :  { %19748 = vmatprep.subr.bf16.mxu1 %v21043_v0 }
0x1490   :  { %v19146_v1 = vpop.f32.mrf.mxu1  ;;  %v19168_v21 = vpop.f32.mrf.mxu0 }
0x1492   :  { %v19147_v9 = vpop.f32.mrf.mxu1  ;;  %v19169_v44 = vpop.f32.mrf.mxu0 }
0x1493   :  { %v19148_v13 = vadd.f32 %v19147_v9, %v19146_v1  ;;  %v19170_v57 = vadd.f32 %v19169_v44, %v19168_v21  ;;  %v17975_v21 = vld [vmem:[#allocation22 + $0x3] ss:$0 sm:$0xff] }
0x1494   :  { %v19149_v61 = vpop.f32.mrf.mxu1  ;;  %v19171_v62 = vpop.f32.mrf.mxu0 }
0x1495   :  { %v11059_v16 = vadd.f32 %v19148_v13, %v11019_v56  ;;  %v17974_v56 = vld [vmem:[#allocation20 + $0x3] ss:$0 sm:$0xff]  ;;  %v17976_v62 = vld [vmem:[#allocation10 + $0x4] ss:$0 sm:$0xff] }
0x1496   :  { %v19150_v41 = vpop.f32.mrf.mxu1  ;;  %v19172_v63 = vpop.f32.mrf.mxu0 }
0x1497   :  { %v11099_v22 = vadd.f32 %v19170_v57, %v11059_v16  ;;  %v11561_v16 = vld [vmem:[#allocation14 + $0x13c8] sm:$0xff]  ;;  %v11536_v57 = vld [vmem:[#allocation14 + $0x1300] sm:$0xff] }
0x14b0   :  { %v19190_v4 = vpop.f32.mrf.mxu1  ;;  %v19212_v5 = vpop.f32.mrf.mxu0 }
0x14b2   :  { %v19191_v54 = vpop.f32.mrf.mxu1  ;;  %v19213_v6 = vpop.f32.mrf.mxu0 }
0x14b3   :  { %v19192_v20 = vadd.f32 %v19191_v54, %v19190_v4  ;;  %v19214_v31 = vadd.f32 %v19213_v6, %v19212_v5 }
0x14b4   :  { %v19193_v48 = vpop.f32.mrf.mxu1  ;;  %v19215_v7 = vpop.f32.mrf.mxu0 }
0x14b5   :  { %v11139_v8 = vadd.f32 %v19192_v20, %v11099_v22  ;;  %v11552_v48 = vld [vmem:[#allocation14 + $0x1380] sm:$0xff] }
0x14b6   :  { %v19194_v11 = vpop.f32.mrf.mxu1  ;;  %v19216_v12 = vpop.f32.mrf.mxu0  ;;  %v11560_v7 = vld [vmem:[#allocation14 + $0x13c0] sm:$0xff] }
0x14b7   :  { %v11179_v33 = vadd.f32 %v19214_v31, %v11139_v8  ;;  %v11553_v11 = vld [vmem:[#allocation14 + $0x1388] sm:$0xff]  ;;  %v18099_v12 = vcombine.low %v11552_v48, %v11560_v7  ;;  %v18100_v13 = vcombine.high %v11552_v48, %v11560_v7  ;;  %v11544_v20 = vld [vmem:[#allocation14 + $0x1340] sm:$0xff] }
0x14b8   :  { %v18101_v22 = vcombine.low %v11553_v11, %v11561_v16  ;;  %v18102_v8 = vcombine.high %v11553_v11, %v11561_v16  ;;  %v11545_v31 = vld [vmem:[#allocation14 + $0x1348] sm:$0xff] }
0x14b9   :  { %12293 = vmatprep.subr.bf16.mxu0 %v18100_v13  ;;  %v11457_v48 = vld [vmem:[#allocation14 + $0x1088] sm:$0xff] }
0x14ba   :  { %12294 = vmatpush1.bf16.msra.mxu0 %v18099_v12  ;;  %v11465_v11 = vld [vmem:[#allocation14 + $0x10c8] sm:$0xff] }
0x14bb   :  { %v18005_v13 = vcombine.low %v11457_v48, %v11465_v11  ;;  %v18006_v16 = vcombine.high %v11457_v48, %v11465_v11  ;;  %v11490_v48 = vld [vmem:[#allocation14 + $0x1190] sm:$0xff]  ;;  %v11491_v11 = vld [vmem:[#allocation14 + $0x1198] sm:$0xff] }
0x14d0   :  { %v19234_v23 = vpop.f32.mrf.mxu1  ;;  %v19256_v24 = vpop.f32.mrf.mxu0 }
0x14d2   :  { %v19235_v25 = vpop.f32.mrf.mxu1  ;;  %v19257_v32 = vpop.f32.mrf.mxu0 }
0x14d3   :  { %v19236_v53 = vadd.f32 %v19235_v25, %v19234_v23  ;;  %v19258_v36 = vadd.f32 %v19257_v32, %v19256_v24  ;;  %v18084_v23 = vcombine.high %v11536_v57, %v11544_v20  ;;  %v11537_v24 = vld [vmem:[#allocation14 + $0x1308] sm:$0xff]  ;;  %v18083_v32 = vcombine.low %v11536_v57, %v11544_v20  ;;  %v11440_v57 = vld [vmem:[#allocation14 + $0x1000] sm:$0xff] }
0x14d4   :  { %v19237_v60 = vpop.f32.mrf.mxu1  ;;  %v19259_v34 = vpop.f32.mrf.mxu0  ;;  %v18086_v25 = vcombine.high %v11537_v24, %v11545_v31  ;;  %v11448_v20 = vld [vmem:[#allocation14 + $0x1040] sm:$0xff] }
0x14d5   :  { %v11219_v35 = vadd.f32 %v19236_v53, %v11179_v33  ;;  %12295 = vmatprep.subr.bf16.mxu0 %v18084_v23  ;;  %v18085_v33 = vcombine.low %v11537_v24, %v11545_v31  ;;  %v11449_v23 = vld [vmem:[#allocation14 + $0x1048] sm:$0xff]  ;;  %v17987_v24 = vcombine.low %v11440_v57, %v11448_v20 }
0x14d6   :  { %v19238_v37 = vpop.f32.mrf.mxu1  ;;  %v19260_v38 = vpop.f32.mrf.mxu0  ;;  %12296 = vmatpush1.bf16.msra.mxu0 %v18083_v32  ;;  %v11554_v32 = vld [vmem:[#allocation14 + $0x1390] sm:$0xff] }
0x14d7   :  { %v11259_v40 = vadd.f32 %v19258_v36, %v11219_v35  ;;  %v11520_v36 = vld [vmem:[#allocation14 + $0x1280] sm:$0xff]  ;;  %v11521_v38 = vld [vmem:[#allocation14 + $0x1288] sm:$0xff] }
0x14d8   :  { %v11528_v37 = vld [vmem:[#allocation14 + $0x12c0] sm:$0xff] }
0x14d9   :  { %v11264_v17 = vadd.f32 %v11259_v40, %v21475_v58  ;;  %v20390_v58 = vld [vmem:[#allocation8 + $0x118] sm:$0xff]   ;;  %v18068_v40 = vcombine.high %v11520_v36, %v11528_v37  ;;  %v18067_v3 = vcombine.low %v11520_v36, %v11528_v37 }
0x14da   :  { %19749 = vmatpush3.bf16.msra.mxu1 %v20390_v58 }
0x14db   :  { %11269 = vadd.xlane.f32.xlu0 %v11264_v17  ;;  %19750 = vmatprep.subr.bf16.mxu1 %v21043_v0 }
0x14dc   :  { %12297 = vmatprep.subr.bf16.mxu0 %v18068_v40 }
0x14dd   :  { %12298 = vmatpush1.bf16.msra.mxu0 %v18067_v3 }
0x14de   :  { %19751 = vmatpush3.bf16.msra.mxu1 %v20391_v10 }
0x14df   :  { %19752 = vmatprep.subr.bf16.mxu1 %v21043_v0 }
0x14e2   :  { %19753 = vmatpush3.bf16.msra.mxu1 %v20392_v49 }
0x14e3   :  { %19754 = vmatprep.subr.bf16.mxu1 %v21043_v0 }
0x14e6   :  { %19755 = vmatpush3.bf16.msra.mxu1 %v20393_v50  ;;  %v11488_v50 = vld [vmem:[#allocation14 + $0x1180] sm:$0xff] }
0x14e7   :  { %12334 = vmatprep.subr.bf16.mxu1 %v18102_v8  ;;  %v17988_v8 = vcombine.high %v11440_v57, %v11448_v20 }
0x1564   :  { %v11270_v43 = vpop.xlane.xlu0 %11269 }
0x1565   :  { %v11271_v45 = vmul.f32 0.0078125, %v11270_v43 }
0x1567   :  { %v11272_v59 = vsub.f32 %v11264_v17, %v11271_v45  ;;  %v11529_v17 = vld [vmem:[#allocation14 + $0x12c8] sm:$0xff]  ;;  %v11504_v45 = vld [vmem:[#allocation14 + $0x1200] sm:$0xff] }
0x1568   :  { %v18069_v42 = vcombine.low %v11521_v38, %v11529_v17  ;;  %v18070_v43 = vcombine.high %v11521_v38, %v11529_v17 }
0x1569   :  { %v11273_v46 = vmul.f32 %v11272_v59, %v11272_v59 }
0x156b   :  { %11274 = vadd.xlane.f32.xlu1 %v11273_v46  ;;  %v11505_v46 = vld [vmem:[#allocation14 + $0x1208] sm:$0xff] }
0x156c   :  { %v18053_v10 = vcombine.low %v11505_v46, %v11513_v28  ;;  %v18054_v49 = vcombine.high %v11505_v46, %v11513_v28  ;;  %v11546_v28 = vld [vmem:[#allocation14 + $0x1350] sm:$0xff] }
0x15f4   :  { %v11275_v51 = vpop.xlane.xlu1 %11274 }
0x15f5   :  { %v11276_v2 = vmul.f32 0.0078125, %v11275_v51  ;;  %v11496_v51 = vld [vmem:[#allocation14 + $0x11c0] sm:$0xff] }
0x15f7   :  { %v11277_v52 = vadd.f32 1e-05, %v11276_v2  ;;  %v11489_v2 = vld [vmem:[#allocation14 + $0x1188] sm:$0xff] }
0x15f9   :  { %20672 = vrsqrt.f32 %v11277_v52  ;;  %v18036_v52 = vcombine.high %v11488_v50, %v11496_v51 }
0x1606   :  { %v20673_v55 = vpop.eup %20672 }
0x1607   :  { %v11279_v1 = vmul.f32 %v20673_v55, %v11272_v59  ;;  %v11512_v59 = vld [vmem:[#allocation14 + $0x1240] sm:$0xff]  ;;  %v11497_v55 = vld [vmem:[#allocation14 + $0x11c8] sm:$0xff] }
0x1608   :  { %v18052_v47 = vcombine.high %v11504_v45, %v11512_v59  ;;  %v18051_v58 = vcombine.low %v11504_v45, %v11512_v59  ;;  %v17986_v59 = vld [vmem:[#allocation13 + $0x4] ss:$0 sm:$0xff] }
0x1609   :  { %v11286_v9 = vmul.f32 %v17974_v56, %v11279_v1  ;;  %v18035_v56 = vcombine.low %v11488_v50, %v11496_v51  ;;  %v18037_v1 = vcombine.low %v11489_v2, %v11497_v55 }
0x160a   :  { %12299 = vmatprep.subr.bf16.mxu0 %v18052_v47  ;;  %v11538_v47 = vld [vmem:[#allocation14 + $0x1310] sm:$0xff] }
0x160b   :  { %v11293_v44 = vadd.f32 %v17975_v21, %v11286_v9  ;;  %12300 = vmatpush1.bf16.msra.mxu0 %v18051_v58  ;;  %v18038_v21 = vcombine.high %v11489_v2, %v11497_v55  ;;  %v11472_v9 = vld [vmem:[#allocation14 + $0x1100] sm:$0xff]  ;;  %v11539_v58 = vld [vmem:[#allocation14 + $0x1318] sm:$0xff]  ;;  %v18088_v51 = vcombine.high %v11538_v47, %v11546_v28  ;;  %v11530_v55 = vld [vmem:[#allocation14 + $0x12d0] sm:$0xff] }
0x160c   :  { %12301 = vmatprep.subr.bf16.mxu0 %v18036_v52  ;;  %v11522_v52 = vld [vmem:[#allocation14 + $0x1290] sm:$0xff] }
0x160d   :  { %v11294_v61 = vpack.c.bf16 %v11293_v44, %v11293_v44 }
0x160f   :  { %19757 = vmatmul.mubr.bf16.vlgmr.msra.gmra.mxu1 %v11294_v61  ;;  %12302 = vmatpush1.bf16.msra.mxu0 %v18035_v56  ;;  %v11473_v61 = vld [vmem:[#allocation14 + $0x1108] sm:$0xff]  ;;  %v11523_v56 = vld [vmem:[#allocation14 + $0x1298] sm:$0xff] }
0x1610   :  { %12366 = vmatprep.mubr.bf16.mxu1 %v21045_v39  ;;  %12335 = vmatpush1.bf16.msra.mxu1 %v18101_v22  ;;  %v11441_v22 = vld [vmem:[#allocation14 + $0x1008] sm:$0xff] }
0x1611   :  { %12336 = vmatprep.subr.bf16.mxu1 %v18086_v25  ;;  %v17989_v31 = vcombine.low %v11441_v22, %v11449_v23  ;;  %v17990_v25 = vcombine.high %v11441_v22, %v11449_v23  ;;  %v11474_v22 = vld [vmem:[#allocation14 + $0x1110] sm:$0xff]  ;;  %v11475_v23 = vld [vmem:[#allocation14 + $0x1118] sm:$0xff] }
0x1614   :  { %12337 = vmatpush1.bf16.msra.mxu1 %v18085_v33  ;;  %v11562_v33 = vld [vmem:[#allocation14 + $0x13d0] sm:$0xff] }
0x1615   :  { %12338 = vmatprep.subr.bf16.mxu1 %v18070_v43  ;;  %v18103_v36 = vcombine.low %v11554_v32, %v11562_v33  ;;  %v17985_v43 = vld [vmem:[#allocation11 + $0x4] ss:$0 sm:$0xff] }
0x1618   :  { %12339 = vmatpush1.bf16.msra.mxu1 %v18069_v42 }
0x1619   :  { %12340 = vmatprep.subr.bf16.mxu1 %v18054_v49 }
0x161c   :  { %12341 = vmatpush1.bf16.msra.mxu1 %v18053_v10  ;;  %v11547_v10 = vld [vmem:[#allocation14 + $0x1358] sm:$0xff] }
0x161d   :  { %12342 = vmatprep.subr.bf16.mxu1 %v18038_v21  ;;  %v18090_v2 = vcombine.high %v11539_v58, %v11547_v10  ;;  %v18089_v21 = vcombine.low %v11539_v58, %v11547_v10  ;;  %v11556_v58 = vld [vmem:[#allocation14 + $0x13a0] sm:$0xff] }
0x161e   :  { %v11564_v10 = vld [vmem:[#allocation14 + $0x13e0] sm:$0xff] }
0x1620   :  { %12343 = vmatpush1.bf16.msra.mxu1 %v18037_v1  ;;  %v11531_v1 = vld [vmem:[#allocation14 + $0x12d8] sm:$0xff] }
0x16cf   :  { %v11402_v41 = vpop.f32.mrf.mxu1 }
0x16d0   :  { %v11403_v63 = vadd.f32 %v17976_v62, %v11402_v41  ;;  %v11481_v41 = vld [vmem:[#allocation14 + $0x1148] sm:$0xff] }
0x16d1   :  { %v19758_v4 = vpop.f32.mrf.mxu1 }
0x16d2   :  { %v11408_v5 = vadd.f32 %v11403_v63, %v11293_v44  ;;  %v11480_v44 = vld [vmem:[#allocation14 + $0x1140] sm:$0xff]  ;;  %v18021_v4 = vcombine.low %v11473_v61, %v11481_v41 }
0x16d3   :  { %v11405_v54 = vpop.f32.mrf.mxu1  ;;  %v18020_v62 = vcombine.high %v11472_v9, %v11480_v44  ;;  %v18019_v63 = vcombine.low %v11472_v9, %v11480_v44  ;;  %v18072_v9 = vcombine.high %v11522_v52, %v11530_v55  ;;  %v18074_v44 = vcombine.high %v11523_v56, %v11531_v1 }
0x16d4   :  { %11413 = vadd.xlane.f32.xlu0 %v11408_v5  ;;  %v11456_v54 = vld [vmem:[#allocation14 + $0x1080] sm:$0xff] }
0x16d5   :  { %v19759_v6 = vpop.f32.mrf.mxu1  ;;  %12303 = vmatprep.subr.bf16.mxu0 %v18020_v62  ;;  %v11514_v62 = vld [vmem:[#allocation14 + $0x1250] sm:$0xff] }
0x16d6   :  { %12304 = vmatpush1.bf16.msra.mxu0 %v18019_v63  ;;  %v11464_v6 = vld [vmem:[#allocation14 + $0x10c0] sm:$0xff]  ;;  %v11515_v63 = vld [vmem:[#allocation14 + $0x1258] sm:$0xff] }
0x16d7   :  { %v18004_v7 = vcombine.high %v11456_v54, %v11464_v6  ;;  %v18003_v12 = vcombine.low %v11456_v54, %v11464_v6 }
0x16d9   :  { %12305 = vmatprep.subr.bf16.mxu0 %v18004_v7  ;;  %v11498_v7 = vld [vmem:[#allocation14 + $0x11d0] sm:$0xff] }
0x16da   :  { %12306 = vmatpush1.bf16.msra.mxu0 %v18003_v12  ;;  %v11499_v12 = vld [vmem:[#allocation14 + $0x11d8] sm:$0xff]  ;;  %v18040_v57 = vcombine.high %v11490_v48, %v11498_v7 }
0x16db   :  { %12307 = vmatprep.subr.bf16.mxu0 %v17988_v8  ;;  %v18042_v20 = vcombine.high %v11491_v11, %v11499_v12  ;;  %v11482_v8 = vld [vmem:[#allocation14 + $0x1150] sm:$0xff] }
0x16de   :  { %12308 = vmatpush1.bf16.msra.mxu0 %v17987_v24  ;;  %v11483_v24 = vld [vmem:[#allocation14 + $0x1158] sm:$0xff] }
0x175d   :  { %v11414_v53 = vpop.xlane.xlu0 %11413 }
0x175e   :  { %v11415_v60 = vmul.f32 0.0078125, %v11414_v53  ;;  %v11555_v53 = vld [vmem:[#allocation14 + $0x1398] sm:$0xff] }
0x1760   :  { %v21544_v34 = vsub.f32 %v11408_v5, %v11415_v60  ;;  %v18022_v5 = vcombine.high %v11473_v61, %v11481_v41  ;;  %v18104_v60 = vcombine.high %v11554_v32, %v11562_v33  ;;  %v11506_v61 = vld [vmem:[#allocation14 + $0x1210] sm:$0xff]  ;;  %v11507_v41 = vld [vmem:[#allocation14 + $0x1218] sm:$0xff]  ;;  %v18024_v32 = vcombine.high %v11474_v22, %v11482_v8 }
0x1761   :  { %v18056_v54 = vcombine.high %v11506_v61, %v11514_v62  ;;  %v18058_v6 = vcombine.high %v11507_v41, %v11515_v63  ;;  %v18026_v33 = vcombine.high %v11475_v23, %v11483_v24 }
0x1762   :  { %v11417_v35 = vmul.f32 %v21544_v34, %v21544_v34  ;;  %12344 = vmatprep.subr.bf16.mxu1 %v18022_v5  ;;  %12375 = vmatprep.subr.bf16.mxu0 %v18104_v60  ;;  %v18073_v5 = vcombine.low %v11523_v56, %v11531_v1  ;;  %v11466_v60 = vld [vmem:[#allocation14 + $0x10d0] sm:$0xff]  ;;  %v18108_v56 = vcombine.high %v11556_v58, %v11564_v10 }
0x1763   :  { %12345 = vmatpush1.bf16.msra.mxu1 %v18021_v4  ;;  %v18071_v4 = vcombine.low %v11522_v52, %v11530_v55 }
0x1764   :  { %11418 = vadd.xlane.f32.xlu1 %v11417_v35  ;;  %12346 = vmatprep.subr.bf16.mxu1 %v18006_v16  ;;  %v11563_v35 = vld [vmem:[#allocation14 + $0x13d8] sm:$0xff]  ;;  %v18057_v16 = vcombine.low %v11507_v41, %v11515_v63 }
0x1765   :  { %v18105_v37 = vcombine.low %v11555_v53, %v11563_v35  ;;  %v18106_v38 = vcombine.high %v11555_v53, %v11563_v35  ;;  %v11458_v53 = vld [vmem:[#allocation14 + $0x1090] sm:$0xff]  ;;  %v11459_v35 = vld [vmem:[#allocation14 + $0x1098] sm:$0xff] }
0x1767   :  { %12347 = vmatpush1.bf16.msra.mxu1 %v18005_v13  ;;  %v18055_v13 = vcombine.low %v11506_v61, %v11514_v62  ;;  %v18107_v61 = vcombine.low %v11556_v58, %v11564_v10 }
0x1768   :  { %12348 = vmatprep.subr.bf16.mxu1 %v17990_v25  ;;  %v18041_v25 = vcombine.low %v11491_v11, %v11499_v12 }
0x176b   :  { %12349 = vmatpush1.bf16.msra.mxu1 %v17989_v31  ;;  %v18039_v31 = vcombine.low %v11490_v48, %v11498_v7 }
0x176c   :  { %12416 = vmatprep.subr.bf16.mxu1 %v18106_v38  ;;  %v18025_v38 = vcombine.low %v11475_v23, %v11483_v24 }
0x17ed   :  { %v11419_v40 = vpop.xlane.xlu1 %11418 }
0x17ee   :  { %v11420_v17 = vmul.f32 0.0078125, %v11419_v40  ;;  %v18008_v40 = vcombine.high %v11458_v53, %v11466_v60 }
0x17f0   :  { %v11421_v3 = vadd.f32 1e-05, %v11420_v17 }
0x17f2   :  { %20674 = vrsqrt.f32 %v11421_v3  ;;  %v11442_v3 = vld [vmem:[#allocation14 + $0x1010] sm:$0xff] }
0x17ff   :  { %v20675_v42 = vpop.eup %20674 }
0x1800   :  { %v11423_v45 = vmul.f32 %v20675_v42, %v21544_v34  ;;  %v18087_v34 = vcombine.low %v11538_v47, %v11546_v28  ;;  %v11450_v42 = vld [vmem:[#allocation14 + $0x1050] sm:$0xff] }
0x1801   :  { %v17992_v47 = vcombine.high %v11442_v3, %v11450_v42  ;;  %v17991_v52 = vcombine.low %v11442_v3, %v11450_v42 }
0x1802   :  { %v11430_v46 = vmul.f32 %v17985_v43, %v11423_v45  ;;  %v11443_v43 = vld [vmem:[#allocation14 + $0x1018] sm:$0xff] }
0x1803   :  { %v11451_v45 = vld [vmem:[#allocation14 + $0x1058] sm:$0xff] }
0x1804   :  { %v21549_v49 = vadd.f32 %v17986_v59, %v11430_v46  ;;  %v18007_v59 = vcombine.low %v11458_v53, %v11466_v60  ;;  %v17994_v28 = vcombine.high %v11443_v43, %v11451_v45  ;;  %v17993_v55 = vcombine.low %v11443_v43, %v11451_v45 }
0x1806   :  { %v21553_v50 = vpack.c.bf16 %v21549_v49, %v21549_v49 }
0x1808   :  { %12326 = vmatmul.mubr.bf16.vlgmr.msra.gmra.mxu0 %v21553_v50  ;;  %12367 = vmatmul.mubr.bf16.vlgmr.msra.gmra.mxu1 %v21553_v50 }
0x1809   :  { %12376 = vmatpush1.bf16.msra.mxu0 %v18103_v36  ;;  %12417 = vmatpush1.bf16.msra.mxu1 %v18105_v37  ;;  %v11467_v36 = vld [vmem:[#allocation14 + $0x10d8] sm:$0xff]  ;;  %v18023_v37 = vcombine.low %v11474_v22, %v11482_v8 }
0x180a   :  { %12377 = vmatprep.subr.bf16.mxu0 %v18088_v51  ;;  %12418 = vmatprep.subr.bf16.mxu1 %v18090_v2  ;;  %v18010_v17 = vcombine.high %v11459_v35, %v11467_v36  ;;  %v18009_v46 = vcombine.low %v11459_v35, %v11467_v36  ;;  %v11557_v51 = vld [vmem:[#allocation14 + $0x13a8] sm:$0xff] }
0x180b   :  { %12407 = vmatprep.mubr.bf16.mxu0 %v21045_v39  ;;  %12448 = vmatprep.mubr.bf16.mxu1 %v21045_v39  ;;  %v11565_v2 = vld [vmem:[#allocation14 + $0x13e8] sm:$0xff] }
0x180c   :  { %v18110_v1 = vcombine.high %v11557_v51, %v11565_v2  ;;  %v18109_v62 = vcombine.low %v11557_v51, %v11565_v2 }
0x180d   :  { %12378 = vmatpush1.bf16.msra.mxu0 %v18087_v34  ;;  %12419 = vmatpush1.bf16.msra.mxu1 %v18089_v21  ;;  %v11540_v34 = vld [vmem:[#allocation14 + $0x1320] sm:$0xff] }
0x180e   :  { %12379 = vmatprep.subr.bf16.mxu0 %v18072_v9  ;;  %12420 = vmatprep.subr.bf16.mxu1 %v18074_v44  ;;  %v11548_v21 = vld [vmem:[#allocation14 + $0x1360] sm:$0xff]  ;;  %v11541_v9 = vld [vmem:[#allocation14 + $0x1328] sm:$0xff] }
0x180f   :  { %v11549_v44 = vld [vmem:[#allocation14 + $0x1368] sm:$0xff]  ;;  %v18092_v41 = vcombine.high %v11540_v34, %v11548_v21  ;;  %v18091_v48 = vcombine.low %v11540_v34, %v11548_v21 }
0x1810   :  { %v18094_v63 = vcombine.high %v11541_v9, %v11549_v44  ;;  %v18093_v7 = vcombine.low %v11541_v9, %v11549_v44 }
0x1811   :  { %12380 = vmatpush1.bf16.msra.mxu0 %v18071_v4  ;;  %12421 = vmatpush1.bf16.msra.mxu1 %v18073_v5  ;;  %v11524_v4 = vld [vmem:[#allocation14 + $0x12a0] sm:$0xff] }
0x1812   :  { %12381 = vmatprep.subr.bf16.mxu0 %v18056_v54  ;;  %12422 = vmatprep.subr.bf16.mxu1 %v18058_v6  ;;  %v11532_v5 = vld [vmem:[#allocation14 + $0x12e0] sm:$0xff]  ;;  %v11525_v54 = vld [vmem:[#allocation14 + $0x12a8] sm:$0xff] }
0x1813   :  { %v11533_v6 = vld [vmem:[#allocation14 + $0x12e8] sm:$0xff]  ;;  %v18076_v11 = vcombine.high %v11524_v4, %v11532_v5  ;;  %v18075_v22 = vcombine.low %v11524_v4, %v11532_v5 }
0x1814   :  { %v18078_v12 = vcombine.high %v11525_v54, %v11533_v6  ;;  %v18077_v8 = vcombine.low %v11525_v54, %v11533_v6 }
0x1815   :  { %12382 = vmatpush1.bf16.msra.mxu0 %v18055_v13  ;;  %12423 = vmatpush1.bf16.msra.mxu1 %v18057_v16  ;;  %v11508_v13 = vld [vmem:[#allocation14 + $0x1220] sm:$0xff] }
0x1816   :  { %12383 = vmatprep.subr.bf16.mxu0 %v18040_v57  ;;  %12424 = vmatprep.subr.bf16.mxu1 %v18042_v20  ;;  %v11516_v16 = vld [vmem:[#allocation14 + $0x1260] sm:$0xff]  ;;  %v11509_v57 = vld [vmem:[#allocation14 + $0x1228] sm:$0xff] }
0x1817   :  { %v11517_v20 = vld [vmem:[#allocation14 + $0x1268] sm:$0xff]  ;;  %v18060_v23 = vcombine.high %v11508_v13, %v11516_v16  ;;  %v18059_v53 = vcombine.low %v11508_v13, %v11516_v16 }
0x1818   :  { %v18062_v24 = vcombine.high %v11509_v57, %v11517_v20  ;;  %v18061_v60 = vcombine.low %v11509_v57, %v11517_v20 }
0x1819   :  { %12384 = vmatpush1.bf16.msra.mxu0 %v18039_v31  ;;  %12425 = vmatpush1.bf16.msra.mxu1 %v18041_v25  ;;  %v11492_v31 = vld [vmem:[#allocation14 + $0x11a0] sm:$0xff] }
0x181a   :  { %12385 = vmatprep.subr.bf16.mxu0 %v18024_v32  ;;  %12426 = vmatprep.subr.bf16.mxu1 %v18026_v33  ;;  %v11500_v25 = vld [vmem:[#allocation14 + $0x11e0] sm:$0xff]  ;;  %v11493_v32 = vld [vmem:[#allocation14 + $0x11a8] sm:$0xff] }
0x181b   :  { %v11501_v33 = vld [vmem:[#allocation14 + $0x11e8] sm:$0xff]  ;;  %v18044_v35 = vcombine.high %v11492_v31, %v11500_v25  ;;  %v18043_v3 = vcombine.low %v11492_v31, %v11500_v25 }
0x181c   :  { %v18046_v36 = vcombine.high %v11493_v32, %v11501_v33  ;;  %v18045_v42 = vcombine.low %v11493_v32, %v11501_v33 }
0x181d   :  { %12386 = vmatpush1.bf16.msra.mxu0 %v18023_v37  ;;  %12427 = vmatpush1.bf16.msra.mxu1 %v18025_v38  ;;  %v11476_v37 = vld [vmem:[#allocation14 + $0x1120] sm:$0xff] }
0x181e   :  { %12387 = vmatprep.subr.bf16.mxu0 %v18008_v40  ;;  %12428 = vmatprep.subr.bf16.mxu1 %v18010_v17  ;;  %v11484_v38 = vld [vmem:[#allocation14 + $0x1160] sm:$0xff]  ;;  %v11477_v40 = vld [vmem:[#allocation14 + $0x1128] sm:$0xff] }
0x181f   :  { %v11485_v17 = vld [vmem:[#allocation14 + $0x1168] sm:$0xff]  ;;  %v18028_v43 = vcombine.high %v11476_v37, %v11484_v38  ;;  %v18027_v58 = vcombine.low %v11476_v37, %v11484_v38 }
0x1820   :  { %v18030_v45 = vcombine.high %v11477_v40, %v11485_v17  ;;  %v18029_v10 = vcombine.low %v11477_v40, %v11485_v17 }
0x1821   :  { %12388 = vmatpush1.bf16.msra.mxu0 %v18007_v59  ;;  %12429 = vmatpush1.bf16.msra.mxu1 %v18009_v46  ;;  %v11460_v59 = vld [vmem:[#allocation14 + $0x10a0] sm:$0xff] }
0x1822   :  { %12389 = vmatprep.subr.bf16.mxu0 %v17992_v47  ;;  %12430 = vmatprep.subr.bf16.mxu1 %v17994_v28  ;;  %v11468_v46 = vld [vmem:[#allocation14 + $0x10e0] sm:$0xff]  ;;  %v11461_v47 = vld [vmem:[#allocation14 + $0x10a8] sm:$0xff] }
0x1823   :  { %v11469_v28 = vld [vmem:[#allocation14 + $0x10e8] sm:$0xff]  ;;  %v18012_v51 = vcombine.high %v11460_v59, %v11468_v46  ;;  %v18011_v34 = vcombine.low %v11460_v59, %v11468_v46 }
0x1824   :  { %v18014_v2 = vcombine.high %v11461_v47, %v11469_v28  ;;  %v18013_v21 = vcombine.low %v11461_v47, %v11469_v28 }
0x1825   :  { %12390 = vmatpush1.bf16.msra.mxu0 %v17991_v52  ;;  %12431 = vmatpush1.bf16.msra.mxu1 %v17993_v55  ;;  %v11444_v52 = vld [vmem:[#allocation14 + $0x1020] sm:$0xff] }
0x1826   :  { %12457 = vmatprep.subr.bf16.mxu0 %v18108_v56  ;;  %12498 = vmatprep.subr.bf16.mxu1 %v18110_v1  ;;  %v11452_v55 = vld [vmem:[#allocation14 + $0x1060] sm:$0xff]  ;;  %v11445_v56 = vld [vmem:[#allocation14 + $0x1028] sm:$0xff] }
0x1827   :  { %v11453_v1 = vld [vmem:[#allocation14 + $0x1068] sm:$0xff]  ;;  %v17996_v9 = vcombine.high %v11444_v52, %v11452_v55  ;;  %v17995_v4 = vcombine.low %v11444_v52, %v11452_v55 }
0x1828   :  { %12408 = vmatmul.mubr.bf16.vlgmr.msra.gmra.mxu0 %v21553_v50  ;;  %12449 = vmatmul.mubr.bf16.vlgmr.msra.gmra.mxu1 %v21553_v50  ;;  %v17998_v44 = vcombine.high %v11445_v56, %v11453_v1  ;;  %v17997_v5 = vcombine.low %v11445_v56, %v11453_v1 }
0x1829   :  { %12458 = vmatpush1.bf16.msra.mxu0 %v18107_v61  ;;  %12499 = vmatpush1.bf16.msra.mxu1 %v18109_v62  ;;  %v11558_v61 = vld [vmem:[#allocation14 + $0x13b0] sm:$0xff] }
0x182a   :  { %12459 = vmatprep.subr.bf16.mxu0 %v18092_v41  ;;  %12500 = vmatprep.subr.bf16.mxu1 %v18094_v63  ;;  %v11566_v62 = vld [vmem:[#allocation14 + $0x13f0] sm:$0xff]  ;;  %v11559_v41 = vld [vmem:[#allocation14 + $0x13b8] sm:$0xff] }
0x182b   :  { %12489 = vmatprep.mubr.bf16.mxu0 %v21045_v39  ;;  %12530 = vmatprep.mubr.bf16.mxu1 %v21045_v39  ;;  %v11567_v63 = vld [vmem:[#allocation14 + $0x13f8] sm:$0xff]  ;;  %v18112_v54 = vcombine.high %v11558_v61, %v11566_v62  ;;  %v18111_v13 = vcombine.low %v11558_v61, %v11566_v62 }
0x182c   :  { %v18114_v6 = vcombine.high %v11559_v41, %v11567_v63  ;;  %v18113_v16 = vcombine.low %v11559_v41, %v11567_v63 }
0x182d   :  { %12460 = vmatpush1.bf16.msra.mxu0 %v18091_v48  ;;  %12501 = vmatpush1.bf16.msra.mxu1 %v18093_v7  ;;  %v11542_v48 = vld [vmem:[#allocation14 + $0x1330] sm:$0xff] }
0x182e   :  { %12461 = vmatprep.subr.bf16.mxu0 %v18076_v11  ;;  %12502 = vmatprep.subr.bf16.mxu1 %v18078_v12  ;;  %v11550_v7 = vld [vmem:[#allocation14 + $0x1370] sm:$0xff]  ;;  %v11543_v11 = vld [vmem:[#allocation14 + $0x1338] sm:$0xff] }
0x182f   :  { %v11551_v12 = vld [vmem:[#allocation14 + $0x1378] sm:$0xff]  ;;  %v18096_v57 = vcombine.high %v11542_v48, %v11550_v7  ;;  %v18095_v31 = vcombine.low %v11542_v48, %v11550_v7 }
0x1830   :  { %v18098_v20 = vcombine.high %v11543_v11, %v11551_v12  ;;  %v18097_v25 = vcombine.low %v11543_v11, %v11551_v12 }
0x1831   :  { %12462 = vmatpush1.bf16.msra.mxu0 %v18075_v22  ;;  %12503 = vmatpush1.bf16.msra.mxu1 %v18077_v8  ;;  %v11526_v22 = vld [vmem:[#allocation14 + $0x12b0] sm:$0xff] }
0x1832   :  { %12463 = vmatprep.subr.bf16.mxu0 %v18060_v23  ;;  %12504 = vmatprep.subr.bf16.mxu1 %v18062_v24  ;;  %v11534_v8 = vld [vmem:[#allocation14 + $0x12f0] sm:$0xff]  ;;  %v11527_v23 = vld [vmem:[#allocation14 + $0x12b8] sm:$0xff] }
0x1833   :  { %v11535_v24 = vld [vmem:[#allocation14 + $0x12f8] sm:$0xff]  ;;  %v18080_v32 = vcombine.high %v11526_v22, %v11534_v8  ;;  %v18079_v37 = vcombine.low %v11526_v22, %v11534_v8 }
0x1834   :  { %v18082_v33 = vcombine.high %v11527_v23, %v11535_v24  ;;  %v18081_v38 = vcombine.low %v11527_v23, %v11535_v24  ;;  %v20396_v22 = vld [vmem:[#allocation17 + $0x1038] sm:$0xff]   ;;  %v20398_v23 = vld [vmem:[#allocation17 + $0x1070] sm:$0xff]  }
0x1835   :  { %12464 = vmatpush1.bf16.msra.mxu0 %v18059_v53  ;;  %12505 = vmatpush1.bf16.msra.mxu1 %v18061_v60  ;;  %v11510_v53 = vld [vmem:[#allocation14 + $0x1230] sm:$0xff]  ;;  %v20397_v8 = vld [vmem:[#allocation17 + $0x10b8] sm:$0xff]  }
0x1836   :  { %12465 = vmatprep.subr.bf16.mxu0 %v18044_v35  ;;  %12506 = vmatprep.subr.bf16.mxu1 %v18046_v36  ;;  %v11518_v60 = vld [vmem:[#allocation14 + $0x1270] sm:$0xff]  ;;  %v11511_v35 = vld [vmem:[#allocation14 + $0x1238] sm:$0xff] }
0x1837   :  { %v11519_v36 = vld [vmem:[#allocation14 + $0x1278] sm:$0xff]  ;;  %v18064_v40 = vcombine.high %v11510_v53, %v11518_v60  ;;  %v18063_v59 = vcombine.low %v11510_v53, %v11518_v60  ;;  %v20399_v24 = vld [vmem:[#allocation17 + $0x10f0] sm:$0xff]   ;;  %v20404_v53 = vld [vmem:[#allocation17 + $0x1028] sm:$0xff]  }
0x1838   :  { %v18066_v17 = vcombine.high %v11511_v35, %v11519_v36  ;;  %v18065_v46 = vcombine.low %v11511_v35, %v11519_v36  ;;  %v20405_v60 = vld [vmem:[#allocation17 + $0x10a8] sm:$0xff]   ;;  %v20406_v35 = vld [vmem:[#allocation17 + $0x1060] sm:$0xff]  }
0x1839   :  { %12466 = vmatpush1.bf16.msra.mxu0 %v18043_v3  ;;  %12507 = vmatpush1.bf16.msra.mxu1 %v18045_v42  ;;  %v11494_v3 = vld [vmem:[#allocation14 + $0x11b0] sm:$0xff]  ;;  %v20407_v36 = vld [vmem:[#allocation17 + $0x10e0] sm:$0xff]  }
0x183a   :  { %12467 = vmatprep.subr.bf16.mxu0 %v18028_v43  ;;  %12508 = vmatprep.subr.bf16.mxu1 %v18030_v45  ;;  %v11502_v42 = vld [vmem:[#allocation14 + $0x11f0] sm:$0xff]  ;;  %v11495_v43 = vld [vmem:[#allocation14 + $0x11b8] sm:$0xff] }
0x183b   :  { %v11503_v45 = vld [vmem:[#allocation14 + $0x11f8] sm:$0xff]  ;;  %v18048_v47 = vcombine.high %v11494_v3, %v11502_v42  ;;  %v18047_v52 = vcombine.low %v11494_v3, %v11502_v42  ;;  %v20414_v42 = vld [vmem:[#allocation17 + $0x1050] sm:$0xff]  }
0x183c   :  { %v18050_v28 = vcombine.high %v11495_v43, %v11503_v45  ;;  %v18049_v55 = vcombine.low %v11495_v43, %v11503_v45  ;;  %v20413_v3 = vld [vmem:[#allocation17 + $0x1098] sm:$0xff]   ;;  %v20415_v43 = vld [vmem:[#allocation17 + $0x10d0] sm:$0xff]  }
0x183d   :  { %12468 = vmatpush1.bf16.msra.mxu0 %v18027_v58  ;;  %12509 = vmatpush1.bf16.msra.mxu1 %v18029_v10  ;;  %v11478_v58 = vld [vmem:[#allocation14 + $0x1130] sm:$0xff] }
0x183e   :  { %12469 = vmatprep.subr.bf16.mxu0 %v18012_v51  ;;  %12510 = vmatprep.subr.bf16.mxu1 %v18014_v2  ;;  %v11486_v10 = vld [vmem:[#allocation14 + $0x1170] sm:$0xff]  ;;  %v11479_v51 = vld [vmem:[#allocation14 + $0x1138] sm:$0xff] }
0x183f   :  { %v11487_v2 = vld [vmem:[#allocation14 + $0x1178] sm:$0xff]  ;;  %v18032_v56 = vcombine.high %v11478_v58, %v11486_v10  ;;  %v18031_v61 = vcombine.low %v11478_v58, %v11486_v10  ;;  %v20416_v45 = vld [vmem:[#allocation17 + $0x1010] sm:$0xff]   ;;  %v20421_v58 = vld [vmem:[#allocation17 + $0x1088] sm:$0xff]  }
0x1840   :  { %v18034_v1 = vcombine.high %v11479_v51, %v11487_v2  ;;  %v18033_v62 = vcombine.low %v11479_v51, %v11487_v2  ;;  %v20422_v10 = vld [vmem:[#allocation17 + $0x1040] sm:$0xff]  }
0x1841   :  { %12470 = vmatpush1.bf16.msra.mxu0 %v18011_v34  ;;  %12511 = vmatpush1.bf16.msra.mxu1 %v18013_v21  ;;  %v11462_v34 = vld [vmem:[#allocation14 + $0x10b0] sm:$0xff]  ;;  %v20423_v51 = vld [vmem:[#allocation17 + $0x10c0] sm:$0xff]  }
0x1842   :  { %12471 = vmatprep.subr.bf16.mxu0 %v17996_v9  ;;  %12512 = vmatprep.subr.bf16.mxu1 %v17998_v44  ;;  %v11470_v21 = vld [vmem:[#allocation14 + $0x10f0] sm:$0xff]  ;;  %v11463_v9 = vld [vmem:[#allocation14 + $0x10b8] sm:$0xff]  ;;  %v20424_v2 = vld [vmem:[#allocation17 + $0x1000] sm:$0xff]  }
0x1843   :  { %v11471_v44 = vld [vmem:[#allocation14 + $0x10f8] sm:$0xff]  ;;  %v18016_v41 = vcombine.high %v11462_v34, %v11470_v21  ;;  %v18015_v48 = vcombine.low %v11462_v34, %v11470_v21 }
0x1844   :  { %v18018_v63 = vcombine.high %v11463_v9, %v11471_v44  ;;  %v18017_v7 = vcombine.low %v11463_v9, %v11471_v44 }
0x1845   :  { %12472 = vmatpush1.bf16.msra.mxu0 %v17995_v4  ;;  %12513 = vmatpush1.bf16.msra.mxu1 %v17997_v5  ;;  %v11446_v4 = vld [vmem:[#allocation14 + $0x1030] sm:$0xff] }
0x1846   :  { %12539 = vmatprep.subr.bf16.mxu0 %v18112_v54  ;;  %12580 = vmatprep.subr.bf16.mxu1 %v18114_v6  ;;  %v11454_v5 = vld [vmem:[#allocation14 + $0x1070] sm:$0xff]  ;;  %v11447_v54 = vld [vmem:[#allocation14 + $0x1038] sm:$0xff] }
0x1847   :  { %v11455_v6 = vld [vmem:[#allocation14 + $0x1078] sm:$0xff]  ;;  %v18000_v11 = vcombine.high %v11446_v4, %v11454_v5 }
0x1848   :  { %12490 = vmatmul.mubr.bf16.vlgmr.msra.gmra.mxu0 %v21553_v50  ;;  %12531 = vmatmul.mubr.bf16.vlgmr.msra.gmra.mxu1 %v21553_v50  ;;  %v18002_v12 = vcombine.high %v11447_v54, %v11455_v6 }
0x1849   :  { %12540 = vmatpush1.bf16.msra.mxu0 %v18111_v13  ;;  %12581 = vmatpush1.bf16.msra.mxu1 %v18113_v16  ;;  %v17999_v13 = vcombine.low %v11446_v4, %v11454_v5  ;;  %v18001_v16 = vcombine.low %v11447_v54, %v11455_v6 }
0x184a   :  { %12541 = vmatprep.subr.bf16.mxu0 %v18096_v57  ;;  %12582 = vmatprep.subr.bf16.mxu1 %v18098_v20  ;;  %v20394_v57 = vld [vmem:[#allocation17 + $0x1078] sm:$0xff]  }
0x184b   :  { %12571 = vmatprep.mubr.bf16.mxu0 %v21045_v39  ;;  %12612 = vmatprep.mubr.bf16.mxu1 %v21045_v39  ;;  %v20395_v20 = vld [vmem:[#allocation17 + $0x10f8] sm:$0xff]  }
0x184d   :  { %12542 = vmatpush1.bf16.msra.mxu0 %v18095_v31  ;;  %12583 = vmatpush1.bf16.msra.mxu1 %v18097_v25  ;;  %v20400_v31 = vld [vmem:[#allocation17 + $0x1030] sm:$0xff]  }
0x184e   :  { %12543 = vmatprep.subr.bf16.mxu0 %v18080_v32  ;;  %12584 = vmatprep.subr.bf16.mxu1 %v18082_v33  ;;  %v20401_v25 = vld [vmem:[#allocation17 + $0x10b0] sm:$0xff]   ;;  %v20402_v32 = vld [vmem:[#allocation17 + $0x1068] sm:$0xff]  }
0x184f   :  { %v20403_v33 = vld [vmem:[#allocation17 + $0x10e8] sm:$0xff]  }
0x1851   :  { %12544 = vmatpush1.bf16.msra.mxu0 %v18079_v37  ;;  %12585 = vmatpush1.bf16.msra.mxu1 %v18081_v38  ;;  %v20408_v37 = vld [vmem:[#allocation17 + $0x1020] sm:$0xff]   ;;  %v20410_v38 = vld [vmem:[#allocation17 + $0x1058] sm:$0xff]  }
0x1852   :  { %12545 = vmatprep.subr.bf16.mxu0 %v18064_v40  ;;  %12586 = vmatprep.subr.bf16.mxu1 %v18066_v17  ;;  %v20411_v40 = vld [vmem:[#allocation17 + $0x10d8] sm:$0xff]  }
0x1853   :  { %v20412_v17 = vld [vmem:[#allocation17 + $0x1018] sm:$0xff]  }
0x1855   :  { %12546 = vmatpush1.bf16.msra.mxu0 %v18063_v59  ;;  %12587 = vmatpush1.bf16.msra.mxu1 %v18065_v46  ;;  %v20417_v59 = vld [vmem:[#allocation17 + $0x1090] sm:$0xff]   ;;  %v20418_v46 = vld [vmem:[#allocation17 + $0x1048] sm:$0xff]  }
0x1856   :  { %12547 = vmatprep.subr.bf16.mxu0 %v18048_v47  ;;  %12588 = vmatprep.subr.bf16.mxu1 %v18050_v28  ;;  %v20419_v47 = vld [vmem:[#allocation17 + $0x10c8] sm:$0xff]  }
0x1857   :  { %v20420_v28 = vld [vmem:[#allocation17 + $0x1008] sm:$0xff]  }
0x1859   :  { %12548 = vmatpush1.bf16.msra.mxu0 %v18047_v52  ;;  %12589 = vmatpush1.bf16.msra.mxu1 %v18049_v55  ;;  %v20425_v52 = vld [vmem:[#allocation17 + $0x1080] sm:$0xff]   ;;  %v20426_v55 = vld [vmem:[#allocation17 + $0x1178] sm:$0xff]  }
0x185a   :  { %12549 = vmatprep.subr.bf16.mxu0 %v18032_v56  ;;  %12590 = vmatprep.subr.bf16.mxu1 %v18034_v1  ;;  %v20427_v56 = vld [vmem:[#allocation17 + $0x11f8] sm:$0xff]   ;;  %v21569_v1 = vld [vmem:[#allocation16 + $0x40] sm:$0xff] }
0x185b   :  { %v11576_v34 = vrot.slane %v21569_v1, %v21250_v26  ;;  %v11584_v21 = vrot.slane %v21569_v1, %v21253_v27  ;;  %v11580_v9 = vrot.slane %v21569_v1, %v21258_v29  ;;  %v11588_v44 = vrot.slane %v21569_v1, %v21261_v30 }
0x185d   :  { %12550 = vmatpush1.bf16.msra.mxu0 %v18031_v61  ;;  %12591 = vmatpush1.bf16.msra.mxu1 %v18033_v62 }
0x185e   :  { %12551 = vmatprep.subr.bf16.mxu0 %v18016_v41  ;;  %12592 = vmatprep.subr.bf16.mxu1 %v18018_v63 }
0x1861   :  { %12552 = vmatpush1.bf16.msra.mxu0 %v18015_v48  ;;  %12593 = vmatpush1.bf16.msra.mxu1 %v18017_v7 }
0x1862   :  { %12553 = vmatprep.subr.bf16.mxu0 %v18000_v11  ;;  %12594 = vmatprep.subr.bf16.mxu1 %v18002_v12 }
0x1865   :  { %12554 = vmatpush1.bf16.msra.mxu0 %v17999_v13  ;;  %12595 = vmatpush1.bf16.msra.mxu1 %v18001_v16 }
0x1866   :  { %19271 = vmatprep.subr.bf16.mxu0 %v20394_v57  ;;  %19293 = vmatprep.subr.bf16.mxu1 %v20395_v20 }
0x1868   :  { %12572 = vmatmul.mubr.bf16.vlgmr.msra.gmra.mxu0 %v21553_v50  ;;  %12613 = vmatmul.mubr.bf16.vlgmr.msra.gmra.mxu1 %v21553_v50  ;;  %v20409_v50 = vld [vmem:[#allocation17 + $0x10a0] sm:$0xff]  }
0x1869   :  { %19272 = vmatpush3.bf16.msra.mxu0 %v20396_v22  ;;  %19294 = vmatpush3.bf16.msra.mxu1 %v20397_v8 }
0x186a   :  { %19273 = vmatprep.subr.bf16.mxu0 %v20398_v23  ;;  %19295 = vmatprep.subr.bf16.mxu1 %v20399_v24  ;;  %v20428_v23 = vld [vmem:[#allocation17 + $0x1138] sm:$0xff]  }
0x186b   :  { %v20429_v24 = vld [vmem:[#allocation17 + $0x11b8] sm:$0xff]  }
0x186d   :  { %19274 = vmatpush3.bf16.msra.mxu0 %v20400_v31  ;;  %19296 = vmatpush3.bf16.msra.mxu1 %v20401_v25 }
0x186e   :  { %19275 = vmatprep.subr.bf16.mxu0 %v20402_v32  ;;  %19297 = vmatprep.subr.bf16.mxu1 %v20403_v33  ;;  %v20430_v32 = vld [vmem:[#allocation17 + $0x1170] sm:$0xff]  }
0x186f   :  { %v20431_v33 = vld [vmem:[#allocation17 + $0x11f0] sm:$0xff]  }
0x1871   :  { %19276 = vmatpush3.bf16.msra.mxu0 %v20404_v53  ;;  %19298 = vmatpush3.bf16.msra.mxu1 %v20405_v60  ;;  %v20432_v53 = vld [vmem:[#allocation17 + $0x1130] sm:$0xff]  }
0x1872   :  { %19277 = vmatprep.subr.bf16.mxu0 %v20406_v35  ;;  %19299 = vmatprep.subr.bf16.mxu1 %v20407_v36  ;;  %v20433_v60 = vld [vmem:[#allocation17 + $0x11b0] sm:$0xff]   ;;  %v20434_v35 = vld [vmem:[#allocation17 + $0x1168] sm:$0xff]  }
0x1873   :  { %v20435_v36 = vld [vmem:[#allocation17 + $0x11e8] sm:$0xff]  }
0x1875   :  { %19278 = vmatpush3.bf16.msra.mxu0 %v20408_v37  ;;  %19300 = vmatpush3.bf16.msra.mxu1 %v20409_v50  ;;  %v20436_v37 = vld [vmem:[#allocation17 + $0x1128] sm:$0xff]  }
0x1876   :  { %19279 = vmatprep.subr.bf16.mxu0 %v20410_v38  ;;  %19301 = vmatprep.subr.bf16.mxu1 %v20411_v40  ;;  %v20437_v50 = vld [vmem:[#allocation17 + $0x11a8] sm:$0xff]   ;;  %v20438_v38 = vld [vmem:[#allocation17 + $0x1160] sm:$0xff]  }
0x1877   :  { %v20439_v40 = vld [vmem:[#allocation17 + $0x11e0] sm:$0xff]  }
0x1879   :  { %19280 = vmatpush3.bf16.msra.mxu0 %v20412_v17  ;;  %19302 = vmatpush3.bf16.msra.mxu1 %v20413_v3  ;;  %v20440_v17 = vld [vmem:[#allocation17 + $0x1120] sm:$0xff]  }
0x187a   :  { %19281 = vmatprep.subr.bf16.mxu0 %v20414_v42  ;;  %19303 = vmatprep.subr.bf16.mxu1 %v20415_v43  ;;  %v20441_v3 = vld [vmem:[#allocation17 + $0x11a0] sm:$0xff]   ;;  %v20442_v42 = vld [vmem:[#allocation17 + $0x1158] sm:$0xff]  }
0x187b   :  { %v20443_v43 = vld [vmem:[#allocation17 + $0x11d8] sm:$0xff]  }
0x187d   :  { %19282 = vmatpush3.bf16.msra.mxu0 %v20416_v45  ;;  %19304 = vmatpush3.bf16.msra.mxu1 %v20417_v59  ;;  %v20444_v45 = vld [vmem:[#allocation17 + $0x1118] sm:$0xff]  }
0x187e   :  { %19283 = vmatprep.subr.bf16.mxu0 %v20418_v46  ;;  %19305 = vmatprep.subr.bf16.mxu1 %v20419_v47  ;;  %v20445_v59 = vld [vmem:[#allocation17 + $0x1198] sm:$0xff]   ;;  %v20446_v46 = vld [vmem:[#allocation17 + $0x1150] sm:$0xff]  }
0x187f   :  { %v20447_v47 = vld [vmem:[#allocation17 + $0x11d0] sm:$0xff]  }
0x1881   :  { %19284 = vmatpush3.bf16.msra.mxu0 %v20420_v28  ;;  %19306 = vmatpush3.bf16.msra.mxu1 %v20421_v58  ;;  %v20448_v28 = vld [vmem:[#allocation17 + $0x1110] sm:$0xff]  }
0x1882   :  { %19285 = vmatprep.subr.bf16.mxu0 %v20422_v10  ;;  %19307 = vmatprep.subr.bf16.mxu1 %v20423_v51  ;;  %v20449_v58 = vld [vmem:[#allocation17 + $0x1190] sm:$0xff]   ;;  %v20450_v10 = vld [vmem:[#allocation17 + $0x1148] sm:$0xff]  }
0x1883   :  { %v20451_v51 = vld [vmem:[#allocation17 + $0x11c8] sm:$0xff]  }
0x1885   :  { %19286 = vmatpush3.bf16.msra.mxu0 %v20424_v2  ;;  %19308 = vmatpush3.bf16.msra.mxu1 %v20425_v52  ;;  %v11592_v2 = vrot.slane %v21569_v1, %v21272_v14  ;;  %v11600_v52 = vrot.slane %v21569_v1, %v21275_v15 }
0x1886   :  { %19315 = vmatprep.subr.bf16.mxu0 %v20426_v55  ;;  %19337 = vmatprep.subr.bf16.mxu1 %v20427_v56  ;;  %v11596_v55 = vrot.slane %v21569_v1, %v21278_v18  ;;  %v11604_v56 = vrot.slane %v21569_v1, %v21281_v19 }
0x18c8   :  { %v12327_v61 = vpop.f32.mrf.mxu0  ;;  %v12368_v62 = vpop.f32.mrf.mxu1 }
0x18c9   :  { %v12328_v41 = vadd.f32 %v12327_v61, %v11576_v34  ;;  %v12369_v63 = vadd.f32 %v12368_v62, %v11584_v21  ;;  %v20452_v34 = vld [vmem:[#allocation17 + $0x1108] sm:$0xff]   ;;  %v20454_v61 = vld [vmem:[#allocation17 + $0x1140] sm:$0xff]  }
0x18ca   :  { %v12329_v4 = vpop.f32.mrf.mxu0  ;;  %v12370_v5 = vpop.f32.mrf.mxu1  ;;  %v20453_v21 = vld [vmem:[#allocation17 + $0x1188] sm:$0xff]   ;;  %v20455_v62 = vld [vmem:[#allocation17 + $0x11c0] sm:$0xff]  }
0x18cb   :  { %v12330_v54 = vadd.f32 %v12329_v4, %v11580_v9  ;;  %v12371_v6 = vadd.f32 %v12370_v5, %v11588_v44  ;;  %v12621_v48 = vmax.f32 %v12328_v41, 0.0  ;;  %v12623_v7 = vmax.f32 %v12369_v63, 0.0 }
0x18cc   :  { %v12331_v11 = vpop.f32.mrf.mxu0  ;;  %v12372_v12 = vpop.f32.mrf.mxu1 }
0x18cd   :  { %v12622_v13 = vmax.f32 %v12330_v54, 0.0  ;;  %v12624_v16 = vmax.f32 %v12371_v6, 0.0  ;;  %v12637_v31 = vpack.c.bf16 %v12621_v48, %v12621_v48  ;;  %v12639_v25 = vpack.c.bf16 %v12623_v7, %v12623_v7  ;;  %v20456_v48 = vld [vmem:[#allocation17 + $0x1100] sm:$0xff]  }
0x18ce   :  { %v12332_v57 = vpop.f32.mrf.mxu0  ;;  %v12373_v20 = vpop.f32.mrf.mxu1  ;;  %v20457_v7 = vld [vmem:[#allocation17 + $0x1180] sm:$0xff]  }
0x18cf   :  { %v12638_v22 = vpack.c.bf16 %v12622_v13, %v12622_v13  ;;  %v12640_v8 = vpack.c.bf16 %v12624_v16, %v12624_v16  ;;  %v20458_v16 = vld [vmem:[#allocation17 + $0x1278] sm:$0xff]  }
0x18d0   :  { %v20459_v57 = vld [vmem:[#allocation17 + $0x12f8] sm:$0xff]  }
0x18d1   :  { %13718 = vmatprep.mubr.bf16.mxu0 %v12638_v22  ;;  %13758 = vmatprep.mubr.bf16.mxu1 %v12640_v8 }
0x18d2   :  { %13719 = vmatmul.mubr.bf16.vlgmr.msra.gmra.mxu0 %v12637_v31  ;;  %13759 = vmatmul.mubr.bf16.vlgmr.msra.gmra.mxu1 %v12639_v25  ;;  %v20460_v25 = vld [vmem:[#allocation17 + $0x1238] sm:$0xff]  }
0x18d3   :  { %19316 = vmatpush3.bf16.msra.mxu0 %v20428_v23  ;;  %19338 = vmatpush3.bf16.msra.mxu1 %v20429_v24 }
0x18d4   :  { %19317 = vmatprep.subr.bf16.mxu0 %v20430_v32  ;;  %19339 = vmatprep.subr.bf16.mxu1 %v20431_v33  ;;  %v20461_v32 = vld [vmem:[#allocation17 + $0x12b8] sm:$0xff]  }
0x18d7   :  { %19318 = vmatpush3.bf16.msra.mxu0 %v20432_v53  ;;  %19340 = vmatpush3.bf16.msra.mxu1 %v20433_v60  ;;  %v20462_v60 = vld [vmem:[#allocation17 + $0x1270] sm:$0xff]  }
0x18d8   :  { %19319 = vmatprep.subr.bf16.mxu0 %v20434_v35  ;;  %19341 = vmatprep.subr.bf16.mxu1 %v20435_v36  ;;  %v20463_v35 = vld [vmem:[#allocation17 + $0x12f0] sm:$0xff]  }
0x18d9   :  { %v20464_v36 = vld [vmem:[#allocation17 + $0x1230] sm:$0xff]  }
0x18db   :  { %19320 = vmatpush3.bf16.msra.mxu0 %v20436_v37  ;;  %19342 = vmatpush3.bf16.msra.mxu1 %v20437_v50  ;;  %v20465_v37 = vld [vmem:[#allocation17 + $0x12b0] sm:$0xff]   ;;  %v20466_v50 = vld [vmem:[#allocation17 + $0x1268] sm:$0xff]  }
0x18dc   :  { %19321 = vmatprep.subr.bf16.mxu0 %v20438_v38  ;;  %19343 = vmatprep.subr.bf16.mxu1 %v20439_v40  ;;  %v20467_v38 = vld [vmem:[#allocation17 + $0x12e8] sm:$0xff]  }
0x18dd   :  { %v20468_v40 = vld [vmem:[#allocation17 + $0x1228] sm:$0xff]  }
0x18df   :  { %19322 = vmatpush3.bf16.msra.mxu0 %v20440_v17  ;;  %19344 = vmatpush3.bf16.msra.mxu1 %v20441_v3  ;;  %v20469_v17 = vld [vmem:[#allocation17 + $0x12a8] sm:$0xff]   ;;  %v20470_v3 = vld [vmem:[#allocation17 + $0x1260] sm:$0xff]  }
0x18e0   :  { %19323 = vmatprep.subr.bf16.mxu0 %v20442_v42  ;;  %19345 = vmatprep.subr.bf16.mxu1 %v20443_v43  ;;  %v20471_v42 = vld [vmem:[#allocation17 + $0x12e0] sm:$0xff]  }
0x18e1   :  { %v20472_v43 = vld [vmem:[#allocation17 + $0x1220] sm:$0xff]  }
0x18e3   :  { %19324 = vmatpush3.bf16.msra.mxu0 %v20444_v45  ;;  %19346 = vmatpush3.bf16.msra.mxu1 %v20445_v59  ;;  %v20473_v45 = vld [vmem:[#allocation17 + $0x12a0] sm:$0xff]   ;;  %v20474_v59 = vld [vmem:[#allocation17 + $0x1258] sm:$0xff]  }
0x18e4   :  { %19325 = vmatprep.subr.bf16.mxu0 %v20446_v46  ;;  %19347 = vmatprep.subr.bf16.mxu1 %v20447_v47  ;;  %v20475_v46 = vld [vmem:[#allocation17 + $0x12d8] sm:$0xff]  }
0x18e5   :  { %v20476_v47 = vld [vmem:[#allocation17 + $0x1218] sm:$0xff]  }
0x18e7   :  { %19326 = vmatpush3.bf16.msra.mxu0 %v20448_v28  ;;  %19348 = vmatpush3.bf16.msra.mxu1 %v20449_v58  ;;  %v20477_v28 = vld [vmem:[#allocation17 + $0x1298] sm:$0xff]   ;;  %v20478_v58 = vld [vmem:[#allocation17 + $0x1250] sm:$0xff]  }
0x18e8   :  { %v12409_v9 = vpop.f32.mrf.mxu0  ;;  %v12450_v44 = vpop.f32.mrf.mxu1  ;;  %19327 = vmatprep.subr.bf16.mxu0 %v20450_v10  ;;  %19349 = vmatprep.subr.bf16.mxu1 %v20451_v51  ;;  %v20479_v10 = vld [vmem:[#allocation17 + $0x12d0] sm:$0xff]   ;;  %v21587_v51 = vld [vmem:[#allocation16 + $0x48] sm:$0xff] }
0x18e9   :  { %v12410_v41 = vadd.f32 %v12409_v9, %v11592_v2  ;;  %v12451_v63 = vadd.f32 %v12450_v44, %v11600_v52  ;;  %v20480_v2 = vld [vmem:[#allocation17 + $0x1210] sm:$0xff]   ;;  %v11612_v9 = vrot.slane %v21587_v51, %v21258_v29  ;;  %v11620_v44 = vrot.slane %v21587_v51, %v21261_v30 }
0x18ea   :  { %v12411_v4 = vpop.f32.mrf.mxu0  ;;  %v12452_v5 = vpop.f32.mrf.mxu1  ;;  %v20481_v52 = vld [vmem:[#allocation17 + $0x1290] sm:$0xff]  }
0x18eb   :  { %v12412_v54 = vadd.f32 %v12411_v4, %v11596_v55  ;;  %v12453_v6 = vadd.f32 %v12452_v5, %v11604_v56  ;;  %19328 = vmatpush3.bf16.msra.mxu0 %v20452_v34  ;;  %19350 = vmatpush3.bf16.msra.mxu1 %v20453_v21  ;;  %v12625_v11 = vmax.f32 %v12410_v41, 0.0  ;;  %v12627_v1 = vmax.f32 %v12451_v63, 0.0  ;;  %v20482_v55 = vld [vmem:[#allocation17 + $0x1248] sm:$0xff]   ;;  %v20486_v4 = vld [vmem:[#allocation17 + $0x1240] sm:$0xff]  }
0x18ec   :  { %v12413_v12 = vpop.f32.mrf.mxu0  ;;  %v12454_v13 = vpop.f32.mrf.mxu1  ;;  %19329 = vmatprep.subr.bf16.mxu0 %v20454_v61  ;;  %19351 = vmatprep.subr.bf16.mxu1 %v20455_v62  ;;  %v20483_v56 = vld [vmem:[#allocation17 + $0x12c8] sm:$0xff]   ;;  %v11608_v34 = vrot.slane %v21587_v51, %v21250_v26  ;;  %v11616_v21 = vrot.slane %v21587_v51, %v21253_v27  ;;  %v20487_v5 = vld [vmem:[#allocation17 + $0x12c0] sm:$0xff]  }
0x18ed   :  { %v12626_v20 = vmax.f32 %v12412_v54, 0.0  ;;  %v12628_v22 = vmax.f32 %v12453_v6, 0.0  ;;  %v12641_v33 = vpack.c.bf16 %v12625_v11, %v12625_v11  ;;  %v12643_v53 = vpack.c.bf16 %v12627_v1, %v12627_v1  ;;  %v20484_v61 = vld [vmem:[#allocation17 + $0x1208] sm:$0xff]   ;;  %v20488_v12 = vld [vmem:[#allocation17 + $0x1200] sm:$0xff]  }
0x18ee   :  { %v12414_v8 = vpop.f32.mrf.mxu0  ;;  %v12455_v23 = vpop.f32.mrf.mxu1  ;;  %v20485_v62 = vld [vmem:[#allocation17 + $0x1288] sm:$0xff]   ;;  %v20489_v13 = vld [vmem:[#allocation17 + $0x1280] sm:$0xff]  }
0x18ef   :  { %v12642_v24 = vpack.c.bf16 %v12626_v20, %v12626_v20  ;;  %v12644_v31 = vpack.c.bf16 %v12628_v22, %v12628_v22  ;;  %19330 = vmatpush3.bf16.msra.mxu0 %v20456_v48  ;;  %19352 = vmatpush3.bf16.msra.mxu1 %v20457_v7  ;;  %v20490_v8 = vld [vmem:[#allocation17 + $0x1378] sm:$0xff]  }
0x18f0   :  { %19359 = vmatprep.subr.bf16.mxu0 %v20458_v16  ;;  %19381 = vmatprep.subr.bf16.mxu1 %v20459_v57  ;;  %v20491_v23 = vld [vmem:[#allocation17 + $0x13f8] sm:$0xff]  }
0x18f1   :  { %13798 = vmatprep.mubr.bf16.mxu0 %v12642_v24  ;;  %13838 = vmatprep.mubr.bf16.mxu1 %v12644_v31 }
0x18f2   :  { %13799 = vmatmul.mubr.bf16.vlgmr.msra.gmra.mxu0 %v12641_v33  ;;  %13839 = vmatmul.mubr.bf16.vlgmr.msra.gmra.mxu1 %v12643_v53 }
0x18f3   :  { %19360 = vmatpush3.bf16.msra.mxu0 %v20460_v25  ;;  %19382 = vmatpush3.bf16.msra.mxu1 %v20461_v32 }
0x18f4   :  { %19361 = vmatprep.subr.bf16.mxu0 %v20462_v60  ;;  %19383 = vmatprep.subr.bf16.mxu1 %v20463_v35  ;;  %v20492_v60 = vld [vmem:[#allocation17 + $0x1338] sm:$0xff]  }
0x18f5   :  { %v20493_v35 = vld [vmem:[#allocation17 + $0x13b8] sm:$0xff]  }
0x18f7   :  { %19362 = vmatpush3.bf16.msra.mxu0 %v20464_v36  ;;  %19384 = vmatpush3.bf16.msra.mxu1 %v20465_v37 }
0x18f8   :  { %19363 = vmatprep.subr.bf16.mxu0 %v20466_v50  ;;  %19385 = vmatprep.subr.bf16.mxu1 %v20467_v38  ;;  %v20494_v50 = vld [vmem:[#allocation17 + $0x1370] sm:$0xff]  }
0x18f9   :  { %v20495_v38 = vld [vmem:[#allocation17 + $0x13f0] sm:$0xff]  }
0x18fb   :  { %19364 = vmatpush3.bf16.msra.mxu0 %v20468_v40  ;;  %19386 = vmatpush3.bf16.msra.mxu1 %v20469_v17  ;;  %v20496_v40 = vld [vmem:[#allocation17 + $0x1330] sm:$0xff]  }
0x18fc   :  { %19365 = vmatprep.subr.bf16.mxu0 %v20470_v3  ;;  %19387 = vmatprep.subr.bf16.mxu1 %v20471_v42  ;;  %v20497_v17 = vld [vmem:[#allocation17 + $0x13b0] sm:$0xff]   ;;  %v20498_v3 = vld [vmem:[#allocation17 + $0x1368] sm:$0xff]  }
0x18fd   :  { %v20499_v42 = vld [vmem:[#allocation17 + $0x13e8] sm:$0xff]  }
0x18ff   :  { %19366 = vmatpush3.bf16.msra.mxu0 %v20472_v43  ;;  %19388 = vmatpush3.bf16.msra.mxu1 %v20473_v45  ;;  %v20500_v43 = vld [vmem:[#allocation17 + $0x1328] sm:$0xff]  }
0x1900   :  { %19367 = vmatprep.subr.bf16.mxu0 %v20474_v59  ;;  %19389 = vmatprep.subr.bf16.mxu1 %v20475_v46  ;;  %v20501_v45 = vld [vmem:[#allocation17 + $0x13a8] sm:$0xff]   ;;  %v20502_v59 = vld [vmem:[#allocation17 + $0x1360] sm:$0xff]  }
0x1901   :  { %v20503_v46 = vld [vmem:[#allocation17 + $0x13e0] sm:$0xff]  }
0x1903   :  { %19368 = vmatpush3.bf16.msra.mxu0 %v20476_v47  ;;  %19390 = vmatpush3.bf16.msra.mxu1 %v20477_v28  ;;  %v20504_v47 = vld [vmem:[#allocation17 + $0x1320] sm:$0xff]  }
0x1904   :  { %19369 = vmatprep.subr.bf16.mxu0 %v20478_v58  ;;  %19391 = vmatprep.subr.bf16.mxu1 %v20479_v10  ;;  %v20505_v28 = vld [vmem:[#allocation17 + $0x13a0] sm:$0xff]   ;;  %v20506_v58 = vld [vmem:[#allocation17 + $0x1358] sm:$0xff]  }
0x1905   :  { %v20507_v10 = vld [vmem:[#allocation17 + $0x13d8] sm:$0xff]  }
0x1907   :  { %19370 = vmatpush3.bf16.msra.mxu0 %v20480_v2  ;;  %19392 = vmatpush3.bf16.msra.mxu1 %v20481_v52  ;;  %v20508_v2 = vld [vmem:[#allocation17 + $0x1318] sm:$0xff]  }
0x1908   :  { %v12491_v41 = vpop.f32.mrf.mxu0  ;;  %v12532_v63 = vpop.f32.mrf.mxu1  ;;  %19371 = vmatprep.subr.bf16.mxu0 %v20482_v55  ;;  %19393 = vmatprep.subr.bf16.mxu1 %v20483_v56  ;;  %v20509_v52 = vld [vmem:[#allocation17 + $0x1398] sm:$0xff]   ;;  %v20510_v55 = vld [vmem:[#allocation17 + $0x1350] sm:$0xff]  }
0x1909   :  { %v12492_v54 = vadd.f32 %v12491_v41, %v11608_v34  ;;  %v12533_v6 = vadd.f32 %v12532_v63, %v11616_v21  ;;  %v20511_v56 = vld [vmem:[#allocation17 + $0x13d0] sm:$0xff]   ;;  %v11628_v41 = vrot.slane %v21587_v51, %v21278_v18  ;;  %v11636_v63 = vrot.slane %v21587_v51, %v21281_v19 }
0x190a   :  { %v12493_v48 = vpop.f32.mrf.mxu0  ;;  %v12534_v7 = vpop.f32.mrf.mxu1  ;;  %v20512_v34 = vld [vmem:[#allocation17 + $0x1310] sm:$0xff]  }
0x190b   :  { %v12494_v11 = vadd.f32 %v12493_v48, %v11612_v9  ;;  %v12535_v1 = vadd.f32 %v12534_v7, %v11620_v44  ;;  %19372 = vmatpush3.bf16.msra.mxu0 %v20484_v61  ;;  %19394 = vmatpush3.bf16.msra.mxu1 %v20485_v62  ;;  %v12629_v16 = vmax.f32 %v12492_v54, 0.0  ;;  %v12631_v57 = vmax.f32 %v12533_v6, 0.0  ;;  %v20513_v21 = vld [vmem:[#allocation17 + $0x1390] sm:$0xff]   ;;  %v20514_v9 = vld [vmem:[#allocation17 + $0x1348] sm:$0xff]   ;;  %v20518_v48 = vld [vmem:[#allocation17 + $0x1340] sm:$0xff]  }
0x190c   :  { %v12495_v20 = vpop.f32.mrf.mxu0  ;;  %v12536_v22 = vpop.f32.mrf.mxu1  ;;  %19373 = vmatprep.subr.bf16.mxu0 %v20486_v4  ;;  %19395 = vmatprep.subr.bf16.mxu1 %v20487_v5  ;;  %v20515_v44 = vld [vmem:[#allocation17 + $0x13c8] sm:$0xff]   ;;  %v11624_v61 = vrot.slane %v21587_v51, %v21272_v14  ;;  %v11632_v62 = vrot.slane %v21587_v51, %v21275_v15  ;;  %v20519_v7 = vld [vmem:[#allocation17 + $0x13c0] sm:$0xff]  }
0x190d   :  { %v12630_v24 = vmax.f32 %v12494_v11, 0.0  ;;  %v12632_v31 = vmax.f32 %v12535_v1, 0.0  ;;  %v12645_v36 = vpack.c.bf16 %v12629_v16, %v12629_v16  ;;  %v12647_v37 = vpack.c.bf16 %v12631_v57, %v12631_v57  ;;  %v20516_v4 = vld [vmem:[#allocation17 + $0x1308] sm:$0xff]   ;;  %v20520_v20 = vld [vmem:[#allocation17 + $0x1300] sm:$0xff]  }
0x190e   :  { %v12496_v25 = vpop.f32.mrf.mxu0  ;;  %v12537_v32 = vpop.f32.mrf.mxu1  ;;  %v20517_v5 = vld [vmem:[#allocation17 + $0x1388] sm:$0xff]   ;;  %v20521_v22 = vld [vmem:[#allocation17 + $0x1380] sm:$0xff]  }
0x190f   :  { %v12646_v33 = vpack.c.bf16 %v12630_v24, %v12630_v24  ;;  %v12648_v53 = vpack.c.bf16 %v12632_v31, %v12632_v31  ;;  %19374 = vmatpush3.bf16.msra.mxu0 %v20488_v12  ;;  %19396 = vmatpush3.bf16.msra.mxu1 %v20489_v13 }
0x1910   :  { %19403 = vmatprep.subr.bf16.mxu0 %v20490_v8  ;;  %19425 = vmatprep.subr.bf16.mxu1 %v20491_v23 }
0x1911   :  { %13878 = vmatprep.mubr.bf16.mxu0 %v12646_v33  ;;  %13918 = vmatprep.mubr.bf16.mxu1 %v12648_v53 }
0x1912   :  { %13879 = vmatmul.mubr.bf16.vlgmr.msra.gmra.mxu0 %v12645_v36  ;;  %13919 = vmatmul.mubr.bf16.vlgmr.msra.gmra.mxu1 %v12647_v37 }
0x1913   :  { %19404 = vmatpush3.bf16.msra.mxu0 %v20492_v60  ;;  %19426 = vmatpush3.bf16.msra.mxu1 %v20493_v35 }
0x1914   :  { %19405 = vmatprep.subr.bf16.mxu0 %v20494_v50  ;;  %19427 = vmatprep.subr.bf16.mxu1 %v20495_v38  ;;  %v18115_v38 = vld [vmem:[#allocation19 + $0x4] ss:$0 sm:$0xff] }
0x1917   :  { %19406 = vmatpush3.bf16.msra.mxu0 %v20496_v40  ;;  %19428 = vmatpush3.bf16.msra.mxu1 %v20497_v17 }
0x1918   :  { %19407 = vmatprep.subr.bf16.mxu0 %v20498_v3  ;;  %19429 = vmatprep.subr.bf16.mxu1 %v20499_v42 }
0x191b   :  { %19408 = vmatpush3.bf16.msra.mxu0 %v20500_v43  ;;  %19430 = vmatpush3.bf16.msra.mxu1 %v20501_v45 }
0x191c   :  { %19409 = vmatprep.subr.bf16.mxu0 %v20502_v59  ;;  %19431 = vmatprep.subr.bf16.mxu1 %v20503_v46 }
0x191f   :  { %19410 = vmatpush3.bf16.msra.mxu0 %v20504_v47  ;;  %19432 = vmatpush3.bf16.msra.mxu1 %v20505_v28 }
0x1920   :  { %19411 = vmatprep.subr.bf16.mxu0 %v20506_v58  ;;  %19433 = vmatprep.subr.bf16.mxu1 %v20507_v10 }
0x1923   :  { %19412 = vmatpush3.bf16.msra.mxu0 %v20508_v2  ;;  %19434 = vmatpush3.bf16.msra.mxu1 %v20509_v52 }
0x1924   :  { %19413 = vmatprep.subr.bf16.mxu0 %v20510_v55  ;;  %19435 = vmatprep.subr.bf16.mxu1 %v20511_v56 }
0x1927   :  { %19414 = vmatpush3.bf16.msra.mxu0 %v20512_v34  ;;  %19436 = vmatpush3.bf16.msra.mxu1 %v20513_v21 }
0x1928   :  { %v12573_v54 = vpop.f32.mrf.mxu0  ;;  %v12614_v6 = vpop.f32.mrf.mxu1  ;;  %19415 = vmatprep.subr.bf16.mxu0 %v20514_v9  ;;  %19437 = vmatprep.subr.bf16.mxu1 %v20515_v44 }
0x1929   :  { %v12574_v11 = vadd.f32 %v12573_v54, %v11624_v61  ;;  %v12615_v1 = vadd.f32 %v12614_v6, %v11632_v62 }
0x192a   :  { %v12575_v12 = vpop.f32.mrf.mxu0  ;;  %v12616_v13 = vpop.f32.mrf.mxu1 }
0x192b   :  { %v12576_v16 = vadd.f32 %v12575_v12, %v11628_v41  ;;  %v12617_v57 = vadd.f32 %v12616_v13, %v11636_v63  ;;  %19416 = vmatpush3.bf16.msra.mxu0 %v20516_v4  ;;  %19438 = vmatpush3.bf16.msra.mxu1 %v20517_v5  ;;  %v12633_v8 = vmax.f32 %v12574_v11, 0.0  ;;  %v12635_v51 = vmax.f32 %v12615_v1, 0.0 }
0x192c   :  { %v12577_v23 = vpop.f32.mrf.mxu0  ;;  %v12618_v24 = vpop.f32.mrf.mxu1  ;;  %19417 = vmatprep.subr.bf16.mxu0 %v20518_v48  ;;  %19439 = vmatprep.subr.bf16.mxu1 %v20519_v7 }
0x192d   :  { %v12634_v31 = vmax.f32 %v12576_v16, 0.0  ;;  %v12636_v25 = vmax.f32 %v12617_v57, 0.0  ;;  %v12649_v35 = vpack.c.bf16 %v12633_v8, %v12633_v8  ;;  %v12651_v36 = vpack.c.bf16 %v12635_v51, %v12635_v51 }
0x192e   :  { %v12578_v32 = vpop.f32.mrf.mxu0  ;;  %v12619_v33 = vpop.f32.mrf.mxu1 }
0x192f   :  { %v12650_v53 = vpack.c.bf16 %v12634_v31, %v12634_v31  ;;  %v12652_v60 = vpack.c.bf16 %v12636_v25, %v12636_v25  ;;  %19418 = vmatpush3.bf16.msra.mxu0 %v20520_v20  ;;  %19440 = vmatpush3.bf16.msra.mxu1 %v20521_v22 }
0x1930   :  { %19760 = vmatprep.subr.bf16.mxu0 %v21043_v0 }
0x1931   :  { %13958 = vmatprep.mubr.bf16.mxu0 %v12650_v53  ;;  %13998 = vmatprep.mubr.bf16.mxu1 %v12652_v60  ;;  %v20522_v60 = vld [vmem:[#allocation8 + $0x178] sm:$0xff]  }
0x1932   :  { %13959 = vmatmul.mubr.bf16.vlgmr.msra.gmra.mxu0 %v12649_v35  ;;  %13999 = vmatmul.mubr.bf16.vlgmr.msra.gmra.mxu1 %v12651_v36  ;;  %v20523_v35 = vld [vmem:[#allocation8 + $0x170] sm:$0xff]  }
0x1933   :  { %19776 = vmatprep.mubr.msk.bf16.mxu0 %vm21044_vm0, %v21043_v0  ;;  %15067 = vmatprep.mubr.bf16.mxu1 %v21045_v39 }
0x1934   :  { %19761 = vmatpush3.bf16.msra.mxu0 %v20522_v60 }
0x1935   :  { %19762 = vmatprep.subr.bf16.mxu0 %v21043_v0 }
0x1938   :  { %19763 = vmatpush3.bf16.msra.mxu0 %v20523_v35 }
0x1939   :  { %19764 = vmatprep.subr.bf16.mxu0 %v21043_v0 }
0x1992   :  { %v19287_v37 = vpop.f32.mrf.mxu0  ;;  %v19309_v50 = vpop.f32.mrf.mxu1 }
0x1994   :  { %v19288_v40 = vpop.f32.mrf.mxu0  ;;  %v19310_v17 = vpop.f32.mrf.mxu1 }
0x1995   :  { %v19289_v3 = vadd.f32 %v19288_v40, %v19287_v37  ;;  %v19311_v42 = vadd.f32 %v19310_v17, %v19309_v50  ;;  %v20524_v40 = vld [vmem:[#allocation8 + $0x168] sm:$0xff]   ;;  %v20525_v17 = vld [vmem:[#allocation8 + $0x160] sm:$0xff]  }
0x1996   :  { %v19290_v43 = vpop.f32.mrf.mxu0  ;;  %v19312_v45 = vpop.f32.mrf.mxu1  ;;  %19765 = vmatpush3.bf16.msra.mxu0 %v20524_v40 }
0x1997   :  { %v13721_v59 = vadd.f32 %v19289_v3, %v18115_v38  ;;  %19766 = vmatprep.subr.bf16.mxu0 %v21043_v0  ;;  %v20527_v3 = vld [vmem:[#allocation8 + $0x150] sm:$0xff]   ;;  %v20529_v43 = vld [vmem:[#allocation8 + $0x140] sm:$0xff]  }
0x1998   :  { %v19291_v46 = vpop.f32.mrf.mxu0  ;;  %v19313_v47 = vpop.f32.mrf.mxu1 }
0x1999   :  { %v13761_v28 = vadd.f32 %v19311_v42, %v13721_v59  ;;  %v20528_v42 = vld [vmem:[#allocation8 + $0x148] sm:$0xff]  }
0x199a   :  { %19767 = vmatpush3.bf16.msra.mxu0 %v20525_v17  ;;  %v14255_v17 = vld [vmem:[#allocation14 + $0x1648] sm:$0xff] }
0x199b   :  { %19768 = vmatprep.subr.bf16.mxu0 %v21043_v0 }
0x19b2   :  { %v19331_v58 = vpop.f32.mrf.mxu0  ;;  %v19353_v10 = vpop.f32.mrf.mxu1 }
0x19b4   :  { %v19332_v2 = vpop.f32.mrf.mxu0  ;;  %v19354_v52 = vpop.f32.mrf.mxu1 }
0x19b5   :  { %v19333_v54 = vadd.f32 %v19332_v2, %v19331_v58  ;;  %v19355_v48 = vadd.f32 %v19354_v52, %v19353_v10  ;;  %v18245_v10 = vld [vmem:[#allocation22 + $0x4] ss:$0 sm:$0xff] }
0x19b6   :  { %v19334_v55 = vpop.f32.mrf.mxu0  ;;  %v19356_v56 = vpop.f32.mrf.mxu1 }
0x19b7   :  { %v13801_v6 = vadd.f32 %v19333_v54, %v13761_v28  ;;  %v18244_v28 = vld [vmem:[#allocation20 + $0x4] ss:$0 sm:$0xff]  ;;  %v18246_v56 = vld [vmem:[#allocation10 + $0x5] ss:$0 sm:$0xff] }
0x19b8   :  { %v19335_v34 = vpop.f32.mrf.mxu0  ;;  %v19357_v21 = vpop.f32.mrf.mxu1 }
0x19b9   :  { %v13841_v11 = vadd.f32 %v19355_v48, %v13801_v6  ;;  %v14303_v6 = vld [vmem:[#allocation14 + $0x17c8] sm:$0xff]  ;;  %v14278_v48 = vld [vmem:[#allocation14 + $0x1700] sm:$0xff] }
0x19d2   :  { %v19375_v9 = vpop.f32.mrf.mxu0  ;;  %v19397_v44 = vpop.f32.mrf.mxu1 }
0x19d4   :  { %v19376_v61 = vpop.f32.mrf.mxu0  ;;  %v19398_v62 = vpop.f32.mrf.mxu1 }
0x19d5   :  { %v19377_v7 = vadd.f32 %v19376_v61, %v19375_v9  ;;  %v19399_v16 = vadd.f32 %v19398_v62, %v19397_v44 }
0x19d6   :  { %v19378_v41 = vpop.f32.mrf.mxu0  ;;  %v19400_v63 = vpop.f32.mrf.mxu1 }
0x19d7   :  { %v13881_v1 = vadd.f32 %v19377_v7, %v13841_v11  ;;  %v14294_v41 = vld [vmem:[#allocation14 + $0x1780] sm:$0xff] }
0x19d8   :  { %v19379_v4 = vpop.f32.mrf.mxu0  ;;  %v19401_v5 = vpop.f32.mrf.mxu1  ;;  %v14302_v63 = vld [vmem:[#allocation14 + $0x17c0] sm:$0xff] }
0x19d9   :  { %v13921_v22 = vadd.f32 %v19399_v16, %v13881_v1  ;;  %v14295_v4 = vld [vmem:[#allocation14 + $0x1788] sm:$0xff]  ;;  %v18369_v5 = vcombine.low %v14294_v41, %v14302_v63  ;;  %v18370_v54 = vcombine.high %v14294_v41, %v14302_v63  ;;  %v14286_v7 = vld [vmem:[#allocation14 + $0x1740] sm:$0xff] }
0x19da   :  { %v18371_v11 = vcombine.low %v14295_v4, %v14303_v6  ;;  %v18372_v1 = vcombine.high %v14295_v4, %v14303_v6  ;;  %v14287_v16 = vld [vmem:[#allocation14 + $0x1748] sm:$0xff] }
0x19db   :  { %15035 = vmatprep.subr.bf16.mxu1 %v18370_v54  ;;  %v14199_v41 = vld [vmem:[#allocation14 + $0x1488] sm:$0xff] }
0x19dc   :  { %15036 = vmatpush1.bf16.msra.mxu1 %v18369_v5  ;;  %v14207_v4 = vld [vmem:[#allocation14 + $0x14c8] sm:$0xff] }
0x19dd   :  { %v18275_v54 = vcombine.low %v14199_v41, %v14207_v4  ;;  %v18276_v6 = vcombine.high %v14199_v41, %v14207_v4  ;;  %v14232_v41 = vld [vmem:[#allocation14 + $0x1590] sm:$0xff]  ;;  %v14233_v4 = vld [vmem:[#allocation14 + $0x1598] sm:$0xff] }
0x19f2   :  { %v19419_v12 = vpop.f32.mrf.mxu0  ;;  %v19441_v13 = vpop.f32.mrf.mxu1 }
0x19f4   :  { %v19420_v57 = vpop.f32.mrf.mxu0  ;;  %v19442_v20 = vpop.f32.mrf.mxu1 }
0x19f5   :  { %v19421_v8 = vadd.f32 %v19420_v57, %v19419_v12  ;;  %v19443_v31 = vadd.f32 %v19442_v20, %v19441_v13  ;;  %v18354_v12 = vcombine.high %v14278_v48, %v14286_v7  ;;  %v14279_v13 = vld [vmem:[#allocation14 + $0x1708] sm:$0xff]  ;;  %v18353_v20 = vcombine.low %v14278_v48, %v14286_v7  ;;  %v14182_v48 = vld [vmem:[#allocation14 + $0x1400] sm:$0xff] }
0x19f6   :  { %v19422_v51 = vpop.f32.mrf.mxu0  ;;  %v19444_v23 = vpop.f32.mrf.mxu1  ;;  %v18356_v57 = vcombine.high %v14279_v13, %v14287_v16  ;;  %v14190_v7 = vld [vmem:[#allocation14 + $0x1440] sm:$0xff] }
0x19f7   :  { %v13961_v24 = vadd.f32 %v19421_v8, %v13921_v22  ;;  %15037 = vmatprep.subr.bf16.mxu1 %v18354_v12  ;;  %v18355_v22 = vcombine.low %v14279_v13, %v14287_v16  ;;  %v14191_v12 = vld [vmem:[#allocation14 + $0x1448] sm:$0xff]  ;;  %v18257_v13 = vcombine.low %v14182_v48, %v14190_v7 }
0x19f8   :  { %v19423_v25 = vpop.f32.mrf.mxu0  ;;  %v19445_v32 = vpop.f32.mrf.mxu1  ;;  %15038 = vmatpush1.bf16.msra.mxu1 %v18353_v20  ;;  %v14296_v20 = vld [vmem:[#allocation14 + $0x1790] sm:$0xff] }
0x19f9   :  { %v14001_v33 = vadd.f32 %v19443_v31, %v13961_v24  ;;  %v14262_v31 = vld [vmem:[#allocation14 + $0x1680] sm:$0xff]  ;;  %v14263_v32 = vld [vmem:[#allocation14 + $0x1688] sm:$0xff] }
0x19fa   :  { %v14270_v25 = vld [vmem:[#allocation14 + $0x16c0] sm:$0xff] }
0x19fb   :  { %v14006_v53 = vadd.f32 %v14001_v33, %v21549_v49  ;;  %v20526_v49 = vld [vmem:[#allocation8 + $0x158] sm:$0xff]   ;;  %v18338_v33 = vcombine.high %v14262_v31, %v14270_v25  ;;  %v18337_v60 = vcombine.low %v14262_v31, %v14270_v25 }
0x19fc   :  { %19769 = vmatpush3.bf16.msra.mxu0 %v20526_v49 }
0x19fd   :  { %14011 = vadd.xlane.f32.xlu0 %v14006_v53  ;;  %19770 = vmatprep.subr.bf16.mxu0 %v21043_v0 }
0x19fe   :  { %15039 = vmatprep.subr.bf16.mxu1 %v18338_v33 }
0x19ff   :  { %15040 = vmatpush1.bf16.msra.mxu1 %v18337_v60 }
0x1a00   :  { %19771 = vmatpush3.bf16.msra.mxu0 %v20527_v3 }
0x1a01   :  { %19772 = vmatprep.subr.bf16.mxu0 %v21043_v0 }
0x1a04   :  { %19773 = vmatpush3.bf16.msra.mxu0 %v20528_v42 }
0x1a05   :  { %19774 = vmatprep.subr.bf16.mxu0 %v21043_v0 }
0x1a08   :  { %19775 = vmatpush3.bf16.msra.mxu0 %v20529_v43  ;;  %v14230_v43 = vld [vmem:[#allocation14 + $0x1580] sm:$0xff] }
0x1a09   :  { %15076 = vmatprep.subr.bf16.mxu0 %v18372_v1  ;;  %v18258_v1 = vcombine.high %v14182_v48, %v14190_v7 }
0x1a86   :  { %v14012_v36 = vpop.xlane.xlu0 %14011 }
0x1a87   :  { %v14013_v37 = vmul.f32 0.0078125, %v14012_v36 }
0x1a89   :  { %v14014_v50 = vsub.f32 %v14006_v53, %v14013_v37  ;;  %v14271_v53 = vld [vmem:[#allocation14 + $0x16c8] sm:$0xff]  ;;  %v14246_v37 = vld [vmem:[#allocation14 + $0x1600] sm:$0xff] }
0x1a8a   :  { %v18339_v35 = vcombine.low %v14263_v32, %v14271_v53  ;;  %v18340_v36 = vcombine.high %v14263_v32, %v14271_v53 }
0x1a8b   :  { %v14015_v38 = vmul.f32 %v14014_v50, %v14014_v50 }
0x1a8d   :  { %14016 = vadd.xlane.f32.xlu1 %v14015_v38  ;;  %v14247_v38 = vld [vmem:[#allocation14 + $0x1608] sm:$0xff] }
0x1a8e   :  { %v18323_v3 = vcombine.low %v14247_v38, %v14255_v17  ;;  %v18324_v42 = vcombine.high %v14247_v38, %v14255_v17  ;;  %v14288_v17 = vld [vmem:[#allocation14 + $0x1750] sm:$0xff] }
0x1b16   :  { %v14017_v45 = vpop.xlane.xlu1 %14016 }
0x1b17   :  { %v14018_v59 = vmul.f32 0.0078125, %v14017_v45  ;;  %v14238_v45 = vld [vmem:[#allocation14 + $0x15c0] sm:$0xff] }
0x1b19   :  { %v14019_v46 = vadd.f32 1e-05, %v14018_v59  ;;  %v14231_v59 = vld [vmem:[#allocation14 + $0x1588] sm:$0xff] }
0x1b1b   :  { %20676 = vrsqrt.f32 %v14019_v46  ;;  %v18306_v46 = vcombine.high %v14230_v43, %v14238_v45 }
0x1b28   :  { %v20677_v47 = vpop.eup %20676 }
0x1b29   :  { %v14021_v58 = vmul.f32 %v20677_v47, %v14014_v50  ;;  %v14254_v50 = vld [vmem:[#allocation14 + $0x1640] sm:$0xff]  ;;  %v14239_v47 = vld [vmem:[#allocation14 + $0x15c8] sm:$0xff] }
0x1b2a   :  { %v18322_v40 = vcombine.high %v14246_v37, %v14254_v50  ;;  %v18321_v49 = vcombine.low %v14246_v37, %v14254_v50  ;;  %v18256_v50 = vld [vmem:[#allocation13 + $0x5] ss:$0 sm:$0xff] }
0x1b2b   :  { %v14028_v2 = vmul.f32 %v18244_v28, %v14021_v58  ;;  %v18305_v28 = vcombine.low %v14230_v43, %v14238_v45  ;;  %v18307_v58 = vcombine.low %v14231_v59, %v14239_v47 }
0x1b2c   :  { %15041 = vmatprep.subr.bf16.mxu1 %v18322_v40  ;;  %v14280_v40 = vld [vmem:[#allocation14 + $0x1710] sm:$0xff] }
0x1b2d   :  { %v14035_v52 = vadd.f32 %v18245_v10, %v14028_v2  ;;  %15042 = vmatpush1.bf16.msra.mxu1 %v18321_v49  ;;  %v18308_v10 = vcombine.high %v14231_v59, %v14239_v47  ;;  %v14214_v2 = vld [vmem:[#allocation14 + $0x1500] sm:$0xff]  ;;  %v14281_v49 = vld [vmem:[#allocation14 + $0x1718] sm:$0xff]  ;;  %v18358_v45 = vcombine.high %v14280_v40, %v14288_v17  ;;  %v14272_v47 = vld [vmem:[#allocation14 + $0x16d0] sm:$0xff] }
0x1b2e   :  { %15043 = vmatprep.subr.bf16.mxu1 %v18306_v46  ;;  %v14264_v46 = vld [vmem:[#allocation14 + $0x1690] sm:$0xff] }
0x1b2f   :  { %v14036_v55 = vpack.c.bf16 %v14035_v52, %v14035_v52 }
0x1b31   :  { %19777 = vmatmul.mubr.bf16.vlgmr.msra.gmra.mxu0 %v14036_v55  ;;  %15044 = vmatpush1.bf16.msra.mxu1 %v18305_v28  ;;  %v14215_v55 = vld [vmem:[#allocation14 + $0x1508] sm:$0xff]  ;;  %v14265_v28 = vld [vmem:[#allocation14 + $0x1698] sm:$0xff] }
0x1b32   :  { %15108 = vmatprep.mubr.bf16.mxu0 %v21045_v39  ;;  %15077 = vmatpush1.bf16.msra.mxu0 %v18371_v11  ;;  %v14183_v11 = vld [vmem:[#allocation14 + $0x1408] sm:$0xff] }
0x1b33   :  { %15078 = vmatprep.subr.bf16.mxu0 %v18356_v57  ;;  %v18259_v16 = vcombine.low %v14183_v11, %v14191_v12  ;;  %v18260_v57 = vcombine.high %v14183_v11, %v14191_v12  ;;  %v14216_v11 = vld [vmem:[#allocation14 + $0x1510] sm:$0xff]  ;;  %v14217_v12 = vld [vmem:[#allocation14 + $0x1518] sm:$0xff] }
0x1b36   :  { %15079 = vmatpush1.bf16.msra.mxu0 %v18355_v22  ;;  %v14304_v22 = vld [vmem:[#allocation14 + $0x17d0] sm:$0xff] }
0x1b37   :  { %15080 = vmatprep.subr.bf16.mxu0 %v18340_v36  ;;  %v18373_v31 = vcombine.low %v14296_v20, %v14304_v22  ;;  %v18255_v36 = vld [vmem:[#allocation11 + $0x5] ss:$0 sm:$0xff] }
0x1b3a   :  { %15081 = vmatpush1.bf16.msra.mxu0 %v18339_v35 }
0x1b3b   :  { %15082 = vmatprep.subr.bf16.mxu0 %v18324_v42 }
0x1b3e   :  { %15083 = vmatpush1.bf16.msra.mxu0 %v18323_v3  ;;  %v14289_v3 = vld [vmem:[#allocation14 + $0x1758] sm:$0xff] }
0x1b3f   :  { %15084 = vmatprep.subr.bf16.mxu0 %v18308_v10  ;;  %v18360_v59 = vcombine.high %v14281_v49, %v14289_v3  ;;  %v18359_v10 = vcombine.low %v14281_v49, %v14289_v3  ;;  %v14298_v49 = vld [vmem:[#allocation14 + $0x17a0] sm:$0xff] }
0x1b40   :  { %v14306_v3 = vld [vmem:[#allocation14 + $0x17e0] sm:$0xff] }
0x1b42   :  { %15085 = vmatpush1.bf16.msra.mxu0 %v18307_v58  ;;  %v14273_v58 = vld [vmem:[#allocation14 + $0x16d8] sm:$0xff] }
0x1bf1   :  { %v14144_v34 = vpop.f32.mrf.mxu0 }
0x1bf2   :  { %v14145_v21 = vadd.f32 %v18246_v56, %v14144_v34  ;;  %v14223_v34 = vld [vmem:[#allocation14 + $0x1548] sm:$0xff] }
0x1bf3   :  { %v19778_v9 = vpop.f32.mrf.mxu0 }
0x1bf4   :  { %v14150_v44 = vadd.f32 %v14145_v21, %v14035_v52  ;;  %v14222_v52 = vld [vmem:[#allocation14 + $0x1540] sm:$0xff]  ;;  %v18291_v9 = vcombine.low %v14215_v55, %v14223_v34 }
0x1bf5   :  { %v14147_v61 = vpop.f32.mrf.mxu0  ;;  %v18290_v56 = vcombine.high %v14214_v2, %v14222_v52  ;;  %v18289_v21 = vcombine.low %v14214_v2, %v14222_v52  ;;  %v18342_v2 = vcombine.high %v14264_v46, %v14272_v47  ;;  %v18344_v52 = vcombine.high %v14265_v28, %v14273_v58 }
0x1bf6   :  { %14155 = vadd.xlane.f32.xlu0 %v14150_v44  ;;  %v14198_v61 = vld [vmem:[#allocation14 + $0x1480] sm:$0xff] }
0x1bf7   :  { %v19779_v62 = vpop.f32.mrf.mxu0  ;;  %15045 = vmatprep.subr.bf16.mxu1 %v18290_v56  ;;  %v14256_v56 = vld [vmem:[#allocation14 + $0x1650] sm:$0xff] }
0x1bf8   :  { %15046 = vmatpush1.bf16.msra.mxu1 %v18289_v21  ;;  %v14206_v62 = vld [vmem:[#allocation14 + $0x14c0] sm:$0xff]  ;;  %v14257_v21 = vld [vmem:[#allocation14 + $0x1658] sm:$0xff] }
0x1bf9   :  { %v18274_v63 = vcombine.high %v14198_v61, %v14206_v62  ;;  %v18273_v5 = vcombine.low %v14198_v61, %v14206_v62 }
0x1bfb   :  { %15047 = vmatprep.subr.bf16.mxu1 %v18274_v63  ;;  %v14240_v63 = vld [vmem:[#allocation14 + $0x15d0] sm:$0xff] }
0x1bfc   :  { %15048 = vmatpush1.bf16.msra.mxu1 %v18273_v5  ;;  %v14241_v5 = vld [vmem:[#allocation14 + $0x15d8] sm:$0xff]  ;;  %v18310_v48 = vcombine.high %v14232_v41, %v14240_v63 }
0x1bfd   :  { %15049 = vmatprep.subr.bf16.mxu1 %v18258_v1  ;;  %v18312_v7 = vcombine.high %v14233_v4, %v14241_v5  ;;  %v14224_v1 = vld [vmem:[#allocation14 + $0x1550] sm:$0xff] }
0x1c00   :  { %15050 = vmatpush1.bf16.msra.mxu1 %v18257_v13  ;;  %v14225_v13 = vld [vmem:[#allocation14 + $0x1558] sm:$0xff] }
0x1c7f   :  { %v14156_v8 = vpop.xlane.xlu0 %14155 }
0x1c80   :  { %v14157_v51 = vmul.f32 0.0078125, %v14156_v8  ;;  %v14297_v8 = vld [vmem:[#allocation14 + $0x1798] sm:$0xff] }
0x1c82   :  { %v21618_v23 = vsub.f32 %v14150_v44, %v14157_v51  ;;  %v18292_v44 = vcombine.high %v14215_v55, %v14223_v34  ;;  %v18374_v51 = vcombine.high %v14296_v20, %v14304_v22  ;;  %v14248_v55 = vld [vmem:[#allocation14 + $0x1610] sm:$0xff]  ;;  %v14249_v34 = vld [vmem:[#allocation14 + $0x1618] sm:$0xff]  ;;  %v18294_v20 = vcombine.high %v14216_v11, %v14224_v1 }
0x1c83   :  { %v18326_v61 = vcombine.high %v14248_v55, %v14256_v56  ;;  %v18328_v62 = vcombine.high %v14249_v34, %v14257_v21  ;;  %v18296_v22 = vcombine.high %v14217_v12, %v14225_v13 }
0x1c84   :  { %v14159_v24 = vmul.f32 %v21618_v23, %v21618_v23  ;;  %15086 = vmatprep.subr.bf16.mxu0 %v18292_v44  ;;  %15117 = vmatprep.subr.bf16.mxu1 %v18374_v51  ;;  %v18343_v44 = vcombine.low %v14265_v28, %v14273_v58  ;;  %v14208_v51 = vld [vmem:[#allocation14 + $0x14d0] sm:$0xff]  ;;  %v18378_v28 = vcombine.high %v14298_v49, %v14306_v3 }
0x1c85   :  { %15087 = vmatpush1.bf16.msra.mxu0 %v18291_v9  ;;  %v18341_v9 = vcombine.low %v14264_v46, %v14272_v47 }
0x1c86   :  { %14160 = vadd.xlane.f32.xlu1 %v14159_v24  ;;  %15088 = vmatprep.subr.bf16.mxu0 %v18276_v6  ;;  %v14305_v24 = vld [vmem:[#allocation14 + $0x17d8] sm:$0xff]  ;;  %v18327_v6 = vcombine.low %v14249_v34, %v14257_v21 }
0x1c87   :  { %v18375_v25 = vcombine.low %v14297_v8, %v14305_v24  ;;  %v18376_v32 = vcombine.high %v14297_v8, %v14305_v24  ;;  %v14200_v8 = vld [vmem:[#allocation14 + $0x1490] sm:$0xff]  ;;  %v14201_v24 = vld [vmem:[#allocation14 + $0x1498] sm:$0xff] }
0x1c89   :  { %15089 = vmatpush1.bf16.msra.mxu0 %v18275_v54  ;;  %v18325_v54 = vcombine.low %v14248_v55, %v14256_v56  ;;  %v18377_v55 = vcombine.low %v14298_v49, %v14306_v3 }
0x1c8a   :  { %15090 = vmatprep.subr.bf16.mxu0 %v18260_v57  ;;  %v18311_v57 = vcombine.low %v14233_v4, %v14241_v5 }
0x1c8d   :  { %15091 = vmatpush1.bf16.msra.mxu0 %v18259_v16  ;;  %v18309_v16 = vcombine.low %v14232_v41, %v14240_v63 }
0x1c8e   :  { %15158 = vmatprep.subr.bf16.mxu0 %v18376_v32  ;;  %v18295_v32 = vcombine.low %v14217_v12, %v14225_v13 }
0x1d0f   :  { %v14161_v33 = vpop.xlane.xlu1 %14160 }
0x1d10   :  { %v14162_v53 = vmul.f32 0.0078125, %v14161_v33  ;;  %v18278_v33 = vcombine.high %v14200_v8, %v14208_v51 }
0x1d12   :  { %v14163_v60 = vadd.f32 1e-05, %v14162_v53 }
0x1d14   :  { %20678 = vrsqrt.f32 %v14163_v60  ;;  %v14184_v60 = vld [vmem:[#allocation14 + $0x1410] sm:$0xff] }
0x1d21   :  { %v20679_v35 = vpop.eup %20678 }
0x1d22   :  { %v14165_v37 = vmul.f32 %v20679_v35, %v21618_v23  ;;  %v18357_v23 = vcombine.low %v14280_v40, %v14288_v17  ;;  %v14192_v35 = vld [vmem:[#allocation14 + $0x1450] sm:$0xff] }
0x1d23   :  { %v18262_v40 = vcombine.high %v14184_v60, %v14192_v35  ;;  %v18261_v46 = vcombine.low %v14184_v60, %v14192_v35 }
0x1d24   :  { %v14172_v38 = vmul.f32 %v18255_v36, %v14165_v37  ;;  %v14185_v36 = vld [vmem:[#allocation14 + $0x1418] sm:$0xff] }
0x1d25   :  { %v14193_v37 = vld [vmem:[#allocation14 + $0x1458] sm:$0xff] }
0x1d26   :  { %v21623_v42 = vadd.f32 %v18256_v50, %v14172_v38  ;;  %v18277_v50 = vcombine.low %v14200_v8, %v14208_v51  ;;  %v18264_v17 = vcombine.high %v14185_v36, %v14193_v37  ;;  %v18263_v47 = vcombine.low %v14185_v36, %v14193_v37 }
0x1d28   :  { %v21627_v43 = vpack.c.bf16 %v21623_v42, %v21623_v42 }
0x1d2a   :  { %15068 = vmatmul.mubr.bf16.vlgmr.msra.gmra.mxu1 %v21627_v43  ;;  %15109 = vmatmul.mubr.bf16.vlgmr.msra.gmra.mxu0 %v21627_v43 }
0x1d2b   :  { %15118 = vmatpush1.bf16.msra.mxu1 %v18373_v31  ;;  %15159 = vmatpush1.bf16.msra.mxu0 %v18375_v25  ;;  %v14209_v31 = vld [vmem:[#allocation14 + $0x14d8] sm:$0xff]  ;;  %v18293_v25 = vcombine.low %v14216_v11, %v14224_v1 }
0x1d2c   :  { %15119 = vmatprep.subr.bf16.mxu1 %v18358_v45  ;;  %15160 = vmatprep.subr.bf16.mxu0 %v18360_v59  ;;  %v18280_v53 = vcombine.high %v14201_v24, %v14209_v31  ;;  %v18279_v38 = vcombine.low %v14201_v24, %v14209_v31  ;;  %v14299_v45 = vld [vmem:[#allocation14 + $0x17a8] sm:$0xff] }
0x1d2d   :  { %15149 = vmatprep.mubr.bf16.mxu1 %v21045_v39  ;;  %15190 = vmatprep.mubr.bf16.mxu0 %v21045_v39  ;;  %v14307_v59 = vld [vmem:[#allocation14 + $0x17e8] sm:$0xff] }
0x1d2e   :  { %v18380_v58 = vcombine.high %v14299_v45, %v14307_v59  ;;  %v18379_v56 = vcombine.low %v14299_v45, %v14307_v59 }
0x1d2f   :  { %15120 = vmatpush1.bf16.msra.mxu1 %v18357_v23  ;;  %15161 = vmatpush1.bf16.msra.mxu0 %v18359_v10  ;;  %v14282_v23 = vld [vmem:[#allocation14 + $0x1720] sm:$0xff] }
0x1d30   :  { %15121 = vmatprep.subr.bf16.mxu1 %v18342_v2  ;;  %15162 = vmatprep.subr.bf16.mxu0 %v18344_v52  ;;  %v14290_v10 = vld [vmem:[#allocation14 + $0x1760] sm:$0xff]  ;;  %v14283_v2 = vld [vmem:[#allocation14 + $0x1728] sm:$0xff] }
0x1d31   :  { %v14291_v52 = vld [vmem:[#allocation14 + $0x1768] sm:$0xff]  ;;  %v18362_v34 = vcombine.high %v14282_v23, %v14290_v10  ;;  %v18361_v41 = vcombine.low %v14282_v23, %v14290_v10 }
0x1d32   :  { %v18364_v21 = vcombine.high %v14283_v2, %v14291_v52  ;;  %v18363_v63 = vcombine.low %v14283_v2, %v14291_v52 }
0x1d33   :  { %15122 = vmatpush1.bf16.msra.mxu1 %v18341_v9  ;;  %15163 = vmatpush1.bf16.msra.mxu0 %v18343_v44  ;;  %v14266_v9 = vld [vmem:[#allocation14 + $0x16a0] sm:$0xff] }
0x1d34   :  { %15123 = vmatprep.subr.bf16.mxu1 %v18326_v61  ;;  %15164 = vmatprep.subr.bf16.mxu0 %v18328_v62  ;;  %v14274_v44 = vld [vmem:[#allocation14 + $0x16e0] sm:$0xff]  ;;  %v14267_v61 = vld [vmem:[#allocation14 + $0x16a8] sm:$0xff] }
0x1d35   :  { %v14275_v62 = vld [vmem:[#allocation14 + $0x16e8] sm:$0xff]  ;;  %v18346_v4 = vcombine.high %v14266_v9, %v14274_v44  ;;  %v18345_v11 = vcombine.low %v14266_v9, %v14274_v44 }
0x1d36   :  { %v18348_v5 = vcombine.high %v14267_v61, %v14275_v62  ;;  %v18347_v1 = vcombine.low %v14267_v61, %v14275_v62 }
0x1d37   :  { %15124 = vmatpush1.bf16.msra.mxu1 %v18325_v54  ;;  %15165 = vmatpush1.bf16.msra.mxu0 %v18327_v6  ;;  %v14250_v54 = vld [vmem:[#allocation14 + $0x1620] sm:$0xff] }
0x1d38   :  { %15125 = vmatprep.subr.bf16.mxu1 %v18310_v48  ;;  %15166 = vmatprep.subr.bf16.mxu0 %v18312_v7  ;;  %v14258_v6 = vld [vmem:[#allocation14 + $0x1660] sm:$0xff]  ;;  %v14251_v48 = vld [vmem:[#allocation14 + $0x1628] sm:$0xff] }
0x1d39   :  { %v14259_v7 = vld [vmem:[#allocation14 + $0x1668] sm:$0xff]  ;;  %v18330_v12 = vcombine.high %v14250_v54, %v14258_v6  ;;  %v18329_v8 = vcombine.low %v14250_v54, %v14258_v6 }
0x1d3a   :  { %v18332_v13 = vcombine.high %v14251_v48, %v14259_v7  ;;  %v18331_v51 = vcombine.low %v14251_v48, %v14259_v7 }
0x1d3b   :  { %15126 = vmatpush1.bf16.msra.mxu1 %v18309_v16  ;;  %15167 = vmatpush1.bf16.msra.mxu0 %v18311_v57  ;;  %v14234_v16 = vld [vmem:[#allocation14 + $0x15a0] sm:$0xff] }
0x1d3c   :  { %15127 = vmatprep.subr.bf16.mxu1 %v18294_v20  ;;  %15168 = vmatprep.subr.bf16.mxu0 %v18296_v22  ;;  %v14242_v57 = vld [vmem:[#allocation14 + $0x15e0] sm:$0xff]  ;;  %v14235_v20 = vld [vmem:[#allocation14 + $0x15a8] sm:$0xff] }
0x1d3d   :  { %v14243_v22 = vld [vmem:[#allocation14 + $0x15e8] sm:$0xff]  ;;  %v18314_v24 = vcombine.high %v14234_v16, %v14242_v57  ;;  %v18313_v60 = vcombine.low %v14234_v16, %v14242_v57 }
0x1d3e   :  { %v18316_v31 = vcombine.high %v14235_v20, %v14243_v22  ;;  %v18315_v35 = vcombine.low %v14235_v20, %v14243_v22 }
0x1d3f   :  { %15128 = vmatpush1.bf16.msra.mxu1 %v18293_v25  ;;  %15169 = vmatpush1.bf16.msra.mxu0 %v18295_v32  ;;  %v14218_v25 = vld [vmem:[#allocation14 + $0x1520] sm:$0xff] }
0x1d40   :  { %15129 = vmatprep.subr.bf16.mxu1 %v18278_v33  ;;  %15170 = vmatprep.subr.bf16.mxu0 %v18280_v53  ;;  %v14226_v32 = vld [vmem:[#allocation14 + $0x1560] sm:$0xff]  ;;  %v14219_v33 = vld [vmem:[#allocation14 + $0x1528] sm:$0xff] }
0x1d41   :  { %v14227_v53 = vld [vmem:[#allocation14 + $0x1568] sm:$0xff]  ;;  %v18298_v36 = vcombine.high %v14218_v25, %v14226_v32  ;;  %v18297_v49 = vcombine.low %v14218_v25, %v14226_v32 }
0x1d42   :  { %v18300_v37 = vcombine.high %v14219_v33, %v14227_v53  ;;  %v18299_v3 = vcombine.low %v14219_v33, %v14227_v53 }
0x1d43   :  { %15130 = vmatpush1.bf16.msra.mxu1 %v18277_v50  ;;  %15171 = vmatpush1.bf16.msra.mxu0 %v18279_v38  ;;  %v14202_v50 = vld [vmem:[#allocation14 + $0x14a0] sm:$0xff] }
0x1d44   :  { %15131 = vmatprep.subr.bf16.mxu1 %v18262_v40  ;;  %15172 = vmatprep.subr.bf16.mxu0 %v18264_v17  ;;  %v14210_v38 = vld [vmem:[#allocation14 + $0x14e0] sm:$0xff]  ;;  %v14203_v40 = vld [vmem:[#allocation14 + $0x14a8] sm:$0xff] }
0x1d45   :  { %v14211_v17 = vld [vmem:[#allocation14 + $0x14e8] sm:$0xff]  ;;  %v18282_v45 = vcombine.high %v14202_v50, %v14210_v38  ;;  %v18281_v23 = vcombine.low %v14202_v50, %v14210_v38 }
0x1d46   :  { %v18284_v59 = vcombine.high %v14203_v40, %v14211_v17  ;;  %v18283_v10 = vcombine.low %v14203_v40, %v14211_v17  ;;  %v14220_v17 = vld [vmem:[#allocation14 + $0x1530] sm:$0xff] }
0x1d47   :  { %15132 = vmatpush1.bf16.msra.mxu1 %v18261_v46  ;;  %15173 = vmatpush1.bf16.msra.mxu0 %v18263_v47  ;;  %v14186_v46 = vld [vmem:[#allocation14 + $0x1420] sm:$0xff] }
0x1d48   :  { %15199 = vmatprep.subr.bf16.mxu1 %v18378_v28  ;;  %15240 = vmatprep.subr.bf16.mxu0 %v18380_v58  ;;  %v14194_v47 = vld [vmem:[#allocation14 + $0x1460] sm:$0xff]  ;;  %v14187_v28 = vld [vmem:[#allocation14 + $0x1428] sm:$0xff] }
0x1d49   :  { %v14195_v58 = vld [vmem:[#allocation14 + $0x1468] sm:$0xff]  ;;  %v18266_v2 = vcombine.high %v14186_v46, %v14194_v47  ;;  %v18265_v9 = vcombine.low %v14186_v46, %v14194_v47 }
0x1d4a   :  { %15150 = vmatmul.mubr.bf16.vlgmr.msra.gmra.mxu1 %v21627_v43  ;;  %15191 = vmatmul.mubr.bf16.vlgmr.msra.gmra.mxu0 %v21627_v43  ;;  %v18268_v52 = vcombine.high %v14187_v28, %v14195_v58  ;;  %v18267_v44 = vcombine.low %v14187_v28, %v14195_v58  ;;  %v14204_v58 = vld [vmem:[#allocation14 + $0x14b0] sm:$0xff] }
0x1d4b   :  { %15200 = vmatpush1.bf16.msra.mxu1 %v18377_v55  ;;  %15241 = vmatpush1.bf16.msra.mxu0 %v18379_v56  ;;  %v14300_v55 = vld [vmem:[#allocation14 + $0x17b0] sm:$0xff] }
0x1d4c   :  { %15201 = vmatprep.subr.bf16.mxu1 %v18362_v34  ;;  %15242 = vmatprep.subr.bf16.mxu0 %v18364_v21  ;;  %v14308_v56 = vld [vmem:[#allocation14 + $0x17f0] sm:$0xff]  ;;  %v14301_v34 = vld [vmem:[#allocation14 + $0x17b8] sm:$0xff] }
0x1d4d   :  { %15231 = vmatprep.mubr.bf16.mxu1 %v21045_v39  ;;  %15272 = vmatprep.mubr.bf16.mxu0 %v21045_v39  ;;  %v14309_v21 = vld [vmem:[#allocation14 + $0x17f8] sm:$0xff]  ;;  %v18382_v61 = vcombine.high %v14300_v55, %v14308_v56  ;;  %v18381_v54 = vcombine.low %v14300_v55, %v14308_v56 }
0x1d4e   :  { %v18384_v62 = vcombine.high %v14301_v34, %v14309_v21  ;;  %v18383_v6 = vcombine.low %v14301_v34, %v14309_v21  ;;  %v14188_v21 = vld [vmem:[#allocation14 + $0x1430] sm:$0xff] }
0x1d4f   :  { %15202 = vmatpush1.bf16.msra.mxu1 %v18361_v41  ;;  %15243 = vmatpush1.bf16.msra.mxu0 %v18363_v63  ;;  %v14284_v41 = vld [vmem:[#allocation14 + $0x1730] sm:$0xff] }
0x1d50   :  { %15203 = vmatprep.subr.bf16.mxu1 %v18346_v4  ;;  %15244 = vmatprep.subr.bf16.mxu0 %v18348_v5  ;;  %v14292_v63 = vld [vmem:[#allocation14 + $0x1770] sm:$0xff]  ;;  %v14285_v4 = vld [vmem:[#allocation14 + $0x1738] sm:$0xff] }
0x1d51   :  { %v14293_v5 = vld [vmem:[#allocation14 + $0x1778] sm:$0xff]  ;;  %v18366_v48 = vcombine.high %v14284_v41, %v14292_v63  ;;  %v18365_v16 = vcombine.low %v14284_v41, %v14292_v63 }
0x1d52   :  { %v18368_v7 = vcombine.high %v14285_v4, %v14293_v5  ;;  %v18367_v57 = vcombine.low %v14285_v4, %v14293_v5 }
0x1d53   :  { %15204 = vmatpush1.bf16.msra.mxu1 %v18345_v11  ;;  %15245 = vmatpush1.bf16.msra.mxu0 %v18347_v1  ;;  %v14268_v11 = vld [vmem:[#allocation14 + $0x16b0] sm:$0xff] }
0x1d54   :  { %15205 = vmatprep.subr.bf16.mxu1 %v18330_v12  ;;  %15246 = vmatprep.subr.bf16.mxu0 %v18332_v13  ;;  %v14276_v1 = vld [vmem:[#allocation14 + $0x16f0] sm:$0xff]  ;;  %v14269_v12 = vld [vmem:[#allocation14 + $0x16b8] sm:$0xff] }
0x1d55   :  { %v14277_v13 = vld [vmem:[#allocation14 + $0x16f8] sm:$0xff]  ;;  %v18350_v20 = vcombine.high %v14268_v11, %v14276_v1  ;;  %v18349_v25 = vcombine.low %v14268_v11, %v14276_v1  ;;  %v20534_v1 = vld [vmem:[#allocation17 + $0x1470] sm:$0xff]  }
0x1d56   :  { %v18352_v22 = vcombine.high %v14269_v12, %v14277_v13  ;;  %v18351_v32 = vcombine.low %v14269_v12, %v14277_v13  ;;  %v20533_v11 = vld [vmem:[#allocation17 + $0x14b8] sm:$0xff]   ;;  %v20535_v12 = vld [vmem:[#allocation17 + $0x14f0] sm:$0xff]  }
0x1d57   :  { %15206 = vmatpush1.bf16.msra.mxu1 %v18329_v8  ;;  %15247 = vmatpush1.bf16.msra.mxu0 %v18331_v51  ;;  %v14252_v8 = vld [vmem:[#allocation14 + $0x1630] sm:$0xff] }
0x1d58   :  { %15207 = vmatprep.subr.bf16.mxu1 %v18314_v24  ;;  %15248 = vmatprep.subr.bf16.mxu0 %v18316_v31  ;;  %v14260_v51 = vld [vmem:[#allocation14 + $0x1670] sm:$0xff]  ;;  %v14253_v24 = vld [vmem:[#allocation14 + $0x1638] sm:$0xff] }
0x1d59   :  { %v14261_v31 = vld [vmem:[#allocation14 + $0x1678] sm:$0xff]  ;;  %v18334_v33 = vcombine.high %v14252_v8, %v14260_v51  ;;  %v18333_v50 = vcombine.low %v14252_v8, %v14260_v51  ;;  %v20536_v13 = vld [vmem:[#allocation17 + $0x1430] sm:$0xff]   ;;  %v20541_v8 = vld [vmem:[#allocation17 + $0x14a8] sm:$0xff]  }
0x1d5a   :  { %v18336_v53 = vcombine.high %v14253_v24, %v14261_v31  ;;  %v18335_v38 = vcombine.low %v14253_v24, %v14261_v31  ;;  %v20542_v51 = vld [vmem:[#allocation17 + $0x1460] sm:$0xff]  }
0x1d5b   :  { %15208 = vmatpush1.bf16.msra.mxu1 %v18313_v60  ;;  %15249 = vmatpush1.bf16.msra.mxu0 %v18315_v35  ;;  %v14236_v60 = vld [vmem:[#allocation14 + $0x15b0] sm:$0xff]  ;;  %v20543_v24 = vld [vmem:[#allocation17 + $0x14e0] sm:$0xff]  }
0x1d5c   :  { %15209 = vmatprep.subr.bf16.mxu1 %v18298_v36  ;;  %15250 = vmatprep.subr.bf16.mxu0 %v18300_v37  ;;  %v14244_v35 = vld [vmem:[#allocation14 + $0x15f0] sm:$0xff]  ;;  %v14237_v36 = vld [vmem:[#allocation14 + $0x15b8] sm:$0xff]  ;;  %v20544_v31 = vld [vmem:[#allocation17 + $0x1420] sm:$0xff]  }
0x1d5d   :  { %v14245_v37 = vld [vmem:[#allocation14 + $0x15f8] sm:$0xff]  ;;  %v18318_v40 = vcombine.high %v14236_v60, %v14244_v35 }
0x1d5e   :  { %v18319_v46 = vcombine.low %v14237_v36, %v14245_v37 }
0x1d5f   :  { %15210 = vmatpush1.bf16.msra.mxu1 %v18297_v49  ;;  %15251 = vmatpush1.bf16.msra.mxu0 %v18299_v3  ;;  %v14228_v49 = vld [vmem:[#allocation14 + $0x1570] sm:$0xff]  ;;  %v14221_v3 = vld [vmem:[#allocation14 + $0x1538] sm:$0xff] }
0x1d60   :  { %15211 = vmatprep.subr.bf16.mxu1 %v18282_v45  ;;  %15252 = vmatprep.subr.bf16.mxu0 %v18284_v59  ;;  %v14229_v45 = vld [vmem:[#allocation14 + $0x1578] sm:$0xff]  ;;  %v18317_v59 = vcombine.low %v14236_v60, %v14244_v35  ;;  %v18302_v47 = vcombine.high %v14220_v17, %v14228_v49  ;;  %v20550_v60 = vld [vmem:[#allocation17 + $0x1450] sm:$0xff]  }
0x1d61   :  { %v18304_v28 = vcombine.high %v14221_v3, %v14229_v45  ;;  %v18303_v55 = vcombine.low %v14221_v3, %v14229_v45  ;;  %v20551_v35 = vld [vmem:[#allocation17 + $0x14d0] sm:$0xff]   ;;  %v20560_v3 = vld [vmem:[#allocation17 + $0x1400] sm:$0xff]  }
0x1d62   :  { %v20561_v45 = vld [vmem:[#allocation17 + $0x1480] sm:$0xff]  }
0x1d63   :  { %15212 = vmatpush1.bf16.msra.mxu1 %v18281_v23  ;;  %15253 = vmatpush1.bf16.msra.mxu0 %v18283_v10  ;;  %v14212_v23 = vld [vmem:[#allocation14 + $0x14f0] sm:$0xff]  ;;  %v14205_v10 = vld [vmem:[#allocation14 + $0x14b8] sm:$0xff] }
0x1d64   :  { %15213 = vmatprep.subr.bf16.mxu1 %v18266_v2  ;;  %15254 = vmatprep.subr.bf16.mxu0 %v18268_v52  ;;  %v14213_v2 = vld [vmem:[#allocation14 + $0x14f8] sm:$0xff]  ;;  %v18301_v52 = vcombine.low %v14220_v17, %v14228_v49  ;;  %v18286_v56 = vcombine.high %v14204_v58, %v14212_v23  ;;  %v20558_v17 = vld [vmem:[#allocation17 + $0x1440] sm:$0xff]  }
0x1d65   :  { %v18288_v34 = vcombine.high %v14205_v10, %v14213_v2  ;;  %v18287_v41 = vcombine.low %v14205_v10, %v14213_v2  ;;  %v20559_v49 = vld [vmem:[#allocation17 + $0x14c0] sm:$0xff]  }
0x1d67   :  { %15214 = vmatpush1.bf16.msra.mxu1 %v18265_v9  ;;  %15255 = vmatpush1.bf16.msra.mxu0 %v18267_v44  ;;  %v14196_v9 = vld [vmem:[#allocation14 + $0x1470] sm:$0xff]  ;;  %v14189_v44 = vld [vmem:[#allocation14 + $0x1438] sm:$0xff] }
0x1d68   :  { %15281 = vmatprep.subr.bf16.mxu1 %v18382_v61  ;;  %15322 = vmatprep.subr.bf16.mxu0 %v18384_v62  ;;  %v14197_v61 = vld [vmem:[#allocation14 + $0x1478] sm:$0xff]  ;;  %v18285_v62 = vcombine.low %v14204_v58, %v14212_v23  ;;  %v18270_v63 = vcombine.high %v14188_v21, %v14196_v9  ;;  %v18269_v5 = vcombine.low %v14188_v21, %v14196_v9 }
0x1d69   :  { %v18272_v4 = vcombine.high %v14189_v44, %v14197_v61 }
0x1d6a   :  { %15232 = vmatmul.mubr.bf16.vlgmr.msra.gmra.mxu1 %v21627_v43  ;;  %15273 = vmatmul.mubr.bf16.vlgmr.msra.gmra.mxu0 %v21627_v43 }
0x1d6b   :  { %15282 = vmatpush1.bf16.msra.mxu1 %v18381_v54  ;;  %15323 = vmatpush1.bf16.msra.mxu0 %v18383_v6  ;;  %v18271_v54 = vcombine.low %v14189_v44, %v14197_v61  ;;  %v20530_v6 = vld [vmem:[#allocation17 + $0x1478] sm:$0xff]  }
0x1d6c   :  { %15283 = vmatprep.subr.bf16.mxu1 %v18366_v48  ;;  %15324 = vmatprep.subr.bf16.mxu0 %v18368_v7  ;;  %v20531_v48 = vld [vmem:[#allocation17 + $0x14f8] sm:$0xff]  }
0x1d6d   :  { %15313 = vmatprep.mubr.bf16.mxu1 %v21045_v39  ;;  %15354 = vmatprep.mubr.bf16.mxu0 %v21045_v39  ;;  %v18320_v39 = vcombine.high %v14237_v36, %v14245_v37  ;;  %v20532_v7 = vld [vmem:[#allocation17 + $0x1438] sm:$0xff]   ;;  %v20552_v36 = vld [vmem:[#allocation17 + $0x1410] sm:$0xff]  }
0x1d6e   :  { %v20553_v37 = vld [vmem:[#allocation17 + $0x1490] sm:$0xff]  }
0x1d6f   :  { %15284 = vmatpush1.bf16.msra.mxu1 %v18365_v16  ;;  %15325 = vmatpush1.bf16.msra.mxu0 %v18367_v57  ;;  %v20537_v16 = vld [vmem:[#allocation17 + $0x14b0] sm:$0xff]   ;;  %v20538_v57 = vld [vmem:[#allocation17 + $0x1468] sm:$0xff]  }
0x1d70   :  { %15285 = vmatprep.subr.bf16.mxu1 %v18350_v20  ;;  %15326 = vmatprep.subr.bf16.mxu0 %v18352_v22  ;;  %v20539_v20 = vld [vmem:[#allocation17 + $0x14e8] sm:$0xff]  }
0x1d71   :  { %v20540_v22 = vld [vmem:[#allocation17 + $0x1428] sm:$0xff]  }
0x1d73   :  { %15286 = vmatpush1.bf16.msra.mxu1 %v18349_v25  ;;  %15327 = vmatpush1.bf16.msra.mxu0 %v18351_v32  ;;  %v20546_v25 = vld [vmem:[#allocation17 + $0x1458] sm:$0xff]  }
0x1d74   :  { %15287 = vmatprep.subr.bf16.mxu1 %v18334_v33  ;;  %15328 = vmatprep.subr.bf16.mxu0 %v18336_v53  ;;  %v20547_v32 = vld [vmem:[#allocation17 + $0x14d8] sm:$0xff]  }
0x1d75   :  { %v20548_v33 = vld [vmem:[#allocation17 + $0x1418] sm:$0xff]  }
0x1d76   :  { %v20549_v53 = vld [vmem:[#allocation17 + $0x1498] sm:$0xff]  }
0x1d77   :  { %15288 = vmatpush1.bf16.msra.mxu1 %v18333_v50  ;;  %15329 = vmatpush1.bf16.msra.mxu0 %v18335_v38  ;;  %v20554_v50 = vld [vmem:[#allocation17 + $0x1448] sm:$0xff]  }
0x1d78   :  { %15289 = vmatprep.subr.bf16.mxu1 %v18318_v40  ;;  %15330 = vmatprep.subr.bf16.mxu0 %v18320_v39  ;;  %v20555_v38 = vld [vmem:[#allocation17 + $0x14c8] sm:$0xff]  }
0x1d79   :  { %v20556_v40 = vld [vmem:[#allocation17 + $0x1408] sm:$0xff]  }
0x1d7a   :  { %v20557_v39 = vld [vmem:[#allocation17 + $0x1488] sm:$0xff]  }
0x1d7b   :  { %15290 = vmatpush1.bf16.msra.mxu1 %v18317_v59  ;;  %15331 = vmatpush1.bf16.msra.mxu0 %v18319_v46  ;;  %v20562_v59 = vld [vmem:[#allocation17 + $0x1578] sm:$0xff]  }
0x1d7c   :  { %15291 = vmatprep.subr.bf16.mxu1 %v18302_v47  ;;  %15332 = vmatprep.subr.bf16.mxu0 %v18304_v28  ;;  %v20563_v46 = vld [vmem:[#allocation17 + $0x15f8] sm:$0xff]   ;;  %v21643_v47 = vld [vmem:[#allocation16 + $0x50] sm:$0xff] }
0x1d7d   :  { %v14318_v28 = vrot.slane %v21643_v47, %v21250_v26  ;;  %v14326_v58 = vrot.slane %v21643_v47, %v21253_v27  ;;  %v14322_v23 = vrot.slane %v21643_v47, %v21258_v29  ;;  %v14330_v10 = vrot.slane %v21643_v47, %v21261_v30 }
0x1d7f   :  { %15292 = vmatpush1.bf16.msra.mxu1 %v18301_v52  ;;  %15333 = vmatpush1.bf16.msra.mxu0 %v18303_v55 }
0x1d80   :  { %15293 = vmatprep.subr.bf16.mxu1 %v18286_v56  ;;  %15334 = vmatprep.subr.bf16.mxu0 %v18288_v34 }
0x1d83   :  { %15294 = vmatpush1.bf16.msra.mxu1 %v18285_v62  ;;  %15335 = vmatpush1.bf16.msra.mxu0 %v18287_v41 }
0x1d84   :  { %15295 = vmatprep.subr.bf16.mxu1 %v18270_v63  ;;  %15336 = vmatprep.subr.bf16.mxu0 %v18272_v4 }
0x1d87   :  { %15296 = vmatpush1.bf16.msra.mxu1 %v18269_v5  ;;  %15337 = vmatpush1.bf16.msra.mxu0 %v18271_v54 }
0x1d88   :  { %19456 = vmatprep.subr.bf16.mxu1 %v20530_v6  ;;  %19478 = vmatprep.subr.bf16.mxu0 %v20531_v48 }
0x1d8a   :  { %15314 = vmatmul.mubr.bf16.vlgmr.msra.gmra.mxu1 %v21627_v43  ;;  %15355 = vmatmul.mubr.bf16.vlgmr.msra.gmra.mxu0 %v21627_v43  ;;  %v20545_v43 = vld [vmem:[#allocation17 + $0x14a0] sm:$0xff]  }
0x1d8b   :  { %19457 = vmatpush3.bf16.msra.mxu1 %v20532_v7  ;;  %19479 = vmatpush3.bf16.msra.mxu0 %v20533_v11  ;;  %v20564_v11 = vld [vmem:[#allocation17 + $0x1538] sm:$0xff]  }
0x1d8c   :  { %19458 = vmatprep.subr.bf16.mxu1 %v20534_v1  ;;  %19480 = vmatprep.subr.bf16.mxu0 %v20535_v12  ;;  %v20565_v1 = vld [vmem:[#allocation17 + $0x15b8] sm:$0xff]  }
0x1d8f   :  { %19459 = vmatpush3.bf16.msra.mxu1 %v20536_v13  ;;  %19481 = vmatpush3.bf16.msra.mxu0 %v20537_v16  ;;  %v20566_v16 = vld [vmem:[#allocation17 + $0x1570] sm:$0xff]  }
0x1d90   :  { %19460 = vmatprep.subr.bf16.mxu1 %v20538_v57  ;;  %19482 = vmatprep.subr.bf16.mxu0 %v20539_v20  ;;  %v20567_v57 = vld [vmem:[#allocation17 + $0x15f0] sm:$0xff]  }
0x1d91   :  { %v20568_v20 = vld [vmem:[#allocation17 + $0x1530] sm:$0xff]  }
0x1d93   :  { %19461 = vmatpush3.bf16.msra.mxu1 %v20540_v22  ;;  %19483 = vmatpush3.bf16.msra.mxu0 %v20541_v8  ;;  %v20569_v22 = vld [vmem:[#allocation17 + $0x15b0] sm:$0xff]   ;;  %v20570_v8 = vld [vmem:[#allocation17 + $0x1568] sm:$0xff]  }
0x1d94   :  { %19462 = vmatprep.subr.bf16.mxu1 %v20542_v51  ;;  %19484 = vmatprep.subr.bf16.mxu0 %v20543_v24  ;;  %v20571_v51 = vld [vmem:[#allocation17 + $0x15e8] sm:$0xff]  }
0x1d95   :  { %v20572_v24 = vld [vmem:[#allocation17 + $0x1528] sm:$0xff]  }
0x1d97   :  { %19463 = vmatpush3.bf16.msra.mxu1 %v20544_v31  ;;  %19485 = vmatpush3.bf16.msra.mxu0 %v20545_v43  ;;  %v20573_v31 = vld [vmem:[#allocation17 + $0x15a8] sm:$0xff]   ;;  %v20574_v43 = vld [vmem:[#allocation17 + $0x1560] sm:$0xff]  }
0x1d98   :  { %19464 = vmatprep.subr.bf16.mxu1 %v20546_v25  ;;  %19486 = vmatprep.subr.bf16.mxu0 %v20547_v32  ;;  %v20575_v25 = vld [vmem:[#allocation17 + $0x15e0] sm:$0xff]  }
0x1d99   :  { %v20576_v32 = vld [vmem:[#allocation17 + $0x1520] sm:$0xff]  }
0x1d9b   :  { %19465 = vmatpush3.bf16.msra.mxu1 %v20548_v33  ;;  %19487 = vmatpush3.bf16.msra.mxu0 %v20549_v53  ;;  %v20577_v33 = vld [vmem:[#allocation17 + $0x15a0] sm:$0xff]   ;;  %v20578_v53 = vld [vmem:[#allocation17 + $0x1558] sm:$0xff]  }
0x1d9c   :  { %19466 = vmatprep.subr.bf16.mxu1 %v20550_v60  ;;  %19488 = vmatprep.subr.bf16.mxu0 %v20551_v35  ;;  %v20579_v60 = vld [vmem:[#allocation17 + $0x15d8] sm:$0xff]  }
0x1d9d   :  { %v20580_v35 = vld [vmem:[#allocation17 + $0x1518] sm:$0xff]  }
0x1d9f   :  { %19467 = vmatpush3.bf16.msra.mxu1 %v20552_v36  ;;  %19489 = vmatpush3.bf16.msra.mxu0 %v20553_v37  ;;  %v20581_v36 = vld [vmem:[#allocation17 + $0x1598] sm:$0xff]   ;;  %v20582_v37 = vld [vmem:[#allocation17 + $0x1550] sm:$0xff]  }
0x1da0   :  { %19468 = vmatprep.subr.bf16.mxu1 %v20554_v50  ;;  %19490 = vmatprep.subr.bf16.mxu0 %v20555_v38  ;;  %v20583_v50 = vld [vmem:[#allocation17 + $0x15d0] sm:$0xff]  }
0x1da1   :  { %v20584_v38 = vld [vmem:[#allocation17 + $0x1510] sm:$0xff]  }
0x1da3   :  { %19469 = vmatpush3.bf16.msra.mxu1 %v20556_v40  ;;  %19491 = vmatpush3.bf16.msra.mxu0 %v20557_v39  ;;  %v20585_v40 = vld [vmem:[#allocation17 + $0x1590] sm:$0xff]   ;;  %v20586_v39 = vld [vmem:[#allocation17 + $0x1548] sm:$0xff]  }
0x1da4   :  { %19470 = vmatprep.subr.bf16.mxu1 %v20558_v17  ;;  %19492 = vmatprep.subr.bf16.mxu0 %v20559_v49  ;;  %v20587_v17 = vld [vmem:[#allocation17 + $0x15c8] sm:$0xff]   ;;  %v14334_v49 = vrot.slane %v21643_v47, %v21272_v14 }
0x1da7   :  { %19471 = vmatpush3.bf16.msra.mxu1 %v20560_v3  ;;  %19493 = vmatpush3.bf16.msra.mxu0 %v20561_v45  ;;  %v14342_v3 = vrot.slane %v21643_v47, %v21275_v15  ;;  %v14338_v45 = vrot.slane %v21643_v47, %v21278_v18 }
0x1da8   :  { %19500 = vmatprep.subr.bf16.mxu1 %v20562_v59  ;;  %19522 = vmatprep.subr.bf16.mxu0 %v20563_v46  ;;  %v14346_v59 = vrot.slane %v21643_v47, %v21281_v19  ;;  %v20588_v46 = vld [vmem:[#allocation17 + $0x1508] sm:$0xff]  }
0x1dea   :  { %v15069_v2 = vpop.f32.mrf.mxu1  ;;  %v15110_v52 = vpop.f32.mrf.mxu0 }
0x1deb   :  { %v15070_v55 = vadd.f32 %v15069_v2, %v14318_v28  ;;  %v15111_v56 = vadd.f32 %v15110_v52, %v14326_v58  ;;  %v20589_v28 = vld [vmem:[#allocation17 + $0x1588] sm:$0xff]   ;;  %v20591_v2 = vld [vmem:[#allocation17 + $0x15c0] sm:$0xff]  }
0x1dec   :  { %v15071_v34 = vpop.f32.mrf.mxu1  ;;  %v15112_v21 = vpop.f32.mrf.mxu0 }
0x1ded   :  { %v15072_v9 = vadd.f32 %v15071_v34, %v14322_v23  ;;  %v15113_v44 = vadd.f32 %v15112_v21, %v14330_v10  ;;  %v15363_v61 = vmax.f32 %v15070_v55, 0.0  ;;  %v15365_v62 = vmax.f32 %v15111_v56, 0.0  ;;  %v20590_v10 = vld [vmem:[#allocation17 + $0x1540] sm:$0xff]  }
0x1dee   :  { %v15073_v41 = vpop.f32.mrf.mxu1  ;;  %v15114_v63 = vpop.f32.mrf.mxu0 }
0x1def   :  { %v15364_v4 = vmax.f32 %v15072_v9, 0.0  ;;  %v15366_v5 = vmax.f32 %v15113_v44, 0.0  ;;  %v15379_v12 = vpack.c.bf16 %v15363_v61, %v15363_v61  ;;  %v15381_v13 = vpack.c.bf16 %v15365_v62, %v15365_v62  ;;  %v20592_v44 = vld [vmem:[#allocation17 + $0x1500] sm:$0xff]  }
0x1df0   :  { %v15074_v54 = vpop.f32.mrf.mxu1  ;;  %v15115_v6 = vpop.f32.mrf.mxu0  ;;  %v20593_v61 = vld [vmem:[#allocation17 + $0x1580] sm:$0xff]  }
0x1df1   :  { %v15380_v48 = vpack.c.bf16 %v15364_v4, %v15364_v4  ;;  %v15382_v7 = vpack.c.bf16 %v15366_v5, %v15366_v5  ;;  %v20594_v4 = vld [vmem:[#allocation17 + $0x1678] sm:$0xff]  }
0x1df2   :  { %v20595_v5 = vld [vmem:[#allocation17 + $0x16f8] sm:$0xff]  }
0x1df3   :  { %16460 = vmatprep.mubr.bf16.mxu1 %v15380_v48  ;;  %16500 = vmatprep.mubr.bf16.mxu0 %v15382_v7 }
0x1df4   :  { %16461 = vmatmul.mubr.bf16.vlgmr.msra.gmra.mxu1 %v15379_v12  ;;  %16501 = vmatmul.mubr.bf16.vlgmr.msra.gmra.mxu0 %v15381_v13  ;;  %v20596_v12 = vld [vmem:[#allocation17 + $0x1638] sm:$0xff]  }
0x1df5   :  { %19501 = vmatpush3.bf16.msra.mxu1 %v20564_v11  ;;  %19523 = vmatpush3.bf16.msra.mxu0 %v20565_v1  ;;  %v20597_v13 = vld [vmem:[#allocation17 + $0x16b8] sm:$0xff]  }
0x1df6   :  { %19502 = vmatprep.subr.bf16.mxu1 %v20566_v16  ;;  %19524 = vmatprep.subr.bf16.mxu0 %v20567_v57 }
0x1df9   :  { %19503 = vmatpush3.bf16.msra.mxu1 %v20568_v20  ;;  %19525 = vmatpush3.bf16.msra.mxu0 %v20569_v22  ;;  %v20598_v20 = vld [vmem:[#allocation17 + $0x1670] sm:$0xff]  }
0x1dfa   :  { %19504 = vmatprep.subr.bf16.mxu1 %v20570_v8  ;;  %19526 = vmatprep.subr.bf16.mxu0 %v20571_v51  ;;  %v20599_v22 = vld [vmem:[#allocation17 + $0x16f0] sm:$0xff]  }
0x1dfb   :  { %v20600_v8 = vld [vmem:[#allocation17 + $0x1630] sm:$0xff]  }
0x1dfc   :  { %v20601_v51 = vld [vmem:[#allocation17 + $0x16b0] sm:$0xff]  }
0x1dfd   :  { %19505 = vmatpush3.bf16.msra.mxu1 %v20572_v24  ;;  %19527 = vmatpush3.bf16.msra.mxu0 %v20573_v31  ;;  %v20602_v24 = vld [vmem:[#allocation17 + $0x1668] sm:$0xff]  }
0x1dfe   :  { %19506 = vmatprep.subr.bf16.mxu1 %v20574_v43  ;;  %19528 = vmatprep.subr.bf16.mxu0 %v20575_v25  ;;  %v20603_v31 = vld [vmem:[#allocation17 + $0x16e8] sm:$0xff]  }
0x1dff   :  { %v20604_v43 = vld [vmem:[#allocation17 + $0x1628] sm:$0xff]  }
0x1e00   :  { %v20605_v25 = vld [vmem:[#allocation17 + $0x16a8] sm:$0xff]  }
0x1e01   :  { %19507 = vmatpush3.bf16.msra.mxu1 %v20576_v32  ;;  %19529 = vmatpush3.bf16.msra.mxu0 %v20577_v33  ;;  %v20606_v32 = vld [vmem:[#allocation17 + $0x1660] sm:$0xff]  }
0x1e02   :  { %19508 = vmatprep.subr.bf16.mxu1 %v20578_v53  ;;  %19530 = vmatprep.subr.bf16.mxu0 %v20579_v60  ;;  %v20607_v33 = vld [vmem:[#allocation17 + $0x16e0] sm:$0xff]  }
0x1e03   :  { %v20608_v53 = vld [vmem:[#allocation17 + $0x1620] sm:$0xff]  }
0x1e04   :  { %v20609_v60 = vld [vmem:[#allocation17 + $0x16a0] sm:$0xff]  }
0x1e05   :  { %19509 = vmatpush3.bf16.msra.mxu1 %v20580_v35  ;;  %19531 = vmatpush3.bf16.msra.mxu0 %v20581_v36  ;;  %v20610_v35 = vld [vmem:[#allocation17 + $0x1658] sm:$0xff]  }
0x1e06   :  { %19510 = vmatprep.subr.bf16.mxu1 %v20582_v37  ;;  %19532 = vmatprep.subr.bf16.mxu0 %v20583_v50  ;;  %v20611_v36 = vld [vmem:[#allocation17 + $0x16d8] sm:$0xff]  }
0x1e07   :  { %v20612_v37 = vld [vmem:[#allocation17 + $0x1618] sm:$0xff]  }
0x1e08   :  { %v20613_v50 = vld [vmem:[#allocation17 + $0x1698] sm:$0xff]  }
0x1e09   :  { %19511 = vmatpush3.bf16.msra.mxu1 %v20584_v38  ;;  %19533 = vmatpush3.bf16.msra.mxu0 %v20585_v40  ;;  %v20614_v38 = vld [vmem:[#allocation17 + $0x1650] sm:$0xff]  }
0x1e0a   :  { %v15151_v58 = vpop.f32.mrf.mxu1  ;;  %v15192_v23 = vpop.f32.mrf.mxu0  ;;  %19512 = vmatprep.subr.bf16.mxu1 %v20586_v39  ;;  %19534 = vmatprep.subr.bf16.mxu0 %v20587_v17  ;;  %v20615_v40 = vld [vmem:[#allocation17 + $0x16d0] sm:$0xff]   ;;  %v21661_v39 = vld [vmem:[#allocation16 + $0x58] sm:$0xff] }
0x1e0b   :  { %v15152_v52 = vadd.f32 %v15151_v58, %v14334_v49  ;;  %v15193_v55 = vadd.f32 %v15192_v23, %v14342_v3  ;;  %v20616_v17 = vld [vmem:[#allocation17 + $0x1610] sm:$0xff]   ;;  %v20618_v3 = vld [vmem:[#allocation17 + $0x1648] sm:$0xff]   ;;  %v14362_v58 = vrot.slane %v21661_v39, %v21261_v30 }
0x1e0c   :  { %v15153_v56 = vpop.f32.mrf.mxu1  ;;  %v15194_v34 = vpop.f32.mrf.mxu0  ;;  %v20617_v49 = vld [vmem:[#allocation17 + $0x1690] sm:$0xff]   ;;  %v20620_v23 = vld [vmem:[#allocation17 + $0x1608] sm:$0xff]  }
0x1e0d   :  { %v15154_v21 = vadd.f32 %v15153_v56, %v14338_v45  ;;  %v15195_v9 = vadd.f32 %v15194_v34, %v14346_v59  ;;  %19513 = vmatpush3.bf16.msra.mxu1 %v20588_v46  ;;  %19535 = vmatpush3.bf16.msra.mxu0 %v20589_v28  ;;  %v15367_v62 = vmax.f32 %v15152_v52, 0.0  ;;  %v15369_v47 = vmax.f32 %v15193_v55, 0.0  ;;  %v20619_v45 = vld [vmem:[#allocation17 + $0x16c8] sm:$0xff]   ;;  %v20622_v55 = vld [vmem:[#allocation17 + $0x1640] sm:$0xff]  }
0x1e0e   :  { %v15155_v41 = vpop.f32.mrf.mxu1  ;;  %v15196_v63 = vpop.f32.mrf.mxu0  ;;  %19514 = vmatprep.subr.bf16.mxu1 %v20590_v10  ;;  %19536 = vmatprep.subr.bf16.mxu0 %v20591_v2  ;;  %v14350_v59 = vrot.slane %v21661_v39, %v21250_v26  ;;  %v14358_v46 = vrot.slane %v21661_v39, %v21253_v27  ;;  %v14354_v28 = vrot.slane %v21661_v39, %v21258_v29  ;;  %v20621_v10 = vld [vmem:[#allocation17 + $0x1688] sm:$0xff]   ;;  %v20623_v56 = vld [vmem:[#allocation17 + $0x16c0] sm:$0xff]  }
0x1e0f   :  { %v15368_v54 = vmax.f32 %v15154_v21, 0.0  ;;  %v15370_v6 = vmax.f32 %v15195_v9, 0.0  ;;  %v15383_v16 = vpack.c.bf16 %v15367_v62, %v15367_v62  ;;  %v15385_v57 = vpack.c.bf16 %v15369_v47, %v15369_v47  ;;  %v20624_v29 = vld [vmem:[#allocation17 + $0x1600] sm:$0xff]   ;;  %v20626_v63 = vld [vmem:[#allocation17 + $0x1778] sm:$0xff]  }
0x1e10   :  { %v15156_v48 = vpop.f32.mrf.mxu1  ;;  %v15197_v7 = vpop.f32.mrf.mxu0 }
0x1e11   :  { %v15384_v11 = vpack.c.bf16 %v15368_v54, %v15368_v54  ;;  %v15386_v1 = vpack.c.bf16 %v15370_v6, %v15370_v6  ;;  %19515 = vmatpush3.bf16.msra.mxu1 %v20592_v44  ;;  %19537 = vmatpush3.bf16.msra.mxu0 %v20593_v61  ;;  %v20625_v61 = vld [vmem:[#allocation17 + $0x1680] sm:$0xff]  }
0x1e12   :  { %19544 = vmatprep.subr.bf16.mxu1 %v20594_v4  ;;  %19566 = vmatprep.subr.bf16.mxu0 %v20595_v5  ;;  %v20627_v4 = vld [vmem:[#allocation17 + $0x17f8] sm:$0xff]  }
0x1e13   :  { %16540 = vmatprep.mubr.bf16.mxu1 %v15384_v11  ;;  %16580 = vmatprep.mubr.bf16.mxu0 %v15386_v1  ;;  %v20628_v1 = vld [vmem:[#allocation17 + $0x1738] sm:$0xff]  }
0x1e14   :  { %16541 = vmatmul.mubr.bf16.vlgmr.msra.gmra.mxu1 %v15383_v16  ;;  %16581 = vmatmul.mubr.bf16.vlgmr.msra.gmra.mxu0 %v15385_v57  ;;  %v20630_v57 = vld [vmem:[#allocation17 + $0x1770] sm:$0xff]  }
0x1e15   :  { %19545 = vmatpush3.bf16.msra.mxu1 %v20596_v12  ;;  %19567 = vmatpush3.bf16.msra.mxu0 %v20597_v13  ;;  %v20629_v12 = vld [vmem:[#allocation17 + $0x17b8] sm:$0xff]  }
0x1e16   :  { %19546 = vmatprep.subr.bf16.mxu1 %v20598_v20  ;;  %19568 = vmatprep.subr.bf16.mxu0 %v20599_v22  ;;  %v20631_v20 = vld [vmem:[#allocation17 + $0x17f0] sm:$0xff]  }
0x1e17   :  { %v20632_v22 = vld [vmem:[#allocation17 + $0x1730] sm:$0xff]  }
0x1e19   :  { %19547 = vmatpush3.bf16.msra.mxu1 %v20600_v8  ;;  %19569 = vmatpush3.bf16.msra.mxu0 %v20601_v51  ;;  %v20633_v8 = vld [vmem:[#allocation17 + $0x17b0] sm:$0xff]   ;;  %v20634_v51 = vld [vmem:[#allocation17 + $0x1768] sm:$0xff]  }
0x1e1a   :  { %19548 = vmatprep.subr.bf16.mxu1 %v20602_v24  ;;  %19570 = vmatprep.subr.bf16.mxu0 %v20603_v31  ;;  %v20635_v24 = vld [vmem:[#allocation17 + $0x17e8] sm:$0xff]  }
0x1e1b   :  { %v20636_v31 = vld [vmem:[#allocation17 + $0x1728] sm:$0xff]  }
0x1e1d   :  { %19549 = vmatpush3.bf16.msra.mxu1 %v20604_v43  ;;  %19571 = vmatpush3.bf16.msra.mxu0 %v20605_v25  ;;  %v20637_v43 = vld [vmem:[#allocation17 + $0x17a8] sm:$0xff]   ;;  %v20638_v25 = vld [vmem:[#allocation17 + $0x1760] sm:$0xff]  }
0x1e1e   :  { %19550 = vmatprep.subr.bf16.mxu1 %v20606_v32  ;;  %19572 = vmatprep.subr.bf16.mxu0 %v20607_v33  ;;  %v20639_v32 = vld [vmem:[#allocation17 + $0x17e0] sm:$0xff]  }
0x1e1f   :  { %v20640_v33 = vld [vmem:[#allocation17 + $0x1720] sm:$0xff]  }
0x1e21   :  { %19551 = vmatpush3.bf16.msra.mxu1 %v20608_v53  ;;  %19573 = vmatpush3.bf16.msra.mxu0 %v20609_v60  ;;  %v20641_v53 = vld [vmem:[#allocation17 + $0x17a0] sm:$0xff]   ;;  %v20642_v60 = vld [vmem:[#allocation17 + $0x1758] sm:$0xff]  }
0x1e22   :  { %19552 = vmatprep.subr.bf16.mxu1 %v20610_v35  ;;  %19574 = vmatprep.subr.bf16.mxu0 %v20611_v36  ;;  %v20643_v35 = vld [vmem:[#allocation17 + $0x17d8] sm:$0xff]  }
0x1e23   :  { %v20644_v36 = vld [vmem:[#allocation17 + $0x1718] sm:$0xff]  }
0x1e25   :  { %19553 = vmatpush3.bf16.msra.mxu1 %v20612_v37  ;;  %19575 = vmatpush3.bf16.msra.mxu0 %v20613_v50  ;;  %v20645_v37 = vld [vmem:[#allocation17 + $0x1798] sm:$0xff]   ;;  %v20646_v50 = vld [vmem:[#allocation17 + $0x1750] sm:$0xff]  }
0x1e26   :  { %19554 = vmatprep.subr.bf16.mxu1 %v20614_v38  ;;  %19576 = vmatprep.subr.bf16.mxu0 %v20615_v40  ;;  %v20647_v38 = vld [vmem:[#allocation17 + $0x17d0] sm:$0xff]  }
0x1e27   :  { %v20648_v40 = vld [vmem:[#allocation17 + $0x1710] sm:$0xff]  }
0x1e29   :  { %19555 = vmatpush3.bf16.msra.mxu1 %v20616_v17  ;;  %19577 = vmatpush3.bf16.msra.mxu0 %v20617_v49  ;;  %v20649_v17 = vld [vmem:[#allocation17 + $0x1790] sm:$0xff]   ;;  %v20650_v49 = vld [vmem:[#allocation17 + $0x1748] sm:$0xff]  }
0x1e2a   :  { %v15233_v2 = vpop.f32.mrf.mxu1  ;;  %v15274_v52 = vpop.f32.mrf.mxu0  ;;  %19556 = vmatprep.subr.bf16.mxu1 %v20618_v3  ;;  %19578 = vmatprep.subr.bf16.mxu0 %v20619_v45  ;;  %v20651_v3 = vld [vmem:[#allocation17 + $0x17c8] sm:$0xff]   ;;  %v14366_v45 = vrot.slane %v21661_v39, %v21272_v14 }
0x1e2b   :  { %v15234_v26 = vadd.f32 %v15233_v2, %v14350_v59  ;;  %v15275_v34 = vadd.f32 %v15274_v52, %v14358_v46  ;;  %v14374_v59 = vrot.slane %v21661_v39, %v21275_v15  ;;  %v14370_v46 = vrot.slane %v21661_v39, %v21278_v18  ;;  %v20654_v52 = vld [vmem:[#allocation17 + $0x1740] sm:$0xff]  }
0x1e2c   :  { %v15235_v21 = vpop.f32.mrf.mxu1  ;;  %v15276_v27 = vpop.f32.mrf.mxu0  ;;  %v20656_v18 = vld [vmem:[#allocation17 + $0x1700] sm:$0xff]  }
0x1e2d   :  { %v15236_v9 = vadd.f32 %v15235_v21, %v14354_v28  ;;  %v15277_v44 = vadd.f32 %v15276_v27, %v14362_v58  ;;  %19557 = vmatpush3.bf16.msra.mxu1 %v20620_v23  ;;  %19579 = vmatpush3.bf16.msra.mxu0 %v20621_v10  ;;  %v15371_v62 = vmax.f32 %v15234_v26, 0.0  ;;  %v15373_v30 = vmax.f32 %v15275_v34, 0.0  ;;  %v20652_v58 = vld [vmem:[#allocation17 + $0x1708] sm:$0xff]   ;;  %v20657_v27 = vld [vmem:[#allocation17 + $0x1780] sm:$0xff]  }
0x1e2e   :  { %v15237_v47 = vpop.f32.mrf.mxu1  ;;  %v15278_v41 = vpop.f32.mrf.mxu0  ;;  %19558 = vmatprep.subr.bf16.mxu1 %v20622_v55  ;;  %19580 = vmatprep.subr.bf16.mxu0 %v20623_v56  ;;  %v14378_v28 = vrot.slane %v21661_v39, %v21281_v19  ;;  %v20653_v23 = vld [vmem:[#allocation17 + $0x1788] sm:$0xff]   ;;  %v20655_v55 = vld [vmem:[#allocation17 + $0x17c0] sm:$0xff]  }
0x1e2f   :  { %v15372_v5 = vmax.f32 %v15236_v9, 0.0  ;;  %v15374_v54 = vmax.f32 %v15277_v44, 0.0  ;;  %v15387_v13 = vpack.c.bf16 %v15371_v62, %v15371_v62  ;;  %v15389_v16 = vpack.c.bf16 %v15373_v30, %v15373_v30 }
0x1e30   :  { %v15238_v6 = vpop.f32.mrf.mxu1  ;;  %v15279_v48 = vpop.f32.mrf.mxu0 }
0x1e31   :  { %v15388_v7 = vpack.c.bf16 %v15372_v5, %v15372_v5  ;;  %v15390_v11 = vpack.c.bf16 %v15374_v54, %v15374_v54  ;;  %19559 = vmatpush3.bf16.msra.mxu1 %v20624_v29  ;;  %19581 = vmatpush3.bf16.msra.mxu0 %v20625_v61  ;;  %v18385_v6 = vld [vmem:[#allocation19 + $0x5] ss:$0 sm:$0xff] }
0x1e32   :  { %19588 = vmatprep.subr.bf16.mxu1 %v20626_v63  ;;  %19610 = vmatprep.subr.bf16.mxu0 %v20627_v4 }
0x1e33   :  { %16620 = vmatprep.mubr.bf16.mxu1 %v15388_v7  ;;  %16660 = vmatprep.mubr.bf16.mxu0 %v15390_v11 }
0x1e34   :  { %16621 = vmatmul.mubr.bf16.vlgmr.msra.gmra.mxu1 %v15387_v13  ;;  %16661 = vmatmul.mubr.bf16.vlgmr.msra.gmra.mxu0 %v15389_v16 }
0x1e35   :  { %19589 = vmatpush3.bf16.msra.mxu1 %v20628_v1  ;;  %19611 = vmatpush3.bf16.msra.mxu0 %v20629_v12 }
0x1e36   :  { %19590 = vmatprep.subr.bf16.mxu1 %v20630_v57  ;;  %19612 = vmatprep.subr.bf16.mxu0 %v20631_v20 }
0x1e39   :  { %19591 = vmatpush3.bf16.msra.mxu1 %v20632_v22  ;;  %19613 = vmatpush3.bf16.msra.mxu0 %v20633_v8 }
0x1e3a   :  { %19592 = vmatprep.subr.bf16.mxu1 %v20634_v51  ;;  %19614 = vmatprep.subr.bf16.mxu0 %v20635_v24 }
0x1e3d   :  { %19593 = vmatpush3.bf16.msra.mxu1 %v20636_v31  ;;  %19615 = vmatpush3.bf16.msra.mxu0 %v20637_v43 }
0x1e3e   :  { %19594 = vmatprep.subr.bf16.mxu1 %v20638_v25  ;;  %19616 = vmatprep.subr.bf16.mxu0 %v20639_v32 }
0x1e41   :  { %19595 = vmatpush3.bf16.msra.mxu1 %v20640_v33  ;;  %19617 = vmatpush3.bf16.msra.mxu0 %v20641_v53 }
0x1e42   :  { %19596 = vmatprep.subr.bf16.mxu1 %v20642_v60  ;;  %19618 = vmatprep.subr.bf16.mxu0 %v20643_v35 }
0x1e45   :  { %19597 = vmatpush3.bf16.msra.mxu1 %v20644_v36  ;;  %19619 = vmatpush3.bf16.msra.mxu0 %v20645_v37 }
0x1e46   :  { %19598 = vmatprep.subr.bf16.mxu1 %v20646_v50  ;;  %19620 = vmatprep.subr.bf16.mxu0 %v20647_v38 }
0x1e49   :  { %19599 = vmatpush3.bf16.msra.mxu1 %v20648_v40  ;;  %19621 = vmatpush3.bf16.msra.mxu0 %v20649_v17 }
0x1e4a   :  { %v15315_v10 = vpop.f32.mrf.mxu1  ;;  %v15356_v2 = vpop.f32.mrf.mxu0  ;;  %19600 = vmatprep.subr.bf16.mxu1 %v20650_v49  ;;  %19622 = vmatprep.subr.bf16.mxu0 %v20651_v3 }
0x1e4b   :  { %v15316_v14 = vadd.f32 %v15315_v10, %v14366_v45  ;;  %v15357_v56 = vadd.f32 %v15356_v2, %v14374_v59 }
0x1e4c   :  { %v15317_v26 = vpop.f32.mrf.mxu1  ;;  %v15358_v15 = vpop.f32.mrf.mxu0 }
0x1e4d   :  { %v15318_v34 = vadd.f32 %v15317_v26, %v14370_v46  ;;  %v15359_v21 = vadd.f32 %v15358_v15, %v14378_v28  ;;  %19601 = vmatpush3.bf16.msra.mxu1 %v20652_v58  ;;  %19623 = vmatpush3.bf16.msra.mxu0 %v20653_v23  ;;  %v15375_v9 = vmax.f32 %v15316_v14, 0.0  ;;  %v15377_v19 = vmax.f32 %v15357_v56, 0.0 }
0x1e4e   :  { %v15319_v39 = vpop.f32.mrf.mxu1  ;;  %v15360_v44 = vpop.f32.mrf.mxu0  ;;  %19602 = vmatprep.subr.bf16.mxu1 %v20654_v52  ;;  %19624 = vmatprep.subr.bf16.mxu0 %v20655_v55 }
0x1e4f   :  { %v15376_v29 = vmax.f32 %v15318_v34, 0.0  ;;  %v15378_v61 = vmax.f32 %v15359_v21, 0.0  ;;  %v15391_v63 = vpack.c.bf16 %v15375_v9, %v15375_v9  ;;  %v15393_v4 = vpack.c.bf16 %v15377_v19, %v15377_v19  ;;  %v16793_v9 = vld [vmem:[#allocation23 + $0x78] sm:$0xff]  ;;  %v16792_v19 = vld [vmem:[#allocation23 + $0x70] sm:$0xff]  ;;  %v16791_v39 = vld [vmem:[#allocation23 + $0x68] sm:$0xff] }
0x1e50   :  { %v15320_v62 = vpop.f32.mrf.mxu1  ;;  %v15361_v30 = vpop.f32.mrf.mxu0  ;;  %v16790_v44 = vld [vmem:[#allocation23 + $0x60] sm:$0xff] }
0x1e51   :  { %v15392_v47 = vpack.c.bf16 %v15376_v29, %v15376_v29  ;;  %v15394_v41 = vpack.c.bf16 %v15378_v61, %v15378_v61  ;;  %19603 = vmatpush3.bf16.msra.mxu1 %v20656_v18  ;;  %19625 = vmatpush3.bf16.msra.mxu0 %v20657_v27  ;;  %v16789_v30 = vld [vmem:[#allocation23 + $0x58] sm:$0xff] }
0x1e52   :  { %19780 = vmatprep.subr.mxu1 %v21043_v0 }
0x1e53   :  { %16700 = vmatprep.mubr.bf16.mxu1 %v15392_v47  ;;  %16740 = vmatprep.mubr.bf16.mxu0 %v15394_v41  ;;  %v16788_v47 = vld [vmem:[#allocation23 + $0x50] sm:$0xff]  ;;  %v16787_v41 = vld [vmem:[#allocation23 + $0x48] sm:$0xff] }
0x1e54   :  { %16701 = vmatmul.mubr.bf16.vlgmr.msra.gmra.mxu1 %v15391_v63  ;;  %16741 = vmatmul.mubr.bf16.vlgmr.msra.gmra.mxu0 %v15393_v4  ;;  %v16786_v63 = vld [vmem:[#allocation23 + $0x40] sm:$0xff]  ;;  %v16785_v4 = vld [vmem:[#allocation23 + $0x38] sm:$0xff] }
0x1e55   :  { %19812 = vmatprep.mubr.msk.f32.mxu1 %vm21044_vm0, %v21043_v0  ;;  %19781 = vmatpush3.msra.mxu1 %v16793_v9 }
0x1e56   :  { %19782 = vmatprep.subr.mxu1 %v21043_v0 }
0x1e57   :  { %19783 = vmatpush3.msra.mxu1 %v16792_v19 }
0x1e58   :  { %19784 = vmatprep.subr.mxu1 %v21043_v0 }
0x1e59   :  { %19785 = vmatpush3.msra.mxu1 %v16791_v39 }
0x1e5a   :  { %19786 = vmatprep.subr.mxu1 %v21043_v0 }
0x1e5b   :  { %19787 = vmatpush3.msra.mxu1 %v16790_v44 }
0x1e5c   :  { %19788 = vmatprep.subr.mxu1 %v21043_v0 }
0x1e5d   :  { %19789 = vmatpush3.msra.mxu1 %v16789_v30 }
0x1e5e   :  { %19790 = vmatprep.subr.mxu1 %v21043_v0 }
0x1e5f   :  { %19791 = vmatpush3.msra.mxu1 %v16788_v47 }
0x1e60   :  { %19792 = vmatprep.subr.mxu1 %v21043_v0 }
0x1e61   :  { %19793 = vmatpush3.msra.mxu1 %v16787_v41 }
0x1e62   :  { %19794 = vmatprep.subr.mxu1 %v21043_v0 }
0x1e63   :  { %19795 = vmatpush3.msra.mxu1 %v16786_v63 }
0x1e64   :  { %19796 = vmatprep.subr.mxu1 %v21043_v0 }
0x1e65   :  { %19797 = vmatpush3.msra.mxu1 %v16785_v4 }
0x1e66   :  { %19798 = vmatprep.subr.mxu1 %v21043_v0 }
0x1eb4   :  { %v19472_v5 = vpop.f32.mrf.mxu1  ;;  %v19494_v54 = vpop.f32.mrf.mxu0 }
0x1eb6   :  { %v19473_v48 = vpop.f32.mrf.mxu1  ;;  %v19495_v7 = vpop.f32.mrf.mxu0 }
0x1eb7   :  { %v19474_v11 = vadd.f32 %v19473_v48, %v19472_v5  ;;  %v19496_v1 = vadd.f32 %v19495_v7, %v19494_v54  ;;  %v16784_v5 = vld [vmem:[#allocation23 + $0x30] sm:$0xff]  ;;  %v16783_v54 = vld [vmem:[#allocation23 + $0x28] sm:$0xff]  ;;  %v16781_v48 = vld [vmem:[#allocation23 + $0x18] sm:$0xff] }
0x1eb8   :  { %v19475_v12 = vpop.f32.mrf.mxu1  ;;  %v19497_v13 = vpop.f32.mrf.mxu0  ;;  %19799 = vmatpush3.msra.mxu1 %v16784_v5  ;;  %v16780_v7 = vld [vmem:[#allocation23 + $0x10] sm:$0xff] }
0x1eb9   :  { %v16463_v16 = vadd.f32 %v19474_v11, %v18385_v6  ;;  %19800 = vmatprep.subr.mxu1 %v21043_v0  ;;  %v16782_v6 = vld [vmem:[#allocation23 + $0x20] sm:$0xff]  ;;  %v16779_v11 = vld [vmem:[#allocation23 + $0x8] sm:$0xff] }
0x1eba   :  { %v19476_v57 = vpop.f32.mrf.mxu1  ;;  %v19498_v20 = vpop.f32.mrf.mxu0  ;;  %19801 = vmatpush3.msra.mxu1 %v16783_v54 }
0x1ebb   :  { %v16503_v22 = vadd.f32 %v19496_v1, %v16463_v16  ;;  %19802 = vmatprep.subr.mxu1 %v21043_v0  ;;  %v16778_v1 = vld [vmem:[#allocation23] sm:$0xff]  ;;  %v18514_v20 = vld [vmem:[#allocation20 + $0x5] ss:$0 sm:$0xff] }
0x1ebc   :  { %19803 = vmatpush3.msra.mxu1 %v16782_v6 }
0x1ebd   :  { %19804 = vmatprep.subr.mxu1 %v21043_v0 }
0x1ebe   :  { %19805 = vmatpush3.msra.mxu1 %v16781_v48 }
0x1ebf   :  { %19806 = vmatprep.subr.mxu1 %v21043_v0 }
0x1ec0   :  { %19807 = vmatpush3.msra.mxu1 %v16780_v7 }
0x1ec1   :  { %19808 = vmatprep.subr.mxu1 %v21043_v0 }
0x1ec2   :  { %19809 = vmatpush3.msra.mxu1 %v16779_v11 }
0x1ec3   :  { %19810 = vmatprep.subr.mxu1 %v21043_v0 }
0x1ec4   :  { %19811 = vmatpush3.msra.mxu1 %v16778_v1 }
0x1ed4   :  { %v19516_v8 = vpop.f32.mrf.mxu1  ;;  %v19538_v51 = vpop.f32.mrf.mxu0 }
0x1ed6   :  { %v19517_v24 = vpop.f32.mrf.mxu1  ;;  %v19539_v31 = vpop.f32.mrf.mxu0 }
0x1ed7   :  { %v19518_v17 = vadd.f32 %v19517_v24, %v19516_v8  ;;  %v19540_v3 = vadd.f32 %v19539_v31, %v19538_v51  ;;  %v18515_v8 = vld [vmem:[#allocation22 + $0x5] ss:$0 sm:$0xff]  ;;  %v18516_v31 = vld [vmem:[#allocation25] ss:$0 sm:$0xff] }
0x1ed8   :  { %v19519_v43 = vpop.f32.mrf.mxu1  ;;  %v19541_v25 = vpop.f32.mrf.mxu0 }
0x1ed9   :  { %v16543_v49 = vadd.f32 %v19518_v17, %v16503_v22 }
0x1eda   :  { %v19520_v32 = vpop.f32.mrf.mxu1  ;;  %v19542_v33 = vpop.f32.mrf.mxu0 }
0x1edb   :  { %v16583_v59 = vadd.f32 %v19540_v3, %v16543_v49 }
0x1ef4   :  { %v19560_v53 = vpop.f32.mrf.mxu1  ;;  %v19582_v60 = vpop.f32.mrf.mxu0 }
0x1ef6   :  { %v19561_v35 = vpop.f32.mrf.mxu1  ;;  %v19583_v36 = vpop.f32.mrf.mxu0 }
0x1ef7   :  { %v19562_v45 = vadd.f32 %v19561_v35, %v19560_v53  ;;  %v19584_v23 = vadd.f32 %v19583_v36, %v19582_v60 }
0x1ef8   :  { %v19563_v37 = vpop.f32.mrf.mxu1  ;;  %v19585_v50 = vpop.f32.mrf.mxu0 }
0x1ef9   :  { %v16623_v46 = vadd.f32 %v19562_v45, %v16583_v59 }
0x1efa   :  { %v19564_v38 = vpop.f32.mrf.mxu1  ;;  %v19586_v40 = vpop.f32.mrf.mxu0 }
0x1efb   :  { %v16663_v52 = vadd.f32 %v19584_v23, %v16623_v46 }
0x1f14   :  { %v19604_v28 = vpop.f32.mrf.mxu1  ;;  %v19626_v58 = vpop.f32.mrf.mxu0 }
0x1f16   :  { %v19605_v10 = vpop.f32.mrf.mxu1  ;;  %v19627_v2 = vpop.f32.mrf.mxu0 }
0x1f17   :  { %v19606_v55 = vadd.f32 %v19605_v10, %v19604_v28  ;;  %v19628_v15 = vadd.f32 %v19627_v2, %v19626_v58 }
0x1f18   :  { %v19607_v14 = vpop.f32.mrf.mxu1  ;;  %v19629_v56 = vpop.f32.mrf.mxu0 }
0x1f19   :  { %v16703_v26 = vadd.f32 %v19606_v55, %v16663_v52 }
0x1f1a   :  { %v19608_v34 = vpop.f32.mrf.mxu1  ;;  %v19630_v21 = vpop.f32.mrf.mxu0 }
0x1f1b   :  { %v16743_v18 = vadd.f32 %v19628_v15, %v16703_v26 }
0x1f1d   :  { %v16748_v27 = vadd.f32 %v16743_v18, %v21623_v42 }
0x1f1f   :  { %16753 = vadd.xlane.f32.xlu0 %v16748_v27 }
0x1fa8   :  { %v16754_v29 = vpop.xlane.xlu0 %16753 }
0x1fa9   :  { %v16755_v61 = vmul.f32 0.0078125, %v16754_v29 }
0x1fab   :  { %v16756_v42 = vsub.f32 %v16748_v27, %v16755_v61 }
0x1fad   :  { %v16757_v62 = vmul.f32 %v16756_v42, %v16756_v42 }
0x1faf   :  { %16758 = vadd.xlane.f32.xlu1 %v16757_v62 }
0x2038   :  { %v16759_v12 = vpop.xlane.xlu1 %16758 }
0x2039   :  { %v16760_v13 = vmul.f32 0.0078125, %v16759_v12 }
0x203b   :  { %v16761_v16 = vadd.f32 1e-05, %v16760_v13 }
0x203d   :  { %20680 = vrsqrt.f32 %v16761_v16 }
0x204a   :  { %v20681_v57 = vpop.eup %20680 }
0x204b   :  { %v16763_v22 = vmul.f32 %v20681_v57, %v16756_v42 }
0x204d   :  { %v16770_v51 = vmul.f32 %v18514_v20, %v16763_v22 }
0x204f   :  { %v16777_v24 = vadd.f32 %v18515_v8, %v16770_v51 }
0x2051   :  { %19813 = vmatmul.mubr.f32.vlgmr.msra.gmra.mxu1 %v16777_v24 }
0x2111   :  { %v16867_v43 = vpop.f32.mrf.mxu1 }
0x2112   :  { %v16868_v25 = vadd.f32 %v18516_v31, %v16867_v43 }
0x2113   :  { %v19814_v32 = vpop.f32.mrf.mxu1 }
0x2114   :  { %16871 = vst [vmem:[#allocation26] sm:$0xff] %v16868_v25 }
0x2115   :  { %20993 = shalt.err (!%p20990_p9)
}
0x2116   :  { %16881 = dma.vmem_to_hbm [thread:$0]  %s16879_s14, 128, %s21716_s15, [#allocation4]  }
0x2117   :  { %21018 = dma.done.wait [#allocation4], 128  }
0x2118   :  { %21019 = vsyncadd [#allocation4], 4294967168 }
0x2119   :  { %16885 = vsyncpa [#allocation3], 1 }
0x211a   :  { %16886 = vsyncpa [#allocation6], 1 }
0x211b   :  { %16887 = vsyncpa [#allocation9], 1 }
0x211c   :  { %16888 = vsyncpa [#allocation12], 1 }
0x211d   :  { %16889 = vsyncpa [#allocation15], 1 }
0x211e   :  { %16890 = vsyncpa [#allocation18], 1 }
0x211f   :  { %16891 = vsyncpa [#allocation21], 1 }
0x2120   :  { %16892 = vsyncpa [#allocation24], 1 }
0x2121   :  { %16893 = vsyncpa [#allocation4], 1 }

</bundles_post_ra>
